<compile_context>
chip_gen: v6e
topology: v6e:2x2x1
jax: 0.10.0
libtpu: 0.0.40
codegen_flags: <defaults>
</compile_context>

<pallas_src>
import numpy as np

import jax
import jax.numpy as jnp
from jax.experimental import pallas as pl
from jax.experimental.pallas import tpu as pltpu

_TB = 128                    # batch rows per grid step (sweep 64..256, mult of 8)
_MXU_DTYPE = jnp.bfloat16    # conv matmul operand dtype (accumulation is f32)


# ------------------------- host-side packing (static index tables) -----------

def _conv1_pack_indices():
    # Conv1 Toeplitz: K = (local input row r in 0..9) * 28 + (input col w),
    # N lane = hp*768 + wp*384 + phl*128 + ow'*10 + c   (N = 1536).
    hp, wp, phl, ow, c, ki, kj = np.indices((2, 2, 3, 12, 10, 5, 5))
    r = 2 * phl + hp + ki
    w = 2 * ow + wp + kj
    rows = (r * 28 + w).reshape(-1).astype(np.int32)
    lanes = (hp * 768 + wp * 384 + phl * 128 + ow * 10 + c).reshape(-1).astype(np.int32)
    return rows, lanes, c.reshape(-1), ki.reshape(-1), kj.reshape(-1)


def _conv2_pack_indices():
    # Conv2 Toeplitz: K = (local pooled-h1 row rl in 0..7)*128 + ow1'*10 + cc,
    # N lane = hp2*512 + wp2*256 + ph2l*128 + ow2'*20 + o   (N = 1024).
    hp, wp, ph, ow2, o, cc, ki, kj = np.indices((2, 2, 2, 4, 20, 10, 5, 5))
    rl = 2 * ph + hp + ki
    ow1 = 2 * ow2 + wp + kj
    rows = (rl * 128 + ow1 * 10 + cc).reshape(-1).astype(np.int32)
    cols = (hp * 512 + wp * 256 + ph * 128 + ow2 * 20 + o).reshape(-1).astype(np.int32)
    return rows, cols, o.reshape(-1), cc.reshape(-1), ki.reshape(-1), kj.reshape(-1)


def _fc1_pack_indices():
    # fc1 with the PyTorch NCHW flatten folded in.
    # K row = oh2'*128 + ow2'*20 + o ; source col = o*16 + oh2'*4 + ow2'.
    oh, ow, o, n = np.indices((4, 4, 20, 50))
    rows = (oh * 128 + ow * 20 + o).reshape(-1).astype(np.int32)
    cols = n.reshape(-1).astype(np.int32)
    src = (o * 16 + oh * 4 + ow).reshape(-1).astype(np.int32)
    return rows, cols, src, n.reshape(-1).astype(np.int32)


_C1_IDX = _conv1_pack_indices()
_C2_IDX = _conv2_pack_indices()
_C3_IDX = _fc1_pack_indices()


def _prepare_operands(params):
    w1, b1 = params["conv1_w"], params["conv1_b"]      # (10,1,5,5), (10,)
    w2, b2 = params["conv2_w"], params["conv2_b"]      # (20,10,5,5), (20,)
    fw1, fb1 = params["fc1_w"], params["fc1_b"]        # (50,320), (50,)
    fw2, fb2 = params["fc2_w"], params["fc2_b"]        # (10,50), (10,)

    r1, l1, c1, ki1, kj1 = _C1_IDX
    W1 = jnp.zeros((280, 1536), jnp.float32).at[r1, l1].set(w1[c1, 0, ki1, kj1])

    r2, l2, o2, c2, ki2, kj2 = _C2_IDX
    W2 = jnp.zeros((1024, 1024), jnp.float32).at[r2, l2].set(w2[o2, c2, ki2, kj2])

    r3, l3, s3, n3 = _C3_IDX
    W3 = jnp.zeros((512, 128), jnp.float32).at[r3, l3].set(fw1[n3, s3])

    W4 = jnp.zeros((128, 128), jnp.float32).at[:50, :10].set(fw2.T)

    # Per-lane biases (pad lanes stay 0 so junk lanes are exactly 0 post-relu).
    b1_128 = jnp.zeros((128,), jnp.float32).at[:120].set(jnp.tile(b1, 12))
    b2_128 = jnp.zeros((128,), jnp.float32).at[:80].set(jnp.tile(b2, 4))

    return dict(
        w1=W1.astype(_MXU_DTYPE),
        b1=jnp.tile(b1_128, 3).reshape(1, 384),
        w2=W2.astype(_MXU_DTYPE),
        b2=jnp.tile(b2_128, 2).reshape(1, 256),
        w3=W3,                                            # f32: tiny, accuracy
        b3=jnp.zeros((1, 128), jnp.float32).at[0, :50].set(fb1),
        w4=W4,                                            # f32: tiny, accuracy
        b4=jnp.zeros((1, 128), jnp.float32).at[0, :10].set(fb2),
    )


# --------------------------------- kernel ------------------------------------

def _mnist_fused_kernel(x1_ref, w1_ref, b1_ref, w2_ref, b2_ref,
                        w3_ref, b3_ref, w4_ref, b4_ref, o_ref):
    f32 = jnp.float32

    # conv1 + 2x2 max-pool + bias + relu.  4 height groups, each one dot
    # (TB, 280) x (280, 1536); lanes = (hp, wp, pooled-h-local, pooled-w, ch),
    # so the pool is two 128-aligned lane-slice maxes.
    h1_parts = []
    for g in range(4):
        y = jnp.dot(x1_ref[g], w1_ref[...], preferred_element_type=f32)  # (TB,1536)
        t = jnp.maximum(y[:, :768], y[:, 768:])        # max over height parity
        t = jnp.maximum(t[:, :384], t[:, 384:])        # max over width parity
        h1_parts.append(jnp.maximum(t + b1_ref[...], 0.0).astype(_MXU_DTYPE))
    h1 = jnp.concatenate(h1_parts, axis=1)             # (TB, 1536) bf16
    # h1 lane = pooled_h*128 + pooled_w*10 + c  (lanes 120..127 of each block 0)

    # conv2 + 2x2 max-pool + bias + relu.  2 height groups, each one dot
    # (TB, 1024) x (1024, 1024); group g2 reads pooled-h1 rows 4g2..4g2+7 as a
    # 512-aligned lane slice of h1.
    h2_parts = []
    for g2 in range(2):
        lhs = h1[:, 512 * g2:512 * g2 + 1024]
        y = jnp.dot(lhs, w2_ref[...], preferred_element_type=f32)        # (TB,1024)
        t = jnp.maximum(y[:, :512], y[:, 512:])        # max over height parity
        t = jnp.maximum(t[:, :256], t[:, 256:])        # max over width parity
        h2_parts.append(jnp.maximum(t + b2_ref[...], 0.0))
    h2 = jnp.concatenate(h2_parts, axis=1)             # (TB, 512) f32
    # h2 lane = pooled_h2*128 + pooled_w2*20 + o  (PyTorch flatten folded in w3)

    # fc1 + relu (single dot, flatten permutation is in the packed weight).
    a3 = jnp.dot(h2, w3_ref[...], preferred_element_type=f32) + b3_ref[...]
    a3 = jnp.maximum(a3, 0.0)                          # (TB, 128), lanes>=50 are 0

    # fc2 + log_softmax over exactly the 10 real class lanes.
    logits = jnp.dot(a3, w4_ref[...], preferred_element_type=f32) + b4_ref[...]
    lane = jax.lax.broadcasted_iota(jnp.int32, logits.shape, 1)
    valid = lane < 10
    lm = jnp.where(valid, logits, -jnp.inf)
    mx = jnp.max(lm, axis=1, keepdims=True)
    s = lm - mx
    lse = jnp.log(jnp.sum(jnp.exp(s), axis=1, keepdims=True))
    o_ref[...] = jnp.where(valid, s - lse, 0.0).astype(o_ref.dtype)


# ------------------------------- wrapper --------------------------------------

def mnistnet_forward(params, x):
    # x: (B, 1, 28, 28) float32 (PyTorch NCHW).
    B = x.shape[0]
    xs = x.reshape(B, 28, 28).astype(jnp.float32)

    tb = _TB if B >= _TB else ((B + 7) // 8) * 8
    b_pad = ((B + tb - 1) // tb) * tb
    if b_pad != B:
        xs = jnp.pad(xs, ((0, b_pad - B), (0, 0), (0, 0)))

    # conv1 LHS groups: group g = input rows 6g..6g+9 flattened to 280 lanes.
    # Repacked + cast to bf16 once, outside the kernel (2240 B/image HBM read).
    x1 = jnp.stack(
        [xs[:, 6 * g:6 * g + 10, :].reshape(b_pad, 280) for g in range(4)],
        axis=0).astype(_MXU_DTYPE)                      # (4, b_pad, 280)

    p = _prepare_operands(params)
    full2 = lambda i: (0, 0)

    out = pl.pallas_call(
        _mnist_fused_kernel,
        out_shape=jax.ShapeDtypeStruct((b_pad, 128), jnp.float32),
        grid=(b_pad // tb,),
        in_specs=[
            pl.BlockSpec((4, tb, 280), lambda i: (0, i, 0)),   # x1 (batch tiled)
            pl.BlockSpec((280, 1536), full2),                  # W1 (resident)
            pl.BlockSpec((1, 384), full2),                     # b1
            pl.BlockSpec((1024, 1024), full2),                 # W2 (resident)
            pl.BlockSpec((1, 256), full2),                     # b2
            pl.BlockSpec((512, 128), full2),                   # W3 (resident)
            pl.BlockSpec((1, 128), full2),                     # b3
            pl.BlockSpec((128, 128), full2),                   # W4 (resident)
            pl.BlockSpec((1, 128), full2),                     # b4
        ],
        out_specs=pl.BlockSpec((tb, 128), lambda i: (i, 0)),   # lane-dense out
        compiler_params=pltpu.CompilerParams(
            dimension_semantics=("parallel",),
            vmem_limit_bytes=48 * 1024 * 1024),
    )(x1, p["w1"], p["b1"], p["w2"], p["b2"],
      p["w3"], p["b3"], p["w4"], p["b4"])

    return out[:B, :10]


# ------------------------- reference & self-test ------------------------------

def init_params(key):
    ks = jax.random.split(key, 8)

    def u(k, shape, fan_in):
        bound = 1.0 / float(fan_in) ** 0.5
        return jax.random.uniform(k, shape, jnp.float32, -bound, bound)

    return dict(
        conv1_w=u(ks[0], (10, 1, 5, 5), 25),
        conv1_b=u(ks[1], (10,), 25),
        conv2_w=u(ks[2], (20, 10, 5, 5), 250),
        conv2_b=u(ks[3], (20,), 250),
        fc1_w=u(ks[4], (50, 320), 320),
        fc1_b=u(ks[5], (50,), 320),
        fc2_w=u(ks[6], (10, 50), 50),
        fc2_b=u(ks[7], (10,), 50),
    )


def mnistnet_reference(params, x):
    def conv2d(x, w, b):
        y = jax.lax.conv_general_dilated(
            x, w, (1, 1), "VALID",
            dimension_numbers=("NCHW", "OIHW", "NCHW"),
            precision=jax.lax.Precision.HIGHEST)
        return y + b.reshape(1, -1, 1, 1)

    def pool(y):
        return jax.lax.reduce_window(y, -jnp.inf, jax.lax.max,
                                     (1, 1, 2, 2), (1, 1, 2, 2), "VALID")

    y = jnp.maximum(pool(conv2d(x, params["conv1_w"], params["conv1_b"])), 0.0)
    y = jnp.maximum(pool(conv2d(y, params["conv2_w"], params["conv2_b"])), 0.0)
    y = y.reshape(y.shape[0], 320)
    y = jnp.maximum(
        jnp.dot(y, params["fc1_w"].T, precision=jax.lax.Precision.HIGHEST)
        + params["fc1_b"], 0.0)
    y = (jnp.dot(y, params["fc2_w"].T, precision=jax.lax.Precision.HIGHEST)
         + params["fc2_b"])
    return jax.nn.log_softmax(y, axis=1)


if __name__ == "__main__":
    key = jax.random.PRNGKey(0)
    pkey, xkey = jax.random.split(key)
    params = init_params(pkey)
    x = jax.random.normal(xkey, (2, 1, 28, 28), jnp.float32)

    out = jax.jit(mnistnet_forward)(params, x)
    out = jax.block_until_ready(out)

    ref = mnistnet_reference(params, x)
    assert out.shape == (2, 10)
    # log_softmax rows must logsumexp to 0 (exact 10-lane reduction check).
    assert bool(jnp.all(jnp.abs(jax.scipy.special.logsumexp(out, axis=1)) < 1e-3))
    # bf16 conv operands vs HIGHEST-precision f32 reference: 2e-2 tolerance.
    assert bool(jnp.allclose(out, ref, atol=2e-2, rtol=2e-2))

    print("KERNEL_OK")
</pallas_src>

<mosaic_0001>
module attributes {stable_mosaic.version = 11 : i64} {
  func.func @_mnist_fused_kernel(%arg0: i32, %arg1: memref<4x8x280xbf16, #tpu.memory_space<vmem>>, %arg2: memref<280x1536xbf16, #tpu.memory_space<vmem>>, %arg3: memref<1x384xf32, #tpu.memory_space<vmem>>, %arg4: memref<1024x1024xbf16, #tpu.memory_space<vmem>>, %arg5: memref<1x256xf32, #tpu.memory_space<vmem>>, %arg6: memref<512x128xf32, #tpu.memory_space<vmem>>, %arg7: memref<1x128xf32, #tpu.memory_space<vmem>>, %arg8: memref<128x128xf32, #tpu.memory_space<vmem>>, %arg9: memref<1x128xf32, #tpu.memory_space<vmem>>, %arg10: memref<8x128xf32, #tpu.memory_space<vmem>>) attributes {dimension_semantics = [#tpu.dimension_semantics<parallel>], iteration_bounds = array<i64: 1>, scalar_prefetch = 0 : i64, scratch_operands = 0 : i64, tpu.core_type = #tpu.core_type<tc>, window_params = [{transform_indices = @transform_0, window_bounds = array<i64: 4, 8, 280>}, {pipeline_mode = #tpu.pipeline_mode<synchronous>, transform_indices = @transform_1, window_bounds = array<i64: 280, 1536>}, {pipeline_mode = #tpu.pipeline_mode<synchronous>, transform_indices = @transform_2, window_bounds = array<i64: 1, 384>}, {pipeline_mode = #tpu.pipeline_mode<synchronous>, transform_indices = @transform_3, window_bounds = array<i64: 1024, 1024>}, {pipeline_mode = #tpu.pipeline_mode<synchronous>, transform_indices = @transform_4, window_bounds = array<i64: 1, 256>}, {pipeline_mode = #tpu.pipeline_mode<synchronous>, transform_indices = @transform_5, window_bounds = array<i64: 512, 128>}, {pipeline_mode = #tpu.pipeline_mode<synchronous>, transform_indices = @transform_6, window_bounds = array<i64: 1, 128>}, {pipeline_mode = #tpu.pipeline_mode<synchronous>, transform_indices = @transform_7, window_bounds = array<i64: 128, 128>}, {pipeline_mode = #tpu.pipeline_mode<synchronous>, transform_indices = @transform_8, window_bounds = array<i64: 1, 128>}, {transform_indices = @transform_9, window_bounds = array<i64: 8, 128>}]} {
    %c0 = arith.constant 0 : index
    %c0_0 = arith.constant 0 : index
    %c0_1 = arith.constant 0 : index
    %0 = vector.load %arg1[%c0, %c0_0, %c0_1] : memref<4x8x280xbf16, #tpu.memory_space<vmem>>, vector<1x8x280xbf16>
    %1 = vector.shape_cast %0 : vector<1x8x280xbf16> to vector<8x280xbf16>
    %c0_2 = arith.constant 0 : index
    %c0_3 = arith.constant 0 : index
    %2 = vector.load %arg2[%c0_2, %c0_3] : memref<280x1536xbf16, #tpu.memory_space<vmem>>, vector<280x1536xbf16>
    %cst = arith.constant dense<0.000000e+00> : vector<8x1536xf32>
    %3 = tpu.matmul %1, %2, %cst {dimension_numbers = #tpu.dot_dimension_numbers<[1], [0], [0], [1], [0, 0, 1, 1], [], []>} : vector<8x280xbf16>, vector<280x1536xbf16>, vector<8x1536xf32> -> vector<8x1536xf32>
    %4 = vector.extract_strided_slice %3 {offsets = [0, 0], sizes = [8, 768], strides = [1, 1]} : vector<8x1536xf32> to vector<8x768xf32>
    %5 = vector.extract_strided_slice %3 {offsets = [0, 768], sizes = [8, 768], strides = [1, 1]} : vector<8x1536xf32> to vector<8x768xf32>
    %6 = arith.maximumf %4, %5 : vector<8x768xf32>
    %7 = vector.extract_strided_slice %6 {offsets = [0, 0], sizes = [8, 384], strides = [1, 1]} : vector<8x768xf32> to vector<8x384xf32>
    %8 = vector.extract_strided_slice %6 {offsets = [0, 384], sizes = [8, 384], strides = [1, 1]} : vector<8x768xf32> to vector<8x384xf32>
    %9 = arith.maximumf %7, %8 : vector<8x384xf32>
    %c0_4 = arith.constant 0 : index
    %c0_5 = arith.constant 0 : index
    %10 = vector.load %arg3[%c0_4, %c0_5] : memref<1x384xf32, #tpu.memory_space<vmem>>, vector<1x384xf32>
    %11 = vector.broadcast %10 : vector<1x384xf32> to vector<8x384xf32>
    %12 = arith.addf %9, %11 : vector<8x384xf32>
    %cst_6 = arith.constant 0.000000e+00 : f32
    %13 = vector.broadcast %cst_6 : f32 to vector<8x384xf32>
    %14 = arith.maximumf %12, %13 : vector<8x384xf32>
    %15 = arith.truncf %14 : vector<8x384xf32> to vector<8x384xbf16>
    %c1 = arith.constant 1 : index
    %c0_7 = arith.constant 0 : index
    %c0_8 = arith.constant 0 : index
    %16 = vector.load %arg1[%c1, %c0_7, %c0_8] : memref<4x8x280xbf16, #tpu.memory_space<vmem>>, vector<1x8x280xbf16>
    %17 = vector.shape_cast %16 : vector<1x8x280xbf16> to vector<8x280xbf16>
    %c0_9 = arith.constant 0 : index
    %c0_10 = arith.constant 0 : index
    %18 = vector.load %arg2[%c0_9, %c0_10] : memref<280x1536xbf16, #tpu.memory_space<vmem>>, vector<280x1536xbf16>
    %cst_11 = arith.constant dense<0.000000e+00> : vector<8x1536xf32>
    %19 = tpu.matmul %17, %18, %cst_11 {dimension_numbers = #tpu.dot_dimension_numbers<[1], [0], [0], [1], [0, 0, 1, 1], [], []>} : vector<8x280xbf16>, vector<280x1536xbf16>, vector<8x1536xf32> -> vector<8x1536xf32>
    %20 = vector.extract_strided_slice %19 {offsets = [0, 0], sizes = [8, 768], strides = [1, 1]} : vector<8x1536xf32> to vector<8x768xf32>
    %21 = vector.extract_strided_slice %19 {offsets = [0, 768], sizes = [8, 768], strides = [1, 1]} : vector<8x1536xf32> to vector<8x768xf32>
    %22 = arith.maximumf %20, %21 : vector<8x768xf32>
    %23 = vector.extract_strided_slice %22 {offsets = [0, 0], sizes = [8, 384], strides = [1, 1]} : vector<8x768xf32> to vector<8x384xf32>
    %24 = vector.extract_strided_slice %22 {offsets = [0, 384], sizes = [8, 384], strides = [1, 1]} : vector<8x768xf32> to vector<8x384xf32>
    %25 = arith.maximumf %23, %24 : vector<8x384xf32>
    %c0_12 = arith.constant 0 : index
    %c0_13 = arith.constant 0 : index
    %26 = vector.load %arg3[%c0_12, %c0_13] : memref<1x384xf32, #tpu.memory_space<vmem>>, vector<1x384xf32>
    %27 = vector.broadcast %26 : vector<1x384xf32> to vector<8x384xf32>
    %28 = arith.addf %25, %27 : vector<8x384xf32>
    %cst_14 = arith.constant 0.000000e+00 : f32
    %29 = vector.broadcast %cst_14 : f32 to vector<8x384xf32>
    %30 = arith.maximumf %28, %29 : vector<8x384xf32>
    %31 = arith.truncf %30 : vector<8x384xf32> to vector<8x384xbf16>
    %c2 = arith.constant 2 : index
    %c0_15 = arith.constant 0 : index
    %c0_16 = arith.constant 0 : index
    %32 = vector.load %arg1[%c2, %c0_15, %c0_16] : memref<4x8x280xbf16, #tpu.memory_space<vmem>>, vector<1x8x280xbf16>
    %33 = vector.shape_cast %32 : vector<1x8x280xbf16> to vector<8x280xbf16>
    %c0_17 = arith.constant 0 : index
    %c0_18 = arith.constant 0 : index
    %34 = vector.load %arg2[%c0_17, %c0_18] : memref<280x1536xbf16, #tpu.memory_space<vmem>>, vector<280x1536xbf16>
    %cst_19 = arith.constant dense<0.000000e+00> : vector<8x1536xf32>
    %35 = tpu.matmul %33, %34, %cst_19 {dimension_numbers = #tpu.dot_dimension_numbers<[1], [0], [0], [1], [0, 0, 1, 1], [], []>} : vector<8x280xbf16>, vector<280x1536xbf16>, vector<8x1536xf32> -> vector<8x1536xf32>
    %36 = vector.extract_strided_slice %35 {offsets = [0, 0], sizes = [8, 768], strides = [1, 1]} : vector<8x1536xf32> to vector<8x768xf32>
    %37 = vector.extract_strided_slice %35 {offsets = [0, 768], sizes = [8, 768], strides = [1, 1]} : vector<8x1536xf32> to vector<8x768xf32>
    %38 = arith.maximumf %36, %37 : vector<8x768xf32>
    %39 = vector.extract_strided_slice %38 {offsets = [0, 0], sizes = [8, 384], strides = [1, 1]} : vector<8x768xf32> to vector<8x384xf32>
    %40 = vector.extract_strided_slice %38 {offsets = [0, 384], sizes = [8, 384], strides = [1, 1]} : vector<8x768xf32> to vector<8x384xf32>
    %41 = arith.maximumf %39, %40 : vector<8x384xf32>
    %c0_20 = arith.constant 0 : index
    %c0_21 = arith.constant 0 : index
    %42 = vector.load %arg3[%c0_20, %c0_21] : memref<1x384xf32, #tpu.memory_space<vmem>>, vector<1x384xf32>
    %43 = vector.broadcast %42 : vector<1x384xf32> to vector<8x384xf32>
    %44 = arith.addf %41, %43 : vector<8x384xf32>
    %cst_22 = arith.constant 0.000000e+00 : f32
    %45 = vector.broadcast %cst_22 : f32 to vector<8x384xf32>
    %46 = arith.maximumf %44, %45 : vector<8x384xf32>
    %47 = arith.truncf %46 : vector<8x384xf32> to vector<8x384xbf16>
    %c3 = arith.constant 3 : index
    %c0_23 = arith.constant 0 : index
    %c0_24 = arith.constant 0 : index
    %48 = vector.load %arg1[%c3, %c0_23, %c0_24] : memref<4x8x280xbf16, #tpu.memory_space<vmem>>, vector<1x8x280xbf16>
    %49 = vector.shape_cast %48 : vector<1x8x280xbf16> to vector<8x280xbf16>
    %c0_25 = arith.constant 0 : index
    %c0_26 = arith.constant 0 : index
    %50 = vector.load %arg2[%c0_25, %c0_26] : memref<280x1536xbf16, #tpu.memory_space<vmem>>, vector<280x1536xbf16>
    %cst_27 = arith.constant dense<0.000000e+00> : vector<8x1536xf32>
    %51 = tpu.matmul %49, %50, %cst_27 {dimension_numbers = #tpu.dot_dimension_numbers<[1], [0], [0], [1], [0, 0, 1, 1], [], []>} : vector<8x280xbf16>, vector<280x1536xbf16>, vector<8x1536xf32> -> vector<8x1536xf32>
    %52 = vector.extract_strided_slice %51 {offsets = [0, 0], sizes = [8, 768], strides = [1, 1]} : vector<8x1536xf32> to vector<8x768xf32>
    %53 = vector.extract_strided_slice %51 {offsets = [0, 768], sizes = [8, 768], strides = [1, 1]} : vector<8x1536xf32> to vector<8x768xf32>
    %54 = arith.maximumf %52, %53 : vector<8x768xf32>
    %55 = vector.extract_strided_slice %54 {offsets = [0, 0], sizes = [8, 384], strides = [1, 1]} : vector<8x768xf32> to vector<8x384xf32>
    %56 = vector.extract_strided_slice %54 {offsets = [0, 384], sizes = [8, 384], strides = [1, 1]} : vector<8x768xf32> to vector<8x384xf32>
    %57 = arith.maximumf %55, %56 : vector<8x384xf32>
    %c0_28 = arith.constant 0 : index
    %c0_29 = arith.constant 0 : index
    %58 = vector.load %arg3[%c0_28, %c0_29] : memref<1x384xf32, #tpu.memory_space<vmem>>, vector<1x384xf32>
    %59 = vector.broadcast %58 : vector<1x384xf32> to vector<8x384xf32>
    %60 = arith.addf %57, %59 : vector<8x384xf32>
    %cst_30 = arith.constant 0.000000e+00 : f32
    %61 = vector.broadcast %cst_30 : f32 to vector<8x384xf32>
    %62 = arith.maximumf %60, %61 : vector<8x384xf32>
    %63 = arith.truncf %62 : vector<8x384xf32> to vector<8x384xbf16>
    %64 = tpu.concatenate %15, %31, %47, %63 in 1 : vector<8x384xbf16>, vector<8x384xbf16>, vector<8x384xbf16>, vector<8x384xbf16> -> vector<8x1536xbf16>
    %65 = vector.extract_strided_slice %64 {offsets = [0, 0], sizes = [8, 1024], strides = [1, 1]} : vector<8x1536xbf16> to vector<8x1024xbf16>
    %c0_31 = arith.constant 0 : index
    %c0_32 = arith.constant 0 : index
    %66 = vector.load %arg4[%c0_31, %c0_32] : memref<1024x1024xbf16, #tpu.memory_space<vmem>>, vector<1024x1024xbf16>
    %cst_33 = arith.constant dense<0.000000e+00> : vector<8x1024xf32>
    %67 = tpu.matmul %65, %66, %cst_33 {dimension_numbers = #tpu.dot_dimension_numbers<[1], [0], [0], [1], [0, 0, 1, 1], [], []>} : vector<8x1024xbf16>, vector<1024x1024xbf16>, vector<8x1024xf32> -> vector<8x1024xf32>
    %68 = vector.extract_strided_slice %67 {offsets = [0, 0], sizes = [8, 512], strides = [1, 1]} : vector<8x1024xf32> to vector<8x512xf32>
    %69 = vector.extract_strided_slice %67 {offsets = [0, 512], sizes = [8, 512], strides = [1, 1]} : vector<8x1024xf32> to vector<8x512xf32>
    %70 = arith.maximumf %68, %69 : vector<8x512xf32>
    %71 = vector.extract_strided_slice %70 {offsets = [0, 0], sizes = [8, 256], strides = [1, 1]} : vector<8x512xf32> to vector<8x256xf32>
    %72 = vector.extract_strided_slice %70 {offsets = [0, 256], sizes = [8, 256], strides = [1, 1]} : vector<8x512xf32> to vector<8x256xf32>
    %73 = arith.maximumf %71, %72 : vector<8x256xf32>
    %c0_34 = arith.constant 0 : index
    %c0_35 = arith.constant 0 : index
    %74 = vector.load %arg5[%c0_34, %c0_35] : memref<1x256xf32, #tpu.memory_space<vmem>>, vector<1x256xf32>
    %75 = vector.broadcast %74 : vector<1x256xf32> to vector<8x256xf32>
    %76 = arith.addf %73, %75 : vector<8x256xf32>
    %cst_36 = arith.constant 0.000000e+00 : f32
    %77 = vector.broadcast %cst_36 : f32 to vector<8x256xf32>
    %78 = arith.maximumf %76, %77 : vector<8x256xf32>
    %79 = vector.extract_strided_slice %64 {offsets = [0, 512], sizes = [8, 1024], strides = [1, 1]} : vector<8x1536xbf16> to vector<8x1024xbf16>
    %c0_37 = arith.constant 0 : index
    %c0_38 = arith.constant 0 : index
    %80 = vector.load %arg4[%c0_37, %c0_38] : memref<1024x1024xbf16, #tpu.memory_space<vmem>>, vector<1024x1024xbf16>
    %cst_39 = arith.constant dense<0.000000e+00> : vector<8x1024xf32>
    %81 = tpu.matmul %79, %80, %cst_39 {dimension_numbers = #tpu.dot_dimension_numbers<[1], [0], [0], [1], [0, 0, 1, 1], [], []>} : vector<8x1024xbf16>, vector<1024x1024xbf16>, vector<8x1024xf32> -> vector<8x1024xf32>
    %82 = vector.extract_strided_slice %81 {offsets = [0, 0], sizes = [8, 512], strides = [1, 1]} : vector<8x1024xf32> to vector<8x512xf32>
    %83 = vector.extract_strided_slice %81 {offsets = [0, 512], sizes = [8, 512], strides = [1, 1]} : vector<8x1024xf32> to vector<8x512xf32>
    %84 = arith.maximumf %82, %83 : vector<8x512xf32>
    %85 = vector.extract_strided_slice %84 {offsets = [0, 0], sizes = [8, 256], strides = [1, 1]} : vector<8x512xf32> to vector<8x256xf32>
    %86 = vector.extract_strided_slice %84 {offsets = [0, 256], sizes = [8, 256], strides = [1, 1]} : vector<8x512xf32> to vector<8x256xf32>
    %87 = arith.maximumf %85, %86 : vector<8x256xf32>
    %c0_40 = arith.constant 0 : index
    %c0_41 = arith.constant 0 : index
    %88 = vector.load %arg5[%c0_40, %c0_41] : memref<1x256xf32, #tpu.memory_space<vmem>>, vector<1x256xf32>
    %89 = vector.broadcast %88 : vector<1x256xf32> to vector<8x256xf32>
    %90 = arith.addf %87, %89 : vector<8x256xf32>
    %cst_42 = arith.constant 0.000000e+00 : f32
    %91 = vector.broadcast %cst_42 : f32 to vector<8x256xf32>
    %92 = arith.maximumf %90, %91 : vector<8x256xf32>
    %93 = tpu.concatenate %78, %92 in 1 : vector<8x256xf32>, vector<8x256xf32> -> vector<8x512xf32>
    %c0_43 = arith.constant 0 : index
    %c0_44 = arith.constant 0 : index
    %94 = vector.load %arg6[%c0_43, %c0_44] : memref<512x128xf32, #tpu.memory_space<vmem>>, vector<512x128xf32>
    %cst_45 = arith.constant dense<0.000000e+00> : vector<8x128xf32>
    %95 = tpu.matmul %93, %94, %cst_45 {dimension_numbers = #tpu.dot_dimension_numbers<[1], [0], [0], [1], [0, 0, 1, 1], [], []>} : vector<8x512xf32>, vector<512x128xf32>, vector<8x128xf32> -> vector<8x128xf32>
    %c0_46 = arith.constant 0 : index
    %c0_47 = arith.constant 0 : index
    %96 = vector.load %arg7[%c0_46, %c0_47] : memref<1x128xf32, #tpu.memory_space<vmem>>, vector<1x128xf32>
    %97 = vector.broadcast %96 : vector<1x128xf32> to vector<8x128xf32>
    %98 = arith.addf %95, %97 : vector<8x128xf32>
    %cst_48 = arith.constant 0.000000e+00 : f32
    %99 = vector.broadcast %cst_48 : f32 to vector<8x128xf32>
    %100 = arith.maximumf %98, %99 : vector<8x128xf32>
    %c0_49 = arith.constant 0 : index
    %c0_50 = arith.constant 0 : index
    %101 = vector.load %arg8[%c0_49, %c0_50] : memref<128x128xf32, #tpu.memory_space<vmem>>, vector<128x128xf32>
    %cst_51 = arith.constant dense<0.000000e+00> : vector<8x128xf32>
    %102 = tpu.matmul %100, %101, %cst_51 {dimension_numbers = #tpu.dot_dimension_numbers<[1], [0], [0], [1], [0, 0, 1, 1], [], []>} : vector<8x128xf32>, vector<128x128xf32>, vector<8x128xf32> -> vector<8x128xf32>
    %c0_52 = arith.constant 0 : index
    %c0_53 = arith.constant 0 : index
    %103 = vector.load %arg9[%c0_52, %c0_53] : memref<1x128xf32, #tpu.memory_space<vmem>>, vector<1x128xf32>
    %104 = vector.broadcast %103 : vector<1x128xf32> to vector<8x128xf32>
    %105 = arith.addf %102, %104 : vector<8x128xf32>
    %106 = tpu.iota {dimensions = array<i32: 1>} : vector<8x128xi32>
    %c10_i32 = arith.constant 10 : i32
    %107 = vector.broadcast %c10_i32 : i32 to vector<8x128xi32>
    %108 = arith.cmpi slt, %106, %107 : vector<8x128xi32>
    %cst_54 = arith.constant 0xFF800000 : f32
    %109 = vector.broadcast %cst_54 : f32 to vector<8x128xf32>
    %110 = arith.select %108, %105, %109 : vector<8x128xi1>, vector<8x128xf32>
    %cst_55 = arith.constant dense<0xFF800000> : vector<8xf32>
    %111 = vector.multi_reduction <maximumf>, %110, %cst_55 [1] : vector<8x128xf32> to vector<8xf32>
    %112 = vector.shape_cast %111 : vector<8xf32> to vector<8x1xf32>
    %113 = vector.broadcast %112 : vector<8x1xf32> to vector<8x128xf32>
    %114 = arith.subf %110, %113 : vector<8x128xf32>
    %115 = math.exp %114 : vector<8x128xf32>
    %cst_56 = arith.constant dense<0.000000e+00> : vector<8xf32>
    %116 = vector.multi_reduction <add>, %115, %cst_56 [1] : vector<8x128xf32> to vector<8xf32>
    %117 = vector.shape_cast %116 : vector<8xf32> to vector<8x1xf32>
    %118 = math.log %117 : vector<8x1xf32>
    %119 = vector.broadcast %118 : vector<8x1xf32> to vector<8x128xf32>
    %120 = arith.subf %114, %119 : vector<8x128xf32>
    %cst_57 = arith.constant 0.000000e+00 : f32
    %121 = vector.broadcast %cst_57 : f32 to vector<8x128xf32>
    %122 = arith.select %108, %120, %121 : vector<8x128xi1>, vector<8x128xf32>
    %c0_58 = arith.constant 0 : index
    %c0_59 = arith.constant 0 : index
    %123 = vector.load %arg10[%c0_58, %c0_59] : memref<8x128xf32, #tpu.memory_space<vmem>>, vector<8x128xf32>
    tpu.vector_store %arg10[%c0_58, %c0_59], %122 {strides = array<i32>} : memref<8x128xf32, #tpu.memory_space<vmem>>, vector<8x128xf32>,
    return
  }
  func.func @transform_0(%arg0: i32) -> (i32, i32, i32) {
    %c0_i32 = arith.constant 0 : i32
    %c0_i32_0 = arith.constant 0 : i32
    %c0_i32_1 = arith.constant 0 : i32
    return %c0_i32, %arg0, %c0_i32_0 : i32, i32, i32
  }
  func.func @transform_1(%arg0: i32) -> (i32, i32) {
    %c0_i32 = arith.constant 0 : i32
    %c0_i32_0 = arith.constant 0 : i32
    %c0_i32_1 = arith.constant 0 : i32
    return %c0_i32, %c0_i32_0 : i32, i32
  }
  func.func @transform_2(%arg0: i32) -> (i32, i32) {
    %c0_i32 = arith.constant 0 : i32
    %c0_i32_0 = arith.constant 0 : i32
    %c0_i32_1 = arith.constant 0 : i32
    return %c0_i32, %c0_i32_0 : i32, i32
  }
  func.func @transform_3(%arg0: i32) -> (i32, i32) {
    %c0_i32 = arith.constant 0 : i32
    %c0_i32_0 = arith.constant 0 : i32
    %c0_i32_1 = arith.constant 0 : i32
    return %c0_i32, %c0_i32_0 : i32, i32
  }
  func.func @transform_4(%arg0: i32) -> (i32, i32) {
    %c0_i32 = arith.constant 0 : i32
    %c0_i32_0 = arith.constant 0 : i32
    %c0_i32_1 = arith.constant 0 : i32
    return %c0_i32, %c0_i32_0 : i32, i32
  }
  func.func @transform_5(%arg0: i32) -> (i32, i32) {
    %c0_i32 = arith.constant 0 : i32
    %c0_i32_0 = arith.constant 0 : i32
    %c0_i32_1 = arith.constant 0 : i32
    return %c0_i32, %c0_i32_0 : i32, i32
  }
  func.func @transform_6(%arg0: i32) -> (i32, i32) {
    %c0_i32 = arith.constant 0 : i32
    %c0_i32_0 = arith.constant 0 : i32
    %c0_i32_1 = arith.constant 0 : i32
    return %c0_i32, %c0_i32_0 : i32, i32
  }
  func.func @transform_7(%arg0: i32) -> (i32, i32) {
    %c0_i32 = arith.constant 0 : i32
    %c0_i32_0 = arith.constant 0 : i32
    %c0_i32_1 = arith.constant 0 : i32
    return %c0_i32, %c0_i32_0 : i32, i32
  }
  func.func @transform_8(%arg0: i32) -> (i32, i32) {
    %c0_i32 = arith.constant 0 : i32
    %c0_i32_0 = arith.constant 0 : i32
    %c0_i32_1 = arith.constant 0 : i32
    return %c0_i32, %c0_i32_0 : i32, i32
  }
  func.func @transform_9(%arg0: i32) -> (i32, i32) {
    %c0_i32 = arith.constant 0 : i32
    %c0_i32_0 = arith.constant 0 : i32
    return %arg0, %c0_i32 : i32, i32
  }
}

</mosaic_0001>

<bundles_post_ra>
// kernel: tile.23
= control target key start
LH: loop header
LB: loop body
LE: loop exit
PB: predicated region body
PF: predicated region fallthrough
CT: control target
= control target key end

     0   :  { %s28_s0 = inlined_call_operand.vmem [shape: f32[10], index: 0, kind: input, shape index: {}]   ;;  %s29_s1 = inlined_call_operand.vmem [shape: f32[12,10], index: 1, kind: output, shape index: {}]  }
   0x1   :  { %v4_v0 = vld [vmem:[%s28_s0] ss:$0 sm:$0xff] }
   0x2   :  { %5 = vst [vmem:[%s29_s1] sm:$0xff] %v4_v0  ;;  %8 = vst [vmem:[%s29_s1 + $0x8] sm:$0xff] %v4_v0 }

// kernel: tile.28
= control target key start
LH: loop header
LB: loop body
LE: loop exit
PB: predicated region body
PF: predicated region fallthrough
CT: control target
= control target key end

     0   :  { %s22_s0 = inlined_call_operand.vmem [shape: f32[20], index: 0, kind: input, shape index: {}]   ;;  %s23_s1 = inlined_call_operand.vmem [shape: f32[4,20], index: 1, kind: output, shape index: {}]  }
   0x1   :  { %v4_v0 = vld [vmem:[%s22_s0] ss:$0 sm:$0xff] }
   0x2   :  { %5 = vst [vmem:[%s23_s1] sm:$0xf] %v4_v0 }

// kernel: tile.38
= control target key start
LH: loop header
LB: loop body
LE: loop exit
PB: predicated region body
PF: predicated region fallthrough
CT: control target
= control target key end

     0   :  { %s22_s0 = inlined_call_operand.vmem [shape: f32[128], index: 0, kind: input, shape index: {}]   ;;  %s23_s1 = inlined_call_operand.vmem [shape: f32[2,128], index: 1, kind: output, shape index: {}]  }
   0x1   :  { %v4_v0 = vld [vmem:[%s22_s0] ss:$0 sm:$0xff] }
   0x2   :  { %5 = vst [vmem:[%s23_s1] sm:$0x3] %v4_v0 }

// kernel: mnistnet_forward.1
= control target key start
LH: loop header
LB: loop body
LE: loop exit
PB: predicated region body
PF: predicated region fallthrough
CT: control target
= control target key end

     0   :  { %v17223_v1 = vmov 0   ;;  %vm1309_vm0 = vcmask 1043456   ;;  %vm1305_vm1 = vcmask 195584   ;;  %vm9728_vm2 = vmmov 0   ;;  %s17213_s1 = inlined_call_operand.vmem [shape: bf16[280,1536], index: 1, kind: input, shape index: {}]   ;;  %s17214_s0 = inlined_call_operand.vmem [shape: bf16[4,8,280], index: 0, kind: input, shape index: {}]   ;;  %s17215_s2 = inlined_call_operand.vmem [shape: f32[1,384], index: 2, kind: input, shape index: {}]   ;;  %s17216_s3 = inlined_call_operand.vmem [shape: bf16[1024,1024], index: 3, kind: input, shape index: {}]   ;;  %s17217_s4 = inlined_call_operand.vmem [shape: f32[1,256], index: 4, kind: input, shape index: {}]   ;;  %s17218_s5 = inlined_call_operand.vmem [shape: f32[512,128], index: 5, kind: input, shape index: {}]   ;;  %s17219_s7 = inlined_call_operand.vmem [shape: f32[128,128], index: 7, kind: input, shape index: {}]   ;;  %s17220_s6 = inlined_call_operand.vmem [shape: f32[1,128], index: 6, kind: input, shape index: {}]   ;;  %s17221_s8 = inlined_call_operand.vmem [shape: f32[1,128], index: 8, kind: input, shape index: {}]   ;;  %s17222_s9 = inlined_call_operand.vmem [shape: f32[8,128], index: 9, kind: output, shape index: {}]  }
   0x1   :  { %v9113_v0 = vld [vmem:[%s17213_s1 + $0x2a4] ss:$48 sps:$4 sm:$0xff]   ;;  %1419 = vmatprep.mubr.bf16.mxu1 %v17223_v1  ;;  %v9116_v3 = vld [vmem:[%s17213_s1 + $0x2a0] ss:$48 sps:$4 sm:$0xff]   ;;  %v9127_v12 = vld [vmem:[%s17213_s1 + $0x2ac] ss:$48 sps:$4 sm:$0xff]  }
   0x2   :  { %v239_v2 = vld [vmem:[%s17213_s1 + $0x660] sm:$0xff]  ;;  %1346 = vmatprep.subr.bf16.mxu0 %v9113_v0  ;;  %v9818_v13 = vld [vmem:[%s17214_s0 + $0x8] ss:$0 sps:$4 sm:$0xff]   ;;  %v9133_v17 = vld [vmem:[%s17213_s1 + $0x24c] ss:$48 sps:$4 sm:$0xff]  }
   0x3   :  { %v9789_v4 = vcombine.high %v239_v2, %v239_v2  ;;  %v8399_v5 = vcombine.low %v239_v2, %v239_v2  ;;  %v9118_v6 = vld [vmem:[%s17213_s1 + $0x244] ss:$48 sps:$4 sm:$0xff]   ;;  %1347 = vmatpush1.bf16.msra.mxu0 %v9116_v3  ;;  %v9122_v8 = vld [vmem:[%s17213_s1 + $0x240] ss:$48 sps:$4 sm:$0xff]   ;;  %v9130_v16 = vld [vmem:[%s17213_s1 + $0x2a8] ss:$48 sps:$4 sm:$0xff]  }
   0x4   :  { %v9120_v7 = vld [vmem:[%s17213_s1 + $0x604] ss:$48 sps:$4 sm:$0xff]   ;;  %1348 = vmatprep.subr.bf16.mxu0 %v9118_v6  ;;  %v9123_v10 = vld [vmem:[%s17213_s1 + $0x600] ss:$48 sps:$4 sm:$0xff]   ;;  %v9136_v20 = vld [vmem:[%s17213_s1 + $0x248] ss:$48 sps:$4 sm:$0xff]  }
   0x5   :  { %17945 = vst [vmem:[#allocation2_spill] sm:$0xff] %v9789_v4  ;;  %8411 = vmatprep.subr.msk.bf16.mxu1 %vm1309_vm0, %v9789_v4  ;;  %v9803_v9 = vsel %vm1309_vm0, %v8399_v5, 0  ;;  %v9124_v11 = vld [vmem:[%s17213_s1 + $0x1e4] ss:$48 sps:$4 sm:$0xff]   ;;  %v9129_v14 = vld [vmem:[%s17213_s1 + $0x1e0] ss:$48 sps:$4 sm:$0xff]  }
   0x6   :  { %17946 = vst [vmem:[#allocation3_spill] sm:$0xff] %v9803_v9  ;;  %1400 = vmatpush1.bf16.msra.mxu1 %v9803_v9  ;;  %v9131_v15 = vld [vmem:[%s17213_s1 + $0x184] ss:$48 sps:$4 sm:$0xff]   ;;  %v9135_v18 = vld [vmem:[%s17213_s1 + $0x180] ss:$48 sps:$4 sm:$0xff]  }
   0x7   :  { %1401 = vmatprep.subr.bf16.mxu1 %v9120_v7  ;;  %1349 = vmatpush1.bf16.msra.mxu0 %v9122_v8  ;;  %v9137_v19 = vld [vmem:[%s17213_s1 + $0x124] ss:$48 sps:$4 sm:$0xff]   ;;  %v9139_v21 = vld [vmem:[%s17213_s1 + $0x1ec] ss:$48 sps:$4 sm:$0xff]   ;;  %v9141_v22 = vld [vmem:[%s17213_s1 + $0x120] ss:$48 sps:$4 sm:$0xff]  }
   0x8   :  { %1350 = vmatprep.subr.bf16.mxu0 %v9124_v11  ;;  %v9143_v23 = vld [vmem:[%s17213_s1 + $0xc4] ss:$48 sps:$4 sm:$0xff]   ;;  %v9142_v24 = vld [vmem:[%s17213_s1 + $0x1e8] ss:$48 sps:$4 sm:$0xff]   ;;  %v9145_v25 = vld [vmem:[%s17213_s1 + $0x18c] ss:$48 sps:$4 sm:$0xff]  }
   0x9   :  { %v9147_v26 = vld [vmem:[%s17213_s1 + $0xc0] ss:$48 sps:$4 sm:$0xff]   ;;  %v9149_v27 = vld [vmem:[%s17213_s1 + $0x64] ss:$48 sps:$4 sm:$0xff]   ;;  %v9148_v28 = vld [vmem:[%s17213_s1 + $0x188] ss:$48 sps:$4 sm:$0xff]  }
   0xa   :  { %1402 = vmatpush1.bf16.msra.mxu1 %v9123_v10  ;;  %v9151_v29 = vld [vmem:[%s17213_s1 + $0x12c] ss:$48 sps:$4 sm:$0xff]   ;;  %v9153_v30 = vld [vmem:[%s17213_s1 + $0x60] ss:$48 sps:$4 sm:$0xff]   ;;  %v9155_v31 = vld [vmem:[%s17213_s1 + $0x4] ss:$48 sps:$4 sm:$0xff]  }
   0xb   :  { %1428 = vmatprep.subr.bf16.mxu1 %v9127_v12  ;;  %1351 = vmatpush1.bf16.msra.mxu0 %v9129_v14  ;;  %v9154_v32 = vld [vmem:[%s17213_s1 + $0x128] ss:$48 sps:$4 sm:$0xff]   ;;  %v9157_v33 = vld [vmem:[%s17213_s1 + $0xcc] ss:$48 sps:$4 sm:$0xff]   ;;  %v9159_v34 = vld [vmem:[%s17213_s1] ss:$48 sps:$4 sm:$0xff]  }
   0xc   :  { %1352 = vmatprep.subr.bf16.mxu0 %v9131_v15  ;;  %v9161_v35 = vld [vmem:[%s17213_s1 + $0x5a4] ss:$48 sps:$4 sm:$0xff]   ;;  %v9160_v36 = vld [vmem:[%s17213_s1 + $0xc8] ss:$48 sps:$4 sm:$0xff]   ;;  %v9163_v37 = vld [vmem:[%s17213_s1 + $0x6c] ss:$48 sps:$4 sm:$0xff]  }
   0xd   :  { %8412 = vmatmul.mubr.msk.bf16.vlgmr.msra.gmra.mxu1 %vm1305_vm1, %v9818_v13  ;;  %v9165_v38 = vld [vmem:[%s17213_s1 + $0x5a0] ss:$48 sps:$4 sm:$0xff]   ;;  %v9167_v39 = vld [vmem:[%s17213_s1 + $0x544] ss:$48 sps:$4 sm:$0xff]   ;;  %v9166_v40 = vld [vmem:[%s17213_s1 + $0x68] ss:$48 sps:$4 sm:$0xff]  }
   0xe   :  { %1429 = vmatpush1.bf16.msra.mxu1 %v9130_v16  ;;  %v9169_v41 = vld [vmem:[%s17213_s1 + $0xc] ss:$48 sps:$4 sm:$0xff]   ;;  %v9171_v42 = vld [vmem:[%s17213_s1 + $0x540] ss:$48 sps:$4 sm:$0xff]   ;;  %v9173_v43 = vld [vmem:[%s17213_s1 + $0x4e4] ss:$48 sps:$4 sm:$0xff]  }
   0xf   :  { %1430 = vmatprep.subr.bf16.mxu1 %v9133_v17  ;;  %1353 = vmatpush1.bf16.msra.mxu0 %v9135_v18  ;;  %v9172_v44 = vld [vmem:[%s17213_s1 + $0x8] ss:$48 sps:$4 sm:$0xff]   ;;  %v9175_v45 = vld [vmem:[%s17213_s1 + $0x5ac] ss:$48 sps:$4 sm:$0xff]   ;;  %v9177_v46 = vld [vmem:[%s17213_s1 + $0x4e0] ss:$48 sps:$4 sm:$0xff]  }
  0x10   :  { %1354 = vmatprep.subr.bf16.mxu0 %v9137_v19  ;;  %v9179_v47 = vld [vmem:[%s17213_s1 + $0x484] ss:$48 sps:$4 sm:$0xff]   ;;  %v9178_v48 = vld [vmem:[%s17213_s1 + $0x5a8] ss:$48 sps:$4 sm:$0xff]   ;;  %v9181_v49 = vld [vmem:[%s17213_s1 + $0x54c] ss:$48 sps:$4 sm:$0xff]  }
  0x11   :  { %v33_v50 = vld [vmem:[%s17214_s0] sm:$0xff]  ;;  %v9184_v54 = vld [vmem:[%s17213_s1 + $0x548] ss:$48 sps:$4 sm:$0xff]   ;;  %v9187_v55 = vld [vmem:[%s17213_s1 + $0x4ec] ss:$48 sps:$4 sm:$0xff]  }
  0x12   :  { %1431 = vmatpush1.bf16.msra.mxu1 %v9136_v20  ;;  %v9183_v51 = vld [vmem:[%s17213_s1 + $0x480] ss:$48 sps:$4 sm:$0xff]   ;;  %v9936_v52 = vcombine.high %v33_v50, %v33_v50  ;;  %v9185_v53 = vld [vmem:[%s17213_s1 + $0x424] ss:$48 sps:$4 sm:$0xff]   ;;  %v9190_v58 = vld [vmem:[%s17213_s1 + $0x4e8] ss:$48 sps:$4 sm:$0xff]   ;;  %v9994_v10 = vcombine.low %v33_v50, %v33_v50 }
  0x13   :  { %1432 = vmatprep.subr.bf16.mxu1 %v9139_v21  ;;  %1355 = vmatpush1.bf16.msra.mxu0 %v9141_v22  ;;  %v9189_v56 = vld [vmem:[%s17213_s1 + $0x420] ss:$48 sps:$4 sm:$0xff]   ;;  %v9191_v57 = vld [vmem:[%s17213_s1 + $0x3c4] ss:$48 sps:$4 sm:$0xff]   ;;  %v9193_v59 = vld [vmem:[%s17213_s1 + $0x48c] ss:$48 sps:$4 sm:$0xff]  }
  0x14   :  { %1356 = vmatprep.subr.bf16.mxu0 %v9143_v23  ;;  %1378 = vmatprep.mubr.bf16.mxu0 %v9936_v52  ;;  %v9195_v60 = vld [vmem:[%s17213_s1 + $0x3c0] ss:$48 sps:$4 sm:$0xff]   ;;  %v9197_v61 = vld [vmem:[%s17213_s1 + $0x364] ss:$48 sps:$4 sm:$0xff]   ;;  %v9196_v62 = vld [vmem:[%s17213_s1 + $0x488] ss:$48 sps:$4 sm:$0xff]  }
  0x15   :  { %1460 = vmatprep.mubr.bf16.mxu1 %v9936_v52  ;;  %v9199_v63 = vld [vmem:[%s17213_s1 + $0x42c] ss:$48 sps:$4 sm:$0xff]   ;;  %v9201_v0 = vld [vmem:[%s17213_s1 + $0x360] ss:$48 sps:$4 sm:$0xff]   ;;  %v9203_v2 = vld [vmem:[%s17213_s1 + $0x304] ss:$48 sps:$4 sm:$0xff]  }
  0x16   :  { %1433 = vmatpush1.bf16.msra.mxu1 %v9142_v24  ;;  %v9202_v3 = vld [vmem:[%s17213_s1 + $0x428] ss:$48 sps:$4 sm:$0xff]   ;;  %v9205_v5 = vld [vmem:[%s17213_s1 + $0x3cc] ss:$48 sps:$4 sm:$0xff]   ;;  %v9207_v6 = vld [vmem:[%s17213_s1 + $0x300] ss:$48 sps:$4 sm:$0xff]  }
  0x17   :  { %1434 = vmatprep.subr.bf16.mxu1 %v9145_v25  ;;  %1357 = vmatpush1.bf16.msra.mxu0 %v9147_v26  ;;  %v9213_v7 = vld [vmem:[%s17213_s1 + $0x2b4] ss:$48 sps:$4 sm:$0xff]   ;;  %v9208_v8 = vld [vmem:[%s17213_s1 + $0x3c8] ss:$48 sps:$4 sm:$0xff]   ;;  %v9211_v11 = vld [vmem:[%s17213_s1 + $0x36c] ss:$48 sps:$4 sm:$0xff]  }
  0x18   :  { %1358 = vmatprep.subr.bf16.mxu0 %v9149_v27  ;;  %v9216_v12 = vld [vmem:[%s17213_s1 + $0x2b0] ss:$48 sps:$4 sm:$0xff]   ;;  %v9219_v14 = vld [vmem:[%s17213_s1 + $0x254] ss:$48 sps:$4 sm:$0xff]   ;;  %v9215_v15 = vld [vmem:[%s17213_s1 + $0x368] ss:$48 sps:$4 sm:$0xff]  }
  0x19   :  { %v9217_v16 = vld [vmem:[%s17213_s1 + $0x30c] ss:$48 sps:$4 sm:$0xff]   ;;  %v9222_v17 = vld [vmem:[%s17213_s1 + $0x250] ss:$48 sps:$4 sm:$0xff]   ;;  %v9224_v19 = vld [vmem:[%s17213_s1 + $0x1f4] ss:$48 sps:$4 sm:$0xff]  }
  0x1a   :  { %1435 = vmatpush1.bf16.msra.mxu1 %v9148_v28  ;;  %v240_v18 = vld [vmem:[%s17213_s1 + $0x668] sm:$0xff]  ;;  %v9227_v23 = vld [vmem:[%s17213_s1 + $0x1f0] ss:$48 sps:$4 sm:$0xff]   ;;  %v9230_v24 = vld [vmem:[%s17213_s1 + $0x194] ss:$48 sps:$4 sm:$0xff]  }
  0x1b   :  { %1436 = vmatprep.subr.bf16.mxu1 %v9151_v29  ;;  %1359 = vmatpush1.bf16.msra.mxu0 %v9153_v30  ;;  %v9221_v20 = vld [vmem:[%s17213_s1 + $0x308] ss:$48 sps:$4 sm:$0xff]   ;;  %v10025_v21 = vcombine.high %v240_v18, %v240_v18  ;;  %v8401_v22 = vcombine.low %v240_v18, %v240_v18  ;;  %v10041_v26 = vld [vmem:[%s17213_s1 + $0x60c] ss:$48 sps:$4 sm:$0xff]   ;;  %v10046_v27 = vld [vmem:[%s17213_s1 + $0x190] ss:$48 sps:$4 sm:$0xff]  }
  0x1c   :  { %1360 = vmatprep.subr.bf16.mxu0 %v9155_v31  ;;  %v241_v28 = vld [vmem:[%s17213_s1 + $0x670] sm:$0xff]  ;;  %v10061_v30 = vld [vmem:[%s17213_s1 + $0x608] ss:$48 sps:$4 sm:$0xff]  }
  0x1d   :  { %17947 = vst [vmem:[#allocation4_spill] sm:$0xff] %v10025_v21  ;;  %v10036_v25 = vsel %vm1309_vm0, %v8401_v22, 0  ;;  %v10055_v29 = vld [vmem:[%s17213_s1 + $0x134] ss:$48 sps:$4 sm:$0xff]   ;;  %v10065_v31 = vcombine.high %v241_v28, %v241_v28  ;;  %v10184_v50 = vld [vmem:[%s17213_s1 + $0x1f8] ss:$48 sps:$4 sm:$0xff]  }
  0x1e   :  { %1437 = vmatpush1.bf16.msra.mxu1 %v9154_v32  ;;  %17948 = vst [vmem:[#allocation5_spill] sm:$0xff] %v10036_v25  ;;  %v8403_v32 = vcombine.low %v241_v28, %v241_v28  ;;  %v10340_v18 = vld [vmem:[%s17213_s1 + $0x310] ss:$48 sps:$4 sm:$0xff]   ;;  %v10358_v22 = vld [vmem:[%s17213_s1 + $0x4fc] ss:$48 sps:$4 sm:$0xff]  }
  0x1f   :  { %1438 = vmatprep.subr.bf16.mxu1 %v9157_v33  ;;  %1361 = vmatpush1.bf16.msra.mxu0 %v9159_v34  ;;  %v10071_v33 = vld [vmem:[%s17213_s1 + $0x130] ss:$48 sps:$4 sm:$0xff]   ;;  %v10077_v34 = vld [vmem:[%s17213_s1 + $0xd4] ss:$48 sps:$4 sm:$0xff]   ;;  %17957 = vst [vmem:[#allocation14_spill] sm:$0xff] %v10358_v22 }
  0x20   :  { %1362 = vmatprep.subr.bf16.mxu0 %v9161_v35  ;;  %v10083_v35 = vsel %vm1309_vm0, %v8403_v32, 0  ;;  %v10376_v28 = vld [vmem:[%s17213_s1 + $0x4f8] ss:$48 sps:$4 sm:$0xff]   ;;  %v10383_v32 = vld [vmem:[%s17213_s1 + $0x49c] ss:$48 sps:$4 sm:$0xff]  }
  0x21   :  { %17960 = vst [vmem:[#allocation17_spill] sm:$0xff] %v10376_v28  ;;  %17961 = vst [vmem:[#allocation18_spill] sm:$0xff] %v10383_v32 }
  0x22   :  { %1439 = vmatpush1.bf16.msra.mxu1 %v9160_v36  ;;  %v10088_v36 = vld [vmem:[%s17213_s1 + $0x614] ss:$48 sps:$4 sm:$0xff]  }
  0x23   :  { %1440 = vmatprep.subr.bf16.mxu1 %v9163_v37  ;;  %1363 = vmatpush2.bf16.msra.mxu0 %v9165_v38  ;;  %v10094_v37 = vld [vmem:[%s17213_s1 + $0xd0] ss:$48 sps:$4 sm:$0xff]   ;;  %v10102_v38 = vld [vmem:[%s17213_s1 + $0x74] ss:$48 sps:$4 sm:$0xff]  }
  0x24   :  { %1364 = vmatprep.subr.bf16.mxu0 %v9167_v39  ;;  %v10108_v39 = vld [vmem:[%s17213_s1 + $0x610] ss:$48 sps:$4 sm:$0xff]  }
  0x26   :  { %1441 = vmatpush1.bf16.msra.mxu1 %v9166_v40  ;;  %v10115_v40 = vld [vmem:[%s17213_s1 + $0x2bc] ss:$48 sps:$4 sm:$0xff]  }
  0x27   :  { %1442 = vmatprep.subr.bf16.mxu1 %v9169_v41  ;;  %1365 = vmatpush2.bf16.msra.mxu0 %v9171_v42  ;;  %v10121_v41 = vld [vmem:[%s17213_s1 + $0x70] ss:$48 sps:$4 sm:$0xff]   ;;  %v10127_v42 = vld [vmem:[%s17213_s1 + $0x14] ss:$48 sps:$4 sm:$0xff]  }
  0x28   :  { %1366 = vmatprep.subr.bf16.mxu0 %v9173_v43  ;;  %v10133_v43 = vld [vmem:[%s17213_s1 + $0x2b8] ss:$48 sps:$4 sm:$0xff]  }
  0x2a   :  { %1443 = vmatpush1.bf16.msra.mxu1 %v9172_v44  ;;  %v10139_v44 = vld [vmem:[%s17213_s1 + $0x25c] ss:$48 sps:$4 sm:$0xff]  }
  0x2b   :  { %1444 = vmatprep.subr.bf16.mxu1 %v9175_v45  ;;  %1367 = vmatpush2.bf16.msra.mxu0 %v9177_v46  ;;  %v10145_v45 = vld [vmem:[%s17213_s1 + $0x10] ss:$48 sps:$4 sm:$0xff]   ;;  %v10153_v46 = vld [vmem:[%s17213_s1 + $0x5b4] ss:$48 sps:$4 sm:$0xff]  }
  0x2c   :  { %1368 = vmatprep.subr.bf16.mxu0 %v9179_v47  ;;  %v10159_v47 = vld [vmem:[%s17213_s1 + $0x258] ss:$48 sps:$4 sm:$0xff]  }
  0x2e   :  { %1445 = vmatpush2.bf16.msra.mxu1 %v9178_v48  ;;  %v10172_v48 = vld [vmem:[%s17213_s1 + $0x5b0] ss:$48 sps:$4 sm:$0xff]  }
  0x2f   :  { %1446 = vmatprep.subr.bf16.mxu1 %v9181_v49  ;;  %1369 = vmatpush2.bf16.msra.mxu0 %v9183_v51  ;;  %v10178_v49 = vld [vmem:[%s17213_s1 + $0x554] ss:$48 sps:$4 sm:$0xff]   ;;  %v10190_v51 = vld [vmem:[%s17213_s1 + $0x19c] ss:$48 sps:$4 sm:$0xff]  }
  0x30   :  { %1370 = vmatprep.subr.bf16.mxu0 %v9185_v53  ;;  %v10196_v53 = vld [vmem:[%s17213_s1 + $0x550] ss:$48 sps:$4 sm:$0xff]  }
  0x32   :  { %1447 = vmatpush2.bf16.msra.mxu1 %v9184_v54  ;;  %v10202_v54 = vld [vmem:[%s17213_s1 + $0x4f4] ss:$48 sps:$4 sm:$0xff]  }
  0x33   :  { %1448 = vmatprep.subr.bf16.mxu1 %v9187_v55  ;;  %1371 = vmatpush2.bf16.msra.mxu0 %v9189_v56  ;;  %v10208_v55 = vld [vmem:[%s17213_s1 + $0x198] ss:$48 sps:$4 sm:$0xff]   ;;  %v10214_v56 = vld [vmem:[%s17213_s1 + $0x13c] ss:$48 sps:$4 sm:$0xff]  }
  0x34   :  { %1372 = vmatprep.subr.bf16.mxu0 %v9191_v57  ;;  %v10220_v57 = vld [vmem:[%s17213_s1 + $0x4f0] ss:$48 sps:$4 sm:$0xff]  }
  0x36   :  { %1449 = vmatpush2.bf16.msra.mxu1 %v9190_v58  ;;  %v10226_v58 = vld [vmem:[%s17213_s1 + $0x494] ss:$48 sps:$4 sm:$0xff]  }
  0x37   :  { %1450 = vmatprep.subr.bf16.mxu1 %v9193_v59  ;;  %1373 = vmatpush2.bf16.msra.mxu0 %v9195_v60  ;;  %v10232_v59 = vld [vmem:[%s17213_s1 + $0x138] ss:$48 sps:$4 sm:$0xff]   ;;  %v10238_v60 = vld [vmem:[%s17213_s1 + $0xdc] ss:$48 sps:$4 sm:$0xff]  }
  0x38   :  { %1374 = vmatprep.subr.bf16.mxu0 %v9197_v61  ;;  %v10244_v61 = vld [vmem:[%s17213_s1 + $0x490] ss:$48 sps:$4 sm:$0xff]  }
  0x3a   :  { %1451 = vmatpush2.bf16.msra.mxu1 %v9196_v62  ;;  %v10250_v62 = vld [vmem:[%s17213_s1 + $0x434] ss:$48 sps:$4 sm:$0xff]  }
  0x3b   :  { %1452 = vmatprep.subr.bf16.mxu1 %v9199_v63  ;;  %1375 = vmatpush2.bf16.msra.mxu0 %v9201_v0  ;;  %v10256_v63 = vld [vmem:[%s17213_s1 + $0xd8] ss:$48 sps:$4 sm:$0xff]   ;;  %v10262_v0 = vld [vmem:[%s17213_s1 + $0x7c] ss:$48 sps:$4 sm:$0xff]  }
  0x3c   :  { %1376 = vmatprep.subr.bf16.mxu0 %v9203_v2  ;;  %v10268_v2 = vld [vmem:[%s17213_s1 + $0x430] ss:$48 sps:$4 sm:$0xff]  }
  0x3e   :  { %1453 = vmatpush2.bf16.msra.mxu1 %v9202_v3  ;;  %v10274_v3 = vld [vmem:[%s17213_s1 + $0x3d4] ss:$48 sps:$4 sm:$0xff]  }
  0x3f   :  { %1454 = vmatprep.subr.bf16.mxu1 %v9205_v5  ;;  %1377 = vmatpush2.bf16.msra.mxu0 %v9207_v6  ;;  %v10280_v5 = vld [vmem:[%s17213_s1 + $0x78] ss:$48 sps:$4 sm:$0xff]   ;;  %v10286_v6 = vld [vmem:[%s17213_s1 + $0x1c] ss:$48 sps:$4 sm:$0xff]  }
  0x40   :  { %1510 = vmatprep.subr.bf16.mxu0 %v9213_v7  ;;  %17949 = vst [vmem:[#allocation6_spill] sm:$0xff] %v10280_v5  ;;  %17950 = vst [vmem:[#allocation7_spill] sm:$0xff] %v10286_v6  ;;  %v10292_v7 = vld [vmem:[%s17213_s1 + $0x3d0] ss:$48 sps:$4 sm:$0xff]  }
  0x42   :  { %1455 = vmatpush2.bf16.msra.mxu1 %v9208_v8  ;;  %1379 = vmatmul.mubr.bf16.vlgmr.msra.gmra.mxu0 %v9994_v10  ;;  %v10298_v8 = vld [vmem:[%s17213_s1 + $0x374] ss:$48 sps:$4 sm:$0xff]  }
  0x43   :  { %1456 = vmatprep.subr.bf16.mxu1 %v9211_v11  ;;  %1511 = vmatpush1.bf16.msra.mxu0 %v9216_v12  ;;  %v10304_v11 = vld [vmem:[%s17213_s1 + $0x18] ss:$48 sps:$4 sm:$0xff]   ;;  %v10310_v12 = vld [vmem:[%s17213_s1 + $0x5bc] ss:$48 sps:$4 sm:$0xff]  }
  0x44   :  { %1542 = vmatprep.mubr.bf16.mxu0 %v9936_v52  ;;  %1512 = vmatprep.subr.bf16.mxu0 %v9219_v14  ;;  %17951 = vst [vmem:[#allocation8_spill] sm:$0xff] %v10304_v11  ;;  %17952 = vst [vmem:[#allocation9_spill] sm:$0xff] %v10310_v12  ;;  %v10316_v14 = vld [vmem:[%s17213_s1 + $0x370] ss:$48 sps:$4 sm:$0xff]  }
  0x46   :  { %1457 = vmatpush2.bf16.msra.mxu1 %v9215_v15  ;;  %v10322_v15 = vld [vmem:[%s17213_s1 + $0x314] ss:$48 sps:$4 sm:$0xff]  }
  0x47   :  { %1458 = vmatprep.subr.bf16.mxu1 %v9217_v16  ;;  %1513 = vmatpush1.bf16.msra.mxu0 %v9222_v17  ;;  %v10328_v16 = vld [vmem:[%s17213_s1 + $0x5b8] ss:$48 sps:$4 sm:$0xff]   ;;  %v10334_v17 = vld [vmem:[%s17213_s1 + $0x55c] ss:$48 sps:$4 sm:$0xff]  }
  0x48   :  { %1514 = vmatprep.subr.bf16.mxu0 %v9224_v19  ;;  %17953 = vst [vmem:[#allocation10_spill] sm:$0xff] %v10328_v16  ;;  %17954 = vst [vmem:[#allocation11_spill] sm:$0xff] %v10334_v17  ;;  %v10346_v19 = vld [vmem:[%s17213_s1 + $0x2c4] ss:$48 sps:$4 sm:$0xff]  }
  0x49   :  { %17955 = vst [vmem:[#allocation12_spill] sm:$0xff] %v10346_v19 }
  0x4a   :  { %1459 = vmatpush2.bf16.msra.mxu1 %v9221_v20  ;;  %v10352_v20 = vld [vmem:[%s17213_s1 + $0x558] ss:$48 sps:$4 sm:$0xff]  }
  0x4b   :  { %8413 = vmatprep.subr.msk.bf16.mxu1 %vm1309_vm0, %v10025_v21  ;;  %1515 = vmatpush1.bf16.msra.mxu0 %v9227_v23  ;;  %17956 = vst [vmem:[#allocation13_spill] sm:$0xff] %v10352_v20  ;;  %v10364_v23 = vld [vmem:[%s17213_s1 + $0x2c0] ss:$48 sps:$4 sm:$0xff]  }
  0x4c   :  { %1516 = vmatprep.subr.bf16.mxu0 %v9230_v24  ;;  %17958 = vst [vmem:[#allocation15_spill] sm:$0xff] %v10364_v23  ;;  %v10370_v24 = vld [vmem:[%s17213_s1 + $0x264] ss:$48 sps:$4 sm:$0xff]  }
  0x4d   :  { %1461 = vmatmul.mubr.bf16.vlgmr.msra.gmra.mxu1 %v9994_v10  ;;  %17959 = vst [vmem:[#allocation16_spill] sm:$0xff] %v10370_v24 }
  0x4e   :  { %1482 = vmatpush1.bf16.msra.mxu1 %v10036_v25  ;;  %1501 = vmatprep.mubr.bf16.mxu1 %v17223_v1 }
  0x4f   :  { %1483 = vmatprep.subr.bf16.mxu1 %v10041_v26  ;;  %1517 = vmatpush1.bf16.msra.mxu0 %v10046_v27 }
  0x50   :  { %1518 = vmatprep.subr.bf16.mxu0 %v10055_v29 }
  0x52   :  { %1484 = vmatpush1.bf16.msra.mxu1 %v10061_v30 }
  0x53   :  { %8415 = vmatprep.subr.msk.bf16.mxu1 %vm1309_vm0, %v10065_v31  ;;  %1519 = vmatpush1.bf16.msra.mxu0 %v10071_v33 }
  0x54   :  { %1520 = vmatprep.subr.bf16.mxu0 %v10077_v34 }
  0x55   :  { %8414 = vmatmul.mubr.msk.bf16.vlgmr.msra.gmra.mxu1 %vm1305_vm1, %v9818_v13 }
  0x56   :  { %1564 = vmatpush1.bf16.msra.mxu1 %v10083_v35  ;;  %1583 = vmatprep.mubr.bf16.mxu1 %v17223_v1  ;;  %v10389_v1 = vld [vmem:[%s17213_s1 + $0x260] ss:$48 sps:$4 sm:$0xff]  }
  0x57   :  { %1565 = vmatprep.subr.bf16.mxu1 %v10088_v36  ;;  %1521 = vmatpush1.bf16.msra.mxu0 %v10094_v37  ;;  %17962 = vst [vmem:[#allocation19_spill] sm:$0xff] %v10389_v1 }
  0x58   :  { %1522 = vmatprep.subr.bf16.mxu0 %v10102_v38 }
  0x5a   :  { %1566 = vmatpush1.bf16.msra.mxu1 %v10108_v39 }
  0x5b   :  { %1592 = vmatprep.subr.bf16.mxu1 %v10115_v40  ;;  %1523 = vmatpush1.bf16.msra.mxu0 %v10121_v41 }
  0x5c   :  { %1524 = vmatprep.subr.bf16.mxu0 %v10127_v42 }
  0x5d   :  { %8416 = vmatmul.mubr.msk.bf16.vlgmr.msra.gmra.mxu1 %vm1305_vm1, %v9818_v13  ;;  %v10166_v13 = vld [vmem:[%s17213_s1 + $0x1fc] ss:$48 sps:$4 sm:$0xff]  }
  0x5e   :  { %1593 = vmatpush1.bf16.msra.mxu1 %v10133_v43  ;;  %1624 = vmatprep.mubr.bf16.mxu1 %v9936_v52 }
  0x5f   :  { %1594 = vmatprep.subr.bf16.mxu1 %v10139_v44  ;;  %1525 = vmatpush1.bf16.msra.mxu0 %v10145_v45 }
  0x60   :  { %1526 = vmatprep.subr.bf16.mxu0 %v10153_v46 }
  0x62   :  { %1595 = vmatpush1.bf16.msra.mxu1 %v10159_v47 }
  0x63   :  { %1596 = vmatprep.subr.bf16.mxu1 %v10166_v13  ;;  %1527 = vmatpush2.bf16.msra.mxu0 %v10172_v48 }
  0x64   :  { %1528 = vmatprep.subr.bf16.mxu0 %v10178_v49 }
  0x66   :  { %1597 = vmatpush1.bf16.msra.mxu1 %v10184_v50 }
  0x67   :  { %1598 = vmatprep.subr.bf16.mxu1 %v10190_v51  ;;  %1529 = vmatpush2.bf16.msra.mxu0 %v10196_v53 }
  0x68   :  { %1530 = vmatprep.subr.bf16.mxu0 %v10202_v54 }
  0x6a   :  { %1599 = vmatpush1.bf16.msra.mxu1 %v10208_v55 }
  0x6b   :  { %1600 = vmatprep.subr.bf16.mxu1 %v10214_v56  ;;  %1531 = vmatpush2.bf16.msra.mxu0 %v10220_v57 }
  0x6c   :  { %1532 = vmatprep.subr.bf16.mxu0 %v10226_v58 }
  0x6e   :  { %1601 = vmatpush1.bf16.msra.mxu1 %v10232_v59 }
  0x6f   :  { %1602 = vmatprep.subr.bf16.mxu1 %v10238_v60  ;;  %1533 = vmatpush2.bf16.msra.mxu0 %v10244_v61 }
  0x70   :  { %1534 = vmatprep.subr.bf16.mxu0 %v10250_v62 }
  0x72   :  { %1603 = vmatpush1.bf16.msra.mxu1 %v10256_v63 }
  0x73   :  { %1604 = vmatprep.subr.bf16.mxu1 %v10262_v0  ;;  %1535 = vmatpush2.bf16.msra.mxu0 %v10268_v2 }
  0x74   :  { %1536 = vmatprep.subr.bf16.mxu0 %v10274_v3 }
  0x76   :  { %1605 = vmatpush1.bf16.msra.mxu1 %v10280_v5 }
  0x77   :  { %1606 = vmatprep.subr.bf16.mxu1 %v10286_v6  ;;  %1537 = vmatpush2.bf16.msra.mxu0 %v10292_v7 }
  0x78   :  { %1538 = vmatprep.subr.bf16.mxu0 %v10298_v8 }
  0x7a   :  { %1607 = vmatpush1.bf16.msra.mxu1 %v10304_v11 }
  0x7b   :  { %1608 = vmatprep.subr.bf16.mxu1 %v10310_v12  ;;  %1539 = vmatpush2.bf16.msra.mxu0 %v10316_v14 }
  0x7c   :  { %1540 = vmatprep.subr.bf16.mxu0 %v10322_v15 }
  0x7e   :  { %1609 = vmatpush2.bf16.msra.mxu1 %v10328_v16  ;;  %v10414_v16 = vld [vmem:[%s17213_s1 + $0x200] ss:$48 sps:$4 sm:$0xff]  }
  0x7f   :  { %1610 = vmatprep.subr.bf16.mxu1 %v10334_v17  ;;  %1541 = vmatpush2.bf16.msra.mxu0 %v10340_v18  ;;  %v10408_v17 = vld [vmem:[%s17213_s1 + $0x43c] ss:$48 sps:$4 sm:$0xff]   ;;  %17966 = vst [vmem:[#allocation23_spill] sm:$0xff] %v10414_v16 }
  0x80   :  { %1674 = vmatprep.subr.bf16.mxu0 %v10346_v19  ;;  %17965 = vst [vmem:[#allocation22_spill] sm:$0xff] %v10408_v17  ;;  %v10565_v19 = vld [vmem:[%s17213_s1 + $0x564] ss:$48 sps:$4 sm:$0xff]  }
  0x81   :  { %17991 = vst [vmem:[#allocation47_spill] sm:$0xff] %v10565_v19 }
  0x82   :  { %1611 = vmatpush2.bf16.msra.mxu1 %v10352_v20  ;;  %1543 = vmatmul.mubr.bf16.vlgmr.msra.gmra.mxu0 %v9994_v10  ;;  %v10402_v20 = vld [vmem:[%s17213_s1 + $0x498] ss:$48 sps:$4 sm:$0xff]  }
  0x83   :  { %1612 = vmatprep.subr.bf16.mxu1 %v10358_v22  ;;  %1675 = vmatpush1.bf16.msra.mxu0 %v10364_v23  ;;  %v10396_v22 = vld [vmem:[%s17213_s1 + $0x204] ss:$48 sps:$4 sm:$0xff]   ;;  %17964 = vst [vmem:[#allocation21_spill] sm:$0xff] %v10402_v20 }
  0x84   :  { %1706 = vmatprep.mubr.bf16.mxu0 %v9936_v52  ;;  %1676 = vmatprep.subr.bf16.mxu0 %v10370_v24  ;;  %17963 = vst [vmem:[#allocation20_spill] sm:$0xff] %v10396_v22 }
  0x86   :  { %1613 = vmatpush2.bf16.msra.mxu1 %v10376_v28  ;;  %v10420_v28 = vld [vmem:[%s17213_s1 + $0x1a4] ss:$48 sps:$4 sm:$0xff]  }
  0x87   :  { %1614 = vmatprep.subr.bf16.mxu1 %v10383_v32  ;;  %1677 = vmatpush1.bf16.msra.mxu0 %v10389_v1  ;;  %17967 = vst [vmem:[#allocation24_spill] sm:$0xff] %v10420_v28  ;;  %v10426_v32 = vld [vmem:[%s17213_s1 + $0x438] ss:$48 sps:$4 sm:$0xff]   ;;  %v10432_v1 = vld [vmem:[%s17213_s1 + $0x3dc] ss:$48 sps:$4 sm:$0xff]  }
  0x88   :  { %1678 = vmatprep.subr.bf16.mxu0 %v10396_v22  ;;  %17968 = vst [vmem:[#allocation25_spill] sm:$0xff] %v10426_v32  ;;  %17969 = vst [vmem:[#allocation26_spill] sm:$0xff] %v10432_v1  ;;  %v10438_v22 = vld [vmem:[%s17213_s1 + $0x1a0] ss:$48 sps:$4 sm:$0xff]  }
  0x89   :  { %17970 = vst [vmem:[#allocation27_spill] sm:$0xff] %v10438_v22 }
  0x8a   :  { %1615 = vmatpush2.bf16.msra.mxu1 %v10402_v20  ;;  %v10444_v20 = vld [vmem:[%s17213_s1 + $0x144] ss:$48 sps:$4 sm:$0xff]  }
  0x8b   :  { %1616 = vmatprep.subr.bf16.mxu1 %v10408_v17  ;;  %1679 = vmatpush1.bf16.msra.mxu0 %v10414_v16  ;;  %17971 = vst [vmem:[#allocation28_spill] sm:$0xff] %v10444_v20  ;;  %v10450_v17 = vld [vmem:[%s17213_s1 + $0x3d8] ss:$48 sps:$4 sm:$0xff]   ;;  %v10456_v16 = vld [vmem:[%s17213_s1 + $0x37c] ss:$48 sps:$4 sm:$0xff]  }
  0x8c   :  { %1680 = vmatprep.subr.bf16.mxu0 %v10420_v28  ;;  %17972 = vst [vmem:[#allocation29_spill] sm:$0xff] %v10450_v17  ;;  %17973 = vst [vmem:[#allocation30_spill] sm:$0xff] %v10456_v16  ;;  %v10462_v28 = vld [vmem:[%s17213_s1 + $0x140] ss:$48 sps:$4 sm:$0xff]  }
  0x8d   :  { %17974 = vst [vmem:[#allocation31_spill] sm:$0xff] %v10462_v28 }
  0x8e   :  { %1617 = vmatpush2.bf16.msra.mxu1 %v10426_v32  ;;  %v10468_v32 = vld [vmem:[%s17213_s1 + $0xe4] ss:$48 sps:$4 sm:$0xff]  }
  0x8f   :  { %1618 = vmatprep.subr.bf16.mxu1 %v10432_v1  ;;  %1681 = vmatpush1.bf16.msra.mxu0 %v10438_v22  ;;  %17975 = vst [vmem:[#allocation32_spill] sm:$0xff] %v10468_v32  ;;  %v10474_v1 = vld [vmem:[%s17213_s1 + $0x378] ss:$48 sps:$4 sm:$0xff]   ;;  %v10480_v22 = vld [vmem:[%s17213_s1 + $0x31c] ss:$48 sps:$4 sm:$0xff]  }
  0x90   :  { %1682 = vmatprep.subr.bf16.mxu0 %v10444_v20  ;;  %17976 = vst [vmem:[#allocation33_spill] sm:$0xff] %v10474_v1  ;;  %17977 = vst [vmem:[#allocation34_spill] sm:$0xff] %v10480_v22  ;;  %v10486_v20 = vld [vmem:[%s17213_s1 + $0xe0] ss:$48 sps:$4 sm:$0xff]  }
  0x91   :  { %17978 = vst [vmem:[#allocation35_spill] sm:$0xff] %v10486_v20 }
  0x92   :  { %1619 = vmatpush2.bf16.msra.mxu1 %v10450_v17  ;;  %v242_v17 = vld [vmem:[%s17213_s1 + $0x678] sm:$0xff] }
  0x93   :  { %1620 = vmatprep.subr.bf16.mxu1 %v10456_v16  ;;  %1683 = vmatpush1.bf16.msra.mxu0 %v10462_v28  ;;  %v10495_v16 = vld [vmem:[%s17213_s1 + $0x84] ss:$48 sps:$4 sm:$0xff]   ;;  %v10501_v28 = vld [vmem:[%s17213_s1 + $0x318] ss:$48 sps:$4 sm:$0xff]   ;;  %v10504_v24 = vcombine.high %v242_v17, %v242_v17  ;;  %v8405_v23 = vcombine.low %v242_v17, %v242_v17 }
  0x94   :  { %1684 = vmatprep.subr.bf16.mxu0 %v10468_v32  ;;  %17979 = vst [vmem:[#allocation36_spill] sm:$0xff] %v10495_v16  ;;  %17980 = vst [vmem:[#allocation37_spill] sm:$0xff] %v10501_v28  ;;  %v10510_v32 = vld [vmem:[%s17213_s1 + $0x80] ss:$48 sps:$4 sm:$0xff]  }
  0x95   :  { %17981 = vst [vmem:[#allocation38_spill] sm:$0xff] %v10504_v24  ;;  %17982 = vst [vmem:[#allocation39_spill] sm:$0xff] %v10510_v32  ;;  %v10522_v17 = vsel %vm1309_vm0, %v8405_v23, 0  ;;  %v10543_v23 = vld [vmem:[%s17213_s1 + $0x5c4] ss:$48 sps:$4 sm:$0xff]  }
  0x96   :  { %1621 = vmatpush2.bf16.msra.mxu1 %v10474_v1  ;;  %v10516_v1 = vld [vmem:[%s17213_s1 + $0x24] ss:$48 sps:$4 sm:$0xff]   ;;  %17984 = vst [vmem:[#allocation41_spill] sm:$0xff] %v10522_v17  ;;  %17986 = vst [vmem:[#allocation43_spill] sm:$0xff] %v10543_v23 }
  0x97   :  { %1622 = vmatprep.subr.bf16.mxu1 %v10480_v22  ;;  %1685 = vmatpush1.bf16.msra.mxu0 %v10486_v20  ;;  %17983 = vst [vmem:[#allocation40_spill] sm:$0xff] %v10516_v1  ;;  %v10527_v22 = vld [vmem:[%s17213_s1 + $0x61c] ss:$48 sps:$4 sm:$0xff]   ;;  %v17988_v20 = vmov 0  }
  0x98   :  { %1686 = vmatprep.subr.bf16.mxu0 %v10495_v16  ;;  %v10533_v16 = vld [vmem:[%s17213_s1 + $0x20] ss:$48 sps:$4 sm:$0xff]  }
  0x99   :  { %17985 = vst [vmem:[#allocation42_spill] sm:$0xff] %v10533_v16 }
  0x9a   :  { %1623 = vmatpush2.bf16.msra.mxu1 %v10501_v28  ;;  %v243_v28 = vld [vmem:[%s17213_s1 + $0x680] sm:$0xff] }
  0x9b   :  { %8417 = vmatprep.subr.msk.bf16.mxu1 %vm1309_vm0, %v10504_v24  ;;  %1687 = vmatpush1.bf16.msra.mxu0 %v10510_v32  ;;  %v10549_v32 = vld [vmem:[%s17213_s1 + $0x618] ss:$48 sps:$4 sm:$0xff]   ;;  %v10553_v12 = vcombine.high %v243_v28, %v243_v28  ;;  %v8407_v11 = vcombine.low %v243_v28, %v243_v28 }
  0x9c   :  { %1688 = vmatprep.subr.bf16.mxu0 %v10516_v1  ;;  %17987 = vst [vmem:[#allocation44_spill] sm:$0xff] %v10549_v32  ;;  %v10559_v1 = vld [vmem:[%s17213_s1 + $0x5c0] ss:$48 sps:$4 sm:$0xff]  }
  0x9d   :  { %1625 = vmatmul.mubr.bf16.vlgmr.msra.gmra.mxu1 %v9994_v10  ;;  %17989 = vst [vmem:[#allocation45_spill] sm:$0xff] %v10553_v12  ;;  %17990 = vst [vmem:[#allocation46_spill] sm:$0xff] %v10559_v1  ;;  %v10571_v28 = vsel %vm1309_vm0, %v8407_v11, 0  ;;  %v10595_v11 = vld [vmem:[%s17213_s1 + $0x504] ss:$48 sps:$4 sm:$0xff]  }
  0x9e   :  { %1646 = vmatpush1.bf16.msra.mxu1 %v10522_v17  ;;  %1665 = vmatprep.mubr.bf16.mxu1 %v17988_v20  ;;  %17992 = vst [vmem:[#allocation48_spill] sm:$0xff] %v10571_v28  ;;  %17995 = vst [vmem:[#allocation51_spill] sm:$0xff] %v10595_v11 }
  0x9f   :  { %1647 = vmatprep.subr.bf16.mxu1 %v10527_v22  ;;  %1689 = vmatpush1.bf16.msra.mxu0 %v10533_v16  ;;  %v10576_v16 = vld [vmem:[%s17213_s1 + $0x624] ss:$48 sps:$4 sm:$0xff]  }
  0xa0   :  { %1690 = vmatprep.subr.bf16.mxu0 %v10543_v23  ;;  %17993 = vst [vmem:[#allocation49_spill] sm:$0xff] %v10576_v16  ;;  %v10582_v23 = vld [vmem:[%s17213_s1 + $0x560] ss:$48 sps:$4 sm:$0xff]  }
  0xa1   :  { %17994 = vst [vmem:[#allocation50_spill] sm:$0xff] %v10582_v23 }
  0xa2   :  { %1648 = vmatpush1.bf16.msra.mxu1 %v10549_v32  ;;  %v10587_v32 = vld [vmem:[%s17214_s0 + $0x8] ss:$0 sps:$4 sm:$0xff]  }
  0xa3   :  { %8419 = vmatprep.subr.msk.bf16.mxu1 %vm1309_vm0, %v10553_v12  ;;  %1691 = vmatpush2.bf16.msra.mxu0 %v10559_v1  ;;  %v10601_v1 = vld [vmem:[%s17213_s1 + $0x620] ss:$48 sps:$4 sm:$0xff]   ;;  %v10620_v12 = vld [vmem:[%s17213_s1 + $0x4a4] ss:$48 sps:$4 sm:$0xff]  }
  0xa4   :  { %1692 = vmatprep.subr.bf16.mxu0 %v10565_v19  ;;  %17996 = vst [vmem:[#allocation52_spill] sm:$0xff] %v10601_v1  ;;  %v10608_v19 = vld [vmem:[%s17213_s1 + $0x2cc] ss:$48 sps:$4 sm:$0xff]   ;;  %17999 = vst [vmem:[#allocation55_spill] sm:$0xff] %v10620_v12 }
  0xa5   :  { %8418 = vmatmul.mubr.msk.bf16.vlgmr.msra.gmra.mxu1 %vm1305_vm1, %v10587_v32  ;;  %17997 = vst [vmem:[#allocation53_spill] sm:$0xff] %v10608_v19 }
  0xa6   :  { %1728 = vmatpush1.bf16.msra.mxu1 %v10571_v28  ;;  %1747 = vmatprep.mubr.bf16.mxu1 %v17988_v20  ;;  %v10614_v28 = vld [vmem:[%s17213_s1 + $0x500] ss:$48 sps:$4 sm:$0xff]  }
  0xa7   :  { %1729 = vmatprep.subr.bf16.mxu1 %v10576_v16  ;;  %1693 = vmatpush2.bf16.msra.mxu0 %v10582_v23  ;;  %17998 = vst [vmem:[#allocation54_spill] sm:$0xff] %v10614_v28  ;;  %v10626_v16 = vld [vmem:[%s17213_s1 + $0x2c8] ss:$48 sps:$4 sm:$0xff]   ;;  %v10632_v23 = vld [vmem:[%s17213_s1 + $0x26c] ss:$48 sps:$4 sm:$0xff]  }
  0xa8   :  { %1694 = vmatprep.subr.bf16.mxu0 %v10595_v11  ;;  %18000 = vst [vmem:[#allocation56_spill] sm:$0xff] %v10626_v16  ;;  %18001 = vst [vmem:[#allocation57_spill] sm:$0xff] %v10632_v23  ;;  %v10638_v11 = vld [vmem:[%s17213_s1 + $0x4a0] ss:$48 sps:$4 sm:$0xff]  }
  0xa9   :  { %18002 = vst [vmem:[#allocation58_spill] sm:$0xff] %v10638_v11 }
  0xaa   :  { %1730 = vmatpush1.bf16.msra.mxu1 %v10601_v1 }
  0xab   :  { %1756 = vmatprep.subr.bf16.mxu1 %v10608_v19  ;;  %1695 = vmatpush2.bf16.msra.mxu0 %v10614_v28  ;;  %v10646_v19 = vld [vmem:[%s17213_s1 + $0x444] ss:$48 sps:$4 sm:$0xff]   ;;  %v10652_v28 = vld [vmem:[%s17213_s1 + $0x268] ss:$48 sps:$4 sm:$0xff]  }
  0xac   :  { %1696 = vmatprep.subr.bf16.mxu0 %v10620_v12  ;;  %18003 = vst [vmem:[#allocation59_spill] sm:$0xff] %v10646_v19  ;;  %18004 = vst [vmem:[#allocation60_spill] sm:$0xff] %v10652_v28  ;;  %v10659_v12 = vld [vmem:[%s17213_s1 + $0x20c] ss:$48 sps:$4 sm:$0xff]  }
  0xad   :  { %8420 = vmatmul.mubr.msk.bf16.vlgmr.msra.gmra.mxu1 %vm1305_vm1, %v10587_v32  ;;  %18005 = vst [vmem:[#allocation61_spill] sm:$0xff] %v10659_v12 }
  0xae   :  { %1757 = vmatpush1.bf16.msra.mxu1 %v10626_v16  ;;  %1788 = vmatprep.mubr.bf16.mxu1 %v9936_v52  ;;  %v10665_v16 = vld [vmem:[%s17213_s1 + $0x440] ss:$48 sps:$4 sm:$0xff]   ;;  %v10671_v52 = vld [vmem:[%s17213_s1 + $0x3e4] ss:$48 sps:$4 sm:$0xff]  }
  0xaf   :  { %1758 = vmatprep.subr.bf16.mxu1 %v10632_v23  ;;  %1697 = vmatpush2.bf16.msra.mxu0 %v10638_v11  ;;  %18006 = vst [vmem:[#allocation62_spill] sm:$0xff] %v10665_v16  ;;  %18007 = vst [vmem:[#allocation63_spill] sm:$0xff] %v10671_v52  ;;  %v10677_v23 = vld [vmem:[%s17213_s1 + $0x208] ss:$48 sps:$4 sm:$0xff]   ;;  %v10683_v11 = vld [vmem:[%s17213_s1 + $0x1ac] ss:$48 sps:$4 sm:$0xff]  }
  0xb0   :  { %1698 = vmatprep.subr.bf16.mxu0 %v10646_v19  ;;  %18008 = vst [vmem:[#allocation64_spill] sm:$0xff] %v10677_v23  ;;  %18009 = vst [vmem:[#allocation65_spill] sm:$0xff] %v10683_v11  ;;  %v10689_v19 = vld [vmem:[%s17213_s1 + $0x3e0] ss:$48 sps:$4 sm:$0xff]  }
  0xb1   :  { %18010 = vst [vmem:[#allocation66_spill] sm:$0xff] %v10689_v19 }
  0xb2   :  { %1759 = vmatpush1.bf16.msra.mxu1 %v10652_v28  ;;  %v10695_v28 = vld [vmem:[%s17213_s1 + $0x384] ss:$48 sps:$4 sm:$0xff]  }
  0xb3   :  { %1760 = vmatprep.subr.bf16.mxu1 %v10659_v12  ;;  %1699 = vmatpush2.bf16.msra.mxu0 %v10665_v16  ;;  %18011 = vst [vmem:[#allocation67_spill] sm:$0xff] %v10695_v28  ;;  %v10701_v12 = vld [vmem:[%s17213_s1 + $0x1a8] ss:$48 sps:$4 sm:$0xff]   ;;  %v10707_v16 = vld [vmem:[%s17213_s1 + $0x14c] ss:$48 sps:$4 sm:$0xff]  }
  0xb4   :  { %1700 = vmatprep.subr.bf16.mxu0 %v10671_v52  ;;  %18012 = vst [vmem:[#allocation68_spill] sm:$0xff] %v10701_v12  ;;  %18013 = vst [vmem:[#allocation69_spill] sm:$0xff] %v10707_v16  ;;  %v10713_v52 = vld [vmem:[%s17213_s1 + $0x380] ss:$48 sps:$4 sm:$0xff]  }
  0xb5   :  { %18014 = vst [vmem:[#allocation70_spill] sm:$0xff] %v10713_v52 }
  0xb6   :  { %1761 = vmatpush1.bf16.msra.mxu1 %v10677_v23  ;;  %v10719_v23 = vld [vmem:[%s17213_s1 + $0x324] ss:$48 sps:$4 sm:$0xff]  }
  0xb7   :  { %1762 = vmatprep.subr.bf16.mxu1 %v10683_v11  ;;  %1701 = vmatpush2.bf16.msra.mxu0 %v10689_v19  ;;  %18015 = vst [vmem:[#allocation71_spill] sm:$0xff] %v10719_v23  ;;  %v10725_v11 = vld [vmem:[%s17213_s1 + $0x148] ss:$48 sps:$4 sm:$0xff]  }
  0xb8   :  { %1702 = vmatprep.subr.bf16.mxu0 %v10695_v28  ;;  %18016 = vst [vmem:[#allocation72_spill] sm:$0xff] %v10725_v11  ;;  %v244_v19 = vld [vmem:[%s17213_s1 + $0x688] sm:$0xff] }
  0xb9   :  { %v10734_v28 = vld [vmem:[%s17213_s1 + $0xec] ss:$48 sps:$4 sm:$0xff]   ;;  %v10743_v1 = vcombine.high %v244_v19, %v244_v19  ;;  %v8409_v6 = vcombine.low %v244_v19, %v244_v19 }
  0xba   :  { %1763 = vmatpush1.bf16.msra.mxu1 %v10701_v12  ;;  %18017 = vst [vmem:[#allocation73_spill] sm:$0xff] %v10734_v28  ;;  %v10740_v12 = vld [vmem:[%s17213_s1 + $0x320] ss:$48 sps:$4 sm:$0xff]  }
  0xbb   :  { %1764 = vmatprep.subr.bf16.mxu1 %v10707_v16  ;;  %1703 = vmatpush2.bf16.msra.mxu0 %v10713_v52  ;;  %18018 = vst [vmem:[#allocation74_spill] sm:$0xff] %v10740_v12  ;;  %18019 = vst [vmem:[#allocation75_spill] sm:$0xff] %v10743_v1  ;;  %v10749_v16 = vld [vmem:[%s17213_s1 + $0xe8] ss:$48 sps:$4 sm:$0xff]   ;;  %v10755_v52 = vld [vmem:[%s17213_s1 + $0x8c] ss:$48 sps:$4 sm:$0xff]  }
  0xbc   :  { %1704 = vmatprep.subr.bf16.mxu0 %v10719_v23  ;;  %18020 = vst [vmem:[#allocation76_spill] sm:$0xff] %v10749_v16  ;;  %18021 = vst [vmem:[#allocation77_spill] sm:$0xff] %v10755_v52  ;;  %v10761_v19 = vsel %vm1309_vm0, %v8409_v6, 0  ;;  %v10779_v6 = vld [vmem:[%s17213_s1 + $0x2c] ss:$48 sps:$4 sm:$0xff]  }
  0xbd   :  { %18022 = vst [vmem:[#allocation78_spill] sm:$0xff] %v10761_v19  ;;  %18025 = vst [vmem:[#allocation81_spill] sm:$0xff] %v10779_v6  ;;  %v10869_v23 = vld [vmem:[%s17213_s1 + $0x1e4] ss:$48 sps:$4 sm:$0xff]  }
  0xbe   :  { %1765 = vmatpush1.bf16.msra.mxu1 %v10725_v11  ;;  %v10766_v11 = vld [vmem:[%s17213_s1 + $0x62c] ss:$48 sps:$4 sm:$0xff]  }
  0xbf   :  { %1766 = vmatprep.subr.bf16.mxu1 %v10734_v28  ;;  %1705 = vmatpush2.bf16.msra.mxu0 %v10740_v12  ;;  %18023 = vst [vmem:[#allocation79_spill] sm:$0xff] %v10766_v11  ;;  %v10772_v28 = vld [vmem:[%s17213_s1 + $0x88] ss:$48 sps:$4 sm:$0xff]  }
  0xc0   :  { %8421 = vmatprep.subr.msk.bf16.mxu0 %vm1309_vm0, %v10743_v1  ;;  %18024 = vst [vmem:[#allocation80_spill] sm:$0xff] %v10772_v28  ;;  %v10804_v1 = vld [vmem:[%s17213_s1 + $0x5cc] ss:$48 sps:$4 sm:$0xff]  }
  0xc1   :  { %18028 = vst [vmem:[#allocation84_spill] sm:$0xff] %v10804_v1 }
  0xc2   :  { %1767 = vmatpush1.bf16.msra.mxu1 %v10749_v16  ;;  %1707 = vmatmul.mubr.bf16.vlgmr.msra.gmra.mxu0 %v9994_v10  ;;  %v10785_v16 = vld [vmem:[%s17213_s1 + $0x628] ss:$48 sps:$4 sm:$0xff]  }
  0xc3   :  { %1768 = vmatprep.subr.bf16.mxu1 %v10755_v52  ;;  %1810 = vmatpush1.bf16.msra.mxu0 %v10761_v19  ;;  %18026 = vst [vmem:[#allocation82_spill] sm:$0xff] %v10785_v16  ;;  %v10792_v52 = vld [vmem:[%s17214_s0 + $0xc] sm:$0xff]  ;;  %v10798_v19 = vld [vmem:[%s17213_s1 + $0x28] ss:$48 sps:$4 sm:$0xff]  }
  0xc4   :  { %1829 = vmatprep.mubr.bf16.mxu0 %v17988_v20  ;;  %1811 = vmatprep.subr.bf16.mxu0 %v10766_v11  ;;  %18027 = vst [vmem:[#allocation83_spill] sm:$0xff] %v10798_v19  ;;  %v10809_v11 = vcombine.high %v10792_v52, %v10792_v52 }
  0xc6   :  { %1769 = vmatpush1.bf16.msra.mxu1 %v10772_v28  ;;  %v10814_v28 = vld [vmem:[%s17213_s1 + $0x2a4] ss:$48 sps:$4 sm:$0xff]  }
  0xc7   :  { %1770 = vmatprep.subr.bf16.mxu1 %v10779_v6  ;;  %1812 = vmatpush1.bf16.msra.mxu0 %v10785_v16  ;;  %18029 = vst [vmem:[#allocation85_spill] sm:$0xff] %v10814_v28  ;;  %v10821_v6 = vld [vmem:[%s17213_s1 + $0x5c8] ss:$48 sps:$4 sm:$0xff]   ;;  %v10829_v16 = vld [vmem:[%s17213_s1 + $0x56c] ss:$48 sps:$4 sm:$0xff]  }
  0xc8   :  { %1889 = vmatprep.subr.bf16.mxu0 %v10814_v28  ;;  %18030 = vst [vmem:[#allocation86_spill] sm:$0xff] %v10821_v6  ;;  %18031 = vst [vmem:[#allocation87_spill] sm:$0xff] %v10829_v16  ;;  %v10834_v28 = vld [vmem:[%s17213_s1 + $0x2a0] ss:$48 sps:$4 sm:$0xff]  }
  0xc9   :  { %18032 = vst [vmem:[#allocation88_spill] sm:$0xff] %v10834_v28 }
  0xca   :  { %1771 = vmatpush1.bf16.msra.mxu1 %v10798_v19  ;;  %8422 = vmatmul.mubr.msk.bf16.vlgmr.msra.gmra.mxu0 %vm1305_vm1, %v10587_v32  ;;  %v10843_v32 = vld [vmem:[%s17213_s1 + $0x244] ss:$48 sps:$4 sm:$0xff]  }
  0xcb   :  { %1772 = vmatprep.subr.bf16.mxu1 %v10804_v1  ;;  %1890 = vmatpush1.bf16.msra.mxu0 %v10834_v28  ;;  %18033 = vst [vmem:[#allocation89_spill] sm:$0xff] %v10843_v32  ;;  %v10850_v1 = vld [vmem:[%s17213_s1 + $0x568] ss:$48 sps:$4 sm:$0xff]   ;;  %v10858_v28 = vld [vmem:[%s17213_s1 + $0x50c] ss:$48 sps:$4 sm:$0xff]  }
  0xcc   :  { %1921 = vmatprep.mubr.bf16.mxu0 %v10809_v11  ;;  %1891 = vmatprep.subr.bf16.mxu0 %v10843_v32  ;;  %18034 = vst [vmem:[#allocation90_spill] sm:$0xff] %v10850_v1  ;;  %18035 = vst [vmem:[#allocation91_spill] sm:$0xff] %v10858_v28  ;;  %v10863_v32 = vld [vmem:[%s17213_s1 + $0x240] ss:$48 sps:$4 sm:$0xff]  }
  0xcd   :  { %v10838_v19 = vpop.f32.mrf.mxu1  ;;  %18036 = vst [vmem:[#allocation92_spill] sm:$0xff] %v10863_v32 }
  0xce   :  { %1773 = vmatpush2.bf16.msra.mxu1 %v10821_v6 }
  0xcf   :  { %v10852_v12 = vpop.f32.mrf.mxu1  ;;  %1774 = vmatprep.subr.bf16.mxu1 %v10829_v16  ;;  %1892 = vmatpush1.bf16.msra.mxu0 %v10863_v32  ;;  %v10876_v16 = vld [vmem:[%s17213_s1 + $0x508] ss:$48 sps:$4 sm:$0xff]   ;;  %v10887_v32 = vld [vmem:[%s17213_s1 + $0x1e0] ss:$48 sps:$4 sm:$0xff]  }
  0xd0   :  { %1893 = vmatprep.subr.bf16.mxu0 %v10869_v23  ;;  %18037 = vst [vmem:[#allocation93_spill] sm:$0xff] %v10876_v16  ;;  %18039 = vst [vmem:[#allocation95_spill] sm:$0xff] %v10887_v32 }
  0xd1   :  { %v1425_v6 = vpop.f32.mrf.mxu1 }
  0xd2   :  { %1775 = vmatpush2.bf16.msra.mxu1 %v10850_v1  ;;  %v10882_v6 = vld [vmem:[%s17213_s1 + $0x4ac] ss:$48 sps:$4 sm:$0xff]   ;;  %v10893_v1 = vld [vmem:[%s17213_s1 + $0x184] ss:$48 sps:$4 sm:$0xff]  }
  0xd3   :  { %v1426_v5 = vpop.f32.mrf.mxu1  ;;  %1776 = vmatprep.subr.bf16.mxu1 %v10858_v28  ;;  %18038 = vst [vmem:[#allocation94_spill] sm:$0xff] %v10882_v6  ;;  %1894 = vmatpush1.bf16.msra.mxu0 %v10887_v32  ;;  %18040 = vst [vmem:[#allocation96_spill] sm:$0xff] %v10893_v1  ;;  %v10906_v32 = vld [vmem:[%s17213_s1 + $0x44c] ss:$48 sps:$4 sm:$0xff]   ;;  %v10911_v28 = vld [vmem:[%s17213_s1 + $0x180] ss:$48 sps:$4 sm:$0xff]  }
  0xd4   :  { %1895 = vmatprep.subr.bf16.mxu0 %v10893_v1  ;;  %v10900_v5 = vld [vmem:[%s17213_s1 + $0x4a8] ss:$48 sps:$4 sm:$0xff]   ;;  %18042 = vst [vmem:[#allocation98_spill] sm:$0xff] %v10906_v32  ;;  %18043 = vst [vmem:[#allocation99_spill] sm:$0xff] %v10911_v28  ;;  %v10935_v1 = vld [vmem:[%s17213_s1 + $0x120] ss:$48 sps:$4 sm:$0xff]  }
  0xd5   :  { %18041 = vst [vmem:[#allocation97_spill] sm:$0xff] %v10900_v5  ;;  %18047 = vst [vmem:[#allocation103_spill] sm:$0xff] %v10935_v1 }
  0xd6   :  { %1777 = vmatpush2.bf16.msra.mxu1 %v10876_v16  ;;  %v10917_v16 = vld [vmem:[%s17213_s1 + $0x124] ss:$48 sps:$4 sm:$0xff]  }
  0xd7   :  { %1778 = vmatprep.subr.bf16.mxu1 %v10882_v6  ;;  %1896 = vmatpush1.bf16.msra.mxu0 %v10911_v28  ;;  %18044 = vst [vmem:[#allocation100_spill] sm:$0xff] %v10917_v16  ;;  %v10924_v6 = vld [vmem:[%s17213_s1 + $0x448] ss:$48 sps:$4 sm:$0xff]   ;;  %v10930_v28 = vld [vmem:[%s17213_s1 + $0x3ec] ss:$48 sps:$4 sm:$0xff]  }
  0xd8   :  { %1897 = vmatprep.subr.bf16.mxu0 %v10917_v16  ;;  %18045 = vst [vmem:[#allocation101_spill] sm:$0xff] %v10924_v6  ;;  %18046 = vst [vmem:[#allocation102_spill] sm:$0xff] %v10930_v28  ;;  %v10959_v16 = vld [vmem:[%s17213_s1 + $0xc0] ss:$48 sps:$4 sm:$0xff]  }
  0xd9   :  { %18051 = vst [vmem:[#allocation107_spill] sm:$0xff] %v10959_v16 }
  0xda   :  { %1779 = vmatpush2.bf16.msra.mxu1 %v10900_v5  ;;  %v10941_v5 = vld [vmem:[%s17213_s1 + $0xc4] ss:$48 sps:$4 sm:$0xff]  }
  0xdb   :  { %1780 = vmatprep.subr.bf16.mxu1 %v10906_v32  ;;  %1898 = vmatpush1.bf16.msra.mxu0 %v10935_v1  ;;  %18048 = vst [vmem:[#allocation104_spill] sm:$0xff] %v10941_v5  ;;  %v10948_v32 = vld [vmem:[%s17213_s1 + $0x3e8] ss:$48 sps:$4 sm:$0xff]   ;;  %v10954_v1 = vld [vmem:[%s17213_s1 + $0x38c] ss:$48 sps:$4 sm:$0xff]  }
  0xdc   :  { %1899 = vmatprep.subr.bf16.mxu0 %v10941_v5  ;;  %18049 = vst [vmem:[#allocation105_spill] sm:$0xff] %v10948_v32  ;;  %18050 = vst [vmem:[#allocation106_spill] sm:$0xff] %v10954_v1  ;;  %v10983_v5 = vld [vmem:[%s17213_s1 + $0x60] ss:$48 sps:$4 sm:$0xff]  }
  0xdd   :  { %18054 = vst [vmem:[#allocation110_spill] sm:$0xff] %v10983_v5 }
  0xde   :  { %1781 = vmatpush2.bf16.msra.mxu1 %v10924_v6  ;;  %v10965_v6 = vld [vmem:[%s17213_s1 + $0x64] ss:$48 sps:$4 sm:$0xff]  }
  0xdf   :  { %1782 = vmatprep.subr.bf16.mxu1 %v10930_v28  ;;  %1900 = vmatpush1.bf16.msra.mxu0 %v10959_v16  ;;  %v10972_v28 = vld [vmem:[%s17213_s1 + $0x388] ss:$48 sps:$4 sm:$0xff]   ;;  %v10978_v16 = vld [vmem:[%s17213_s1 + $0x32c] ss:$48 sps:$4 sm:$0xff]  }
  0xe0   :  { %1901 = vmatprep.subr.bf16.mxu0 %v10965_v6  ;;  %18052 = vst [vmem:[#allocation108_spill] sm:$0xff] %v10972_v28  ;;  %18053 = vst [vmem:[#allocation109_spill] sm:$0xff] %v10978_v16 }
  0xe2   :  { %1783 = vmatpush2.bf16.msra.mxu1 %v10948_v32  ;;  %v10989_v32 = vld [vmem:[%s17213_s1 + $0x4] ss:$48 sps:$4 sm:$0xff]  }
  0xe3   :  { %1784 = vmatprep.subr.bf16.mxu1 %v10954_v1  ;;  %1902 = vmatpush1.bf16.msra.mxu0 %v10983_v5  ;;  %18055 = vst [vmem:[#allocation111_spill] sm:$0xff] %v10989_v32  ;;  %v10996_v1 = vld [vmem:[%s17213_s1 + $0x328] ss:$48 sps:$4 sm:$0xff]   ;;  %v11002_v5 = vld [vmem:[%s17213_s1] ss:$48 sps:$4 sm:$0xff]  }
  0xe4   :  { %1903 = vmatprep.subr.bf16.mxu0 %v10989_v32  ;;  %18056 = vst [vmem:[#allocation112_spill] sm:$0xff] %v10996_v1  ;;  %18057 = vst [vmem:[#allocation113_spill] sm:$0xff] %v11002_v5  ;;  %v11008_v32 = vld [vmem:[%s17213_s1 + $0x5a4] ss:$48 sps:$4 sm:$0xff]  }
  0xe5   :  { %18058 = vst [vmem:[#allocation114_spill] sm:$0xff] %v11008_v32 }
  0xe6   :  { %1785 = vmatpush2.bf16.msra.mxu1 %v10972_v28  ;;  %v11200_v28 = vld [vmem:[%s17213_s1 + $0x300] ss:$48 sps:$4 sm:$0xff]  }
  0xe7   :  { %1786 = vmatprep.subr.bf16.mxu1 %v10978_v16  ;;  %1904 = vmatpush1.bf16.msra.mxu0 %v11002_v5  ;;  %v11017_v16 = vld [vmem:[%s17213_s1 + $0x5a0] ss:$48 sps:$4 sm:$0xff]   ;;  %v11024_v5 = vld [vmem:[%s17213_s1 + $0x544] ss:$48 sps:$4 sm:$0xff]   ;;  %18084 = vst [vmem:[#allocation140_spill] sm:$0xff] %v11200_v28 }
  0xe8   :  { %1905 = vmatprep.subr.bf16.mxu0 %v11008_v32  ;;  %18059 = vst [vmem:[#allocation115_spill] sm:$0xff] %v11017_v16  ;;  %18060 = vst [vmem:[#allocation116_spill] sm:$0xff] %v11024_v5 }
  0xea   :  { %1787 = vmatpush2.bf16.msra.mxu1 %v10996_v1  ;;  %v11160_v1 = vld [vmem:[%s17213_s1 + $0x12c] ss:$48 sps:$4 sm:$0xff]  }
  0xeb   :  { %8428 = vmatprep.subr.msk.bf16.mxu1 %vm1309_vm0, %v9789_v4  ;;  %1906 = vmatpush2.bf16.msra.mxu0 %v11017_v16  ;;  %v11032_v4 = vld [vmem:[%s17213_s1 + $0x604] ss:$48 sps:$4 sm:$0xff]   ;;  %v11106_v16 = vld [vmem:[%s17213_s1 + $0x248] ss:$48 sps:$4 sm:$0xff]   ;;  %18081 = vst [vmem:[#allocation137_spill] sm:$0xff] %v11160_v1 }
  0xec   :  { %1907 = vmatprep.subr.bf16.mxu0 %v11024_v5  ;;  %18061 = vst [vmem:[#allocation117_spill] sm:$0xff] %v11032_v4  ;;  %v11050_v5 = vld [vmem:[%s17214_s0 + $0x14] ss:$0 sps:$4 sm:$0xff]   ;;  %18072 = vst [vmem:[#allocation128_spill] sm:$0xff] %v11106_v16 }
  0xed   :  { %1789 = vmatmul.mubr.bf16.vlgmr.msra.gmra.mxu1 %v9994_v10  ;;  %v11038_v10 = vld [vmem:[%s17213_s1 + $0x540] ss:$48 sps:$4 sm:$0xff]  }
  0xee   :  { %1943 = vmatpush1.bf16.msra.mxu1 %v9803_v9  ;;  %1962 = vmatprep.mubr.bf16.mxu1 %v17988_v20  ;;  %18062 = vst [vmem:[#allocation118_spill] sm:$0xff] %v11038_v10  ;;  %v11044_v9 = vld [vmem:[%s17213_s1 + $0x4e4] ss:$48 sps:$4 sm:$0xff]  }
  0xef   :  { %1944 = vmatprep.subr.bf16.mxu1 %v11032_v4  ;;  %1908 = vmatpush2.bf16.msra.mxu0 %v11038_v10  ;;  %18063 = vst [vmem:[#allocation119_spill] sm:$0xff] %v11044_v9  ;;  %v11055_v4 = vld [vmem:[%s17213_s1 + $0x600] ss:$48 sps:$4 sm:$0xff]   ;;  %v11061_v10 = vld [vmem:[%s17213_s1 + $0x2ac] ss:$48 sps:$4 sm:$0xff]  }
  0xf0   :  { %1909 = vmatprep.subr.bf16.mxu0 %v11044_v9  ;;  %18064 = vst [vmem:[#allocation120_spill] sm:$0xff] %v11055_v4  ;;  %18065 = vst [vmem:[#allocation121_spill] sm:$0xff] %v11061_v10  ;;  %v11067_v9 = vld [vmem:[%s17213_s1 + $0x4e0] ss:$48 sps:$4 sm:$0xff]  }
  0xf1   :  { %18066 = vst [vmem:[#allocation122_spill] sm:$0xff] %v11067_v9 }
  0xf2   :  { %1945 = vmatpush1.bf16.msra.mxu1 %v11055_v4  ;;  %v11075_v4 = vld [vmem:[%s17213_s1 + $0x484] ss:$48 sps:$4 sm:$0xff]  }
  0xf3   :  { %1971 = vmatprep.subr.bf16.mxu1 %v11061_v10  ;;  %1910 = vmatpush2.bf16.msra.mxu0 %v11067_v9  ;;  %18067 = vst [vmem:[#allocation123_spill] sm:$0xff] %v11075_v4  ;;  %v11081_v10 = vld [vmem:[%s17213_s1 + $0x2a8] ss:$48 sps:$4 sm:$0xff]   ;;  %v11088_v9 = vld [vmem:[%s17213_s1 + $0x24c] ss:$48 sps:$4 sm:$0xff]  }
  0xf4   :  { %1911 = vmatprep.subr.bf16.mxu0 %v11075_v4  ;;  %18068 = vst [vmem:[#allocation124_spill] sm:$0xff] %v11081_v10  ;;  %18069 = vst [vmem:[#allocation125_spill] sm:$0xff] %v11088_v9  ;;  %v11094_v4 = vld [vmem:[%s17213_s1 + $0x480] ss:$48 sps:$4 sm:$0xff]  }
  0xf5   :  { %8429 = vmatmul.mubr.msk.bf16.vlgmr.msra.gmra.mxu1 %vm1305_vm1, %v11050_v5  ;;  %18070 = vst [vmem:[#allocation126_spill] sm:$0xff] %v11094_v4 }
  0xf6   :  { %1972 = vmatpush1.bf16.msra.mxu1 %v11081_v10  ;;  %2003 = vmatprep.mubr.bf16.mxu1 %v10809_v11  ;;  %v11100_v10 = vld [vmem:[%s17213_s1 + $0x424] ss:$48 sps:$4 sm:$0xff]  }
  0xf7   :  { %1973 = vmatprep.subr.bf16.mxu1 %v11088_v9  ;;  %1912 = vmatpush2.bf16.msra.mxu0 %v11094_v4  ;;  %18071 = vst [vmem:[#allocation127_spill] sm:$0xff] %v11100_v10  ;;  %v11112_v9 = vld [vmem:[%s17213_s1 + $0x1ec] ss:$48 sps:$4 sm:$0xff]   ;;  %v11118_v4 = vld [vmem:[%s17213_s1 + $0x420] ss:$48 sps:$4 sm:$0xff]  }
  0xf8   :  { %1913 = vmatprep.subr.bf16.mxu0 %v11100_v10  ;;  %18073 = vst [vmem:[#allocation129_spill] sm:$0xff] %v11112_v9  ;;  %18074 = vst [vmem:[#allocation130_spill] sm:$0xff] %v11118_v4  ;;  %v11124_v10 = vld [vmem:[%s17213_s1 + $0x3c4] ss:$48 sps:$4 sm:$0xff]  }
  0xf9   :  { %18075 = vst [vmem:[#allocation131_spill] sm:$0xff] %v11124_v10 }
  0xfa   :  { %1974 = vmatpush1.bf16.msra.mxu1 %v11106_v16  ;;  %v11130_v16 = vld [vmem:[%s17213_s1 + $0x1e8] ss:$48 sps:$4 sm:$0xff]  }
  0xfb   :  { %1975 = vmatprep.subr.bf16.mxu1 %v11112_v9  ;;  %1914 = vmatpush2.bf16.msra.mxu0 %v11118_v4  ;;  %18076 = vst [vmem:[#allocation132_spill] sm:$0xff] %v11130_v16  ;;  %v11136_v9 = vld [vmem:[%s17213_s1 + $0x18c] ss:$48 sps:$4 sm:$0xff]   ;;  %v11142_v4 = vld [vmem:[%s17213_s1 + $0x3c0] ss:$48 sps:$4 sm:$0xff]  }
  0xfc   :  { %1915 = vmatprep.subr.bf16.mxu0 %v11124_v10  ;;  %18077 = vst [vmem:[#allocation133_spill] sm:$0xff] %v11136_v9  ;;  %18078 = vst [vmem:[#allocation134_spill] sm:$0xff] %v11142_v4  ;;  %v11148_v10 = vld [vmem:[%s17213_s1 + $0x364] ss:$48 sps:$4 sm:$0xff]  }
  0xfd   :  { %18079 = vst [vmem:[#allocation135_spill] sm:$0xff] %v11148_v10 }
  0xfe   :  { %1976 = vmatpush1.bf16.msra.mxu1 %v11130_v16  ;;  %v11154_v16 = vld [vmem:[%s17213_s1 + $0x188] ss:$48 sps:$4 sm:$0xff]  }
  0xff   :  { %1977 = vmatprep.subr.bf16.mxu1 %v11136_v9  ;;  %1916 = vmatpush2.bf16.msra.mxu0 %v11142_v4  ;;  %18080 = vst [vmem:[#allocation136_spill] sm:$0xff] %v11154_v16 }
 0x100   :  { %1917 = vmatprep.subr.bf16.mxu0 %v11148_v10  ;;  %v11169_v10 = vld [vmem:[%s17213_s1 + $0x360] ss:$48 sps:$4 sm:$0xff]  }
 0x101   :  { %18082 = vst [vmem:[#allocation138_spill] sm:$0xff] %v11169_v10 }
 0x102   :  { %1978 = vmatpush1.bf16.msra.mxu1 %v11154_v16  ;;  %v1380_v9 = vpop.f32.mrf.mxu0  ;;  %v11175_v16 = vld [vmem:[%s17213_s1 + $0x304] ss:$48 sps:$4 sm:$0xff]  }
 0x103   :  { %1979 = vmatprep.subr.bf16.mxu1 %v11160_v1  ;;  %v11164_v4 = vadd.f32 %v10838_v19, %v1380_v9  ;;  %1918 = vmatpush2.bf16.msra.mxu0 %v11169_v10  ;;  %18083 = vst [vmem:[#allocation139_spill] sm:$0xff] %v11175_v16  ;;  %v11181_v9 = vld [vmem:[%s17213_s1 + $0x128] ss:$48 sps:$4 sm:$0xff]   ;;  %v11190_v10 = vld [vmem:[%s17213_s1 + $0xcc] ss:$48 sps:$4 sm:$0xff]  }
 0x104   :  { %v1382_v32 = vpop.f32.mrf.mxu0  ;;  %1919 = vmatprep.subr.bf16.mxu0 %v11175_v16  ;;  %v11195_v16 = vcombine.low %v10792_v52, %v10792_v52 }
 0x105   :  { %v11185_v19 = vadd.f32 %v10852_v12, %v1382_v32  ;;  %v11208_v32 = vld [vmem:[%s17213_s1 + $0xc8] ss:$48 sps:$4 sm:$0xff]  }
 0x106   :  { %1980 = vmatpush1.bf16.msra.mxu1 %v11181_v9  ;;  %v1384_v1 = vpop.f32.mrf.mxu0  ;;  %18085 = vst [vmem:[#allocation141_spill] sm:$0xff] %v11208_v32 }
 0x107   :  { %1981 = vmatprep.subr.bf16.mxu1 %v11190_v10  ;;  %1920 = vmatpush2.bf16.msra.mxu0 %v11200_v28  ;;  %v11215_v1 = vld [vmem:[%s17213_s1 + $0x6c] ss:$48 sps:$4 sm:$0xff]  }
 0x108   :  { %8430 = vmatprep.subr.msk.bf16.mxu0 %vm1309_vm0, %v10025_v21  ;;  %v1385_v12 = vpop.f32.mrf.mxu0  ;;  %18086 = vst [vmem:[#allocation142_spill] sm:$0xff] %v11215_v1  ;;  %v11230_v21 = vld [vmem:[%s17213_s1 + $0xc] ss:$48 sps:$4 sm:$0xff]  }
 0x109   :  { %v11224_v12 = vld [vmem:[%s17213_s1 + $0x68] ss:$48 sps:$4 sm:$0xff]   ;;  %18088 = vst [vmem:[#allocation144_spill] sm:$0xff] %v11230_v21 }
 0x10a   :  { %1982 = vmatpush1.bf16.msra.mxu1 %v11208_v32  ;;  %1922 = vmatmul.mubr.bf16.vlgmr.msra.gmra.mxu0 %v11195_v16  ;;  %18087 = vst [vmem:[#allocation143_spill] sm:$0xff] %v11224_v12 }
 0x10b   :  { %1983 = vmatprep.subr.bf16.mxu1 %v11215_v1  ;;  %2025 = vmatpush1.bf16.msra.mxu0 %v10036_v25 }
 0x10c   :  { %2044 = vmatprep.mubr.bf16.mxu0 %v17988_v20  ;;  %2026 = vmatprep.subr.bf16.mxu0 %v10041_v26  ;;  %v11237_v26 = vld [vmem:[%s17213_s1 + $0x2b4] ss:$48 sps:$4 sm:$0xff]  }
 0x10d   :  { %v1462_v52 = vpop.f32.mrf.mxu1  ;;  %18089 = vst [vmem:[#allocation145_spill] sm:$0xff] %v11237_v26 }
 0x10e   :  { %1984 = vmatpush1.bf16.msra.mxu1 %v11224_v12  ;;  %v11243_v12 = vld [vmem:[%s17213_s1 + $0x8] ss:$48 sps:$4 sm:$0xff]  }
 0x10f   :  { %v1464_v32 = vpop.f32.mrf.mxu1  ;;  %1985 = vmatprep.subr.bf16.mxu1 %v11230_v21  ;;  %2027 = vmatpush1.bf16.msra.mxu0 %v10061_v30  ;;  %18090 = vst [vmem:[#allocation146_spill] sm:$0xff] %v11243_v12  ;;  %v11249_v30 = vld [vmem:[%s17213_s1 + $0x5ac] ss:$48 sps:$4 sm:$0xff]  }
 0x110   :  { %2053 = vmatprep.subr.bf16.mxu0 %v11237_v26  ;;  %18091 = vst [vmem:[#allocation147_spill] sm:$0xff] %v11249_v30  ;;  %v11272_v26 = vld [vmem:[%s17213_s1 + $0x5a8] ss:$48 sps:$4 sm:$0xff]   ;;  %v11278_v21 = vld [vmem:[%s17213_s1 + $0x54c] ss:$48 sps:$4 sm:$0xff]  }
 0x111   :  { %v1466_v25 = vpop.f32.mrf.mxu1  ;;  %18094 = vst [vmem:[#allocation150_spill] sm:$0xff] %v11272_v26  ;;  %18095 = vst [vmem:[#allocation151_spill] sm:$0xff] %v11278_v21 }
 0x112   :  { %1986 = vmatpush1.bf16.msra.mxu1 %v11243_v12  ;;  %8431 = vmatmul.mubr.msk.bf16.vlgmr.msra.gmra.mxu0 %vm1305_vm1, %v11050_v5  ;;  %v11257_v25 = vld [vmem:[%s17213_s1 + $0x2b0] ss:$48 sps:$4 sm:$0xff]   ;;  %v11264_v12 = vld [vmem:[%s17213_s1 + $0x254] ss:$48 sps:$4 sm:$0xff]  }
 0x113   :  { %v1467_v1 = vpop.f32.mrf.mxu1  ;;  %1987 = vmatprep.subr.bf16.mxu1 %v11249_v30  ;;  %18092 = vst [vmem:[#allocation148_spill] sm:$0xff] %v11257_v25  ;;  %2054 = vmatpush1.bf16.msra.mxu0 %v11257_v25  ;;  %18093 = vst [vmem:[#allocation149_spill] sm:$0xff] %v11264_v12 }
 0x114   :  { %2085 = vmatprep.mubr.bf16.mxu0 %v10809_v11  ;;  %2055 = vmatprep.subr.bf16.mxu0 %v11264_v12  ;;  %v11346_v12 = vld [vmem:[%s17213_s1 + $0x42c] ss:$48 sps:$4 sm:$0xff]  }
 0x115   :  { %v1503_v1 = vpop.f32.mrf.mxu1 }
 0x116   :  { %v11267_v30 = vadd.f32 %v1503_v1, %v1462_v52  ;;  %1988 = vmatpush2.bf16.msra.mxu1 %v11272_v26  ;;  %v11286_v52 = vld [vmem:[%s17213_s1 + $0x250] ss:$48 sps:$4 sm:$0xff]   ;;  %v11292_v26 = vld [vmem:[%s17213_s1 + $0x1f4] ss:$48 sps:$4 sm:$0xff]  }
 0x117   :  { %v1505_v25 = vpop.f32.mrf.mxu1  ;;  %1989 = vmatprep.subr.bf16.mxu1 %v11278_v21  ;;  %18096 = vst [vmem:[#allocation152_spill] sm:$0xff] %v11286_v52  ;;  %2056 = vmatpush1.bf16.msra.mxu0 %v11286_v52  ;;  %18097 = vst [vmem:[#allocation153_spill] sm:$0xff] %v11292_v26  ;;  %v11304_v52 = vld [vmem:[%s17213_s1 + $0x4ec] ss:$48 sps:$4 sm:$0xff]  }
 0x118   :  { %v11281_v28 = vadd.f32 %v1505_v25, %v1464_v32  ;;  %2057 = vmatprep.subr.bf16.mxu0 %v11292_v26  ;;  %v11298_v32 = vld [vmem:[%s17213_s1 + $0x548] ss:$48 sps:$4 sm:$0xff]   ;;  %18099 = vst [vmem:[#allocation155_spill] sm:$0xff] %v11304_v52 }
 0x119   :  { %v1507_v1 = vpop.f32.mrf.mxu1  ;;  %18098 = vst [vmem:[#allocation154_spill] sm:$0xff] %v11298_v32 }
 0x11a   :  { %1990 = vmatpush2.bf16.msra.mxu1 %v11298_v32  ;;  %v11310_v1 = vld [vmem:[%s17213_s1 + $0x1f0] ss:$48 sps:$4 sm:$0xff]  }
 0x11b   :  { %v1508_v25 = vpop.f32.mrf.mxu1  ;;  %1991 = vmatprep.subr.bf16.mxu1 %v11304_v52  ;;  %18100 = vst [vmem:[#allocation156_spill] sm:$0xff] %v11310_v1  ;;  %2058 = vmatpush1.bf16.msra.mxu0 %v11310_v1  ;;  %v11324_v52 = vld [vmem:[%s17213_s1 + $0x4e8] ss:$48 sps:$4 sm:$0xff]   ;;  %v11332_v1 = vld [vmem:[%s17213_s1 + $0x48c] ss:$48 sps:$4 sm:$0xff]  }
 0x11c   :  { %v11318_v25 = vld [vmem:[%s17213_s1 + $0x194] ss:$48 sps:$4 sm:$0xff]   ;;  %18102 = vst [vmem:[#allocation158_spill] sm:$0xff] %v11324_v52 }
 0x11d   :  { %v11313_v26 = vpop.f32.mrf.mxu1  ;;  %18101 = vst [vmem:[#allocation157_spill] sm:$0xff] %v11318_v25  ;;  %2059 = vmatprep.subr.bf16.mxu0 %v11318_v25  ;;  %v11340_v25 = vld [vmem:[%s17213_s1 + $0x488] ss:$48 sps:$4 sm:$0xff]  }
 0x11e   :  { %1992 = vmatpush2.bf16.msra.mxu1 %v11324_v52 }
 0x11f   :  { %v11327_v32 = vpop.f32.mrf.mxu1  ;;  %1993 = vmatprep.subr.bf16.mxu1 %v11332_v1  ;;  %2060 = vmatpush1.bf16.msra.mxu0 %v10046_v27  ;;  %v11360_v27 = vld [vmem:[%s17213_s1 + $0x3cc] ss:$48 sps:$4 sm:$0xff]  }
 0x120   :  { %2061 = vmatprep.subr.bf16.mxu0 %v10055_v29  ;;  %v11368_v29 = vld [vmem:[%s17213_s1 + $0x3c8] ss:$48 sps:$4 sm:$0xff]  }
 0x121   :  { %v1589_v21 = vpop.f32.mrf.mxu1 }
 0x122   :  { %1994 = vmatpush2.bf16.msra.mxu1 %v11340_v25  ;;  %v11354_v21 = vld [vmem:[%s17213_s1 + $0x428] ss:$48 sps:$4 sm:$0xff]  }
 0x123   :  { %v1590_v52 = vpop.f32.mrf.mxu1  ;;  %1995 = vmatprep.subr.bf16.mxu1 %v11346_v12  ;;  %2062 = vmatpush1.bf16.msra.mxu0 %v10071_v33  ;;  %v11374_v33 = vld [vmem:[%s17213_s1 + $0x36c] ss:$48 sps:$4 sm:$0xff]  }
 0x124   :  { %2063 = vmatprep.subr.bf16.mxu0 %v10077_v34  ;;  %v17388_v34 = vlaneseq }
 0x126   :  { %1996 = vmatpush2.bf16.msra.mxu1 %v11354_v21 }
 0x127   :  { %1997 = vmatprep.subr.bf16.mxu1 %v11360_v27  ;;  %2064 = vmatpush1.bf16.msra.mxu0 %v10094_v37  ;;  %v11382_v37 = vld [vmem:[%s17213_s1 + $0x368] ss:$48 sps:$4 sm:$0xff]  }
 0x128   :  { %2065 = vmatprep.subr.bf16.mxu0 %v10102_v38  ;;  %v11388_v38 = vld [vmem:[%s17213_s1 + $0x30c] ss:$48 sps:$4 sm:$0xff]  }
 0x12a   :  { %1998 = vmatpush2.bf16.msra.mxu1 %v11368_v29 }
 0x12b   :  { %1999 = vmatprep.subr.bf16.mxu1 %v11374_v33  ;;  %2066 = vmatpush1.bf16.msra.mxu0 %v10121_v41  ;;  %v11393_v41 = vshrl.u32 %v17388_v34, 7 }
 0x12c   :  { %2067 = vmatprep.subr.bf16.mxu0 %v10127_v42  ;;  %v11399_v42 = vld [vmem:[%s17213_s1 + $0x308] ss:$48 sps:$4 sm:$0xff]  }
 0x12d   :  { %18103 = vst [vmem:[#allocation159_spill] sm:$0xff] %v11393_v41  ;;  %v1859_v52 = vsub.s32 2, %v11393_v41  ;;  %v11957_v41 = vld [vmem:[%s17213_s1 + $0x310] ss:$48 sps:$4 sm:$0xff]  }
 0x12e   :  { %2000 = vmatpush2.bf16.msra.mxu1 %v11382_v37 }
 0x12f   :  { %2001 = vmatprep.subr.bf16.mxu1 %v11388_v38  ;;  %2068 = vmatpush1.bf16.msra.mxu0 %v10145_v45  ;;  %v1847_v45 = vld [vmem:[%s17215_s2] sm:$0x7] }
 0x130   :  { %2069 = vmatprep.subr.bf16.mxu0 %v10153_v46  ;;  %v11409_v34 = vrot.slane %v1847_v45, %v1859_v52  ;;  %v18124_v45 = vld [vmem:[#allocation28_spill] sm:$0xff] }
 0x132   :  { %2002 = vmatpush2.bf16.msra.mxu1 %v11399_v42  ;;  %18104 = vst [vmem:[#allocation160_spill] sm:$0xff] %v11409_v34  ;;  %v11933_v34 = vld [vmem:[%s17213_s1 + $0x370] ss:$48 sps:$4 sm:$0xff]  }
 0x133   :  { %8432 = vmatprep.subr.msk.bf16.mxu1 %vm1309_vm0, %v10065_v31  ;;  %2070 = vmatpush2.bf16.msra.mxu0 %v10172_v48  ;;  %v18107_v48 = vld [vmem:[#allocation44_spill] sm:$0xff] }
 0x134   :  { %2071 = vmatprep.subr.bf16.mxu0 %v10178_v49  ;;  %v18108_v49 = vld [vmem:[#allocation12_spill] sm:$0xff] }
 0x135   :  { %2004 = vmatmul.mubr.bf16.vlgmr.msra.gmra.mxu1 %v11195_v16  ;;  %18263 = vst [vmem:[#allocation12_spill] sm:$0xff] %v11933_v34 }
 0x136   :  { %2107 = vmatpush1.bf16.msra.mxu1 %v10083_v35  ;;  %2126 = vmatprep.mubr.bf16.mxu1 %v17988_v20 }
 0x137   :  { %2108 = vmatprep.subr.bf16.mxu1 %v10088_v36  ;;  %2072 = vmatpush2.bf16.msra.mxu0 %v10196_v53  ;;  %v18111_v53 = vld [vmem:[#allocation15_spill] sm:$0xff] }
 0x138   :  { %2073 = vmatprep.subr.bf16.mxu0 %v10202_v54 }
 0x13a   :  { %2109 = vmatpush1.bf16.msra.mxu1 %v10108_v39 }
 0x13b   :  { %2135 = vmatprep.subr.bf16.mxu1 %v10115_v40  ;;  %2074 = vmatpush2.bf16.msra.mxu0 %v10220_v57 }
 0x13c   :  { %2075 = vmatprep.subr.bf16.mxu0 %v10226_v58  ;;  %v18114_v58 = vld [vmem:[#allocation11_spill] sm:$0xff] }
 0x13d   :  { %8433 = vmatmul.mubr.msk.bf16.vlgmr.msra.gmra.mxu1 %vm1305_vm1, %v11050_v5 }
 0x13e   :  { %2136 = vmatpush1.bf16.msra.mxu1 %v10133_v43  ;;  %2167 = vmatprep.mubr.bf16.mxu1 %v10809_v11 }
 0x13f   :  { %2137 = vmatprep.subr.bf16.mxu1 %v10139_v44  ;;  %2076 = vmatpush2.bf16.msra.mxu0 %v10244_v61  ;;  %v18116_v61 = vld [vmem:[#allocation20_spill] sm:$0xff] }
 0x140   :  { %2077 = vmatprep.subr.bf16.mxu0 %v10250_v62  ;;  %v18117_v62 = vld [vmem:[#allocation13_spill] sm:$0xff] }
 0x142   :  { %2138 = vmatpush1.bf16.msra.mxu1 %v10159_v47  ;;  %v1544_v36 = vpop.f32.mrf.mxu0  ;;  %v18105_v47 = vld [vmem:[#allocation6_spill] sm:$0xff] }
 0x143   :  { %2139 = vmatprep.subr.bf16.mxu1 %v10166_v13  ;;  %v11432_v39 = vadd.f32 %v11313_v26, %v1544_v36  ;;  %2078 = vmatpush2.bf16.msra.mxu0 %v10268_v2  ;;  %v18106_v13 = vld [vmem:[#allocation7_spill] sm:$0xff] }
 0x144   :  { %v1546_v40 = vpop.f32.mrf.mxu0  ;;  %2079 = vmatprep.subr.bf16.mxu0 %v10274_v3  ;;  %v18119_v2 = vld [vmem:[#allocation23_spill] sm:$0xff] }
 0x145   :  { %v11438_v43 = vadd.f32 %v11327_v32, %v1546_v40  ;;  %v18123_v32 = vld [vmem:[#allocation27_spill] sm:$0xff]  ;;  %v18125_v40 = vld [vmem:[#allocation21_spill] sm:$0xff] }
 0x146   :  { %2140 = vmatpush1.bf16.msra.mxu1 %v10184_v50  ;;  %v1548_v44 = vpop.f32.mrf.mxu0  ;;  %v18109_v50 = vld [vmem:[#allocation8_spill] sm:$0xff] }
 0x147   :  { %2141 = vmatprep.subr.bf16.mxu1 %v10190_v51  ;;  %2080 = vmatpush2.bf16.msra.mxu0 %v10292_v7  ;;  %v18110_v51 = vld [vmem:[#allocation9_spill] sm:$0xff]  ;;  %v18120_v7 = vld [vmem:[#allocation24_spill] sm:$0xff] }
 0x148   :  { %2081 = vmatprep.subr.bf16.mxu0 %v10298_v8  ;;  %v1549_v46 = vpop.f32.mrf.mxu0 }
 0x149   :  { %v18126_v46 = vld [vmem:[#allocation22_spill] sm:$0xff] }
 0x14a   :  { %2142 = vmatpush1.bf16.msra.mxu1 %v10208_v55  ;;  %v18112_v55 = vld [vmem:[#allocation16_spill] sm:$0xff] }
 0x14b   :  { %2143 = vmatprep.subr.bf16.mxu1 %v10214_v56  ;;  %2082 = vmatpush2.bf16.msra.mxu0 %v10316_v14  ;;  %v18113_v56 = vld [vmem:[#allocation10_spill] sm:$0xff]  ;;  %v18121_v14 = vld [vmem:[#allocation17_spill] sm:$0xff]  ;;  %18267 = vst [vmem:[#allocation16_spill] sm:$0xff] %v11957_v41 }
 0x14c   :  { %2083 = vmatprep.subr.bf16.mxu0 %v10322_v15 }
 0x14e   :  { %2144 = vmatpush1.bf16.msra.mxu1 %v10232_v59  ;;  %v18115_v59 = vld [vmem:[#allocation19_spill] sm:$0xff] }
 0x14f   :  { %2145 = vmatprep.subr.bf16.mxu1 %v10238_v60  ;;  %2084 = vmatpush2.bf16.msra.mxu0 %v10340_v18  ;;  %v18122_v18 = vld [vmem:[#allocation18_spill] sm:$0xff] }
 0x150   :  { %8434 = vmatprep.subr.msk.bf16.mxu0 %vm1309_vm0, %v10504_v24 }
 0x152   :  { %2146 = vmatpush1.bf16.msra.mxu1 %v10256_v63  ;;  %2086 = vmatmul.mubr.bf16.vlgmr.msra.gmra.mxu0 %v11195_v16 }
 0x153   :  { %2147 = vmatprep.subr.bf16.mxu1 %v10262_v0  ;;  %2189 = vmatpush1.bf16.msra.mxu0 %v10522_v17  ;;  %v18118_v0 = vld [vmem:[#allocation14_spill] sm:$0xff] }
 0x154   :  { %2208 = vmatprep.mubr.bf16.mxu0 %v17988_v20  ;;  %2190 = vmatprep.subr.bf16.mxu0 %v10527_v22 }
 0x156   :  { %2148 = vmatpush1.bf16.msra.mxu1 %v18105_v47  ;;  %v18127_v47 = vld [vmem:[#allocation31_spill] sm:$0xff] }
 0x157   :  { %2149 = vmatprep.subr.bf16.mxu1 %v18106_v13  ;;  %2191 = vmatpush1.bf16.msra.mxu0 %v18107_v48  ;;  %v18128_v48 = vld [vmem:[#allocation32_spill] sm:$0xff] }
 0x158   :  { %2217 = vmatprep.subr.bf16.mxu0 %v18108_v49 }
 0x15a   :  { %2150 = vmatpush1.bf16.msra.mxu1 %v18109_v50  ;;  %8435 = vmatmul.mubr.msk.bf16.vlgmr.msra.gmra.mxu0 %vm1305_vm1, %v11050_v5  ;;  %v18130_v50 = vld [vmem:[#allocation26_spill] sm:$0xff] }
 0x15b   :  { %2151 = vmatprep.subr.bf16.mxu1 %v18110_v51  ;;  %2218 = vmatpush1.bf16.msra.mxu0 %v18111_v53  ;;  %v18131_v51 = vld [vmem:[#allocation35_spill] sm:$0xff] }
 0x15c   :  { %2249 = vmatprep.mubr.bf16.mxu0 %v10809_v11  ;;  %2219 = vmatprep.subr.bf16.mxu0 %v18112_v55  ;;  %v18133_v55 = vld [vmem:[#allocation29_spill] sm:$0xff] }
 0x15d   :  { %v1626_v54 = vpop.f32.mrf.mxu1 }
 0x15e   :  { %2152 = vmatpush2.bf16.msra.mxu1 %v18113_v56 }
 0x15f   :  { %v1628_v57 = vpop.f32.mrf.mxu1  ;;  %2153 = vmatprep.subr.bf16.mxu1 %v18114_v58  ;;  %2220 = vmatpush1.bf16.msra.mxu0 %v18115_v59  ;;  %v18135_v58 = vld [vmem:[#allocation39_spill] sm:$0xff]  ;;  %v18136_v59 = vld [vmem:[#allocation40_spill] sm:$0xff] }
 0x160   :  { %2221 = vmatprep.subr.bf16.mxu0 %v18116_v61  ;;  %v18138_v61 = vld [vmem:[#allocation34_spill] sm:$0xff] }
 0x161   :  { %v1630_v60 = vpop.f32.mrf.mxu1 }
 0x162   :  { %2154 = vmatpush2.bf16.msra.mxu1 %v18117_v62  ;;  %v18137_v60 = vld [vmem:[#allocation33_spill] sm:$0xff]  ;;  %v18139_v62 = vld [vmem:[#allocation42_spill] sm:$0xff] }
 0x163   :  { %v1631_v63 = vpop.f32.mrf.mxu1  ;;  %2155 = vmatprep.subr.bf16.mxu1 %v18118_v0  ;;  %2222 = vmatpush1.bf16.msra.mxu0 %v18119_v2  ;;  %v18141_v0 = vld [vmem:[#allocation37_spill] sm:$0xff] }
 0x164   :  { %2223 = vmatprep.subr.bf16.mxu0 %v18120_v7  ;;  %v18140_v63 = vld [vmem:[#allocation43_spill] sm:$0xff]  ;;  %v18142_v2 = vld [vmem:[#allocation45_spill] sm:$0xff] }
 0x165   :  { %v1667_v3 = vpop.f32.mrf.mxu1  ;;  %v18144_v7 = vld [vmem:[#allocation47_spill] sm:$0xff] }
 0x166   :  { %v1668_v8 = vadd.f32 %v1667_v3, %v1626_v54  ;;  %2156 = vmatpush2.bf16.msra.mxu1 %v18121_v14  ;;  %v18132_v54 = vld [vmem:[#allocation36_spill] sm:$0xff]  ;;  %v18143_v3 = vld [vmem:[#allocation46_spill] sm:$0xff]  ;;  %v18146_v14 = vld [vmem:[#allocation49_spill] sm:$0xff] }
 0x167   :  { %v1669_v15 = vpop.f32.mrf.mxu1  ;;  %2157 = vmatprep.subr.bf16.mxu1 %v18122_v18  ;;  %2224 = vmatpush1.bf16.msra.mxu0 %v18123_v32  ;;  %v18148_v18 = vld [vmem:[#allocation51_spill] sm:$0xff]  ;;  %v18149_v32 = vld [vmem:[#allocation52_spill] sm:$0xff] }
 0x168   :  { %v1838_v22 = vmax.f32 %v11164_v4, %v1668_v8  ;;  %v11480_v26 = vadd.f32 %v1669_v15, %v1628_v57  ;;  %2225 = vmatprep.subr.bf16.mxu0 %v18124_v45  ;;  %v18129_v4 = vld [vmem:[#allocation25_spill] sm:$0xff]  ;;  %v18134_v57 = vld [vmem:[#allocation30_spill] sm:$0xff]  ;;  %v18145_v8 = vld [vmem:[#allocation48_spill] sm:$0xff] }
 0x169   :  { %v1671_v52 = vpop.f32.mrf.mxu1  ;;  %v18147_v15 = vld [vmem:[#allocation50_spill] sm:$0xff]  ;;  %v18150_v45 = vld [vmem:[#allocation53_spill] sm:$0xff] }
 0x16a   :  { %v1839_v36 = vmax.f32 %v11185_v19, %v11480_v26  ;;  %2158 = vmatpush2.bf16.msra.mxu1 %v18125_v40  ;;  %v18203_v19 = vld [vmem:[#allocation101_spill] sm:$0xff] }
 0x16b   :  { %v1672_v44 = vpop.f32.mrf.mxu1  ;;  %2159 = vmatprep.subr.bf16.mxu1 %v18126_v46  ;;  %2226 = vmatpush1.bf16.msra.mxu0 %v18127_v47  ;;  %v18152_v47 = vld [vmem:[#allocation55_spill] sm:$0xff] }
 0x16c   :  { %2227 = vmatprep.subr.bf16.mxu0 %v18128_v48  ;;  %v18151_v44 = vld [vmem:[#allocation54_spill] sm:$0xff] }
 0x16d   :  { %v1749_v13 = vpop.f32.mrf.mxu1 }
 0x16e   :  { %2160 = vmatpush2.bf16.msra.mxu1 %v18129_v4  ;;  %v18153_v4 = vld [vmem:[#allocation56_spill] sm:$0xff] }
 0x16f   :  { %v1751_v49 = vpop.f32.mrf.mxu1  ;;  %2161 = vmatprep.subr.bf16.mxu1 %v18130_v50  ;;  %2228 = vmatpush1.bf16.msra.mxu0 %v18131_v51  ;;  %v18154_v51 = vld [vmem:[#allocation57_spill] sm:$0xff] }
 0x170   :  { %2229 = vmatprep.subr.bf16.mxu0 %v18132_v54  ;;  %v18155_v54 = vld [vmem:[#allocation58_spill] sm:$0xff] }
 0x171   :  { %v1753_v53 = vpop.f32.mrf.mxu1 }
 0x172   :  { %2162 = vmatpush2.bf16.msra.mxu1 %v18133_v55  ;;  %v18156_v55 = vld [vmem:[#allocation59_spill] sm:$0xff] }
 0x173   :  { %v1754_v56 = vpop.f32.mrf.mxu1  ;;  %2163 = vmatprep.subr.bf16.mxu1 %v18134_v57  ;;  %2230 = vmatpush1.bf16.msra.mxu0 %v18135_v58  ;;  %v18158_v58 = vld [vmem:[#allocation60_spill] sm:$0xff] }
 0x174   :  { %2231 = vmatprep.subr.bf16.mxu0 %v18136_v59  ;;  %v18159_v59 = vld [vmem:[#allocation61_spill] sm:$0xff] }
 0x176   :  { %2164 = vmatpush2.bf16.msra.mxu1 %v18137_v60 }
 0x177   :  { %2165 = vmatprep.subr.bf16.mxu1 %v18138_v61  ;;  %2232 = vmatpush1.bf16.msra.mxu0 %v18139_v62  ;;  %v18162_v62 = vld [vmem:[#allocation64_spill] sm:$0xff] }
 0x178   :  { %2233 = vmatprep.subr.bf16.mxu0 %v18140_v63 }
 0x17a   :  { %2166 = vmatpush2.bf16.msra.mxu1 %v18141_v0  ;;  %v18164_v0 = vld [vmem:[#allocation66_spill] sm:$0xff] }
 0x17b   :  { %8436 = vmatprep.subr.msk.bf16.mxu1 %vm1309_vm0, %v18142_v2  ;;  %2234 = vmatpush2.bf16.msra.mxu0 %v18143_v3  ;;  %v18165_v3 = vld [vmem:[#allocation67_spill] sm:$0xff] }
 0x17c   :  { %2235 = vmatprep.subr.bf16.mxu0 %v18144_v7  ;;  %v18166_v7 = vld [vmem:[#allocation68_spill] sm:$0xff] }
 0x17d   :  { %2168 = vmatmul.mubr.bf16.vlgmr.msra.gmra.mxu1 %v11195_v16 }
 0x17e   :  { %2271 = vmatpush1.bf16.msra.mxu1 %v18145_v8  ;;  %2290 = vmatprep.mubr.bf16.mxu1 %v17988_v20 }
 0x17f   :  { %2272 = vmatprep.subr.bf16.mxu1 %v18146_v14  ;;  %2236 = vmatpush2.bf16.msra.mxu0 %v18147_v15  ;;  %v18167_v14 = vld [vmem:[#allocation69_spill] sm:$0xff]  ;;  %v18168_v15 = vld [vmem:[#allocation70_spill] sm:$0xff] }
 0x180   :  { %2237 = vmatprep.subr.bf16.mxu0 %v18148_v18  ;;  %v18169_v18 = vld [vmem:[#allocation71_spill] sm:$0xff] }
 0x182   :  { %2273 = vmatpush1.bf16.msra.mxu1 %v18149_v32  ;;  %v1708_v52 = vpop.f32.mrf.mxu0  ;;  %v18170_v32 = vld [vmem:[#allocation72_spill] sm:$0xff] }
 0x183   :  { %2299 = vmatprep.subr.bf16.mxu1 %v18150_v45  ;;  %v11515_v40 = vadd.f32 %v1749_v13, %v1708_v52  ;;  %2238 = vmatpush2.bf16.msra.mxu0 %v18151_v44  ;;  %v18171_v52 = vld [vmem:[#allocation73_spill] sm:$0xff]  ;;  %v18172_v45 = vld [vmem:[#allocation74_spill] sm:$0xff]  ;;  %v18173_v44 = vld [vmem:[#allocation75_spill] sm:$0xff] }
 0x184   :  { %v1710_v46 = vpop.f32.mrf.mxu0  ;;  %2239 = vmatprep.subr.bf16.mxu0 %v18152_v47  ;;  %v18175_v47 = vld [vmem:[#allocation77_spill] sm:$0xff] }
 0x185   :  { %8437 = vmatmul.mubr.msk.bf16.vlgmr.msra.gmra.mxu1 %vm1305_vm1, %v11050_v5  ;;  %v1840_v48 = vmax.f32 %v11267_v30, %v11515_v40  ;;  %v1752_v50 = vadd.f32 %v1751_v49, %v1710_v46  ;;  %v18160_v49 = vld [vmem:[#allocation62_spill] sm:$0xff]  ;;  %v18174_v46 = vld [vmem:[#allocation76_spill] sm:$0xff] }
 0x186   :  { %2300 = vmatpush1.bf16.msra.mxu1 %v18153_v4  ;;  %2331 = vmatprep.mubr.bf16.mxu1 %v10809_v11  ;;  %v1712_v13 = vpop.f32.mrf.mxu0  ;;  %v18161_v11 = vld [vmem:[#allocation63_spill] sm:$0xff]  ;;  %v18176_v4 = vld [vmem:[#allocation78_spill] sm:$0xff] }
 0x187   :  { %2301 = vmatprep.subr.bf16.mxu1 %v18154_v51  ;;  %v1841_v53 = vmax.f32 %v11281_v28, %v1752_v50  ;;  %2240 = vmatpush2.bf16.msra.mxu0 %v18155_v54  ;;  %v18163_v28 = vld [vmem:[#allocation65_spill] sm:$0xff]  ;;  %v18177_v50 = vld [vmem:[#allocation79_spill] sm:$0xff]  ;;  %v18178_v13 = vld [vmem:[#allocation80_spill] sm:$0xff] }
 0x188   :  { %2241 = vmatprep.subr.bf16.mxu0 %v18156_v55  ;;  %v1713_v56 = vpop.f32.mrf.mxu0  ;;  %v11557_v51 = vld [vmem:[%s17214_s0 + $0x18] sm:$0xff]  ;;  %v18180_v54 = vld [vmem:[#allocation82_spill] sm:$0xff] }
 0x189   :  { %v11529_v57 = vmax.f32 %v1838_v22, %v1841_v53  ;;  %v18179_v53 = vld [vmem:[#allocation81_spill] sm:$0xff]  ;;  %v11564_v55 = vcombine.high %v11557_v51, %v11557_v51  ;;  %v18207_v40 = vld [vmem:[#allocation106_spill] sm:$0xff] }
 0x18a   :  { %2302 = vmatpush1.bf16.msra.mxu1 %v18158_v58  ;;  %v1831_v60 = vpop.f32.mrf.mxu0  ;;  %v18181_v56 = vld [vmem:[#allocation85_spill] sm:$0xff]  ;;  %v18182_v58 = vld [vmem:[#allocation83_spill] sm:$0xff] }
 0x18b   :  { %18157 = vst [vmem:[#allocation6_spill] sm:$0xff] %v11529_v57  ;;  %2303 = vmatprep.subr.bf16.mxu1 %v18159_v59  ;;  %2242 = vmatpush2.bf16.msra.mxu0 %v18160_v49  ;;  %v18183_v59 = vld [vmem:[#allocation84_spill] sm:$0xff]  ;;  %v11945_v57 = vld [vmem:[%s17213_s1 + $0x138] ss:$48 sps:$4 sm:$0xff]  }
 0x18c   :  { %2243 = vmatprep.subr.bf16.mxu0 %v18161_v11  ;;  %v1833_v61 = vpop.f32.mrf.mxu0  ;;  %v18184_v49 = vld [vmem:[#allocation88_spill] sm:$0xff]  ;;  %v18185_v11 = vld [vmem:[#allocation89_spill] sm:$0xff]  ;;  %18265 = vst [vmem:[#allocation9_spill] sm:$0xff] %v11945_v57 }
 0x18e   :  { %2304 = vmatpush1.bf16.msra.mxu1 %v18162_v62  ;;  %v1835_v63 = vpop.f32.mrf.mxu0  ;;  %v18186_v62 = vld [vmem:[#allocation86_spill] sm:$0xff] }
 0x18f   :  { %2305 = vmatprep.subr.bf16.mxu1 %v18163_v28  ;;  %2244 = vmatpush2.bf16.msra.mxu0 %v18164_v0  ;;  %v18187_v28 = vld [vmem:[#allocation87_spill] sm:$0xff]  ;;  %v18188_v63 = vld [vmem:[#allocation92_spill] sm:$0xff]  ;;  %v18189_v0 = vld [vmem:[#allocation90_spill] sm:$0xff] }
 0x190   :  { %2245 = vmatprep.subr.bf16.mxu0 %v18165_v3  ;;  %v1836_v22 = vpop.f32.mrf.mxu0  ;;  %v18190_v3 = vld [vmem:[#allocation91_spill] sm:$0xff] }
 0x191   :  { %v18191_v22 = vld [vmem:[#allocation95_spill] sm:$0xff] }
 0x192   :  { %2306 = vmatpush1.bf16.msra.mxu1 %v18166_v7  ;;  %v18192_v7 = vld [vmem:[#allocation96_spill] sm:$0xff] }
 0x193   :  { %2307 = vmatprep.subr.bf16.mxu1 %v18167_v14  ;;  %2246 = vmatpush2.bf16.msra.mxu0 %v18168_v15  ;;  %v18193_v15 = vld [vmem:[#allocation93_spill] sm:$0xff] }
 0x194   :  { %2247 = vmatprep.subr.bf16.mxu0 %v18169_v18 }
 0x196   :  { %2308 = vmatpush1.bf16.msra.mxu1 %v18170_v32  ;;  %v18194_v32 = vld [vmem:[#allocation94_spill] sm:$0xff] }
 0x197   :  { %2309 = vmatprep.subr.bf16.mxu1 %v18171_v52  ;;  %2248 = vmatpush2.bf16.msra.mxu0 %v18172_v45 }
 0x198   :  { %8438 = vmatprep.subr.msk.bf16.mxu0 %vm1309_vm0, %v18173_v44 }
 0x19a   :  { %2310 = vmatpush1.bf16.msra.mxu1 %v18174_v46  ;;  %2250 = vmatmul.mubr.bf16.vlgmr.msra.gmra.mxu0 %v11195_v16  ;;  %v18195_v46 = vld [vmem:[#allocation99_spill] sm:$0xff] }
 0x19b   :  { %2311 = vmatprep.subr.bf16.mxu1 %v18175_v47  ;;  %2353 = vmatpush1.bf16.msra.mxu0 %v18176_v4  ;;  %v18196_v47 = vld [vmem:[#allocation100_spill] sm:$0xff] }
 0x19c   :  { %2372 = vmatprep.mubr.bf16.mxu0 %v17988_v20  ;;  %2354 = vmatprep.subr.bf16.mxu0 %v18177_v50 }
 0x19e   :  { %2312 = vmatpush1.bf16.msra.mxu1 %v18178_v13  ;;  %v18198_v13 = vld [vmem:[#allocation97_spill] sm:$0xff] }
 0x19f   :  { %2313 = vmatprep.subr.bf16.mxu1 %v18179_v53  ;;  %2355 = vmatpush1.bf16.msra.mxu0 %v18180_v54  ;;  %v18199_v54 = vld [vmem:[#allocation98_spill] sm:$0xff] }
 0x1a0   :  { %2415 = vmatprep.subr.bf16.mxu0 %v18181_v56 }
 0x1a2   :  { %2314 = vmatpush1.bf16.msra.mxu1 %v18182_v58  ;;  %8439 = vmatmul.mubr.msk.bf16.vlgmr.msra.gmra.mxu0 %vm1305_vm1, %v11050_v5  ;;  %v18202_v58 = vld [vmem:[#allocation104_spill] sm:$0xff] }
 0x1a3   :  { %2315 = vmatprep.subr.bf16.mxu1 %v18183_v59  ;;  %2416 = vmatpush1.bf16.msra.mxu0 %v18184_v49  ;;  %v18206_v49 = vld [vmem:[#allocation105_spill] sm:$0xff] }
 0x1a4   :  { %2447 = vmatprep.mubr.bf16.mxu0 %v11564_v55  ;;  %2417 = vmatprep.subr.bf16.mxu0 %v18185_v11  ;;  %v18209_v11 = vld [vmem:[#allocation111_spill] sm:$0xff] }
 0x1a6   :  { %2316 = vmatpush2.bf16.msra.mxu1 %v18186_v62  ;;  %v18210_v62 = vld [vmem:[#allocation108_spill] sm:$0xff] }
 0x1a7   :  { %2317 = vmatprep.subr.bf16.mxu1 %v18187_v28  ;;  %2418 = vmatpush1.bf16.msra.mxu0 %v18188_v63  ;;  %v18211_v28 = vld [vmem:[#allocation109_spill] sm:$0xff] }
 0x1a8   :  { %2419 = vmatprep.subr.bf16.mxu0 %v10869_v23  ;;  %v18212_v63 = vld [vmem:[#allocation113_spill] sm:$0xff] }
 0x1aa   :  { %2318 = vmatpush2.bf16.msra.mxu1 %v18189_v0  ;;  %v18213_v0 = vld [vmem:[#allocation114_spill] sm:$0xff] }
 0x1ab   :  { %2319 = vmatprep.subr.bf16.mxu1 %v18190_v3  ;;  %2420 = vmatpush1.bf16.msra.mxu0 %v18191_v22  ;;  %v18214_v3 = vld [vmem:[#allocation112_spill] sm:$0xff]  ;;  %v18216_v22 = vld [vmem:[#allocation115_spill] sm:$0xff] }
 0x1ac   :  { %2421 = vmatprep.subr.bf16.mxu0 %v18192_v7  ;;  %v18218_v7 = vld [vmem:[#allocation3_spill] sm:$0xff] }
 0x1ad   :  { %v1790_v5 = vpop.f32.mrf.mxu1 }
 0x1ae   :  { %v1832_v14 = vadd.f32 %v1831_v60, %v1790_v5  ;;  %2320 = vmatpush2.bf16.msra.mxu1 %v18193_v15  ;;  %v18217_v5 = vld [vmem:[#allocation116_spill] sm:$0xff]  ;;  %v18220_v15 = vld [vmem:[#allocation118_spill] sm:$0xff] }
 0x1af   :  { %v1792_v18 = vpop.f32.mrf.mxu1  ;;  %2321 = vmatprep.subr.bf16.mxu1 %v18194_v32  ;;  %2422 = vmatpush1.bf16.msra.mxu0 %v18195_v46  ;;  %v11628_v32 = vld [vmem:[%s17214_s0 + $0x20] ss:$0 sps:$4 sm:$0xff]  }
 0x1b0   :  { %v1842_v52 = vmax.f32 %v11432_v39, %v1832_v14  ;;  %v1834_v45 = vadd.f32 %v1833_v61, %v1792_v18  ;;  %2423 = vmatprep.subr.bf16.mxu0 %v18196_v47  ;;  %v18201_v61 = vld [vmem:[#allocation103_spill] sm:$0xff]  ;;  %v18219_v14 = vld [vmem:[#allocation117_spill] sm:$0xff] }
 0x1b1   :  { %v1794_v23 = vpop.f32.mrf.mxu1  ;;  %v18221_v18 = vld [vmem:[#allocation119_spill] sm:$0xff] }
 0x1b2   :  { %v11590_v50 = vmax.f32 %v1839_v36, %v1842_v52  ;;  %v1843_v60 = vmax.f32 %v11438_v43, %v1834_v45  ;;  %2322 = vmatpush2.bf16.msra.mxu1 %v18198_v13  ;;  %v18204_v36 = vld [vmem:[#allocation102_spill] sm:$0xff]  ;;  %v18205_v43 = vld [vmem:[#allocation107_spill] sm:$0xff]  ;;  %v18222_v52 = vld [vmem:[#allocation120_spill] sm:$0xff] }
 0x1b3   :  { %v1795_v53 = vpop.f32.mrf.mxu1  ;;  %2323 = vmatprep.subr.bf16.mxu1 %v18199_v54  ;;  %2424 = vmatpush1.bf16.msra.mxu0 %v18201_v61  ;;  %v18223_v45 = vld [vmem:[#allocation121_spill] sm:$0xff]  ;;  %v18224_v23 = vld [vmem:[#allocation122_spill] sm:$0xff]  ;;  %v18226_v13 = vld [vmem:[#allocation124_spill] sm:$0xff] }
 0x1b4   :  { %18197 = vst [vmem:[#allocation7_spill] sm:$0xff] %v11590_v50  ;;  %v11598_v39 = vmax.f32 %v1840_v48, %v1843_v60  ;;  %2425 = vmatprep.subr.bf16.mxu0 %v18202_v58  ;;  %v18208_v48 = vld [vmem:[#allocation110_spill] sm:$0xff]  ;;  %v18225_v60 = vld [vmem:[#allocation123_spill] sm:$0xff]  ;;  %v18227_v54 = vld [vmem:[#allocation125_spill] sm:$0xff] }
 0x1b5   :  { %v1964_v56 = vpop.f32.mrf.mxu1  ;;  %v18228_v58 = vld [vmem:[#allocation126_spill] sm:$0xff]  ;;  %v11951_v50 = vld [vmem:[%s17213_s1 + $0xdc] ss:$48 sps:$4 sm:$0xff]  }
 0x1b6   :  { %18200 = vst [vmem:[#allocation44_spill] sm:$0xff] %v11598_v39  ;;  %2324 = vmatpush2.bf16.msra.mxu1 %v18203_v19  ;;  %v11921_v39 = vld [vmem:[%s17213_s1 + $0x198] ss:$48 sps:$4 sm:$0xff]   ;;  %18266 = vst [vmem:[#allocation15_spill] sm:$0xff] %v11951_v50 }
 0x1b7   :  { %v1966_v26 = vpop.f32.mrf.mxu1  ;;  %2325 = vmatprep.subr.bf16.mxu1 %v18204_v36  ;;  %2426 = vmatpush1.bf16.msra.mxu0 %v18205_v43  ;;  %v18230_v36 = vld [vmem:[#allocation128_spill] sm:$0xff]  ;;  %v18231_v43 = vld [vmem:[#allocation129_spill] sm:$0xff] }
 0x1b8   :  { %2427 = vmatprep.subr.bf16.mxu0 %v10965_v6  ;;  %v18215_v6 = vld [vmem:[#allocation2_spill] sm:$0xff] }
 0x1b9   :  { %v1968_v59 = vpop.f32.mrf.mxu1 }
 0x1ba   :  { %2326 = vmatpush2.bf16.msra.mxu1 %v18206_v49  ;;  %v18232_v49 = vld [vmem:[#allocation130_spill] sm:$0xff] }
 0x1bb   :  { %v1969_v30 = vpop.f32.mrf.mxu1  ;;  %2327 = vmatprep.subr.bf16.mxu1 %v18207_v40  ;;  %2428 = vmatpush1.bf16.msra.mxu0 %v18208_v48  ;;  %v18234_v40 = vld [vmem:[#allocation132_spill] sm:$0xff]  ;;  %v18235_v48 = vld [vmem:[#allocation133_spill] sm:$0xff] }
 0x1bc   :  { %2429 = vmatprep.subr.bf16.mxu0 %v18209_v11  ;;  %v18233_v30 = vld [vmem:[#allocation131_spill] sm:$0xff] }
 0x1be   :  { %2328 = vmatpush2.bf16.msra.mxu1 %v18210_v62  ;;  %v18236_v62 = vld [vmem:[#allocation134_spill] sm:$0xff] }
 0x1bf   :  { %2329 = vmatprep.subr.bf16.mxu1 %v18211_v28  ;;  %2430 = vmatpush1.bf16.msra.mxu0 %v18212_v63  ;;  %v18237_v28 = vld [vmem:[#allocation135_spill] sm:$0xff] }
 0x1c0   :  { %2431 = vmatprep.subr.bf16.mxu0 %v18213_v0  ;;  %v18238_v0 = vld [vmem:[#allocation136_spill] sm:$0xff] }
 0x1c2   :  { %2330 = vmatpush2.bf16.msra.mxu1 %v18214_v3  ;;  %v18239_v3 = vld [vmem:[#allocation137_spill] sm:$0xff] }
 0x1c3   :  { %8445 = vmatprep.subr.msk.bf16.mxu1 %vm1309_vm0, %v18215_v6  ;;  %2432 = vmatpush2.bf16.msra.mxu0 %v18216_v22  ;;  %v18240_v22 = vld [vmem:[#allocation138_spill] sm:$0xff] }
 0x1c4   :  { %2433 = vmatprep.subr.bf16.mxu0 %v18217_v5  ;;  %v18241_v5 = vld [vmem:[#allocation139_spill] sm:$0xff] }
 0x1c5   :  { %2332 = vmatmul.mubr.bf16.vlgmr.msra.gmra.mxu1 %v11195_v16 }
 0x1c6   :  { %2469 = vmatpush1.bf16.msra.mxu1 %v18218_v7  ;;  %2488 = vmatprep.mubr.bf16.mxu1 %v17988_v20 }
 0x1c7   :  { %2470 = vmatprep.subr.bf16.mxu1 %v18219_v14  ;;  %2434 = vmatpush2.bf16.msra.mxu0 %v18220_v15  ;;  %v11661_v14 = vcombine.low %v11557_v51, %v11557_v51  ;;  %v18242_v15 = vld [vmem:[#allocation140_spill] sm:$0xff] }
 0x1c8   :  { %2435 = vmatprep.subr.bf16.mxu0 %v18221_v18  ;;  %v18243_v18 = vld [vmem:[#allocation4_spill] sm:$0xff] }
 0x1c9   :  { %v18248_v51 = vld [vmem:[#allocation144_spill] sm:$0xff] }
 0x1ca   :  { %2471 = vmatpush1.bf16.msra.mxu1 %v18222_v52  ;;  %v1923_v16 = vpop.f32.mrf.mxu0  ;;  %v18244_v52 = vld [vmem:[#allocation141_spill] sm:$0xff] }
 0x1cb   :  { %2497 = vmatprep.subr.bf16.mxu1 %v18223_v45  ;;  %v11632_v46 = vadd.f32 %v1964_v56, %v1923_v16  ;;  %2436 = vmatpush2.bf16.msra.mxu0 %v18224_v23  ;;  %v18229_v56 = vld [vmem:[#allocation127_spill] sm:$0xff]  ;;  %v18245_v16 = vld [vmem:[#allocation142_spill] sm:$0xff]  ;;  %v18246_v45 = vld [vmem:[#allocation5_spill] sm:$0xff] }
 0x1cc   :  { %v1925_v47 = vpop.f32.mrf.mxu0  ;;  %2437 = vmatprep.subr.bf16.mxu0 %v18225_v60  ;;  %v11682_v23 = vld [vmem:[%s17213_s1 + $0x608] ss:$48 sps:$4 sm:$0xff]   ;;  %v18250_v60 = vld [vmem:[#allocation146_spill] sm:$0xff] }
 0x1cd   :  { %8446 = vmatmul.mubr.msk.bf16.vlgmr.msra.gmra.mxu1 %vm1305_vm1, %v11628_v32  ;;  %v11639_v53 = vadd.f32 %v1966_v26, %v1925_v47  ;;  %v18249_v47 = vld [vmem:[#allocation145_spill] sm:$0xff] }
 0x1ce   :  { %2498 = vmatpush1.bf16.msra.mxu1 %v18226_v13  ;;  %2529 = vmatprep.mubr.bf16.mxu1 %v11564_v55  ;;  %v1927_v61 = vpop.f32.mrf.mxu0  ;;  %v18251_v13 = vld [vmem:[#allocation147_spill] sm:$0xff] }
 0x1cf   :  { %2499 = vmatprep.subr.bf16.mxu1 %v18227_v54  ;;  %2438 = vmatpush2.bf16.msra.mxu0 %v18228_v58  ;;  %v18252_v54 = vld [vmem:[#allocation148_spill] sm:$0xff]  ;;  %v18253_v61 = vld [vmem:[#allocation149_spill] sm:$0xff]  ;;  %v18254_v58 = vld [vmem:[#allocation150_spill] sm:$0xff] }
 0x1d0   :  { %2439 = vmatprep.subr.bf16.mxu0 %v18229_v56  ;;  %v1928_v19 = vpop.f32.mrf.mxu0  ;;  %v18255_v56 = vld [vmem:[#allocation151_spill] sm:$0xff] }
 0x1d1   :  { %v18256_v19 = vld [vmem:[#allocation152_spill] sm:$0xff] }
 0x1d2   :  { %2500 = vmatpush1.bf16.msra.mxu1 %v18230_v36  ;;  %v2046_v59 = vpop.f32.mrf.mxu0  ;;  %v18257_v36 = vld [vmem:[#allocation153_spill] sm:$0xff] }
 0x1d3   :  { %2501 = vmatprep.subr.bf16.mxu1 %v18231_v43  ;;  %2440 = vmatpush2.bf16.msra.mxu0 %v18232_v49  ;;  %v18258_v43 = vld [vmem:[#allocation154_spill] sm:$0xff]  ;;  %v18259_v49 = vld [vmem:[#allocation155_spill] sm:$0xff] }
 0x1d4   :  { %2441 = vmatprep.subr.bf16.mxu0 %v18233_v30  ;;  %v2048_v26 = vpop.f32.mrf.mxu0  ;;  %v18260_v30 = vld [vmem:[#allocation156_spill] sm:$0xff] }
 0x1d6   :  { %2502 = vmatpush1.bf16.msra.mxu1 %v18234_v40  ;;  %v2050_v11 = vpop.f32.mrf.mxu0 }
 0x1d7   :  { %2503 = vmatprep.subr.bf16.mxu1 %v18235_v48  ;;  %2442 = vmatpush2.bf16.msra.mxu0 %v18236_v62  ;;  %v18261_v48 = vld [vmem:[#allocation157_spill] sm:$0xff]  ;;  %v18262_v62 = vld [vmem:[#allocation158_spill] sm:$0xff] }
 0x1d8   :  { %2443 = vmatprep.subr.bf16.mxu0 %v18237_v28  ;;  %v2051_v63 = vpop.f32.mrf.mxu0 }
 0x1da   :  { %2504 = vmatpush1.bf16.msra.mxu1 %v18238_v0  ;;  %v11710_v0 = vld [vmem:[%s17213_s1 + $0x190] ss:$48 sps:$4 sm:$0xff]  }
 0x1db   :  { %2505 = vmatprep.subr.bf16.mxu1 %v18239_v3  ;;  %2444 = vmatpush2.bf16.msra.mxu0 %v18240_v22 }
 0x1dc   :  { %2445 = vmatprep.subr.bf16.mxu0 %v18241_v5  ;;  %v11730_v5 = vld [vmem:[%s17213_s1 + $0xd4] ss:$48 sps:$4 sm:$0xff]  }
 0x1de   :  { %2506 = vmatpush1.bf16.msra.mxu1 %v11181_v9  ;;  %v18247_v9 = vld [vmem:[#allocation143_spill] sm:$0xff] }
 0x1df   :  { %2507 = vmatprep.subr.bf16.mxu1 %v11190_v10  ;;  %2446 = vmatpush2.bf16.msra.mxu0 %v18242_v15  ;;  %v11674_v10 = vld [vmem:[%s17213_s1 + $0x60c] ss:$48 sps:$4 sm:$0xff]  }
 0x1e0   :  { %8447 = vmatprep.subr.msk.bf16.mxu0 %vm1309_vm0, %v18243_v18 }
 0x1e2   :  { %2508 = vmatpush1.bf16.msra.mxu1 %v18244_v52  ;;  %2448 = vmatmul.mubr.bf16.vlgmr.msra.gmra.mxu0 %v11661_v14  ;;  %v11744_v52 = vld [vmem:[%s17213_s1 + $0x74] ss:$48 sps:$4 sm:$0xff]  }
 0x1e3   :  { %2509 = vmatprep.subr.bf16.mxu1 %v18245_v16  ;;  %2551 = vmatpush1.bf16.msra.mxu0 %v18246_v45  ;;  %v11758_v16 = vld [vmem:[%s17213_s1 + $0x14] ss:$48 sps:$4 sm:$0xff]  }
 0x1e4   :  { %2570 = vmatprep.mubr.bf16.mxu0 %v17988_v20  ;;  %2552 = vmatprep.subr.bf16.mxu0 %v11674_v10 }
 0x1e6   :  { %2510 = vmatpush1.bf16.msra.mxu1 %v18247_v9  ;;  %v11802_v9 = vld [vmem:[%s17213_s1 + $0x550] ss:$48 sps:$4 sm:$0xff]  }
 0x1e7   :  { %2511 = vmatprep.subr.bf16.mxu1 %v18248_v51  ;;  %2553 = vmatpush1.bf16.msra.mxu0 %v11682_v23  ;;  %v11808_v51 = vld [vmem:[%s17213_s1 + $0x4f4] ss:$48 sps:$4 sm:$0xff]  }
 0x1e8   :  { %2579 = vmatprep.subr.bf16.mxu0 %v18249_v47  ;;  %v11814_v47 = vld [vmem:[%s17213_s1 + $0x610] ss:$48 sps:$4 sm:$0xff]  }
 0x1ea   :  { %2512 = vmatpush1.bf16.msra.mxu1 %v18250_v60  ;;  %8448 = vmatmul.mubr.msk.bf16.vlgmr.msra.gmra.mxu0 %vm1305_vm1, %v11628_v32 }
 0x1eb   :  { %2513 = vmatprep.subr.bf16.mxu1 %v18251_v13  ;;  %2580 = vmatpush1.bf16.msra.mxu0 %v18252_v54  ;;  %v11820_v13 = vld [vmem:[%s17213_s1 + $0x2bc] ss:$48 sps:$4 sm:$0xff]  }
 0x1ec   :  { %2611 = vmatprep.mubr.bf16.mxu0 %v11564_v55  ;;  %2581 = vmatprep.subr.bf16.mxu0 %v18253_v61  ;;  %v11828_v61 = vld [vmem:[%s17213_s1 + $0x4f0] ss:$48 sps:$4 sm:$0xff]  }
 0x1ee   :  { %2514 = vmatpush2.bf16.msra.mxu1 %v18254_v58 }
 0x1ef   :  { %2515 = vmatprep.subr.bf16.mxu1 %v18255_v56  ;;  %2582 = vmatpush1.bf16.msra.mxu0 %v18256_v19  ;;  %v11836_v56 = vld [vmem:[%s17213_s1 + $0x494] ss:$48 sps:$4 sm:$0xff]   ;;  %v11842_v19 = vld [vmem:[%s17213_s1 + $0x2b8] ss:$48 sps:$4 sm:$0xff]  }
 0x1f0   :  { %2583 = vmatprep.subr.bf16.mxu0 %v18257_v36 }
 0x1f2   :  { %2516 = vmatpush2.bf16.msra.mxu1 %v18258_v43  ;;  %v11851_v43 = vld [vmem:[%s17213_s1 + $0x25c] ss:$48 sps:$4 sm:$0xff]  }
 0x1f3   :  { %2517 = vmatprep.subr.bf16.mxu1 %v18259_v49  ;;  %2584 = vmatpush1.bf16.msra.mxu0 %v18260_v30  ;;  %v11857_v30 = vld [vmem:[%s17213_s1 + $0x490] ss:$48 sps:$4 sm:$0xff]  }
 0x1f4   :  { %2585 = vmatprep.subr.bf16.mxu0 %v18261_v48 }
 0x1f5   :  { %v2005_v40 = vpop.f32.mrf.mxu1 }
 0x1f6   :  { %v11701_v11 = vadd.f32 %v2046_v59, %v2005_v40  ;;  %2518 = vmatpush2.bf16.msra.mxu1 %v18262_v62  ;;  %v11716_v59 = vld [vmem:[%s17213_s1 + $0x134] ss:$48 sps:$4 sm:$0xff]   ;;  %v11869_v62 = vld [vmem:[%s17213_s1 + $0x258] ss:$48 sps:$4 sm:$0xff]  }
 0x1f7   :  { %v2007_v28 = vpop.f32.mrf.mxu1  ;;  %2519 = vmatprep.subr.bf16.mxu1 %v11332_v1  ;;  %2586 = vmatpush1.bf16.msra.mxu0 %v11710_v0  ;;  %v11863_v40 = vld [vmem:[%s17213_s1 + $0x434] ss:$48 sps:$4 sm:$0xff]  }
 0x1f8   :  { %v11705_v63 = vadd.f32 %v2048_v26, %v2007_v28  ;;  %2587 = vmatprep.subr.bf16.mxu0 %v11716_v59  ;;  %v11724_v26 = vld [vmem:[%s17213_s1 + $0x130] ss:$48 sps:$4 sm:$0xff]   ;;  %v11875_v28 = vld [vmem:[%s17213_s1 + $0x1fc] ss:$48 sps:$4 sm:$0xff]  }
 0x1f9   :  { %v2009_v3 = vpop.f32.mrf.mxu1 }
 0x1fa   :  { %2520 = vmatpush2.bf16.msra.mxu1 %v11340_v25 }
 0x1fb   :  { %v2010_v1 = vpop.f32.mrf.mxu1  ;;  %2521 = vmatprep.subr.bf16.mxu1 %v11346_v12  ;;  %2588 = vmatpush1.bf16.msra.mxu0 %v11724_v26  ;;  %v11738_v12 = vld [vmem:[%s17213_s1 + $0xd0] ss:$48 sps:$4 sm:$0xff]  }
 0x1fc   :  { %2589 = vmatprep.subr.bf16.mxu0 %v11730_v5  ;;  %v11883_v1 = vld [vmem:[%s17213_s1 + $0x430] ss:$48 sps:$4 sm:$0xff]  }
 0x1fd   :  { %v2128_v22 = vpop.f32.mrf.mxu1 }
 0x1fe   :  { %2522 = vmatpush2.bf16.msra.mxu1 %v11354_v21 }
 0x1ff   :  { %v2130_v25 = vpop.f32.mrf.mxu1  ;;  %2523 = vmatprep.subr.bf16.mxu1 %v11360_v27  ;;  %2590 = vmatpush1.bf16.msra.mxu0 %v11738_v12  ;;  %v11752_v27 = vld [vmem:[%s17213_s1 + $0x70] ss:$48 sps:$4 sm:$0xff]  }
 0x200   :  { %2591 = vmatprep.subr.bf16.mxu0 %v11744_v52 }
 0x201   :  { %v2132_v15 = vpop.f32.mrf.mxu1 }
 0x202   :  { %2524 = vmatpush2.bf16.msra.mxu1 %v11368_v29  ;;  %v11766_v29 = vld [vmem:[%s17213_s1 + $0x10] ss:$48 sps:$4 sm:$0xff]   ;;  %v11897_v15 = vld [vmem:[%s17213_s1 + $0x1f8] ss:$48 sps:$4 sm:$0xff]  }
 0x203   :  { %v2133_v21 = vpop.f32.mrf.mxu1  ;;  %2525 = vmatprep.subr.bf16.mxu1 %v11374_v33  ;;  %2592 = vmatpush1.bf16.msra.mxu0 %v11752_v27  ;;  %v11772_v33 = vld [vmem:[%s17213_s1 + $0x5b4] ss:$48 sps:$4 sm:$0xff]  }
 0x204   :  { %2593 = vmatprep.subr.bf16.mxu0 %v11758_v16  ;;  %v11903_v21 = vld [vmem:[%s17213_s1 + $0x19c] ss:$48 sps:$4 sm:$0xff]  }
 0x206   :  { %2526 = vmatpush2.bf16.msra.mxu1 %v11382_v37  ;;  %v11781_v37 = vld [vmem:[%s17213_s1 + $0x5b0] ss:$48 sps:$4 sm:$0xff]  }
 0x207   :  { %2527 = vmatprep.subr.bf16.mxu1 %v11388_v38  ;;  %2594 = vmatpush1.bf16.msra.mxu0 %v11766_v29  ;;  %v11788_v38 = vld [vmem:[%s17213_s1 + $0x554] ss:$48 sps:$4 sm:$0xff]  }
 0x208   :  { %2595 = vmatprep.subr.bf16.mxu0 %v11772_v33 }
 0x20a   :  { %2528 = vmatpush2.bf16.msra.mxu1 %v11399_v42  ;;  %v11796_v42 = vld [vmem:[%s17213_s1 + $0x614] ss:$48 sps:$4 sm:$0xff]  }
 0x20b   :  { %8449 = vmatprep.subr.msk.bf16.mxu1 %vm1309_vm0, %v10065_v31  ;;  %2596 = vmatpush2.bf16.msra.mxu0 %v11781_v37 }
 0x20c   :  { %2597 = vmatprep.subr.bf16.mxu0 %v11788_v38 }
 0x20d   :  { %2530 = vmatmul.mubr.bf16.vlgmr.msra.gmra.mxu1 %v11661_v14 }
 0x20e   :  { %2633 = vmatpush1.bf16.msra.mxu1 %v10083_v35  ;;  %2652 = vmatprep.mubr.bf16.mxu1 %v17988_v20 }
 0x20f   :  { %2634 = vmatprep.subr.bf16.mxu1 %v11796_v42  ;;  %2598 = vmatpush2.bf16.msra.mxu0 %v11802_v9 }
 0x210   :  { %2599 = vmatprep.subr.bf16.mxu0 %v11808_v51 }
 0x212   :  { %2635 = vmatpush1.bf16.msra.mxu1 %v11814_v47  ;;  %v2087_v60 = vpop.f32.mrf.mxu0 }
 0x213   :  { %2661 = vmatprep.subr.bf16.mxu1 %v11820_v13  ;;  %v11823_v54 = vadd.f32 %v2128_v22, %v2087_v60  ;;  %2600 = vmatpush2.bf16.msra.mxu0 %v11828_v61  ;;  %v11889_v22 = vld [vmem:[%s17213_s1 + $0x3d4] ss:$48 sps:$4 sm:$0xff]  }
 0x214   :  { %v2089_v58 = vpop.f32.mrf.mxu0  ;;  %2601 = vmatprep.subr.bf16.mxu0 %v11836_v56 }
 0x215   :  { %8450 = vmatmul.mubr.msk.bf16.vlgmr.msra.gmra.mxu1 %vm1305_vm1, %v11628_v32  ;;  %v11845_v36 = vadd.f32 %v2130_v25, %v2089_v58  ;;  %v11909_v58 = vld [vmem:[%s17213_s1 + $0x3d0] ss:$48 sps:$4 sm:$0xff]  }
 0x216   :  { %2662 = vmatpush1.bf16.msra.mxu1 %v11842_v19  ;;  %2693 = vmatprep.mubr.bf16.mxu1 %v11564_v55  ;;  %v2091_v49 = vpop.f32.mrf.mxu0 }
 0x217   :  { %2663 = vmatprep.subr.bf16.mxu1 %v11851_v43  ;;  %2602 = vmatpush2.bf16.msra.mxu0 %v11857_v30  ;;  %v11915_v49 = vld [vmem:[%s17213_s1 + $0x374] ss:$48 sps:$4 sm:$0xff]  }
 0x218   :  { %2603 = vmatprep.subr.bf16.mxu0 %v11863_v40  ;;  %v2092_v48 = vpop.f32.mrf.mxu0 }
 0x21a   :  { %2664 = vmatpush1.bf16.msra.mxu1 %v11869_v62  ;;  %v11878_v3 = vpop.f32.mrf.mxu0 }
 0x21b   :  { %2665 = vmatprep.subr.bf16.mxu1 %v11875_v28  ;;  %2604 = vmatpush2.bf16.msra.mxu0 %v11883_v1 }
 0x21c   :  { %2605 = vmatprep.subr.bf16.mxu0 %v11889_v22  ;;  %v11892_v25 = vpop.f32.mrf.mxu0 }
 0x21e   :  { %2666 = vmatpush1.bf16.msra.mxu1 %v11897_v15  ;;  %v2214_v60 = vpop.f32.mrf.mxu0 }
 0x21f   :  { %2667 = vmatprep.subr.bf16.mxu1 %v11903_v21  ;;  %2606 = vmatpush2.bf16.msra.mxu0 %v11909_v58  ;;  %v11927_v60 = vld [vmem:[%s17213_s1 + $0x13c] ss:$48 sps:$4 sm:$0xff]  }
 0x220   :  { %2607 = vmatprep.subr.bf16.mxu0 %v11915_v49  ;;  %v2215_v48 = vpop.f32.mrf.mxu0 }
 0x221   :  { %v11939_v48 = vld [vmem:[%s17213_s1 + $0x314] ss:$48 sps:$4 sm:$0xff]  }
 0x222   :  { %2668 = vmatpush1.bf16.msra.mxu1 %v11921_v39  ;;  %18264 = vst [vmem:[#allocation8_spill] sm:$0xff] %v11939_v48 }
 0x223   :  { %2669 = vmatprep.subr.bf16.mxu1 %v11927_v60  ;;  %2608 = vmatpush2.bf16.msra.mxu0 %v11933_v34  ;;  %v12111_v34 = vld [vmem:[%s17213_s1 + $0x144] ss:$48 sps:$4 sm:$0xff]  }
 0x224   :  { %2609 = vmatprep.subr.bf16.mxu0 %v11939_v48  ;;  %18290 = vst [vmem:[#allocation39_spill] sm:$0xff] %v12111_v34 }
 0x226   :  { %2670 = vmatpush1.bf16.msra.mxu1 %v11945_v57  ;;  %v11965_v57 = vld [vmem:[%s17213_s1 + $0xd8] ss:$48 sps:$4 sm:$0xff]  }
 0x227   :  { %2671 = vmatprep.subr.bf16.mxu1 %v11951_v50  ;;  %2610 = vmatpush2.bf16.msra.mxu0 %v11957_v41  ;;  %18268 = vst [vmem:[#allocation10_spill] sm:$0xff] %v11965_v57  ;;  %v11972_v50 = vld [vmem:[%s17213_s1 + $0x7c] ss:$48 sps:$4 sm:$0xff]   ;;  %v12079_v41 = vld [vmem:[%s17213_s1 + $0x1a4] ss:$48 sps:$4 sm:$0xff]  }
 0x228   :  { %8451 = vmatprep.subr.msk.bf16.mxu0 %vm1309_vm0, %v10504_v24  ;;  %18269 = vst [vmem:[#allocation11_spill] sm:$0xff] %v11972_v50  ;;  %v11980_v24 = vld [vmem:[%s17213_s1 + $0x61c] ss:$48 sps:$4 sm:$0xff]   ;;  %18286 = vst [vmem:[#allocation35_spill] sm:$0xff] %v12079_v41 }
 0x229   :  { %18270 = vst [vmem:[#allocation19_spill] sm:$0xff] %v11980_v24 }
 0x22a   :  { %2672 = vmatpush1.bf16.msra.mxu1 %v11965_v57  ;;  %2612 = vmatmul.mubr.bf16.vlgmr.msra.gmra.mxu0 %v11661_v14  ;;  %v11986_v57 = vld [vmem:[%s17213_s1 + $0x78] ss:$48 sps:$4 sm:$0xff]  }
 0x22b   :  { %2673 = vmatprep.subr.bf16.mxu1 %v11972_v50  ;;  %2715 = vmatpush1.bf16.msra.mxu0 %v10522_v17  ;;  %18271 = vst [vmem:[#allocation20_spill] sm:$0xff] %v11986_v57  ;;  %v11992_v17 = vld [vmem:[%s17213_s1 + $0x1c] ss:$48 sps:$4 sm:$0xff]   ;;  %v11998_v50 = vld [vmem:[%s17213_s1 + $0x618] ss:$48 sps:$4 sm:$0xff]  }
 0x22c   :  { %2734 = vmatprep.mubr.bf16.mxu0 %v17988_v20  ;;  %2716 = vmatprep.subr.bf16.mxu0 %v11980_v24  ;;  %18272 = vst [vmem:[#allocation13_spill] sm:$0xff] %v11992_v17  ;;  %18273 = vst [vmem:[#allocation14_spill] sm:$0xff] %v11998_v50  ;;  %v12004_v24 = vld [vmem:[%s17213_s1 + $0x2c4] ss:$48 sps:$4 sm:$0xff]  }
 0x22d   :  { %18274 = vst [vmem:[#allocation23_spill] sm:$0xff] %v12004_v24 }
 0x22e   :  { %2674 = vmatpush1.bf16.msra.mxu1 %v11986_v57  ;;  %v12010_v57 = vld [vmem:[%s17213_s1 + $0x18] ss:$48 sps:$4 sm:$0xff]  }
 0x22f   :  { %2675 = vmatprep.subr.bf16.mxu1 %v11992_v17  ;;  %2717 = vmatpush1.bf16.msra.mxu0 %v11998_v50  ;;  %18275 = vst [vmem:[#allocation24_spill] sm:$0xff] %v12010_v57  ;;  %v12016_v17 = vld [vmem:[%s17213_s1 + $0x5bc] ss:$48 sps:$4 sm:$0xff]   ;;  %v12049_v50 = vld [vmem:[%s17213_s1 + $0x260] ss:$48 sps:$4 sm:$0xff]  }
 0x230   :  { %2743 = vmatprep.subr.bf16.mxu0 %v12004_v24  ;;  %18276 = vst [vmem:[#allocation17_spill] sm:$0xff] %v12016_v17  ;;  %v12024_v24 = vld [vmem:[%s17213_s1 + $0x2c0] ss:$48 sps:$4 sm:$0xff]   ;;  %18281 = vst [vmem:[#allocation22_spill] sm:$0xff] %v12049_v50 }
 0x231   :  { %18277 = vst [vmem:[#allocation18_spill] sm:$0xff] %v12024_v24 }
 0x232   :  { %2676 = vmatpush1.bf16.msra.mxu1 %v12010_v57  ;;  %8452 = vmatmul.mubr.msk.bf16.vlgmr.msra.gmra.mxu0 %vm1305_vm1, %v11628_v32  ;;  %v12031_v57 = vld [vmem:[%s17213_s1 + $0x264] ss:$48 sps:$4 sm:$0xff]  }
 0x233   :  { %2677 = vmatprep.subr.bf16.mxu1 %v12016_v17  ;;  %2744 = vmatpush1.bf16.msra.mxu0 %v12024_v24  ;;  %18278 = vst [vmem:[#allocation27_spill] sm:$0xff] %v12031_v57  ;;  %v12037_v17 = vld [vmem:[%s17213_s1 + $0x5b8] ss:$48 sps:$4 sm:$0xff]   ;;  %v12043_v24 = vld [vmem:[%s17213_s1 + $0x55c] ss:$48 sps:$4 sm:$0xff]  }
 0x234   :  { %2775 = vmatprep.mubr.bf16.mxu0 %v11564_v55  ;;  %2745 = vmatprep.subr.bf16.mxu0 %v12031_v57  ;;  %18279 = vst [vmem:[#allocation28_spill] sm:$0xff] %v12037_v17  ;;  %18280 = vst [vmem:[#allocation21_spill] sm:$0xff] %v12043_v24  ;;  %v12055_v57 = vld [vmem:[%s17213_s1 + $0x204] ss:$48 sps:$4 sm:$0xff]  }
 0x235   :  { %18282 = vst [vmem:[#allocation31_spill] sm:$0xff] %v12055_v57 }
 0x236   :  { %2678 = vmatpush2.bf16.msra.mxu1 %v12037_v17  ;;  %v12061_v17 = vld [vmem:[%s17213_s1 + $0x558] ss:$48 sps:$4 sm:$0xff]  }
 0x237   :  { %2679 = vmatprep.subr.bf16.mxu1 %v12043_v24  ;;  %2746 = vmatpush1.bf16.msra.mxu0 %v12049_v50  ;;  %18283 = vst [vmem:[#allocation32_spill] sm:$0xff] %v12061_v17  ;;  %v12067_v24 = vld [vmem:[%s17213_s1 + $0x4fc] ss:$48 sps:$4 sm:$0xff]   ;;  %v12073_v50 = vld [vmem:[%s17213_s1 + $0x200] ss:$48 sps:$4 sm:$0xff]  }
 0x238   :  { %2747 = vmatprep.subr.bf16.mxu0 %v12055_v57  ;;  %18284 = vst [vmem:[#allocation25_spill] sm:$0xff] %v12067_v24  ;;  %18285 = vst [vmem:[#allocation26_spill] sm:$0xff] %v12073_v50 }
 0x23a   :  { %2680 = vmatpush2.bf16.msra.mxu1 %v12061_v17 }
 0x23b   :  { %2681 = vmatprep.subr.bf16.mxu1 %v12067_v24  ;;  %2748 = vmatpush1.bf16.msra.mxu0 %v12073_v50  ;;  %v12088_v24 = vld [vmem:[%s17213_s1 + $0x4f8] ss:$48 sps:$4 sm:$0xff]   ;;  %v12094_v50 = vld [vmem:[%s17213_s1 + $0x49c] ss:$48 sps:$4 sm:$0xff]  }
 0x23c   :  { %2749 = vmatprep.subr.bf16.mxu0 %v12079_v41  ;;  %18287 = vst [vmem:[#allocation36_spill] sm:$0xff] %v12088_v24  ;;  %18288 = vst [vmem:[#allocation29_spill] sm:$0xff] %v12094_v50 }
 0x23d   :  { %v2169_v57 = vpop.f32.mrf.mxu1 }
 0x23e   :  { %v12083_v17 = vadd.f32 %v11878_v3, %v2169_v57  ;;  %2682 = vmatpush2.bf16.msra.mxu1 %v12088_v24  ;;  %v12105_v3 = vld [vmem:[%s17213_s1 + $0x1a0] ss:$48 sps:$4 sm:$0xff]  }
 0x23f   :  { %v2171_v48 = vpop.f32.mrf.mxu1  ;;  %2683 = vmatprep.subr.bf16.mxu1 %v12094_v50  ;;  %18289 = vst [vmem:[#allocation30_spill] sm:$0xff] %v12105_v3  ;;  %2750 = vmatpush1.bf16.msra.mxu0 %v12105_v3  ;;  %v12155_v3 = vld [vmem:[%s17213_s1 + $0xe0] ss:$48 sps:$4 sm:$0xff]   ;;  %v12167_v50 = vld [vmem:[%s17213_s1 + $0x3d8] ss:$48 sps:$4 sm:$0xff]  }
 0x240   :  { %v12100_v57 = vadd.f32 %v11892_v25, %v2171_v48  ;;  %2751 = vmatprep.subr.bf16.mxu0 %v12111_v34  ;;  %v12119_v25 = vld [vmem:[%s17213_s1 + $0x498] ss:$48 sps:$4 sm:$0xff]   ;;  %v12131_v34 = vld [vmem:[%s17213_s1 + $0x140] ss:$48 sps:$4 sm:$0xff]   ;;  %18297 = vst [vmem:[#allocation46_spill] sm:$0xff] %v12155_v3  ;;  %18299 = vst [vmem:[#allocation49_spill] sm:$0xff] %v12167_v50 }
 0x241   :  { %v2173_v24 = vpop.f32.mrf.mxu1  ;;  %18291 = vst [vmem:[#allocation40_spill] sm:$0xff] %v12119_v25  ;;  %18293 = vst [vmem:[#allocation34_spill] sm:$0xff] %v12131_v34 }
 0x242   :  { %2684 = vmatpush2.bf16.msra.mxu1 %v12119_v25  ;;  %v12125_v24 = vld [vmem:[%s17213_s1 + $0x43c] ss:$48 sps:$4 sm:$0xff]   ;;  %v12137_v25 = vld [vmem:[%s17213_s1 + $0xe4] ss:$48 sps:$4 sm:$0xff]  }
 0x243   :  { %v2174_v48 = vpop.f32.mrf.mxu1  ;;  %18292 = vst [vmem:[#allocation33_spill] sm:$0xff] %v12125_v24  ;;  %2685 = vmatprep.subr.bf16.mxu1 %v12125_v24  ;;  %2752 = vmatpush1.bf16.msra.mxu0 %v12131_v34  ;;  %18294 = vst [vmem:[#allocation42_spill] sm:$0xff] %v12137_v25  ;;  %v12149_v34 = vld [vmem:[%s17213_s1 + $0x3dc] ss:$48 sps:$4 sm:$0xff]  }
 0x244   :  { %2753 = vmatprep.subr.bf16.mxu0 %v12137_v25  ;;  %v12143_v48 = vld [vmem:[%s17213_s1 + $0x438] ss:$48 sps:$4 sm:$0xff]   ;;  %18296 = vst [vmem:[#allocation37_spill] sm:$0xff] %v12149_v34 }
 0x245   :  { %v2292_v41 = vpop.f32.mrf.mxu1  ;;  %18295 = vst [vmem:[#allocation43_spill] sm:$0xff] %v12143_v48 }
 0x246   :  { %2686 = vmatpush2.bf16.msra.mxu1 %v12143_v48  ;;  %v12161_v48 = vld [vmem:[%s17213_s1 + $0x84] ss:$48 sps:$4 sm:$0xff]  }
 0x247   :  { %v2294_v24 = vpop.f32.mrf.mxu1  ;;  %2687 = vmatprep.subr.bf16.mxu1 %v12149_v34  ;;  %2754 = vmatpush1.bf16.msra.mxu0 %v12155_v3  ;;  %18298 = vst [vmem:[#allocation47_spill] sm:$0xff] %v12161_v48  ;;  %v12173_v3 = vld [vmem:[%s17213_s1 + $0x37c] ss:$48 sps:$4 sm:$0xff]  }
 0x248   :  { %2755 = vmatprep.subr.bf16.mxu0 %v12161_v48  ;;  %18300 = vst [vmem:[#allocation50_spill] sm:$0xff] %v12173_v3  ;;  %v12185_v48 = vld [vmem:[%s17213_s1 + $0x24] ss:$48 sps:$4 sm:$0xff]  }
 0x249   :  { %v2296_v25 = vpop.f32.mrf.mxu1  ;;  %18302 = vst [vmem:[#allocation52_spill] sm:$0xff] %v12185_v48 }
 0x24a   :  { %2688 = vmatpush2.bf16.msra.mxu1 %v12167_v50  ;;  %v12179_v25 = vld [vmem:[%s17213_s1 + $0x80] ss:$48 sps:$4 sm:$0xff]  }
 0x24b   :  { %v2297_v34 = vpop.f32.mrf.mxu1  ;;  %2689 = vmatprep.subr.bf16.mxu1 %v12173_v3  ;;  %18301 = vst [vmem:[#allocation51_spill] sm:$0xff] %v12179_v25  ;;  %2756 = vmatpush1.bf16.msra.mxu0 %v12179_v25  ;;  %v12197_v3 = vld [vmem:[%s17213_s1 + $0x31c] ss:$48 sps:$4 sm:$0xff]   ;;  %v12203_v25 = vld [vmem:[%s17213_s1 + $0x20] ss:$48 sps:$4 sm:$0xff]  }
 0x24c   :  { %2757 = vmatprep.subr.bf16.mxu0 %v12185_v48  ;;  %v12191_v34 = vld [vmem:[%s17213_s1 + $0x378] ss:$48 sps:$4 sm:$0xff]   ;;  %18304 = vst [vmem:[#allocation54_spill] sm:$0xff] %v12197_v3  ;;  %18305 = vst [vmem:[#allocation55_spill] sm:$0xff] %v12203_v25  ;;  %v12209_v48 = vld [vmem:[%s17213_s1 + $0x5c4] ss:$48 sps:$4 sm:$0xff]  }
 0x24d   :  { %18303 = vst [vmem:[#allocation53_spill] sm:$0xff] %v12191_v34  ;;  %18306 = vst [vmem:[#allocation56_spill] sm:$0xff] %v12209_v48  ;;  %v12300_v50 = vld [vmem:[%s17213_s1 + $0x4a0] ss:$48 sps:$4 sm:$0xff]  }
 0x24e   :  { %2690 = vmatpush2.bf16.msra.mxu1 %v12191_v34  ;;  %v12215_v34 = vld [vmem:[%s17213_s1 + $0x318] ss:$48 sps:$4 sm:$0xff]   ;;  %18317 = vst [vmem:[#allocation67_spill] sm:$0xff] %v12300_v50 }
 0x24f   :  { %2691 = vmatprep.subr.bf16.mxu1 %v12197_v3  ;;  %2758 = vmatpush1.bf16.msra.mxu0 %v12203_v25  ;;  %18307 = vst [vmem:[#allocation57_spill] sm:$0xff] %v12215_v34  ;;  %v12223_v25 = vld [vmem:[%s17213_s1 + $0x5c0] ss:$48 sps:$4 sm:$0xff]   ;;  %v12278_v3 = vld [vmem:[%s17213_s1 + $0x4a4] ss:$48 sps:$4 sm:$0xff]  }
 0x250   :  { %2759 = vmatprep.subr.bf16.mxu0 %v12209_v48  ;;  %18308 = vst [vmem:[#allocation58_spill] sm:$0xff] %v12223_v25  ;;  %v12230_v48 = vld [vmem:[%s17213_s1 + $0x564] ss:$48 sps:$4 sm:$0xff]   ;;  %18316 = vst [vmem:[#allocation66_spill] sm:$0xff] %v12278_v3 }
 0x251   :  { %18309 = vst [vmem:[#allocation59_spill] sm:$0xff] %v12230_v48 }
 0x252   :  { %2692 = vmatpush2.bf16.msra.mxu1 %v12215_v34  ;;  %v12262_v34 = vld [vmem:[%s17213_s1 + $0x2cc] ss:$48 sps:$4 sm:$0xff]  }
 0x253   :  { %8453 = vmatprep.subr.msk.bf16.mxu1 %vm1309_vm0, %v18142_v2  ;;  %2760 = vmatpush2.bf16.msra.mxu0 %v12223_v25  ;;  %v12238_v2 = vld [vmem:[%s17213_s1 + $0x624] ss:$48 sps:$4 sm:$0xff]   ;;  %v12244_v25 = vld [vmem:[%s17213_s1 + $0x560] ss:$48 sps:$4 sm:$0xff]   ;;  %18314 = vst [vmem:[#allocation64_spill] sm:$0xff] %v12262_v34 }
 0x254   :  { %2761 = vmatprep.subr.bf16.mxu0 %v12230_v48  ;;  %18310 = vst [vmem:[#allocation60_spill] sm:$0xff] %v12238_v2  ;;  %18311 = vst [vmem:[#allocation61_spill] sm:$0xff] %v12244_v25  ;;  %v12256_v48 = vld [vmem:[%s17213_s1 + $0x620] ss:$48 sps:$4 sm:$0xff]  }
 0x255   :  { %2694 = vmatmul.mubr.bf16.vlgmr.msra.gmra.mxu1 %v11661_v14  ;;  %18313 = vst [vmem:[#allocation63_spill] sm:$0xff] %v12256_v48 }
 0x256   :  { %2797 = vmatpush1.bf16.msra.mxu1 %v18145_v8  ;;  %2816 = vmatprep.mubr.bf16.mxu1 %v17988_v20  ;;  %v12250_v8 = vld [vmem:[%s17213_s1 + $0x504] ss:$48 sps:$4 sm:$0xff]  }
 0x257   :  { %2798 = vmatprep.subr.bf16.mxu1 %v12238_v2  ;;  %2762 = vmatpush2.bf16.msra.mxu0 %v12244_v25  ;;  %18312 = vst [vmem:[#allocation62_spill] sm:$0xff] %v12250_v8 }
 0x258   :  { %2763 = vmatprep.subr.bf16.mxu0 %v12250_v8  ;;  %v12270_v8 = vld [vmem:[%s17213_s1 + $0x500] ss:$48 sps:$4 sm:$0xff]  }
 0x259   :  { %18315 = vst [vmem:[#allocation65_spill] sm:$0xff] %v12270_v8 }
 0x25a   :  { %2799 = vmatpush1.bf16.msra.mxu1 %v12256_v48  ;;  %v2251_v2 = vpop.f32.mrf.mxu0 }
 0x25b   :  { %2825 = vmatprep.subr.bf16.mxu1 %v12262_v34  ;;  %v12265_v25 = vadd.f32 %v2292_v41, %v2251_v2  ;;  %2764 = vmatpush2.bf16.msra.mxu0 %v12270_v8  ;;  %v12286_v2 = vld [vmem:[%s17213_s1 + $0x2c8] ss:$48 sps:$4 sm:$0xff]   ;;  %v12293_v34 = vld [vmem:[%s17213_s1 + $0x26c] ss:$48 sps:$4 sm:$0xff]  }
 0x25c   :  { %v2253_v48 = vpop.f32.mrf.mxu0  ;;  %2765 = vmatprep.subr.bf16.mxu0 %v12278_v3 }
 0x25d   :  { %8454 = vmatmul.mubr.msk.bf16.vlgmr.msra.gmra.mxu1 %vm1305_vm1, %v11628_v32  ;;  %v2295_v8 = vadd.f32 %v2294_v24, %v2253_v48 }
 0x25e   :  { %2826 = vmatpush1.bf16.msra.mxu1 %v12286_v2  ;;  %2857 = vmatprep.mubr.bf16.mxu1 %v11564_v55  ;;  %v2255_v3 = vpop.f32.mrf.mxu0  ;;  %v12306_v55 = vld [vmem:[%s17213_s1 + $0x444] ss:$48 sps:$4 sm:$0xff]  }
 0x25f   :  { %2827 = vmatprep.subr.bf16.mxu1 %v12293_v34  ;;  %v2384_v41 = vmax.f32 %v11705_v63, %v2295_v8  ;;  %2766 = vmatpush2.bf16.msra.mxu0 %v12300_v50  ;;  %18318 = vst [vmem:[#allocation68_spill] sm:$0xff] %v12306_v55  ;;  %v18319_v3 = vmax.f32 %v11632_v46, %v12083_v17  ;;  %v12317_v8 = vld [vmem:[%s17213_s1 + $0x268] ss:$48 sps:$4 sm:$0xff]   ;;  %v12323_v63 = vld [vmem:[%s17213_s1 + $0x20c] ss:$48 sps:$4 sm:$0xff]  }
 0x260   :  { %2767 = vmatprep.subr.bf16.mxu0 %v12306_v55  ;;  %v2256_v24 = vpop.f32.mrf.mxu0  ;;  %18321 = vst [vmem:[#allocation70_spill] sm:$0xff] %v12317_v8  ;;  %18322 = vst [vmem:[#allocation71_spill] sm:$0xff] %v12323_v63  ;;  %v12331_v17 = vld [vmem:[%s17213_s1 + $0x440] ss:$48 sps:$4 sm:$0xff]   ;;  %v12337_v46 = vld [vmem:[%s17213_s1 + $0x3e4] ss:$48 sps:$4 sm:$0xff]   ;;  %v18349_v55 = vmax.f32 %v11639_v53, %v12100_v57  ;;  %v18351_v53 = vmax.f32 %v11701_v11, %v12265_v25 }
 0x261   :  { %v12312_v48 = vmax.f32 %v18319_v3, %v2384_v41  ;;  %18323 = vst [vmem:[#allocation72_spill] sm:$0xff] %v12331_v17  ;;  %18324 = vst [vmem:[#allocation73_spill] sm:$0xff] %v12337_v46  ;;  %v12345_v3 = vld [vmem:[%s17213_s1 + $0x208] ss:$48 sps:$4 sm:$0xff]   ;;  %v12579_v25 = vld [vmem:[%s17213_s1 + $0x3ec] ss:$48 sps:$4 sm:$0xff]  }
 0x262   :  { %2828 = vmatpush1.bf16.msra.mxu1 %v12317_v8  ;;  %v12326_v24 = vpop.f32.mrf.mxu0  ;;  %18325 = vst [vmem:[#allocation74_spill] sm:$0xff] %v12345_v3 }
 0x263   :  { %18320 = vst [vmem:[#allocation69_spill] sm:$0xff] %v12312_v48  ;;  %2829 = vmatprep.subr.bf16.mxu1 %v12323_v63  ;;  %2768 = vmatpush2.bf16.msra.mxu0 %v12331_v17  ;;  %v12351_v48 = vld [vmem:[%s17213_s1 + $0x1ac] ss:$48 sps:$4 sm:$0xff]   ;;  %v12363_v63 = vld [vmem:[%s17213_s1 + $0x384] ss:$48 sps:$4 sm:$0xff]  }
 0x264   :  { %2769 = vmatprep.subr.bf16.mxu0 %v12337_v46  ;;  %v12340_v41 = vpop.f32.mrf.mxu0  ;;  %18326 = vst [vmem:[#allocation76_spill] sm:$0xff] %v12351_v48  ;;  %v12357_v46 = vld [vmem:[%s17213_s1 + $0x3e0] ss:$48 sps:$4 sm:$0xff]   ;;  %18328 = vst [vmem:[#allocation79_spill] sm:$0xff] %v12363_v63 }
 0x265   :  { %18327 = vst [vmem:[#allocation77_spill] sm:$0xff] %v12357_v46 }
 0x266   :  { %2830 = vmatpush1.bf16.msra.mxu1 %v12345_v3  ;;  %v2378_v17 = vpop.f32.mrf.mxu0 }
 0x267   :  { %2831 = vmatprep.subr.bf16.mxu1 %v12351_v48  ;;  %2770 = vmatpush2.bf16.msra.mxu0 %v12357_v46  ;;  %v12369_v48 = vld [vmem:[%s17213_s1 + $0x1a8] ss:$48 sps:$4 sm:$0xff]   ;;  %v12375_v17 = vld [vmem:[%s17213_s1 + $0x14c] ss:$48 sps:$4 sm:$0xff]   ;;  %v12381_v46 = vld [vmem:[%s17213_s1 + $0x380] ss:$48 sps:$4 sm:$0xff]  }
 0x268   :  { %2771 = vmatprep.subr.bf16.mxu0 %v12363_v63  ;;  %v2379_v3 = vpop.f32.mrf.mxu0  ;;  %18329 = vst [vmem:[#allocation80_spill] sm:$0xff] %v12369_v48  ;;  %18330 = vst [vmem:[#allocation81_spill] sm:$0xff] %v12375_v17  ;;  %v12522_v63 = vld [vmem:[%s17213_s1 + $0x508] ss:$48 sps:$4 sm:$0xff]  }
 0x269   :  { %18331 = vst [vmem:[#allocation82_spill] sm:$0xff] %v12381_v46  ;;  %v12387_v3 = vld [vmem:[%s17213_s1 + $0x324] ss:$48 sps:$4 sm:$0xff]   ;;  %18348 = vst [vmem:[#allocation97_spill] sm:$0xff] %v12522_v63 }
 0x26a   :  { %2832 = vmatpush1.bf16.msra.mxu1 %v12369_v48  ;;  %18332 = vst [vmem:[#allocation85_spill] sm:$0xff] %v12387_v3  ;;  %v12393_v48 = vld [vmem:[%s17213_s1 + $0x148] ss:$48 sps:$4 sm:$0xff]  }
 0x26b   :  { %2833 = vmatprep.subr.bf16.mxu1 %v12375_v17  ;;  %2772 = vmatpush2.bf16.msra.mxu0 %v12381_v46  ;;  %18333 = vst [vmem:[#allocation83_spill] sm:$0xff] %v12393_v48  ;;  %v12399_v17 = vld [vmem:[%s17213_s1 + $0xec] ss:$48 sps:$4 sm:$0xff]   ;;  %v12405_v46 = vld [vmem:[%s17213_s1 + $0x320] ss:$48 sps:$4 sm:$0xff]  }
 0x26c   :  { %2773 = vmatprep.subr.bf16.mxu0 %v12387_v3  ;;  %18334 = vst [vmem:[#allocation84_spill] sm:$0xff] %v12399_v17  ;;  %18335 = vst [vmem:[#allocation88_spill] sm:$0xff] %v12405_v46  ;;  %v12485_v3 = vld [vmem:[%s17213_s1 + $0x5c8] ss:$48 sps:$4 sm:$0xff]  }
 0x26d   :  { %18344 = vst [vmem:[#allocation93_spill] sm:$0xff] %v12485_v3 }
 0x26e   :  { %2834 = vmatpush1.bf16.msra.mxu1 %v12393_v48  ;;  %v12413_v48 = vld [vmem:[%s17213_s1 + $0xe8] ss:$48 sps:$4 sm:$0xff]  }
 0x26f   :  { %2835 = vmatprep.subr.bf16.mxu1 %v12399_v17  ;;  %2774 = vmatpush2.bf16.msra.mxu0 %v12405_v46  ;;  %18336 = vst [vmem:[#allocation89_spill] sm:$0xff] %v12413_v48  ;;  %v12420_v17 = vld [vmem:[%s17213_s1 + $0x8c] ss:$48 sps:$4 sm:$0xff]  }
 0x270   :  { %8455 = vmatprep.subr.msk.bf16.mxu0 %vm1309_vm0, %v18173_v44  ;;  %18337 = vst [vmem:[#allocation86_spill] sm:$0xff] %v12420_v17  ;;  %v12428_v44 = vld [vmem:[%s17213_s1 + $0x62c] ss:$48 sps:$4 sm:$0xff]  }
 0x271   :  { %18338 = vst [vmem:[#allocation87_spill] sm:$0xff] %v12428_v44 }
 0x272   :  { %2836 = vmatpush1.bf16.msra.mxu1 %v12413_v48  ;;  %2776 = vmatmul.mubr.bf16.vlgmr.msra.gmra.mxu0 %v11661_v14  ;;  %v12434_v48 = vld [vmem:[%s17214_s0 + $0x24] sm:$0xff] }
 0x273   :  { %2837 = vmatprep.subr.bf16.mxu1 %v12420_v17  ;;  %2879 = vmatpush1.bf16.msra.mxu0 %v18176_v4  ;;  %v12439_v17 = vld [vmem:[%s17213_s1 + $0x88] ss:$48 sps:$4 sm:$0xff]   ;;  %v12445_v4 = vld [vmem:[%s17213_s1 + $0x2c] ss:$48 sps:$4 sm:$0xff]   ;;  %v12456_v46 = vcombine.high %v12434_v48, %v12434_v48 }
 0x274   :  { %2898 = vmatprep.mubr.bf16.mxu0 %v17988_v20  ;;  %2880 = vmatprep.subr.bf16.mxu0 %v12428_v44  ;;  %18339 = vst [vmem:[#allocation92_spill] sm:$0xff] %v12439_v17  ;;  %18340 = vst [vmem:[#allocation90_spill] sm:$0xff] %v12445_v4  ;;  %v12451_v44 = vld [vmem:[%s17213_s1 + $0x628] ss:$48 sps:$4 sm:$0xff]  }
 0x275   :  { %18341 = vst [vmem:[#allocation91_spill] sm:$0xff] %v12451_v44 }
 0x276   :  { %2838 = vmatpush1.bf16.msra.mxu1 %v12439_v17  ;;  %v9635_v17 = vld [vmem:[%s17213_s1 + $0x2a4] ss:$48 sps:$4 sm:$0xff]  }
 0x277   :  { %2839 = vmatprep.subr.bf16.mxu1 %v12445_v4  ;;  %2881 = vmatpush1.bf16.msra.mxu0 %v12451_v44  ;;  %v12464_v4 = vld [vmem:[%s17213_s1 + $0x28] ss:$48 sps:$4 sm:$0xff]   ;;  %v12470_v44 = vld [vmem:[%s17213_s1 + $0x5cc] ss:$48 sps:$4 sm:$0xff]  }
 0x278   :  { %2941 = vmatprep.subr.bf16.mxu0 %v9635_v17  ;;  %18342 = vst [vmem:[#allocation95_spill] sm:$0xff] %v12464_v4  ;;  %18343 = vst [vmem:[#allocation96_spill] sm:$0xff] %v12470_v44  ;;  %v9638_v17 = vld [vmem:[%s17213_s1 + $0x2a0] ss:$48 sps:$4 sm:$0xff]  }
 0x27a   :  { %2840 = vmatpush1.bf16.msra.mxu1 %v12464_v4  ;;  %8456 = vmatmul.mubr.msk.bf16.vlgmr.msra.gmra.mxu0 %vm1305_vm1, %v11628_v32  ;;  %v9639_v4 = vld [vmem:[%s17213_s1 + $0x244] ss:$48 sps:$4 sm:$0xff]   ;;  %v12491_v32 = vld [vmem:[%s17213_s1 + $0x56c] ss:$48 sps:$4 sm:$0xff]  }
 0x27b   :  { %2841 = vmatprep.subr.bf16.mxu1 %v12470_v44  ;;  %2942 = vmatpush1.bf16.msra.mxu0 %v9638_v17  ;;  %18345 = vst [vmem:[#allocation94_spill] sm:$0xff] %v12491_v32  ;;  %v9642_v17 = vld [vmem:[%s17213_s1 + $0x240] ss:$48 sps:$4 sm:$0xff]   ;;  %v9647_v44 = vld [vmem:[%s17213_s1 + $0x184] ss:$48 sps:$4 sm:$0xff]  }
 0x27c   :  { %2973 = vmatprep.mubr.bf16.mxu0 %v12456_v46  ;;  %2943 = vmatprep.subr.bf16.mxu0 %v9639_v4  ;;  %v9643_v4 = vld [vmem:[%s17213_s1 + $0x1e4] ss:$48 sps:$4 sm:$0xff]  }
 0x27e   :  { %2842 = vmatpush2.bf16.msra.mxu1 %v12485_v3  ;;  %v12503_v3 = vld [vmem:[%s17213_s1 + $0x568] ss:$48 sps:$4 sm:$0xff]  }
 0x27f   :  { %2843 = vmatprep.subr.bf16.mxu1 %v12491_v32  ;;  %2944 = vmatpush1.bf16.msra.mxu0 %v9642_v17  ;;  %18346 = vst [vmem:[#allocation99_spill] sm:$0xff] %v12503_v3  ;;  %v12509_v32 = vld [vmem:[%s17213_s1 + $0x50c] ss:$48 sps:$4 sm:$0xff]   ;;  %v9646_v17 = vld [vmem:[%s17213_s1 + $0x1e0] ss:$48 sps:$4 sm:$0xff]  }
 0x280   :  { %2945 = vmatprep.subr.bf16.mxu0 %v9643_v4  ;;  %18347 = vst [vmem:[#allocation100_spill] sm:$0xff] %v12509_v32 }
 0x282   :  { %2844 = vmatpush2.bf16.msra.mxu1 %v12503_v3 }
 0x283   :  { %2845 = vmatprep.subr.bf16.mxu1 %v12509_v32  ;;  %2946 = vmatpush1.bf16.msra.mxu0 %v9646_v17  ;;  %v12528_v17 = vld [vmem:[%s17213_s1 + $0x4ac] ss:$48 sps:$4 sm:$0xff]  }
 0x284   :  { %2947 = vmatprep.subr.bf16.mxu0 %v9647_v44 }
 0x285   :  { %v2333_v4 = vpop.f32.mrf.mxu1 }
 0x286   :  { %v2375_v3 = vadd.f32 %v12326_v24, %v2333_v4  ;;  %2846 = vmatpush2.bf16.msra.mxu1 %v12522_v63  ;;  %v9650_v24 = vld [vmem:[%s17213_s1 + $0x180] ss:$48 sps:$4 sm:$0xff]   ;;  %v9651_v63 = vld [vmem:[%s17213_s1 + $0x124] ss:$48 sps:$4 sm:$0xff]  }
 0x287   :  { %v2335_v32 = vpop.f32.mrf.mxu1  ;;  %2847 = vmatprep.subr.bf16.mxu1 %v12528_v17  ;;  %2948 = vmatpush1.bf16.msra.mxu0 %v9650_v24 }
 0x288   :  { %v2385_v8 = vmax.f32 %v11823_v54, %v2375_v3  ;;  %v2377_v44 = vadd.f32 %v12340_v41, %v2335_v32  ;;  %2949 = vmatprep.subr.bf16.mxu0 %v9651_v63  ;;  %v12548_v41 = vld [vmem:[%s17213_s1 + $0x4a8] ss:$48 sps:$4 sm:$0xff]   ;;  %v12554_v32 = vld [vmem:[%s17213_s1 + $0x44c] ss:$48 sps:$4 sm:$0xff]  }
 0x289   :  { %v2337_v4 = vpop.f32.mrf.mxu1  ;;  %v12571_v63 = vld [vmem:[%s17213_s1 + $0x448] ss:$48 sps:$4 sm:$0xff]  }
 0x28a   :  { %v12542_v50 = vmax.f32 %v18349_v55, %v2385_v8  ;;  %v2386_v54 = vmax.f32 %v11845_v36, %v2377_v44  ;;  %2848 = vmatpush2.bf16.msra.mxu1 %v12548_v41  ;;  %v9654_v36 = vld [vmem:[%s17213_s1 + $0x120] ss:$48 sps:$4 sm:$0xff]   ;;  %v9655_v8 = vld [vmem:[%s17213_s1 + $0xc4] ss:$48 sps:$4 sm:$0xff]  }
 0x28b   :  { %v2338_v3 = vpop.f32.mrf.mxu1  ;;  %2849 = vmatprep.subr.bf16.mxu1 %v12554_v32  ;;  %2950 = vmatpush1.bf16.msra.mxu0 %v9654_v36  ;;  %v9658_v44 = vld [vmem:[%s17213_s1 + $0xc0] ss:$48 sps:$4 sm:$0xff]   ;;  %v9659_v4 = vld [vmem:[%s17213_s1 + $0x64] ss:$48 sps:$4 sm:$0xff]  }
 0x28c   :  { %18350 = vst [vmem:[#allocation98_spill] sm:$0xff] %v12542_v50  ;;  %v12560_v57 = vmax.f32 %v18351_v53, %v2386_v54  ;;  %2951 = vmatprep.subr.bf16.mxu0 %v9655_v8  ;;  %v12591_v54 = vld [vmem:[%s17213_s1 + $0x3e8] ss:$48 sps:$4 sm:$0xff]   ;;  %v12597_v53 = vld [vmem:[%s17213_s1 + $0x38c] ss:$48 sps:$4 sm:$0xff]  }
 0x28d   :  { %v2490_v55 = vpop.f32.mrf.mxu1  ;;  %v9662_v36 = vld [vmem:[%s17213_s1 + $0x60] ss:$48 sps:$4 sm:$0xff]   ;;  %v9663_v8 = vld [vmem:[%s17213_s1 + $0x4] ss:$48 sps:$4 sm:$0xff]  }
 0x28e   :  { %18352 = vst [vmem:[#allocation103_spill] sm:$0xff] %v12560_v57  ;;  %2850 = vmatpush2.bf16.msra.mxu1 %v12571_v63 }
 0x28f   :  { %v12574_v11 = vpop.f32.mrf.mxu1  ;;  %2851 = vmatprep.subr.bf16.mxu1 %v12579_v25  ;;  %2952 = vmatpush1.bf16.msra.mxu0 %v9658_v44  ;;  %v12609_v44 = vld [vmem:[%s17213_s1 + $0x388] ss:$48 sps:$4 sm:$0xff]  }
 0x290   :  { %2953 = vmatprep.subr.bf16.mxu0 %v9659_v4  ;;  %v9666_v4 = vld [vmem:[%s17213_s1] ss:$48 sps:$4 sm:$0xff]  }
 0x291   :  { %v2494_v24 = vpop.f32.mrf.mxu1 }
 0x292   :  { %2852 = vmatpush2.bf16.msra.mxu1 %v12591_v54  ;;  %v12615_v24 = vld [vmem:[%s17213_s1 + $0x32c] ss:$48 sps:$4 sm:$0xff]  }
 0x293   :  { %v2495_v3 = vpop.f32.mrf.mxu1  ;;  %2853 = vmatprep.subr.bf16.mxu1 %v12597_v53  ;;  %2954 = vmatpush1.bf16.msra.mxu0 %v9662_v36  ;;  %18353 = vst [vmem:[#allocation104_spill] sm:$0xff] %v12615_v24  ;;  %v12627_v36 = vld [vmem:[%s17213_s1 + $0x328] ss:$48 sps:$4 sm:$0xff]  }
 0x294   :  { %2955 = vmatprep.subr.bf16.mxu0 %v9663_v8  ;;  %v9667_v3 = vld [vmem:[%s17213_s1 + $0x5a4] ss:$48 sps:$4 sm:$0xff]   ;;  %18354 = vst [vmem:[#allocation101_spill] sm:$0xff] %v12627_v36  ;;  %v9669_v8 = vld [vmem:[%s17213_s1 + $0x5a0] ss:$48 sps:$4 sm:$0xff]  }
 0x296   :  { %2854 = vmatpush2.bf16.msra.mxu1 %v12609_v44 }
 0x297   :  { %2855 = vmatprep.subr.bf16.mxu1 %v12615_v24  ;;  %2956 = vmatpush1.bf16.msra.mxu0 %v9666_v4  ;;  %v9670_v4 = vld [vmem:[%s17213_s1 + $0x544] ss:$48 sps:$4 sm:$0xff]  }
 0x298   :  { %2957 = vmatprep.subr.bf16.mxu0 %v9667_v3  ;;  %v9672_v3 = vld [vmem:[%s17213_s1 + $0x540] ss:$48 sps:$4 sm:$0xff]  }
 0x29a   :  { %2856 = vmatpush2.bf16.msra.mxu1 %v12627_v36 }
 0x29b   :  { %8462 = vmatprep.subr.msk.bf16.mxu1 %vm1309_vm0, %v18215_v6  ;;  %2958 = vmatpush2.bf16.msra.mxu0 %v9669_v8  ;;  %v9671_v6 = vld [vmem:[%s17213_s1 + $0x604] ss:$48 sps:$4 sm:$0xff]   ;;  %v9674_v8 = vld [vmem:[%s17213_s1 + $0x600] ss:$48 sps:$4 sm:$0xff]  }
 0x29c   :  { %2959 = vmatprep.subr.bf16.mxu0 %v9670_v4 }
 0x29d   :  { %2858 = vmatmul.mubr.bf16.vlgmr.msra.gmra.mxu1 %v11661_v14  ;;  %v9673_v14 = vld [vmem:[%s17213_s1 + $0x4e4] ss:$48 sps:$4 sm:$0xff]  }
 0x29e   :  { %2995 = vmatpush1.bf16.msra.mxu1 %v18218_v7  ;;  %3014 = vmatprep.mubr.bf16.mxu1 %v17988_v20  ;;  %v12653_v7 = vld [vmem:[%s17214_s0 + $0x2c] ss:$0 sps:$4 sm:$0xff]  }
 0x29f   :  { %2996 = vmatprep.subr.bf16.mxu1 %v9671_v6  ;;  %2960 = vmatpush2.bf16.msra.mxu0 %v9672_v3  ;;  %v9675_v6 = vld [vmem:[%s17213_s1 + $0x2ac] ss:$48 sps:$4 sm:$0xff]  }
 0x2a0   :  { %2961 = vmatprep.subr.bf16.mxu0 %v9673_v14  ;;  %v9676_v14 = vld [vmem:[%s17213_s1 + $0x4e0] ss:$48 sps:$4 sm:$0xff]  }
 0x2a2   :  { %2997 = vmatpush1.bf16.msra.mxu1 %v9674_v8  ;;  %v2449_v4 = vpop.f32.mrf.mxu0  ;;  %v9677_v8 = vld [vmem:[%s17213_s1 + $0x484] ss:$48 sps:$4 sm:$0xff]  }
 0x2a3   :  { %3023 = vmatprep.subr.bf16.mxu1 %v9675_v6  ;;  %v12661_v3 = vadd.f32 %v2490_v55, %v2449_v4  ;;  %2962 = vmatpush2.bf16.msra.mxu0 %v9676_v14  ;;  %v9678_v55 = vld [vmem:[%s17213_s1 + $0x2a8] ss:$48 sps:$4 sm:$0xff]   ;;  %v9679_v4 = vld [vmem:[%s17213_s1 + $0x24c] ss:$48 sps:$4 sm:$0xff]   ;;  %v9680_v14 = vld [vmem:[%s17213_s1 + $0x480] ss:$48 sps:$4 sm:$0xff]  }
 0x2a4   :  { %v12668_v50 = vpop.f32.mrf.mxu0  ;;  %2963 = vmatprep.subr.bf16.mxu0 %v9677_v8  ;;  %v9681_v8 = vld [vmem:[%s17213_s1 + $0x424] ss:$48 sps:$4 sm:$0xff]  }
 0x2a5   :  { %8463 = vmatmul.mubr.msk.bf16.vlgmr.msra.gmra.mxu1 %vm1305_vm1, %v12653_v7 }
 0x2a6   :  { %3024 = vmatpush1.bf16.msra.mxu1 %v9678_v55  ;;  %3055 = vmatprep.mubr.bf16.mxu1 %v12456_v46  ;;  %v2453_v6 = vpop.f32.mrf.mxu0  ;;  %v9682_v55 = vld [vmem:[%s17213_s1 + $0x248] ss:$48 sps:$4 sm:$0xff]  }
 0x2a7   :  { %3025 = vmatprep.subr.bf16.mxu1 %v9679_v4  ;;  %2964 = vmatpush2.bf16.msra.mxu0 %v9680_v14  ;;  %v9683_v4 = vld [vmem:[%s17213_s1 + $0x1ec] ss:$48 sps:$4 sm:$0xff]   ;;  %v9684_v14 = vld [vmem:[%s17213_s1 + $0x420] ss:$48 sps:$4 sm:$0xff]  }
 0x2a8   :  { %2965 = vmatprep.subr.bf16.mxu0 %v9681_v8  ;;  %v2454_v57 = vpop.f32.mrf.mxu0 }
 0x2a9   :  { %v9685_v57 = vld [vmem:[%s17213_s1 + $0x3c4] ss:$48 sps:$4 sm:$0xff]  }
 0x2aa   :  { %3026 = vmatpush1.bf16.msra.mxu1 %v9682_v55  ;;  %v12692_v6 = vpop.f32.mrf.mxu0  ;;  %v9686_v55 = vld [vmem:[%s17213_s1 + $0x1e8] ss:$48 sps:$4 sm:$0xff]  }
 0x2ab   :  { %3027 = vmatprep.subr.bf16.mxu1 %v9683_v4  ;;  %2966 = vmatpush2.bf16.msra.mxu0 %v9684_v14  ;;  %v9687_v4 = vld [vmem:[%s17213_s1 + $0x18c] ss:$48 sps:$4 sm:$0xff]   ;;  %v9688_v14 = vld [vmem:[%s17213_s1 + $0x3c0] ss:$48 sps:$4 sm:$0xff]  }
 0x2ac   :  { %2967 = vmatprep.subr.bf16.mxu0 %v9685_v57  ;;  %v12700_v8 = vpop.f32.mrf.mxu0  ;;  %v9689_v57 = vld [vmem:[%s17213_s1 + $0x364] ss:$48 sps:$4 sm:$0xff]  }
 0x2ae   :  { %3028 = vmatpush1.bf16.msra.mxu1 %v9686_v55  ;;  %v2576_v36 = vpop.f32.mrf.mxu0  ;;  %v9690_v55 = vld [vmem:[%s17213_s1 + $0x188] ss:$48 sps:$4 sm:$0xff]  }
 0x2af   :  { %3029 = vmatprep.subr.bf16.mxu1 %v9687_v4  ;;  %2968 = vmatpush2.bf16.msra.mxu0 %v9688_v14  ;;  %v9691_v36 = vld [vmem:[%s17213_s1 + $0x12c] ss:$48 sps:$4 sm:$0xff]   ;;  %v9692_v4 = vld [vmem:[%s17213_s1 + $0x360] ss:$48 sps:$4 sm:$0xff]   ;;  %v9693_v14 = vld [vmem:[%s17213_s1 + $0x304] ss:$48 sps:$4 sm:$0xff]  }
 0x2b0   :  { %2969 = vmatprep.subr.bf16.mxu0 %v9689_v57  ;;  %v2577_v24 = vpop.f32.mrf.mxu0  ;;  %v9695_v57 = vld [vmem:[%s17213_s1 + $0xcc] ss:$48 sps:$4 sm:$0xff]  }
 0x2b1   :  { %v9694_v24 = vld [vmem:[%s17213_s1 + $0x128] ss:$48 sps:$4 sm:$0xff]  }
 0x2b2   :  { %3030 = vmatpush1.bf16.msra.mxu1 %v9690_v55  ;;  %v12734_v55 = vcombine.low %v12434_v48, %v12434_v48  ;;  %v9698_v48 = vld [vmem:[%s17213_s1 + $0x6c] ss:$48 sps:$4 sm:$0xff]  }
 0x2b3   :  { %3031 = vmatprep.subr.bf16.mxu1 %v9691_v36  ;;  %2970 = vmatpush2.bf16.msra.mxu0 %v9692_v4  ;;  %v9696_v36 = vld [vmem:[%s17213_s1 + $0x300] ss:$48 sps:$4 sm:$0xff]   ;;  %v9697_v4 = vld [vmem:[%s17213_s1 + $0xc8] ss:$48 sps:$4 sm:$0xff]  }
 0x2b4   :  { %2971 = vmatprep.subr.bf16.mxu0 %v9693_v14  ;;  %v9700_v14 = vld [vmem:[%s17213_s1 + $0xc] ss:$48 sps:$4 sm:$0xff]  }
 0x2b6   :  { %3032 = vmatpush1.bf16.msra.mxu1 %v9694_v24  ;;  %v9703_v24 = vld [vmem:[%s17213_s1 + $0x5ac] ss:$48 sps:$4 sm:$0xff]  }
 0x2b7   :  { %3033 = vmatprep.subr.bf16.mxu1 %v9695_v57  ;;  %2972 = vmatpush2.bf16.msra.mxu0 %v9696_v36  ;;  %v9705_v57 = vld [vmem:[%s17213_s1 + $0x254] ss:$48 sps:$4 sm:$0xff]   ;;  %v9706_v36 = vld [vmem:[%s17213_s1 + $0x5a8] ss:$48 sps:$4 sm:$0xff]  }
 0x2b8   :  { %8464 = vmatprep.subr.msk.bf16.mxu0 %vm1309_vm0, %v18243_v18  ;;  %v9699_v18 = vld [vmem:[%s17213_s1 + $0x68] ss:$48 sps:$4 sm:$0xff]  }
 0x2ba   :  { %3034 = vmatpush1.bf16.msra.mxu1 %v9697_v4  ;;  %2974 = vmatmul.mubr.bf16.vlgmr.msra.gmra.mxu0 %v12734_v55  ;;  %v9707_v4 = vld [vmem:[%s17213_s1 + $0x54c] ss:$48 sps:$4 sm:$0xff]  }
 0x2bb   :  { %3035 = vmatprep.subr.bf16.mxu1 %v9698_v48  ;;  %3077 = vmatpush1.bf16.msra.mxu0 %v18246_v45  ;;  %v9701_v45 = vld [vmem:[%s17213_s1 + $0x2b4] ss:$48 sps:$4 sm:$0xff]   ;;  %v9708_v48 = vld [vmem:[%s17213_s1 + $0x250] ss:$48 sps:$4 sm:$0xff]  }
 0x2bc   :  { %3096 = vmatprep.mubr.bf16.mxu0 %v17988_v20  ;;  %3078 = vmatprep.subr.bf16.mxu0 %v11674_v10  ;;  %v9702_v10 = vld [vmem:[%s17213_s1 + $0x8] ss:$48 sps:$4 sm:$0xff]  }
 0x2be   :  { %3036 = vmatpush1.bf16.msra.mxu1 %v9699_v18  ;;  %v9709_v18 = vld [vmem:[%s17213_s1 + $0x1f4] ss:$48 sps:$4 sm:$0xff]  }
 0x2bf   :  { %3037 = vmatprep.subr.bf16.mxu1 %v9700_v14  ;;  %3079 = vmatpush1.bf16.msra.mxu0 %v11682_v23  ;;  %v9704_v23 = vld [vmem:[%s17213_s1 + $0x2b0] ss:$48 sps:$4 sm:$0xff]   ;;  %v9710_v14 = vld [vmem:[%s17213_s1 + $0x548] ss:$48 sps:$4 sm:$0xff]  }
 0x2c0   :  { %3105 = vmatprep.subr.bf16.mxu0 %v9701_v45  ;;  %v9711_v45 = vld [vmem:[%s17213_s1 + $0x4ec] ss:$48 sps:$4 sm:$0xff]  }
 0x2c2   :  { %3038 = vmatpush1.bf16.msra.mxu1 %v9702_v10  ;;  %8465 = vmatmul.mubr.msk.bf16.vlgmr.msra.gmra.mxu0 %vm1305_vm1, %v12653_v7  ;;  %v9712_v10 = vld [vmem:[%s17213_s1 + $0x1f0] ss:$48 sps:$4 sm:$0xff]  }
 0x2c3   :  { %3039 = vmatprep.subr.bf16.mxu1 %v9703_v24  ;;  %3106 = vmatpush1.bf16.msra.mxu0 %v9704_v23  ;;  %v9713_v23 = vld [vmem:[%s17213_s1 + $0x194] ss:$48 sps:$4 sm:$0xff]  }
 0x2c4   :  { %3137 = vmatprep.mubr.bf16.mxu0 %v12456_v46  ;;  %3107 = vmatprep.subr.bf16.mxu0 %v9705_v57 }
 0x2c6   :  { %3040 = vmatpush2.bf16.msra.mxu1 %v9706_v36  ;;  %v9714_v36 = vld [vmem:[%s17213_s1 + $0x4e8] ss:$48 sps:$4 sm:$0xff]  }
 0x2c7   :  { %3041 = vmatprep.subr.bf16.mxu1 %v9707_v4  ;;  %3108 = vmatpush1.bf16.msra.mxu0 %v9708_v48  ;;  %v9715_v48 = vld [vmem:[%s17213_s1 + $0x48c] ss:$48 sps:$4 sm:$0xff]  }
 0x2c8   :  { %3109 = vmatprep.subr.bf16.mxu0 %v9709_v18 }
 0x2ca   :  { %3042 = vmatpush2.bf16.msra.mxu1 %v9710_v14 }
 0x2cb   :  { %3043 = vmatprep.subr.bf16.mxu1 %v9711_v45  ;;  %3110 = vmatpush1.bf16.msra.mxu0 %v9712_v10  ;;  %v9717_v10 = vld [vmem:[%s17213_s1 + $0x42c] ss:$48 sps:$4 sm:$0xff]  }
 0x2cc   :  { %3111 = vmatprep.subr.bf16.mxu0 %v9713_v23 }
 0x2cd   :  { %v2531_v24 = vpop.f32.mrf.mxu1 }
 0x2ce   :  { %v12801_v57 = vadd.f32 %v12692_v6, %v2531_v24  ;;  %3044 = vmatpush2.bf16.msra.mxu1 %v9714_v36  ;;  %v9716_v6 = vld [vmem:[%s17213_s1 + $0x488] ss:$48 sps:$4 sm:$0xff]   ;;  %v9719_v24 = vld [vmem:[%s17213_s1 + $0x3cc] ss:$48 sps:$4 sm:$0xff]  }
 0x2cf   :  { %v2533_v4 = vpop.f32.mrf.mxu1  ;;  %3045 = vmatprep.subr.bf16.mxu1 %v9715_v48  ;;  %3112 = vmatpush1.bf16.msra.mxu0 %v11710_v0  ;;  %v9718_v0 = vld [vmem:[%s17213_s1 + $0x428] ss:$48 sps:$4 sm:$0xff]   ;;  %v9721_v36 = vld [vmem:[%s17213_s1 + $0x36c] ss:$48 sps:$4 sm:$0xff]  }
 0x2d0   :  { %v12810_v18 = vadd.f32 %v12700_v8, %v2533_v4  ;;  %3113 = vmatprep.subr.bf16.mxu0 %v11716_v59  ;;  %v18373_v4 = vld [vmem:[#allocation28_spill] sm:$0xff]  ;;  %v18374_v48 = vld [vmem:[#allocation21_spill] sm:$0xff] }
 0x2d1   :  { %v2535_v14 = vpop.f32.mrf.mxu1 }
 0x2d2   :  { %3046 = vmatpush2.bf16.msra.mxu1 %v9716_v6  ;;  %v18375_v14 = vld [vmem:[#allocation22_spill] sm:$0xff]  ;;  %v18376_v6 = vld [vmem:[#allocation31_spill] sm:$0xff] }
 0x2d3   :  { %v2536_v45 = vpop.f32.mrf.mxu1  ;;  %3047 = vmatprep.subr.bf16.mxu1 %v9717_v10  ;;  %3114 = vmatpush1.bf16.msra.mxu0 %v11724_v26  ;;  %v9720_v26 = vld [vmem:[%s17213_s1 + $0x3c8] ss:$48 sps:$4 sm:$0xff]  }
 0x2d4   :  { %3115 = vmatprep.subr.bf16.mxu0 %v11730_v5  ;;  %v18377_v45 = vld [vmem:[#allocation32_spill] sm:$0xff]  ;;  %v18378_v10 = vld [vmem:[#allocation25_spill] sm:$0xff] }
 0x2d5   :  { %v2654_v8 = vpop.f32.mrf.mxu1 }
 0x2d6   :  { %3048 = vmatpush2.bf16.msra.mxu1 %v9718_v0 }
 0x2d7   :  { %v2656_v59 = vpop.f32.mrf.mxu1  ;;  %3049 = vmatprep.subr.bf16.mxu1 %v9719_v24  ;;  %3116 = vmatpush1.bf16.msra.mxu0 %v11738_v12  ;;  %v9722_v12 = vld [vmem:[%s17213_s1 + $0x368] ss:$48 sps:$4 sm:$0xff]  }
 0x2d8   :  { %3117 = vmatprep.subr.bf16.mxu0 %v11744_v52  ;;  %v9723_v52 = vld [vmem:[%s17213_s1 + $0x30c] ss:$48 sps:$4 sm:$0xff]  }
 0x2d9   :  { %v2658_v23 = vpop.f32.mrf.mxu1 }
 0x2da   :  { %3050 = vmatpush2.bf16.msra.mxu1 %v9720_v26  ;;  %v18381_v23 = vld [vmem:[#allocation36_spill] sm:$0xff] }
 0x2db   :  { %v2659_v5 = vpop.f32.mrf.mxu1  ;;  %3051 = vmatprep.subr.bf16.mxu1 %v9721_v36  ;;  %3118 = vmatpush1.bf16.msra.mxu0 %v11752_v27  ;;  %v9724_v27 = vld [vmem:[%s17213_s1 + $0x308] ss:$48 sps:$4 sm:$0xff]  }
 0x2dc   :  { %3119 = vmatprep.subr.bf16.mxu0 %v11758_v16  ;;  %v18382_v5 = vld [vmem:[#allocation29_spill] sm:$0xff] }
 0x2de   :  { %3052 = vmatpush2.bf16.msra.mxu1 %v9722_v12 }
 0x2df   :  { %3053 = vmatprep.subr.bf16.mxu1 %v9723_v52  ;;  %3120 = vmatpush1.bf16.msra.mxu0 %v11766_v29  ;;  %v18383_v52 = vld [vmem:[#allocation30_spill] sm:$0xff] }
 0x2e0   :  { %3121 = vmatprep.subr.bf16.mxu0 %v11772_v33 }
 0x2e2   :  { %3054 = vmatpush2.bf16.msra.mxu1 %v9724_v27 }
 0x2e3   :  { %8466 = vmatprep.subr.msk.bf16.mxu1 %vm1309_vm0, %v10065_v31  ;;  %3122 = vmatpush2.bf16.msra.mxu0 %v11781_v37 }
 0x2e4   :  { %3123 = vmatprep.subr.bf16.mxu0 %v11788_v38 }
 0x2e5   :  { %3056 = vmatmul.mubr.bf16.vlgmr.msra.gmra.mxu1 %v12734_v55 }
 0x2e6   :  { %3159 = vmatpush1.bf16.msra.mxu1 %v10083_v35  ;;  %3178 = vmatprep.mubr.bf16.mxu1 %v17988_v20 }
 0x2e7   :  { %3160 = vmatprep.subr.bf16.mxu1 %v11796_v42  ;;  %3124 = vmatpush2.bf16.msra.mxu0 %v11802_v9 }
 0x2e8   :  { %3125 = vmatprep.subr.bf16.mxu0 %v11808_v51 }
 0x2ea   :  { %3161 = vmatpush1.bf16.msra.mxu1 %v11814_v47  ;;  %v2613_v16 = vpop.f32.mrf.mxu0  ;;  %v18355_v47 = vld [vmem:[#allocation12_spill] sm:$0xff] }
 0x2eb   :  { %3187 = vmatprep.subr.bf16.mxu1 %v11820_v13  ;;  %v12861_v31 = vadd.f32 %v2654_v8, %v2613_v16  ;;  %3126 = vmatpush2.bf16.msra.mxu0 %v11828_v61  ;;  %v18356_v13 = vld [vmem:[#allocation8_spill] sm:$0xff]  ;;  %v18357_v61 = vld [vmem:[#allocation9_spill] sm:$0xff]  ;;  %v18379_v8 = vld [vmem:[#allocation26_spill] sm:$0xff] }
 0x2ec   :  { %v2615_v35 = vpop.f32.mrf.mxu0  ;;  %3127 = vmatprep.subr.bf16.mxu0 %v11836_v56  ;;  %v18358_v56 = vld [vmem:[#allocation15_spill] sm:$0xff] }
 0x2ed   :  { %8467 = vmatmul.mubr.msk.bf16.vlgmr.msra.gmra.mxu1 %vm1305_vm1, %v12653_v7  ;;  %v12868_v29 = vadd.f32 %v2656_v59, %v2615_v35  ;;  %v18380_v59 = vld [vmem:[#allocation35_spill] sm:$0xff]  ;;  %v18385_v35 = vld [vmem:[#allocation40_spill] sm:$0xff] }
 0x2ee   :  { %3188 = vmatpush1.bf16.msra.mxu1 %v11842_v19  ;;  %3219 = vmatprep.mubr.bf16.mxu1 %v12456_v46  ;;  %v2617_v33 = vpop.f32.mrf.mxu0  ;;  %v18359_v19 = vld [vmem:[#allocation16_spill] sm:$0xff]  ;;  %v18384_v16 = vld [vmem:[#allocation39_spill] sm:$0xff] }
 0x2ef   :  { %3189 = vmatprep.subr.bf16.mxu1 %v11851_v43  ;;  %3128 = vmatpush2.bf16.msra.mxu0 %v11857_v30  ;;  %v18360_v43 = vld [vmem:[#allocation38_spill] sm:$0xff] }
 0x2f0   :  { %3129 = vmatprep.subr.bf16.mxu0 %v11863_v40  ;;  %v2618_v37 = vpop.f32.mrf.mxu0  ;;  %v18361_v30 = vld [vmem:[#allocation10_spill] sm:$0xff]  ;;  %v18363_v40 = vld [vmem:[#allocation41_spill] sm:$0xff] }
 0x2f1   :  { %v18386_v37 = vld [vmem:[#allocation33_spill] sm:$0xff] }
 0x2f2   :  { %3190 = vmatpush1.bf16.msra.mxu1 %v11869_v62  ;;  %v2736_v38 = vpop.f32.mrf.mxu0  ;;  %v18364_v62 = vld [vmem:[#allocation19_spill] sm:$0xff] }
 0x2f3   :  { %3191 = vmatprep.subr.bf16.mxu1 %v11875_v28  ;;  %3130 = vmatpush2.bf16.msra.mxu0 %v11883_v1  ;;  %v18365_v28 = vld [vmem:[#allocation20_spill] sm:$0xff]  ;;  %v18366_v1 = vld [vmem:[#allocation13_spill] sm:$0xff] }
 0x2f4   :  { %3131 = vmatprep.subr.bf16.mxu0 %v11889_v22  ;;  %v2738_v42 = vpop.f32.mrf.mxu0  ;;  %v18367_v22 = vld [vmem:[#allocation14_spill] sm:$0xff] }
 0x2f6   :  { %3192 = vmatpush1.bf16.msra.mxu1 %v11897_v15  ;;  %v2740_v9 = vpop.f32.mrf.mxu0  ;;  %v18368_v15 = vld [vmem:[#allocation23_spill] sm:$0xff] }
 0x2f7   :  { %3193 = vmatprep.subr.bf16.mxu1 %v11903_v21  ;;  %3132 = vmatpush2.bf16.msra.mxu0 %v11909_v58  ;;  %v18369_v21 = vld [vmem:[#allocation24_spill] sm:$0xff]  ;;  %v18370_v58 = vld [vmem:[#allocation17_spill] sm:$0xff] }
 0x2f8   :  { %3133 = vmatprep.subr.bf16.mxu0 %v11915_v49  ;;  %v2741_v51 = vpop.f32.mrf.mxu0  ;;  %v18371_v49 = vld [vmem:[#allocation18_spill] sm:$0xff] }
 0x2f9   :  { %v18388_v51 = vld [vmem:[#allocation42_spill] sm:$0xff] }
 0x2fa   :  { %3194 = vmatpush1.bf16.msra.mxu1 %v11921_v39  ;;  %v18362_v39 = vld [vmem:[#allocation11_spill] sm:$0xff] }
 0x2fb   :  { %3195 = vmatprep.subr.bf16.mxu1 %v11927_v60  ;;  %3134 = vmatpush2.bf16.msra.mxu0 %v18355_v47  ;;  %v18372_v60 = vld [vmem:[#allocation27_spill] sm:$0xff] }
 0x2fc   :  { %3135 = vmatprep.subr.bf16.mxu0 %v18356_v13  ;;  %v18389_v47 = vld [vmem:[#allocation43_spill] sm:$0xff]  ;;  %v18391_v13 = vld [vmem:[#allocation46_spill] sm:$0xff] }
 0x2fe   :  { %3196 = vmatpush1.bf16.msra.mxu1 %v18357_v61 }
 0x2ff   :  { %3197 = vmatprep.subr.bf16.mxu1 %v18358_v56  ;;  %3136 = vmatpush2.bf16.msra.mxu0 %v18359_v19  ;;  %v18392_v56 = vld [vmem:[#allocation47_spill] sm:$0xff]  ;;  %v18393_v19 = vld [vmem:[#allocation49_spill] sm:$0xff] }
 0x300   :  { %8468 = vmatprep.subr.msk.bf16.mxu0 %vm1309_vm0, %v18360_v43 }
 0x302   :  { %3198 = vmatpush1.bf16.msra.mxu1 %v18361_v30  ;;  %3138 = vmatmul.mubr.bf16.vlgmr.msra.gmra.mxu0 %v12734_v55  ;;  %v18394_v30 = vld [vmem:[#allocation50_spill] sm:$0xff] }
 0x303   :  { %3199 = vmatprep.subr.bf16.mxu1 %v18362_v39  ;;  %3241 = vmatpush1.bf16.msra.mxu0 %v18363_v40  ;;  %v18395_v39 = vld [vmem:[#allocation51_spill] sm:$0xff]  ;;  %v18396_v40 = vld [vmem:[#allocation52_spill] sm:$0xff] }
 0x304   :  { %3260 = vmatprep.mubr.bf16.mxu0 %v17988_v20  ;;  %3242 = vmatprep.subr.bf16.mxu0 %v18364_v62  ;;  %v18397_v62 = vld [vmem:[#allocation53_spill] sm:$0xff] }
 0x306   :  { %3200 = vmatpush1.bf16.msra.mxu1 %v18365_v28  ;;  %v18398_v28 = vld [vmem:[#allocation54_spill] sm:$0xff] }
 0x307   :  { %3201 = vmatprep.subr.bf16.mxu1 %v18366_v1  ;;  %3243 = vmatpush1.bf16.msra.mxu0 %v18367_v22  ;;  %v18399_v1 = vld [vmem:[#allocation55_spill] sm:$0xff]  ;;  %v18400_v22 = vld [vmem:[#allocation56_spill] sm:$0xff] }
 0x308   :  { %3269 = vmatprep.subr.bf16.mxu0 %v18368_v15  ;;  %v18401_v15 = vld [vmem:[#allocation57_spill] sm:$0xff] }
 0x30a   :  { %3202 = vmatpush1.bf16.msra.mxu1 %v18369_v21  ;;  %8469 = vmatmul.mubr.msk.bf16.vlgmr.msra.gmra.mxu0 %vm1305_vm1, %v12653_v7  ;;  %v18402_v21 = vld [vmem:[#allocation45_spill] sm:$0xff] }
 0x30b   :  { %3203 = vmatprep.subr.bf16.mxu1 %v18370_v58  ;;  %3270 = vmatpush1.bf16.msra.mxu0 %v18371_v49  ;;  %v18403_v58 = vld [vmem:[#allocation58_spill] sm:$0xff]  ;;  %v18404_v49 = vld [vmem:[#allocation59_spill] sm:$0xff] }
 0x30c   :  { %3301 = vmatprep.mubr.bf16.mxu0 %v12456_v46  ;;  %3271 = vmatprep.subr.bf16.mxu0 %v18372_v60  ;;  %v18405_v60 = vld [vmem:[#allocation48_spill] sm:$0xff] }
 0x30e   :  { %3204 = vmatpush2.bf16.msra.mxu1 %v18373_v4  ;;  %v18406_v4 = vld [vmem:[#allocation60_spill] sm:$0xff] }
 0x30f   :  { %3205 = vmatprep.subr.bf16.mxu1 %v18374_v48  ;;  %3272 = vmatpush1.bf16.msra.mxu0 %v18375_v14  ;;  %v18407_v48 = vld [vmem:[#allocation61_spill] sm:$0xff]  ;;  %v18408_v14 = vld [vmem:[#allocation62_spill] sm:$0xff] }
 0x310   :  { %3273 = vmatprep.subr.bf16.mxu0 %v18376_v6  ;;  %v18409_v6 = vld [vmem:[#allocation63_spill] sm:$0xff] }
 0x312   :  { %3206 = vmatpush2.bf16.msra.mxu1 %v18377_v45 }
 0x313   :  { %3207 = vmatprep.subr.bf16.mxu1 %v18378_v10  ;;  %3274 = vmatpush1.bf16.msra.mxu0 %v18379_v8  ;;  %v18410_v10 = vld [vmem:[#allocation64_spill] sm:$0xff] }
 0x314   :  { %3275 = vmatprep.subr.bf16.mxu0 %v18380_v59 }
 0x315   :  { %v2695_v0 = vpop.f32.mrf.mxu1 }
 0x316   :  { %v2737_v24 = vadd.f32 %v2736_v38, %v2695_v0  ;;  %3208 = vmatpush2.bf16.msra.mxu1 %v18381_v23  ;;  %v18387_v38 = vld [vmem:[#allocation34_spill] sm:$0xff]  ;;  %v18411_v0 = vld [vmem:[#allocation65_spill] sm:$0xff] }
 0x317   :  { %v2697_v26 = vpop.f32.mrf.mxu1  ;;  %3209 = vmatprep.subr.bf16.mxu1 %v18382_v5  ;;  %3276 = vmatpush1.bf16.msra.mxu0 %v18383_v52 }
 0x318   :  { %v2907_v36 = vmax.f32 %v12661_v3, %v2737_v24  ;;  %v12919_v12 = vadd.f32 %v2738_v42, %v2697_v26  ;;  %3277 = vmatprep.subr.bf16.mxu0 %v18384_v16  ;;  %v18390_v42 = vld [vmem:[#allocation37_spill] sm:$0xff]  ;;  %v18412_v24 = vld [vmem:[#allocation66_spill] sm:$0xff]  ;;  %v18414_v16 = vld [vmem:[#allocation68_spill] sm:$0xff] }
 0x319   :  { %v2699_v27 = vpop.f32.mrf.mxu1 }
 0x31a   :  { %3210 = vmatpush2.bf16.msra.mxu1 %v18385_v35  ;;  %v18413_v27 = vld [vmem:[#allocation67_spill] sm:$0xff] }
 0x31b   :  { %v2700_v33 = vpop.f32.mrf.mxu1  ;;  %3211 = vmatprep.subr.bf16.mxu1 %v18386_v37  ;;  %3278 = vmatpush1.bf16.msra.mxu0 %v18387_v38  ;;  %v18415_v37 = vld [vmem:[#allocation70_spill] sm:$0xff]  ;;  %v18416_v38 = vld [vmem:[#allocation71_spill] sm:$0xff] }
 0x31c   :  { %3279 = vmatprep.subr.bf16.mxu0 %v18388_v51  ;;  %v18420_v51 = vld [vmem:[#allocation76_spill] sm:$0xff] }
 0x31d   :  { %v2818_v9 = vpop.f32.mrf.mxu1 }
 0x31e   :  { %3212 = vmatpush2.bf16.msra.mxu1 %v18389_v47 }
 0x31f   :  { %v2820_v3 = vpop.f32.mrf.mxu1  ;;  %3213 = vmatprep.subr.bf16.mxu1 %v18390_v42  ;;  %3280 = vmatpush1.bf16.msra.mxu0 %v18391_v13  ;;  %v18423_v13 = vld [vmem:[#allocation159_spill] sm:$0xff] }
 0x320   :  { %3281 = vmatprep.subr.bf16.mxu0 %v18392_v56  ;;  %v18424_v56 = vld [vmem:[#allocation80_spill] sm:$0xff] }
 0x321   :  { %v2822_v61 = vpop.f32.mrf.mxu1 }
 0x322   :  { %3214 = vmatpush2.bf16.msra.mxu1 %v18393_v19  ;;  %v17485_v61 = vsub.s32 1, %v18423_v13  ;;  %v18425_v19 = vld [vmem:[#allocation81_spill] sm:$0xff] }
 0x323   :  { %v2823_v43 = vpop.f32.mrf.mxu1  ;;  %3215 = vmatprep.subr.bf16.mxu1 %v18394_v30  ;;  %3282 = vmatpush1.bf16.msra.mxu0 %v18395_v39  ;;  %v18427_v30 = vld [vmem:[#allocation85_spill] sm:$0xff]  ;;  %v12988_v39 = vld [vmem:[%s17215_s2] sm:$0x7] }
 0x324   :  { %3283 = vmatprep.subr.bf16.mxu0 %v18396_v40  ;;  %v18426_v43 = vld [vmem:[#allocation82_spill] sm:$0xff]  ;;  %v12993_v40 = vrot.slane %v12988_v39, %v17485_v61 }
 0x326   :  { %3216 = vmatpush2.bf16.msra.mxu1 %v18397_v62  ;;  %18428 = vst [vmem:[#allocation102_spill] sm:$0xff] %v12993_v40  ;;  %v18429_v62 = vld [vmem:[#allocation83_spill] sm:$0xff] }
 0x327   :  { %3217 = vmatprep.subr.bf16.mxu1 %v18398_v28  ;;  %3284 = vmatpush1.bf16.msra.mxu0 %v18399_v1  ;;  %v18430_v28 = vld [vmem:[#allocation84_spill] sm:$0xff] }
 0x328   :  { %3285 = vmatprep.subr.bf16.mxu0 %v18400_v22  ;;  %v18431_v1 = vld [vmem:[#allocation88_spill] sm:$0xff]  ;;  %v18432_v22 = vld [vmem:[#allocation75_spill] sm:$0xff] }
 0x32a   :  { %3218 = vmatpush2.bf16.msra.mxu1 %v18401_v15  ;;  %v18433_v15 = vld [vmem:[#allocation7_spill] sm:$0xff] }
 0x32b   :  { %8470 = vmatprep.subr.msk.bf16.mxu1 %vm1309_vm0, %v18402_v21  ;;  %3286 = vmatpush2.bf16.msra.mxu0 %v18403_v58  ;;  %v1865_v21 = vadd.f32 %v12993_v40, %v18433_v15  ;;  %v18434_v58 = vld [vmem:[#allocation89_spill] sm:$0xff]  ;;  %v3467_v15 = vld [vmem:[%s17216_s3 + $0x80] sm:$0xff] }
 0x32c   :  { %3287 = vmatprep.subr.bf16.mxu0 %v18404_v49  ;;  %v3507_v49 = vld [vmem:[%s17216_s3 + $0x1c0] sm:$0xff] }
 0x32d   :  { %3220 = vmatmul.mubr.bf16.vlgmr.msra.gmra.mxu1 %v12734_v55 }
 0x32e   :  { %3323 = vmatpush1.bf16.msra.mxu1 %v18405_v60  ;;  %3342 = vmatprep.mubr.bf16.mxu1 %v17988_v20  ;;  %v3511_v60 = vld [vmem:[%s17216_s3 + $0x1e0] sm:$0xff] }
 0x32f   :  { %3324 = vmatprep.subr.bf16.mxu1 %v18406_v4  ;;  %3288 = vmatpush2.bf16.msra.mxu0 %v18407_v48  ;;  %v18435_v4 = vld [vmem:[#allocation86_spill] sm:$0xff] }
 0x330   :  { %3289 = vmatprep.subr.bf16.mxu0 %v18408_v14  ;;  %v18436_v48 = vld [vmem:[#allocation78_spill] sm:$0xff]  ;;  %v18437_v14 = vld [vmem:[#allocation87_spill] sm:$0xff] }
 0x332   :  { %3325 = vmatpush1.bf16.msra.mxu1 %v18409_v6  ;;  %v2777_v45 = vpop.f32.mrf.mxu0  ;;  %v13014_v6 = vcombine.high %v3507_v49, %v3511_v60 }
 0x333   :  { %3351 = vmatprep.subr.bf16.mxu1 %v18410_v10  ;;  %v12952_v8 = vadd.f32 %v2818_v9, %v2777_v45  ;;  %3290 = vmatpush2.bf16.msra.mxu0 %v18411_v0  ;;  %v18417_v9 = vld [vmem:[#allocation72_spill] sm:$0xff]  ;;  %v1868_v45 = vmax.f32 %v1865_v21, 0.0  ;;  %v3499_v0 = vld [vmem:[%s17216_s3 + $0x180] sm:$0xff] }
 0x334   :  { %v2779_v59 = vpop.f32.mrf.mxu0  ;;  %3291 = vmatprep.subr.bf16.mxu0 %v18412_v24  ;;  %v18438_v10 = vld [vmem:[#allocation92_spill] sm:$0xff]  ;;  %v18439_v24 = vld [vmem:[#allocation90_spill] sm:$0xff] }
 0x335   :  { %8471 = vmatmul.mubr.msk.bf16.vlgmr.msra.gmra.mxu1 %vm1305_vm1, %v12653_v7  ;;  %v2909_v23 = vmax.f32 %v12801_v57, %v12952_v8  ;;  %v2821_v26 = vadd.f32 %v2820_v3, %v2779_v59  ;;  %v18421_v3 = vld [vmem:[#allocation77_spill] sm:$0xff]  ;;  %v3503_v59 = vld [vmem:[%s17216_s3 + $0x1a0] sm:$0xff] }
 0x336   :  { %3352 = vmatpush1.bf16.msra.mxu1 %v12286_v2  ;;  %3383 = vmatprep.mubr.bf16.mxu1 %v12456_v46  ;;  %v2781_v5 = vpop.f32.mrf.mxu0  ;;  %v18418_v46 = vld [vmem:[#allocation73_spill] sm:$0xff]  ;;  %v3471_v21 = vld [vmem:[%s17216_s3 + $0xa0] sm:$0xff] }
 0x337   :  { %3353 = vmatprep.subr.bf16.mxu1 %v12293_v34  ;;  %v2910_v52 = vmax.f32 %v12810_v18, %v2821_v26  ;;  %3292 = vmatpush2.bf16.msra.mxu0 %v18413_v27  ;;  %v18419_v18 = vld [vmem:[#allocation74_spill] sm:$0xff]  ;;  %v18440_v26 = vld [vmem:[#allocation91_spill] sm:$0xff]  ;;  %v13028_v5 = vcombine.high %v3499_v0, %v3503_v59  ;;  %v13031_v27 = vpack.c.bf16 %v1868_v45, %v1868_v45 }
 0x338   :  { %3293 = vmatprep.subr.bf16.mxu0 %v18414_v16  ;;  %v2782_v35 = vpop.f32.mrf.mxu0  ;;  %v3491_v16 = vld [vmem:[%s17216_s3 + $0x140] sm:$0xff] }
 0x339   :  { %v12966_v33 = vmax.f32 %v2907_v36, %v2910_v52  ;;  %v18422_v36 = vld [vmem:[#allocation79_spill] sm:$0xff]  ;;  %v3495_v35 = vld [vmem:[%s17216_s3 + $0x160] sm:$0xff] }
 0x33a   :  { %3354 = vmatpush1.bf16.msra.mxu1 %v18415_v37  ;;  %v12970_v2 = vpop.f32.mrf.mxu0  ;;  %v18441_v52 = vld [vmem:[#allocation95_spill] sm:$0xff]  ;;  %v18442_v37 = vld [vmem:[#allocation96_spill] sm:$0xff]  ;;  %v3455_v57 = vld [vmem:[%s17216_s3 + $0x20] sm:$0xff] }
 0x33b   :  { %3355 = vmatprep.subr.bf16.mxu1 %v18416_v38  ;;  %3294 = vmatpush2.bf16.msra.mxu0 %v18417_v9  ;;  %v13044_v38 = vcombine.low %v3499_v0, %v3503_v59  ;;  %v13047_v9 = vcombine.high %v3491_v16, %v3495_v35 }
 0x33c   :  { %3295 = vmatprep.subr.bf16.mxu0 %v18418_v46  ;;  %v12974_v34 = vpop.f32.mrf.mxu0  ;;  %v18443_v46 = vld [vmem:[#allocation93_spill] sm:$0xff] }
 0x33e   :  { %3356 = vmatpush1.bf16.msra.mxu1 %v18419_v18  ;;  %v2904_v47 = vpop.f32.mrf.mxu0  ;;  %v3483_v18 = vld [vmem:[%s17216_s3 + $0x100] sm:$0xff] }
 0x33f   :  { %3357 = vmatprep.subr.bf16.mxu1 %v18420_v51  ;;  %3296 = vmatpush2.bf16.msra.mxu0 %v18421_v3  ;;  %v18444_v51 = vld [vmem:[#allocation94_spill] sm:$0xff]  ;;  %v13058_v47 = vcombine.low %v3491_v16, %v3495_v35 }
 0x340   :  { %3297 = vmatprep.subr.bf16.mxu0 %v18422_v36  ;;  %v2905_v42 = vpop.f32.mrf.mxu0  ;;  %v18445_v36 = vld [vmem:[#allocation99_spill] sm:$0xff]  ;;  %v3639_v35 = vld [vmem:[%s17216_s3 + $0x5e0] sm:$0xff] }
 0x341   :  { %v3475_v42 = vld [vmem:[%s17216_s3 + $0xc0] sm:$0xff] }
 0x342   :  { %3358 = vmatpush1.bf16.msra.mxu1 %v18424_v56  ;;  %v3479_v56 = vld [vmem:[%s17216_s3 + $0xe0] sm:$0xff] }
 0x343   :  { %3359 = vmatprep.subr.bf16.mxu1 %v18425_v19  ;;  %3298 = vmatpush2.bf16.msra.mxu0 %v18426_v43  ;;  %v18446_v19 = vld [vmem:[#allocation100_spill] sm:$0xff] }
 0x344   :  { %3299 = vmatprep.subr.bf16.mxu0 %v18427_v30 }
 0x346   :  { %3360 = vmatpush1.bf16.msra.mxu1 %v18429_v62  ;;  %v13075_v62 = vcombine.high %v3475_v42, %v3479_v56 }
 0x347   :  { %3361 = vmatprep.subr.bf16.mxu1 %v18430_v28  ;;  %3300 = vmatpush2.bf16.msra.mxu0 %v18431_v1  ;;  %v2493_v28 = vadd.f32 %v12574_v11, %v12668_v50  ;;  %v13092_v11 = vcombine.low %v3475_v42, %v3479_v56  ;;  %v3631_v42 = vld [vmem:[%s17216_s3 + $0x5a0] sm:$0xff] }
 0x348   :  { %8472 = vmatprep.subr.msk.bf16.mxu0 %vm1309_vm0, %v18432_v22  ;;  %v18447_v22 = vld [vmem:[#allocation97_spill] sm:$0xff] }
 0x34a   :  { %3362 = vmatpush1.bf16.msra.mxu1 %v18434_v58  ;;  %3302 = vmatmul.mubr.bf16.vlgmr.msra.gmra.mxu0 %v12734_v55 }
 0x34b   :  { %3363 = vmatprep.subr.bf16.mxu1 %v18435_v4  ;;  %3405 = vmatpush1.bf16.msra.mxu0 %v18436_v48  ;;  %v13095_v4 = vcombine.high %v3467_v15, %v3471_v21 }
 0x34c   :  { %3424 = vmatprep.mubr.bf16.mxu0 %v17988_v20  ;;  %3406 = vmatprep.subr.bf16.mxu0 %v18437_v14  ;;  %v13025_v20 = vcombine.low %v3507_v49, %v3511_v60  ;;  %v2908_v49 = vmax.f32 %v2493_v28, %v12919_v12  ;;  %v3555_v28 = vld [vmem:[%s17216_s3 + $0x340] sm:$0xff] }
 0x34e   :  { %3364 = vmatpush1.bf16.msra.mxu1 %v18438_v10  ;;  %v17484_v10 = vsub.s32 0, %v18423_v13  ;;  %v18468_v13 = vld [vmem:[#allocation6_spill] sm:$0xff] }
 0x34f   :  { %3365 = vmatprep.subr.bf16.mxu1 %v18439_v24  ;;  %3407 = vmatpush1.bf16.msra.mxu0 %v18440_v26  ;;  %v3575_v24 = vld [vmem:[%s17216_s3 + $0x3e0] sm:$0xff] }
 0x350   :  { %6523 = vmatprep.subr.bf16.mxu0 %v13014_v6  ;;  %v13141_v59 = vrot.slane %v12988_v39, %v17484_v10 }
 0x352   :  { %3366 = vmatpush1.bf16.msra.mxu1 %v18441_v52  ;;  %8473 = vmatmul.mubr.msk.bf16.vlgmr.msra.gmra.mxu0 %vm1305_vm1, %v12653_v7  ;;  %v3487_v7 = vld [vmem:[%s17216_s3 + $0x120] sm:$0xff]  ;;  %18449 = vst [vmem:[#allocation105_spill] sm:$0xff] %v13141_v59  ;;  %v18450_v52 = vld [vmem:[#allocation69_spill] sm:$0xff] }
 0x353   :  { %3367 = vmatprep.subr.bf16.mxu1 %v18442_v37  ;;  %6524 = vmatpush1.bf16.msra.mxu0 %v13025_v20  ;;  %v13061_v3 = vcombine.high %v3483_v18, %v3487_v7  ;;  %v13072_v43 = vcombine.low %v3483_v18, %v3487_v7  ;;  %v2390_v16 = vadd.f32 %v18450_v52, %v13141_v59  ;;  %v18451_v18 = vld [vmem:[#allocation104_spill] sm:$0xff] }
 0x354   :  { %6555 = vmatprep.mubr.bf16.mxu0 %v13031_v27  ;;  %6525 = vmatprep.subr.bf16.mxu0 %v13028_v5 }
 0x356   :  { %3368 = vmatpush2.bf16.msra.mxu1 %v18443_v46  ;;  %v3567_v46 = vld [vmem:[%s17216_s3 + $0x3a0] sm:$0xff] }
 0x357   :  { %3369 = vmatprep.subr.bf16.mxu1 %v18444_v51  ;;  %6526 = vmatpush1.bf16.msra.mxu0 %v13044_v38  ;;  %v2393_v51 = vmax.f32 %v2390_v16, 0.0 }
 0x358   :  { %6527 = vmatprep.subr.bf16.mxu0 %v13047_v9 }
 0x35a   :  { %3370 = vmatpush2.bf16.msra.mxu1 %v18445_v36 }
 0x35b   :  { %3371 = vmatprep.subr.bf16.mxu1 %v18446_v19  ;;  %6528 = vmatpush1.bf16.msra.mxu0 %v13058_v47  ;;  %v18452_v19 = vld [vmem:[#allocation101_spill] sm:$0xff] }
 0x35c   :  { %6529 = vmatprep.subr.bf16.mxu0 %v13061_v3 }
 0x35d   :  { %v2859_v30 = vpop.f32.mrf.mxu1 }
 0x35e   :  { %v2901_v1 = vadd.f32 %v12970_v2, %v2859_v30  ;;  %3372 = vmatpush2.bf16.msra.mxu1 %v18447_v22 }
 0x35f   :  { %v2861_v58 = vpop.f32.mrf.mxu1  ;;  %3373 = vmatprep.subr.bf16.mxu1 %v12528_v17  ;;  %6530 = vmatpush1.bf16.msra.mxu0 %v13072_v43  ;;  %v3459_v17 = vld [vmem:[%s17216_s3 + $0x40] sm:$0xff] }
 0x360   :  { %v2911_v60 = vmax.f32 %v12861_v31, %v2901_v1  ;;  %v2903_v50 = vadd.f32 %v12974_v34, %v2861_v58  ;;  %6531 = vmatprep.subr.bf16.mxu0 %v13075_v62  ;;  %v3463_v31 = vld [vmem:[%s17216_s3 + $0x60] sm:$0xff] }
 0x361   :  { %v2863_v2 = vpop.f32.mrf.mxu1  ;;  %v13119_v45 = vcombine.high %v3459_v17, %v3463_v31  ;;  %v3559_v1 = vld [vmem:[%s17216_s3 + $0x360] sm:$0xff] }
 0x362   :  { %v13097_v48 = vmax.f32 %v2908_v49, %v2911_v60  ;;  %v2912_v14 = vmax.f32 %v12868_v29, %v2903_v50  ;;  %3374 = vmatpush2.bf16.msra.mxu1 %v12548_v41  ;;  %v13114_v29 = vcombine.low %v3467_v15, %v3471_v21  ;;  %v13200_v15 = vpack.c.bf16 %v2393_v51, %v2393_v51  ;;  %v3619_v58 = vld [vmem:[%s17216_s3 + $0x540] sm:$0xff] }
 0x363   :  { %v2864_v12 = vpop.f32.mrf.mxu1  ;;  %3375 = vmatprep.subr.bf16.mxu1 %v12554_v32  ;;  %6532 = vmatpush1.bf16.msra.mxu0 %v13092_v11  ;;  %v3451_v32 = vld [vmem:[%s17216_s3] sm:$0xff]  ;;  %v13212_v60 = vcombine.high %v3555_v28, %v3559_v1 }
 0x364   :  { %v13111_v34 = vmax.f32 %v2909_v23, %v2912_v14  ;;  %6533 = vmatprep.subr.bf16.mxu0 %v13095_v4  ;;  %v13133_v23 = vcombine.low %v3459_v17, %v3463_v31  ;;  %v13154_v39 = vcombine.low %v3451_v32, %v3455_v57  ;;  %v3623_v49 = vld [vmem:[%s17216_s3 + $0x560] sm:$0xff]  ;;  %v13228_v17 = vcombine.low %v3555_v28, %v3559_v1 }
 0x365   :  { %v13116_v41 = vpop.f32.mrf.mxu1  ;;  %v3547_v2 = vld [vmem:[%s17216_s3 + $0x300] sm:$0xff] }
 0x366   :  { %18448 = vst [vmem:[#allocation107_spill] sm:$0xff] %v13111_v34  ;;  %3376 = vmatpush2.bf16.msra.mxu1 %v12571_v63  ;;  %v13136_v63 = vcombine.high %v3451_v32, %v3455_v57  ;;  %v3551_v14 = vld [vmem:[%s17216_s3 + $0x320] sm:$0xff]  ;;  %v13240_v57 = vcombine.low %v3619_v58, %v3623_v49  ;;  %v1864_v34 = vadd.f32 %v13141_v59, %v18468_v13 }
 0x367   :  { %v13129_v8 = vpop.f32.mrf.mxu1  ;;  %3377 = vmatprep.subr.bf16.mxu1 %v12579_v25  ;;  %6534 = vmatpush1.bf16.msra.mxu0 %v13114_v29  ;;  %v3571_v25 = vld [vmem:[%s17216_s3 + $0x3c0] sm:$0xff]  ;;  %v13237_v32 = vcombine.high %v3547_v2, %v3551_v14  ;;  %v13255_v16 = vcombine.low %v3547_v2, %v3551_v14 }
 0x368   :  { %6535 = vmatprep.subr.bf16.mxu0 %v13119_v45  ;;  %v13163_v37 = vcombine.high %v3571_v25, %v3575_v24  ;;  %v13176_v36 = vcombine.low %v3571_v25, %v3575_v24  ;;  %v3611_v31 = vld [vmem:[%s17216_s3 + $0x500] sm:$0xff]  ;;  %18453 = vst [vmem:[#allocation106_spill] sm:$0xff] %v13240_v57 }
 0x369   :  { %v3020_v0 = vpop.f32.mrf.mxu1  ;;  %v3615_v12 = vld [vmem:[%s17216_s3 + $0x520] sm:$0xff]  ;;  %18455 = vst [vmem:[#allocation111_spill] sm:$0xff] %v13255_v16 }
 0x36a   :  { %3378 = vmatpush2.bf16.msra.mxu1 %v12591_v54  ;;  %v3635_v54 = vld [vmem:[%s17216_s3 + $0x5c0] sm:$0xff] }
 0x36b   :  { %v3021_v26 = vpop.f32.mrf.mxu1  ;;  %3379 = vmatprep.subr.bf16.mxu1 %v12597_v53  ;;  %6536 = vmatpush1.bf16.msra.mxu0 %v13133_v23  ;;  %v3563_v53 = vld [vmem:[%s17216_s3 + $0x380] sm:$0xff]  ;;  %v13173_v7 = vcombine.high %v3635_v54, %v3639_v35  ;;  %v13188_v30 = vcombine.low %v3635_v54, %v3639_v35 }
 0x36c   :  { %6537 = vmatprep.subr.bf16.mxu0 %v13136_v63  ;;  %v13185_v56 = vcombine.high %v3563_v53, %v3567_v46  ;;  %v13202_v21 = vcombine.low %v3563_v53, %v3567_v46  ;;  %v3539_v0 = vld [vmem:[%s17216_s3 + $0x2c0] sm:$0xff]  ;;  %v13249_v26 = vcombine.high %v3611_v31, %v3615_v12 }
 0x36d   :  { %v3543_v25 = vld [vmem:[%s17216_s3 + $0x2e0] sm:$0xff] }
 0x36e   :  { %3380 = vmatpush2.bf16.msra.mxu1 %v12609_v44  ;;  %v3627_v44 = vld [vmem:[%s17216_s3 + $0x580] sm:$0xff]  ;;  %18454 = vst [vmem:[#allocation110_spill] sm:$0xff] %v13249_v26  ;;  %v13264_v46 = vcombine.high %v3539_v0, %v3543_v25  ;;  %v13282_v28 = vcombine.low %v3539_v0, %v3543_v25 }
 0x36f   :  { %3381 = vmatprep.subr.bf16.mxu1 %v18451_v18  ;;  %6538 = vmatpush1.bf16.msra.mxu0 %v13154_v39  ;;  %v13197_v22 = vcombine.high %v3627_v44, %v3631_v42  ;;  %v13216_v50 = vcombine.low %v3627_v44, %v3631_v42  ;;  %v3603_v54 = vld [vmem:[%s17216_s3 + $0x4c0] sm:$0xff]  ;;  %v13270_v18 = vcombine.low %v3611_v31, %v3615_v12 }
 0x370   :  { %6539 = vmatprep.subr.bf16.mxu0 %v13163_v37  ;;  %v3607_v35 = vld [vmem:[%s17216_s3 + $0x4e0] sm:$0xff]  ;;  %18456 = vst [vmem:[#allocation108_spill] sm:$0xff] %v13264_v46  ;;  %18459 = vst [vmem:[#allocation114_spill] sm:$0xff] %v13282_v28 }
 0x371   :  { %18457 = vst [vmem:[#allocation109_spill] sm:$0xff] %v13270_v18  ;;  %v3531_v51 = vld [vmem:[%s17216_s3 + $0x280] sm:$0xff]  ;;  %v13279_v42 = vcombine.high %v3603_v54, %v3607_v35  ;;  %v13294_v2 = vcombine.low %v3603_v54, %v3607_v35 }
 0x372   :  { %3382 = vmatpush2.bf16.msra.mxu1 %v18452_v19  ;;  %v3535_v44 = vld [vmem:[%s17216_s3 + $0x2a0] sm:$0xff] }
 0x373   :  { %6564 = vmatprep.subr.bf16.mxu1 %v13173_v7  ;;  %6540 = vmatpush2.bf16.msra.mxu0 %v13176_v36  ;;  %18458 = vst [vmem:[#allocation113_spill] sm:$0xff] %v13279_v42  ;;  %v3599_v1 = vld [vmem:[%s17216_s3 + $0x4a0] sm:$0xff]  ;;  %18461 = vst [vmem:[#allocation2_spill] sm:$0xff] %v13294_v2  ;;  %v13308_v25 = vcombine.low %v3531_v51, %v3535_v44 }
 0x374   :  { %6541 = vmatprep.subr.bf16.mxu0 %v13185_v56  ;;  %v3523_v14 = vld [vmem:[%s17216_s3 + $0x240] sm:$0xff] }
 0x375   :  { %3384 = vmatmul.mubr.bf16.vlgmr.msra.gmra.mxu1 %v12734_v55  ;;  %v13225_v55 = vcombine.high %v3619_v58, %v3623_v49  ;;  %v13291_v58 = vcombine.high %v3531_v51, %v3535_v44  ;;  %v3527_v31 = vld [vmem:[%s17216_s3 + $0x260] sm:$0xff]  ;;  %18463 = vst [vmem:[#allocation116_spill] sm:$0xff] %v13308_v25 }
 0x376   :  { %6565 = vmatpush1.bf16.msra.mxu1 %v13188_v30  ;;  %6596 = vmatprep.mubr.bf16.mxu1 %v13200_v15  ;;  %v3591_v54 = vld [vmem:[%s17216_s3 + $0x460] sm:$0xff]  ;;  %v13317_v35 = vcombine.high %v3523_v14, %v3527_v31  ;;  %v13334_v61 = vcombine.low %v3523_v14, %v3527_v31 }
 0x377   :  { %6566 = vmatprep.subr.bf16.mxu1 %v13197_v22  ;;  %6542 = vmatpush2.bf16.msra.mxu0 %v13202_v21  ;;  %18460 = vst [vmem:[#allocation112_spill] sm:$0xff] %v13291_v58  ;;  %v3515_v51 = vld [vmem:[%s17216_s3 + $0x200] sm:$0xff] }
 0x378   :  { %6543 = vmatprep.subr.bf16.mxu0 %v13212_v60  ;;  %18464 = vst [vmem:[#allocation3_spill] sm:$0xff] %v13317_v35  ;;  %v3519_v44 = vld [vmem:[%s17216_s3 + $0x220] sm:$0xff]  ;;  %18467 = vst [vmem:[#allocation119_spill] sm:$0xff] %v13334_v61 }
 0x379   :  { %v3767_v13 = vld [vmem:[%s17216_s3 + $0x9e0] sm:$0xff] }
 0x37a   :  { %6567 = vmatpush1.bf16.msra.mxu1 %v13216_v50  ;;  %v2975_v24 = vpop.f32.mrf.mxu0 }
 0x37b   :  { %6568 = vmatprep.subr.bf16.mxu1 %v13225_v55  ;;  %v13252_v52 = vadd.f32 %v13116_v41, %v2975_v24  ;;  %6544 = vmatpush2.bf16.msra.mxu0 %v13228_v17  ;;  %v3587_v24 = vld [vmem:[%s17216_s3 + $0x440] sm:$0xff] }
 0x37c   :  { %v2977_v53 = vpop.f32.mrf.mxu0  ;;  %6545 = vmatprep.subr.bf16.mxu0 %v13237_v32  ;;  %v13350_v31 = vcombine.low %v3587_v24, %v3591_v54 }
 0x37d   :  { %v13268_v41 = vadd.f32 %v13129_v8, %v2977_v53  ;;  %v3595_v8 = vld [vmem:[%s17216_s3 + $0x480] sm:$0xff] }
 0x37e   :  { %6569 = vmatpush1.bf16.msra.mxu1 %v13240_v57  ;;  %v2979_v19 = vpop.f32.mrf.mxu0  ;;  %v13303_v12 = vcombine.high %v3595_v8, %v3599_v1  ;;  %18472 = vst [vmem:[#allocation121_spill] sm:$0xff] %v13350_v31 }
 0x37f   :  { %6570 = vmatprep.subr.bf16.mxu1 %v13249_v26  ;;  %6546 = vmatpush2.bf16.msra.mxu0 %v13255_v16  ;;  %v13322_v19 = vcombine.low %v3595_v8, %v3599_v1  ;;  %v3579_v8 = vld [vmem:[%s17216_s3 + $0x400] sm:$0xff] }
 0x380   :  { %6547 = vmatprep.subr.bf16.mxu0 %v13264_v46  ;;  %v2980_v49 = vpop.f32.mrf.mxu0  ;;  %18462 = vst [vmem:[#allocation115_spill] sm:$0xff] %v13303_v12  ;;  %v3583_v1 = vld [vmem:[%s17216_s3 + $0x420] sm:$0xff] }
 0x381   :  { %18465 = vst [vmem:[#allocation117_spill] sm:$0xff] %v13322_v19  ;;  %v13331_v49 = vcombine.high %v3587_v24, %v3591_v54  ;;  %v3703_v24 = vld [vmem:[%s17216_s3 + $0x7e0] sm:$0xff]  ;;  %v1867_v54 = vmax.f32 %v1864_v34, 0.0 }
 0x382   :  { %6571 = vmatpush1.bf16.msra.mxu1 %v13270_v18  ;;  %v13305_v0 = vpop.f32.mrf.mxu0 }
 0x383   :  { %6572 = vmatprep.subr.bf16.mxu1 %v13279_v42  ;;  %6548 = vmatpush2.bf16.msra.mxu0 %v13282_v28  ;;  %18466 = vst [vmem:[#allocation118_spill] sm:$0xff] %v13331_v49  ;;  %v13374_v28 = vcombine.low %v3579_v8, %v3583_v1 }
 0x384   :  { %6549 = vmatprep.subr.bf16.mxu0 %v13291_v58  ;;  %v13319_v53 = vpop.f32.mrf.mxu0  ;;  %v3763_v58 = vld [vmem:[%s17216_s3 + $0x9c0] sm:$0xff] }
 0x385   :  { %18476 = vst [vmem:[#allocation125_spill] sm:$0xff] %v13374_v28 }
 0x386   :  { %6573 = vmatpush1.bf16.msra.mxu1 %v13294_v2  ;;  %v3102_v10 = vpop.f32.mrf.mxu0  ;;  %v18470_v2 = vld [vmem:[#allocation160_spill] sm:$0xff] }
 0x387   :  { %6574 = vmatprep.subr.bf16.mxu1 %v13303_v12  ;;  %6550 = vmatpush2.bf16.msra.mxu0 %v13308_v25  ;;  %v13345_v12 = vcombine.high %v3515_v51, %v3519_v44  ;;  %v18471_v25 = vld [vmem:[#allocation103_spill] sm:$0xff] }
 0x388   :  { %6551 = vmatprep.subr.bf16.mxu0 %v13317_v35  ;;  %v3103_v10 = vpop.f32.mrf.mxu0  ;;  %v2392_v14 = vadd.f32 %v18471_v25, %v18470_v2  ;;  %v13359_v35 = vcombine.high %v3579_v8, %v3583_v1  ;;  %v3699_v25 = vld [vmem:[%s17216_s3 + $0x7c0] sm:$0xff] }
 0x389   :  { %18469 = vst [vmem:[#allocation120_spill] sm:$0xff] %v13345_v12  ;;  %v13362_v10 = vcombine.low %v3515_v51, %v3519_v44  ;;  %v3755_v51 = vld [vmem:[%s17216_s3 + $0x980] sm:$0xff]  ;;  %v13383_v34 = vcombine.high %v3699_v25, %v3703_v24 }
 0x38a   :  { %6575 = vmatpush1.bf16.msra.mxu1 %v13322_v19  ;;  %18473 = vst [vmem:[#allocation122_spill] sm:$0xff] %v13359_v35  ;;  %v13371_v19 = vcombine.high %v3763_v58, %v3767_v13  ;;  %v3759_v44 = vld [vmem:[%s17216_s3 + $0x9a0] sm:$0xff] }
 0x38b   :  { %6576 = vmatprep.subr.bf16.mxu1 %v13331_v49  ;;  %6552 = vmatpush2.bf16.msra.mxu0 %v13334_v61  ;;  %18474 = vst [vmem:[#allocation123_spill] sm:$0xff] %v13362_v10  ;;  %v2395_v49 = vmax.f32 %v2392_v14, 0.0  ;;  %18477 = vst [vmem:[#allocation126_spill] sm:$0xff] %v13383_v34  ;;  %v3691_v8 = vld [vmem:[%s17216_s3 + $0x780] sm:$0xff]  ;;  %v13394_v14 = vpack.c.bf16 %v1867_v54, %v1867_v54 }
 0x38c   :  { %6553 = vmatprep.subr.bf16.mxu0 %v13345_v12  ;;  %18475 = vst [vmem:[#allocation124_spill] sm:$0xff] %v13371_v19  ;;  %v13386_v12 = vcombine.low %v3763_v58, %v3767_v13  ;;  %v3695_v1 = vld [vmem:[%s17216_s3 + $0x7a0] sm:$0xff]  ;;  %v13402_v58 = vcombine.low %v3699_v25, %v3703_v24 }
 0x38d   :  { %v3747_v13 = vld [vmem:[%s17216_s3 + $0x940] sm:$0xff]  ;;  %v13412_v54 = vcombine.high %v3691_v8, %v3695_v1 }
 0x38e   :  { %6577 = vmatpush1.bf16.msra.mxu1 %v13350_v31  ;;  %18478 = vst [vmem:[#allocation127_spill] sm:$0xff] %v13386_v12  ;;  %v13397_v31 = vcombine.high %v3755_v51, %v3759_v44  ;;  %18480 = vst [vmem:[#allocation129_spill] sm:$0xff] %v13402_v58  ;;  %v3683_v25 = vld [vmem:[%s17216_s3 + $0x740] sm:$0xff] }
 0x38f   :  { %6578 = vmatprep.subr.bf16.mxu1 %v13359_v35  ;;  %6554 = vmatpush2.bf16.msra.mxu0 %v13362_v10  ;;  %v13399_v35 = vpack.c.bf16 %v2395_v49, %v2395_v49  ;;  %v3751_v10 = vld [vmem:[%s17216_s3 + $0x960] sm:$0xff]  ;;  %18481 = vst [vmem:[#allocation130_spill] sm:$0xff] %v13412_v54  ;;  %v13416_v49 = vcombine.low %v3755_v51, %v3759_v44 }
 0x390   :  { %6605 = vmatprep.subr.bf16.mxu0 %v13371_v19  ;;  %18479 = vst [vmem:[#allocation128_spill] sm:$0xff] %v13397_v31  ;;  %v3687_v24 = vld [vmem:[%s17216_s3 + $0x760] sm:$0xff] }
 0x391   :  { %18482 = vst [vmem:[#allocation131_spill] sm:$0xff] %v13416_v49  ;;  %v3739_v51 = vld [vmem:[%s17216_s3 + $0x900] sm:$0xff] }
 0x392   :  { %6579 = vmatpush1.bf16.msra.mxu1 %v13374_v28  ;;  %6556 = vmatmul.mubr.bf16.vlgmr.msra.gmra.mxu0 %v13394_v14  ;;  %v13425_v28 = vcombine.high %v3747_v13, %v3751_v10  ;;  %v3743_v44 = vld [vmem:[%s17216_s3 + $0x920] sm:$0xff] }
 0x393   :  { %6580 = vmatprep.subr.bf16.mxu1 %v13383_v34  ;;  %6606 = vmatpush1.bf16.msra.mxu0 %v13386_v12  ;;  %v13428_v34 = vcombine.low %v3691_v8, %v3695_v1  ;;  %v13437_v12 = vcombine.high %v3683_v25, %v3687_v24  ;;  %v3675_v8 = vld [vmem:[%s17216_s3 + $0x700] sm:$0xff] }
 0x394   :  { %6637 = vmatprep.mubr.bf16.mxu0 %v13399_v35  ;;  %6607 = vmatprep.subr.bf16.mxu0 %v13397_v31  ;;  %18483 = vst [vmem:[#allocation132_spill] sm:$0xff] %v13425_v28  ;;  %v13440_v31 = vcombine.low %v3747_v13, %v3751_v10  ;;  %v3679_v1 = vld [vmem:[%s17216_s3 + $0x720] sm:$0xff] }
 0x395   :  { %18484 = vst [vmem:[#allocation133_spill] sm:$0xff] %v13428_v34  ;;  %18485 = vst [vmem:[#allocation134_spill] sm:$0xff] %v13437_v12  ;;  %v3731_v10 = vld [vmem:[%s17216_s3 + $0x8c0] sm:$0xff] }
 0x396   :  { %6581 = vmatpush2.bf16.msra.mxu1 %v13402_v58  ;;  %18486 = vst [vmem:[#allocation135_spill] sm:$0xff] %v13440_v31  ;;  %v13449_v58 = vcombine.high %v3739_v51, %v3743_v44  ;;  %v3735_v13 = vld [vmem:[%s17216_s3 + $0x8e0] sm:$0xff] }
 0x397   :  { %6582 = vmatprep.subr.bf16.mxu1 %v13412_v54  ;;  %6608 = vmatpush1.bf16.msra.mxu0 %v13416_v49  ;;  %v13452_v54 = vcombine.low %v3683_v25, %v3687_v24  ;;  %v13461_v49 = vcombine.high %v3675_v8, %v3679_v1  ;;  %v3667_v25 = vld [vmem:[%s17216_s3 + $0x6c0] sm:$0xff] }
 0x398   :  { %6609 = vmatprep.subr.bf16.mxu0 %v13425_v28  ;;  %18487 = vst [vmem:[#allocation136_spill] sm:$0xff] %v13449_v58  ;;  %v13464_v28 = vcombine.low %v3739_v51, %v3743_v44  ;;  %v3671_v24 = vld [vmem:[%s17216_s3 + $0x6e0] sm:$0xff] }
 0x399   :  { %18488 = vst [vmem:[#allocation137_spill] sm:$0xff] %v13452_v54  ;;  %18489 = vst [vmem:[#allocation138_spill] sm:$0xff] %v13461_v49  ;;  %v3723_v51 = vld [vmem:[%s17216_s3 + $0x880] sm:$0xff] }
 0x39a   :  { %6583 = vmatpush2.bf16.msra.mxu1 %v13428_v34  ;;  %18490 = vst [vmem:[#allocation139_spill] sm:$0xff] %v13464_v28  ;;  %v13473_v34 = vcombine.high %v3731_v10, %v3735_v13  ;;  %v3727_v44 = vld [vmem:[%s17216_s3 + $0x8a0] sm:$0xff] }
 0x39b   :  { %6584 = vmatprep.subr.bf16.mxu1 %v13437_v12  ;;  %6610 = vmatpush1.bf16.msra.mxu0 %v13440_v31  ;;  %v13476_v12 = vcombine.low %v3675_v8, %v3679_v1  ;;  %v13485_v31 = vcombine.high %v3667_v25, %v3671_v24  ;;  %v3659_v8 = vld [vmem:[%s17216_s3 + $0x680] sm:$0xff] }
 0x39c   :  { %6611 = vmatprep.subr.bf16.mxu0 %v13449_v58  ;;  %18491 = vst [vmem:[#allocation140_spill] sm:$0xff] %v13473_v34  ;;  %v13488_v58 = vcombine.low %v3731_v10, %v3735_v13  ;;  %v3663_v1 = vld [vmem:[%s17216_s3 + $0x6a0] sm:$0xff] }
 0x39d   :  { %18492 = vst [vmem:[#allocation4_spill] sm:$0xff] %v13476_v12  ;;  %18493 = vst [vmem:[#allocation141_spill] sm:$0xff] %v13485_v31  ;;  %v3715_v10 = vld [vmem:[%s17216_s3 + $0x840] sm:$0xff] }
 0x39e   :  { %6585 = vmatpush2.bf16.msra.mxu1 %v13452_v54  ;;  %18494 = vst [vmem:[#allocation142_spill] sm:$0xff] %v13488_v58  ;;  %v13497_v54 = vcombine.high %v3723_v51, %v3727_v44  ;;  %v3719_v13 = vld [vmem:[%s17216_s3 + $0x860] sm:$0xff] }
 0x39f   :  { %6586 = vmatprep.subr.bf16.mxu1 %v13461_v49  ;;  %6612 = vmatpush1.bf16.msra.mxu0 %v13464_v28  ;;  %v13500_v49 = vcombine.low %v3667_v25, %v3671_v24  ;;  %v13509_v28 = vcombine.high %v3659_v8, %v3663_v1  ;;  %v3651_v25 = vld [vmem:[%s17216_s3 + $0x640] sm:$0xff]  ;;  %v13521_v19 = vcombine.high %v3715_v10, %v3719_v13 }
 0x3a0   :  { %6613 = vmatprep.subr.bf16.mxu0 %v13473_v34  ;;  %18495 = vst [vmem:[#allocation5_spill] sm:$0xff] %v13497_v54  ;;  %v13512_v34 = vcombine.low %v3723_v51, %v3727_v44  ;;  %v3655_v24 = vld [vmem:[%s17216_s3 + $0x660] sm:$0xff]  ;;  %v13527_v51 = vcombine.low %v3659_v8, %v3663_v1 }
 0x3a1   :  { %18496 = vst [vmem:[#allocation143_spill] sm:$0xff] %v13500_v49  ;;  %18497 = vst [vmem:[#allocation144_spill] sm:$0xff] %v13509_v28  ;;  %v3707_v44 = vld [vmem:[%s17216_s3 + $0x800] sm:$0xff] }
 0x3a2   :  { %6587 = vmatpush2.bf16.msra.mxu1 %v13476_v12  ;;  %18498 = vst [vmem:[#allocation145_spill] sm:$0xff] %v13512_v34  ;;  %18499 = vst [vmem:[#allocation146_spill] sm:$0xff] %v13521_v19  ;;  %v3643_v8 = vld [vmem:[%s17216_s3 + $0x600] sm:$0xff] }
 0x3a3   :  { %6588 = vmatprep.subr.bf16.mxu1 %v13485_v31  ;;  %6614 = vmatpush1.bf16.msra.mxu0 %v13488_v58  ;;  %18500 = vst [vmem:[#allocation147_spill] sm:$0xff] %v13527_v51  ;;  %v3711_v58 = vld [vmem:[%s17216_s3 + $0x820] sm:$0xff] }
 0x3a4   :  { %6615 = vmatprep.subr.bf16.mxu0 %v13497_v54  ;;  %v13536_v54 = vcombine.high %v3651_v25, %v3655_v24  ;;  %v3647_v1 = vld [vmem:[%s17216_s3 + $0x620] sm:$0xff] }
 0x3a5   :  { %v3057_v12 = vpop.f32.mrf.mxu1 }
 0x3a6   :  { %v13524_v31 = vadd.f32 %v13305_v0, %v3057_v12  ;;  %6589 = vmatpush2.bf16.msra.mxu1 %v13500_v49  ;;  %18501 = vst [vmem:[#allocation148_spill] sm:$0xff] %v13536_v54  ;;  %v13542_v0 = vcombine.low %v3715_v10, %v3719_v13  ;;  %v3831_v10 = vld [vmem:[%s17216_s3 + $0xbe0] sm:$0xff]  ;;  %v18505_v13 = vld [vmem:[#allocation44_spill] sm:$0xff] }
 0x3a7   :  { %v3059_v61 = vpop.f32.mrf.mxu1  ;;  %6590 = vmatprep.subr.bf16.mxu1 %v13509_v28  ;;  %6616 = vmatpush1.bf16.msra.mxu0 %v13512_v34  ;;  %v13551_v28 = vcombine.high %v3707_v44, %v3711_v58  ;;  %v1866_v34 = vadd.f32 %v18470_v2, %v18505_v13  ;;  %v3895_v13 = vld [vmem:[%s17216_s3 + $0xde0] sm:$0xff] }
 0x3a8   :  { %v13539_v12 = vadd.f32 %v13319_v53, %v3059_v61  ;;  %18502 = vst [vmem:[#allocation149_spill] sm:$0xff] %v13542_v0  ;;  %6617 = vmatprep.subr.bf16.mxu0 %v13521_v19  ;;  %v13554_v61 = vcombine.low %v3651_v25, %v3655_v24  ;;  %v3827_v53 = vld [vmem:[%s17216_s3 + $0xbc0] sm:$0xff]  ;;  %v13565_v19 = vcombine.high %v3643_v8, %v3647_v1 }
 0x3a9   :  { %v3061_v49 = vpop.f32.mrf.mxu1  ;;  %18503 = vst [vmem:[#allocation150_spill] sm:$0xff] %v13551_v28  ;;  %v2917_v25 = vadd.f32 %v13097_v48, %v12993_v40  ;;  %v13570_v24 = vcombine.low %v3707_v44, %v3711_v58  ;;  %v13581_v2 = vcombine.high %v3827_v53, %v3831_v10  ;;  %v13584_v48 = vcombine.low %v3643_v8, %v3647_v1  ;;  %v3819_v58 = vld [vmem:[%s17216_s3 + $0xb80] sm:$0xff] }
 0x3aa   :  { %6591 = vmatpush2.bf16.msra.mxu1 %v13527_v51  ;;  %18504 = vst [vmem:[#allocation151_spill] sm:$0xff] %v13554_v61  ;;  %18506 = vst [vmem:[#allocation152_spill] sm:$0xff] %v13565_v19  ;;  %v3891_v51 = vld [vmem:[%s17216_s3 + $0xdc0] sm:$0xff]  ;;  %v13598_v8 = vcombine.low %v3827_v53, %v3831_v10 }
 0x3ab   :  { %v3062_v49 = vpop.f32.mrf.mxu1  ;;  %6592 = vmatprep.subr.bf16.mxu1 %v13536_v54  ;;  %6618 = vmatpush1.bf16.msra.mxu0 %v13542_v0  ;;  %18507 = vst [vmem:[#allocation153_spill] sm:$0xff] %v13570_v24  ;;  %18508 = vst [vmem:[#allocation154_spill] sm:$0xff] %v13581_v2  ;;  %v3823_v44 = vld [vmem:[%s17216_s3 + $0xba0] sm:$0xff]  ;;  %v1869_v0 = vmax.f32 %v1866_v34, 0.0  ;;  %v2920_v42 = vmax.f32 %v2917_v25, 0.0  ;;  %v13610_v25 = vcombine.low %v3891_v51, %v3895_v13 }
 0x3ac   :  { %6619 = vmatprep.subr.bf16.mxu0 %v13551_v28  ;;  %18509 = vst [vmem:[#allocation155_spill] sm:$0xff] %v13584_v48  ;;  %v13595_v28 = vcombine.high %v3891_v51, %v3895_v13  ;;  %18511 = vst [vmem:[#allocation157_spill] sm:$0xff] %v13598_v8  ;;  %v3883_v1 = vld [vmem:[%s17216_s3 + $0xd80] sm:$0xff]  ;;  %v13607_v18 = vcombine.high %v3819_v58, %v3823_v44  ;;  %v13626_v51 = vcombine.low %v3819_v58, %v3823_v44 }
 0x3ad   :  { %v13578_v49 = vpop.f32.mrf.mxu1  ;;  %18513 = vst [vmem:[#allocation12_spill] sm:$0xff] %v13610_v25  ;;  %v3811_v53 = vld [vmem:[%s17216_s3 + $0xb40] sm:$0xff] }
 0x3ae   :  { %6593 = vmatpush2.bf16.msra.mxu1 %v13554_v61  ;;  %18510 = vst [vmem:[#allocation156_spill] sm:$0xff] %v13595_v28  ;;  %v3887_v61 = vld [vmem:[%s17216_s3 + $0xda0] sm:$0xff]  ;;  %18512 = vst [vmem:[#allocation158_spill] sm:$0xff] %v13607_v18 }
 0x3af   :  { %v13592_v54 = vpop.f32.mrf.mxu1  ;;  %6594 = vmatprep.subr.bf16.mxu1 %v13565_v19  ;;  %6620 = vmatpush1.bf16.msra.mxu0 %v13570_v24  ;;  %v3815_v10 = vld [vmem:[%s17216_s3 + $0xb60] sm:$0xff]  ;;  %v13618_v19 = vpack.c.bf16 %v1869_v0, %v1869_v0  ;;  %18515 = vst [vmem:[#allocation9_spill] sm:$0xff] %v13626_v51 }
 0x3b0   :  { %6621 = vmatprep.subr.bf16.mxu0 %v13581_v2  ;;  %v13623_v2 = vpack.c.bf16 %v2920_v42, %v2920_v42  ;;  %v3875_v13 = vld [vmem:[%s17216_s3 + $0xd40] sm:$0xff]  ;;  %v13636_v0 = vcombine.high %v3811_v53, %v3815_v10  ;;  %v13640_v42 = vcombine.low %v3883_v1, %v3887_v61 }
 0x3b1   :  { %v3184_v34 = vpop.f32.mrf.mxu1  ;;  %v3803_v58 = vld [vmem:[%s17216_s3 + $0xb00] sm:$0xff] }
 0x3b2   :  { %6595 = vmatpush2.bf16.msra.mxu1 %v13584_v48  ;;  %v13621_v34 = vcombine.high %v3883_v1, %v3887_v61  ;;  %18516 = vst [vmem:[#allocation15_spill] sm:$0xff] %v13636_v0  ;;  %18517 = vst [vmem:[#allocation16_spill] sm:$0xff] %v13640_v42  ;;  %v3807_v44 = vld [vmem:[%s17216_s3 + $0xb20] sm:$0xff] }
 0x3b3   :  { %v3185_v24 = vpop.f32.mrf.mxu1  ;;  %6646 = vmatprep.subr.bf16.mxu1 %v13595_v28  ;;  %6622 = vmatpush2.bf16.msra.mxu0 %v13598_v8  ;;  %v3867_v61 = vld [vmem:[%s17216_s3 + $0xd00] sm:$0xff] }
 0x3b4   :  { %18514 = vst [vmem:[#allocation8_spill] sm:$0xff] %v13621_v34  ;;  %v3879_v24 = vld [vmem:[%s17216_s3 + $0xd60] sm:$0xff]  ;;  %6623 = vmatprep.subr.bf16.mxu0 %v13607_v18  ;;  %v13652_v18 = vcombine.low %v3811_v53, %v3815_v10 }
 0x3b5   :  { %6597 = vmatmul.mubr.bf16.vlgmr.msra.gmra.mxu1 %v13618_v19  ;;  %v13649_v8 = vcombine.high %v3875_v13, %v3879_v24  ;;  %v3871_v1 = vld [vmem:[%s17216_s3 + $0xd20] sm:$0xff] }
 0x3b6   :  { %6647 = vmatpush1.bf16.msra.mxu1 %v13610_v25  ;;  %6678 = vmatprep.mubr.bf16.mxu1 %v13623_v2  ;;  %18519 = vst [vmem:[#allocation10_spill] sm:$0xff] %v13652_v18  ;;  %v13661_v25 = vcombine.high %v3803_v58, %v3807_v44  ;;  %v3795_v53 = vld [vmem:[%s17216_s3 + $0xac0] sm:$0xff] }
 0x3b7   :  { %6648 = vmatprep.subr.bf16.mxu1 %v13621_v34  ;;  %18518 = vst [vmem:[#allocation38_spill] sm:$0xff] %v13649_v8  ;;  %6624 = vmatpush2.bf16.msra.mxu0 %v13626_v51  ;;  %v13664_v34 = vcombine.low %v3875_v13, %v3879_v24  ;;  %v3799_v10 = vld [vmem:[%s17216_s3 + $0xae0] sm:$0xff]  ;;  %v13673_v51 = vcombine.high %v3867_v61, %v3871_v1 }
 0x3b8   :  { %6625 = vmatprep.subr.bf16.mxu0 %v13636_v0  ;;  %18520 = vst [vmem:[#allocation11_spill] sm:$0xff] %v13661_v25  ;;  %v13676_v0 = vcombine.low %v3803_v58, %v3807_v44  ;;  %v3859_v13 = vld [vmem:[%s17216_s3 + $0xcc0] sm:$0xff] }
 0x3b9   :  { %18521 = vst [vmem:[#allocation41_spill] sm:$0xff] %v13664_v34  ;;  %18522 = vst [vmem:[#allocation19_spill] sm:$0xff] %v13673_v51  ;;  %v3863_v24 = vld [vmem:[%s17216_s3 + $0xce0] sm:$0xff] }
 0x3ba   :  { %6649 = vmatpush1.bf16.msra.mxu1 %v13640_v42  ;;  %18523 = vst [vmem:[#allocation20_spill] sm:$0xff] %v13676_v0  ;;  %v13685_v42 = vcombine.high %v3795_v53, %v3799_v10  ;;  %v3787_v58 = vld [vmem:[%s17216_s3 + $0xa80] sm:$0xff] }
 0x3bb   :  { %6650 = vmatprep.subr.bf16.mxu1 %v13649_v8  ;;  %6626 = vmatpush2.bf16.msra.mxu0 %v13652_v18  ;;  %v13688_v8 = vcombine.low %v3867_v61, %v3871_v1  ;;  %v3791_v44 = vld [vmem:[%s17216_s3 + $0xaa0] sm:$0xff]  ;;  %v13697_v18 = vcombine.high %v3859_v13, %v3863_v24 }
 0x3bc   :  { %6627 = vmatprep.subr.bf16.mxu0 %v13661_v25  ;;  %18524 = vst [vmem:[#allocation13_spill] sm:$0xff] %v13685_v42  ;;  %v13700_v25 = vcombine.low %v3795_v53, %v3799_v10  ;;  %v3851_v61 = vld [vmem:[%s17216_s3 + $0xc80] sm:$0xff] }
 0x3bd   :  { %18525 = vst [vmem:[#allocation14_spill] sm:$0xff] %v13688_v8  ;;  %18526 = vst [vmem:[#allocation23_spill] sm:$0xff] %v13697_v18  ;;  %v3855_v1 = vld [vmem:[%s17216_s3 + $0xca0] sm:$0xff] }
 0x3be   :  { %6651 = vmatpush1.bf16.msra.mxu1 %v13664_v34  ;;  %18527 = vst [vmem:[#allocation24_spill] sm:$0xff] %v13700_v25  ;;  %v13709_v34 = vcombine.high %v3787_v58, %v3791_v44  ;;  %v3779_v53 = vld [vmem:[%s17216_s3 + $0xa40] sm:$0xff]  ;;  %v13721_v28 = vcombine.high %v3851_v61, %v3855_v1 }
 0x3bf   :  { %6652 = vmatprep.subr.bf16.mxu1 %v13673_v51  ;;  %6628 = vmatpush2.bf16.msra.mxu0 %v13676_v0  ;;  %v13712_v51 = vcombine.low %v3859_v13, %v3863_v24  ;;  %v3783_v10 = vld [vmem:[%s17216_s3 + $0xa60] sm:$0xff]  ;;  %v13727_v13 = vcombine.low %v3787_v58, %v3791_v44 }
 0x3c0   :  { %6629 = vmatprep.subr.bf16.mxu0 %v13685_v42  ;;  %18528 = vst [vmem:[#allocation17_spill] sm:$0xff] %v13709_v34  ;;  %18530 = vst [vmem:[#allocation27_spill] sm:$0xff] %v13721_v28  ;;  %v3843_v24 = vld [vmem:[%s17216_s3 + $0xc40] sm:$0xff] }
 0x3c1   :  { %18529 = vst [vmem:[#allocation18_spill] sm:$0xff] %v13712_v51  ;;  %18531 = vst [vmem:[#allocation28_spill] sm:$0xff] %v13727_v13  ;;  %v3771_v58 = vld [vmem:[%s17216_s3 + $0xa00] sm:$0xff] }
 0x3c2   :  { %6653 = vmatpush1.bf16.msra.mxu1 %v13688_v8  ;;  %v3139_v0 = vpop.f32.mrf.mxu0  ;;  %v3847_v8 = vld [vmem:[%s17216_s3 + $0xc60] sm:$0xff] }
 0x3c3   :  { %6654 = vmatprep.subr.bf16.mxu1 %v13697_v18  ;;  %v13724_v42 = vadd.f32 %v13578_v49, %v3139_v0  ;;  %6630 = vmatpush2.bf16.msra.mxu0 %v13700_v25  ;;  %v13736_v18 = vcombine.high %v3779_v53, %v3783_v10  ;;  %v13742_v0 = vcombine.low %v3851_v61, %v3855_v1  ;;  %v3775_v44 = vld [vmem:[%s17216_s3 + $0xa20] sm:$0xff] }
 0x3c4   :  { %v3141_v48 = vpop.f32.mrf.mxu0  ;;  %6631 = vmatprep.subr.bf16.mxu0 %v13709_v34  ;;  %v13751_v34 = vcombine.high %v3843_v24, %v3847_v8  ;;  %v18536_v61 = vld [vmem:[#allocation98_spill] sm:$0xff] }
 0x3c5   :  { %18532 = vst [vmem:[#allocation21_spill] sm:$0xff] %v13736_v18  ;;  %v13740_v49 = vadd.f32 %v13592_v54, %v3141_v48  ;;  %18533 = vst [vmem:[#allocation22_spill] sm:$0xff] %v13742_v0  ;;  %v3835_v54 = vld [vmem:[%s17216_s3 + $0xc00] sm:$0xff]  ;;  %v2391_v1 = vadd.f32 %v18536_v61, %v12993_v40 }
 0x3c6   :  { %6655 = vmatpush1.bf16.msra.mxu1 %v13712_v51  ;;  %18534 = vst [vmem:[#allocation31_spill] sm:$0xff] %v13751_v34  ;;  %v3143_v25 = vpop.f32.mrf.mxu0  ;;  %v13754_v51 = vcombine.low %v3779_v53, %v3783_v10  ;;  %v3839_v48 = vld [vmem:[%s17216_s3 + $0xc20] sm:$0xff]  ;;  %v13768_v53 = vcombine.low %v3843_v24, %v3847_v8  ;;  %v3508_v10 = vld [vmem:[%s17216_s3 + $0x1c8] sm:$0xff] }
 0x3c7   :  { %6656 = vmatprep.subr.bf16.mxu1 %v13721_v28  ;;  %6632 = vmatpush2.bf16.msra.mxu0 %v13727_v13  ;;  %v13765_v28 = vcombine.high %v3771_v58, %v3775_v44  ;;  %v3512_v13 = vld [vmem:[%s17216_s3 + $0x1e8] sm:$0xff]  ;;  %v13777_v61 = vcombine.high %v3835_v54, %v3839_v48  ;;  %v3955_v8 = vld [vmem:[%s17216_s3 + $0xfc0] sm:$0xff] }
 0x3c8   :  { %18535 = vst [vmem:[#allocation32_spill] sm:$0xff] %v13754_v51  ;;  %6633 = vmatprep.subr.bf16.mxu0 %v13736_v18  ;;  %v3144_v25 = vpop.f32.mrf.mxu0  ;;  %18538 = vst [vmem:[#allocation26_spill] sm:$0xff] %v13768_v53  ;;  %v3959_v24 = vld [vmem:[%s17216_s3 + $0xfe0] sm:$0xff]  ;;  %v13808_v46 = vcombine.low %v3508_v10, %v3512_v13 }
 0x3c9   :  { %18537 = vst [vmem:[#allocation25_spill] sm:$0xff] %v13765_v28  ;;  %18539 = vst [vmem:[#allocation35_spill] sm:$0xff] %v13777_v61  ;;  %v13782_v25 = vcombine.low %v3771_v58, %v3775_v44  ;;  %v3500_v58 = vld [vmem:[%s17216_s3 + $0x188] sm:$0xff] }
 0x3ca   :  { %6657 = vmatpush1.bf16.msra.mxu1 %v13742_v0  ;;  %v13779_v40 = vpop.f32.mrf.mxu0  ;;  %v2394_v0 = vmax.f32 %v2391_v1, 0.0  ;;  %v3504_v44 = vld [vmem:[%s17216_s3 + $0x1a8] sm:$0xff]  ;;  %v13805_v1 = vcombine.high %v3955_v8, %v3959_v24  ;;  %18544 = vst [vmem:[#allocation40_spill] sm:$0xff] %v13808_v46 }
 0x3cb   :  { %6658 = vmatprep.subr.bf16.mxu1 %v13751_v34  ;;  %6634 = vmatpush2.bf16.msra.mxu0 %v13754_v51  ;;  %18540 = vst [vmem:[#allocation36_spill] sm:$0xff] %v13782_v25  ;;  %v13791_v34 = vcombine.high %v3508_v10, %v3512_v13  ;;  %v13796_v51 = vcombine.low %v3835_v54, %v3839_v48  ;;  %v3947_v54 = vld [vmem:[%s17216_s3 + $0xf80] sm:$0xff]  ;;  %v3492_v13 = vld [vmem:[%s17216_s3 + $0x148] sm:$0xff] }
 0x3cc   :  { %6635 = vmatprep.subr.bf16.mxu0 %v13765_v28  ;;  %v13793_v18 = vpop.f32.mrf.mxu0  ;;  %18543 = vst [vmem:[#allocation39_spill] sm:$0xff] %v13805_v1  ;;  %v3951_v48 = vld [vmem:[%s17216_s3 + $0xfa0] sm:$0xff]  ;;  %v3496_v10 = vld [vmem:[%s17216_s3 + $0x168] sm:$0xff] }
 0x3cd   :  { %18541 = vst [vmem:[#allocation29_spill] sm:$0xff] %v13791_v34  ;;  %18542 = vst [vmem:[#allocation30_spill] sm:$0xff] %v13796_v51 }
 0x3ce   :  { %6659 = vmatpush1.bf16.msra.mxu1 %v13768_v53  ;;  %v3266_v28 = vpop.f32.mrf.mxu0  ;;  %v13816_v53 = vpack.c.bf16 %v2394_v0, %v2394_v0  ;;  %v13832_v0 = vcombine.high %v3947_v54, %v3951_v48 }
 0x3cf   :  { %6660 = vmatprep.subr.bf16.mxu1 %v13777_v61  ;;  %6636 = vmatpush2.bf16.msra.mxu0 %v13782_v25  ;;  %v13819_v61 = vcombine.high %v3500_v58, %v3504_v44  ;;  %v13822_v28 = vcombine.low %v3955_v8, %v3959_v24  ;;  %v3939_v8 = vld [vmem:[%s17216_s3 + $0xf40] sm:$0xff] }
 0x3d0   :  { %6687 = vmatprep.subr.bf16.mxu0 %v13791_v34  ;;  %v3267_v16 = vpop.f32.mrf.mxu0  ;;  %18547 = vst [vmem:[#allocation42_spill] sm:$0xff] %v13832_v0  ;;  %v3943_v24 = vld [vmem:[%s17216_s3 + $0xf60] sm:$0xff] }
 0x3d1   :  { %18545 = vst [vmem:[#allocation33_spill] sm:$0xff] %v13819_v61  ;;  %18546 = vst [vmem:[#allocation34_spill] sm:$0xff] %v13822_v28  ;;  %v13836_v16 = vcombine.low %v3500_v58, %v3504_v44  ;;  %v3484_v58 = vld [vmem:[%s17216_s3 + $0x108] sm:$0xff] }
 0x3d2   :  { %6661 = vmatpush1.bf16.msra.mxu1 %v13796_v51  ;;  %6638 = vmatmul.mubr.bf16.vlgmr.msra.gmra.mxu0 %v13816_v53  ;;  %v13845_v51 = vcombine.high %v3492_v13, %v3496_v10  ;;  %v3488_v44 = vld [vmem:[%s17216_s3 + $0x128] sm:$0xff] }
 0x3d3   :  { %6662 = vmatprep.subr.bf16.mxu1 %v13805_v1  ;;  %6688 = vmatpush1.bf16.msra.mxu0 %v13808_v46  ;;  %18548 = vst [vmem:[#allocation43_spill] sm:$0xff] %v13836_v16  ;;  %v13848_v1 = vcombine.low %v3947_v54, %v3951_v48  ;;  %v13857_v46 = vcombine.high %v3939_v8, %v3943_v24  ;;  %v3931_v54 = vld [vmem:[%s17216_s3 + $0xf00] sm:$0xff] }
 0x3d4   :  { %6719 = vmatprep.mubr.bf16.mxu0 %v13031_v27  ;;  %6689 = vmatprep.subr.bf16.mxu0 %v13819_v61  ;;  %18549 = vst [vmem:[#allocation37_spill] sm:$0xff] %v13845_v51  ;;  %v13860_v61 = vcombine.low %v3492_v13, %v3496_v10  ;;  %v3935_v48 = vld [vmem:[%s17216_s3 + $0xf20] sm:$0xff]  ;;  %v3476_v13 = vld [vmem:[%s17216_s3 + $0xc8] sm:$0xff] }
 0x3d5   :  { %18550 = vst [vmem:[#allocation46_spill] sm:$0xff] %v13848_v1  ;;  %18551 = vst [vmem:[#allocation47_spill] sm:$0xff] %v13857_v46  ;;  %v3480_v10 = vld [vmem:[%s17216_s3 + $0xe8] sm:$0xff] }
 0x3d6   :  { %6663 = vmatpush2.bf16.msra.mxu1 %v13822_v28  ;;  %18552 = vst [vmem:[#allocation49_spill] sm:$0xff] %v13860_v61  ;;  %v13869_v28 = vcombine.high %v3484_v58, %v3488_v44 }
 0x3d7   :  { %6664 = vmatprep.subr.bf16.mxu1 %v13832_v0  ;;  %6690 = vmatpush1.bf16.msra.mxu0 %v13836_v16  ;;  %v13872_v0 = vcombine.low %v3939_v8, %v3943_v24  ;;  %v13881_v16 = vcombine.high %v3931_v54, %v3935_v48  ;;  %v3923_v8 = vld [vmem:[%s17216_s3 + $0xec0] sm:$0xff] }
 0x3d8   :  { %6691 = vmatprep.subr.bf16.mxu0 %v13845_v51  ;;  %18553 = vst [vmem:[#allocation50_spill] sm:$0xff] %v13869_v28  ;;  %v13884_v51 = vcombine.low %v3484_v58, %v3488_v44  ;;  %v3927_v24 = vld [vmem:[%s17216_s3 + $0xee0] sm:$0xff]  ;;  %v3468_v58 = vld [vmem:[%s17216_s3 + $0x88] sm:$0xff] }
 0x3d9   :  { %18554 = vst [vmem:[#allocation51_spill] sm:$0xff] %v13872_v0  ;;  %18555 = vst [vmem:[#allocation52_spill] sm:$0xff] %v13881_v16  ;;  %v3472_v44 = vld [vmem:[%s17216_s3 + $0xa8] sm:$0xff] }
 0x3da   :  { %6665 = vmatpush2.bf16.msra.mxu1 %v13848_v1  ;;  %18556 = vst [vmem:[#allocation53_spill] sm:$0xff] %v13884_v51  ;;  %v13893_v1 = vcombine.high %v3476_v13, %v3480_v10 }
 0x3db   :  { %6666 = vmatprep.subr.bf16.mxu1 %v13857_v46  ;;  %6692 = vmatpush1.bf16.msra.mxu0 %v13860_v61  ;;  %v13896_v46 = vcombine.low %v3931_v54, %v3935_v48  ;;  %v13905_v61 = vcombine.high %v3923_v8, %v3927_v24  ;;  %v3915_v54 = vld [vmem:[%s17216_s3 + $0xe80] sm:$0xff] }
 0x3dc   :  { %6693 = vmatprep.subr.bf16.mxu0 %v13869_v28  ;;  %18557 = vst [vmem:[#allocation54_spill] sm:$0xff] %v13893_v1  ;;  %v13908_v28 = vcombine.low %v3476_v13, %v3480_v10  ;;  %v3919_v48 = vld [vmem:[%s17216_s3 + $0xea0] sm:$0xff]  ;;  %v3460_v13 = vld [vmem:[%s17216_s3 + $0x48] sm:$0xff] }
 0x3dd   :  { %18558 = vst [vmem:[#allocation55_spill] sm:$0xff] %v13896_v46  ;;  %18559 = vst [vmem:[#allocation56_spill] sm:$0xff] %v13905_v61  ;;  %v3464_v10 = vld [vmem:[%s17216_s3 + $0x68] sm:$0xff] }
 0x3de   :  { %6667 = vmatpush2.bf16.msra.mxu1 %v13872_v0  ;;  %18560 = vst [vmem:[#allocation57_spill] sm:$0xff] %v13908_v28  ;;  %v13917_v0 = vcombine.high %v3468_v58, %v3472_v44 }
 0x3df   :  { %6668 = vmatprep.subr.bf16.mxu1 %v13881_v16  ;;  %6694 = vmatpush1.bf16.msra.mxu0 %v13884_v51  ;;  %v13920_v16 = vcombine.low %v3923_v8, %v3927_v24  ;;  %v13929_v51 = vcombine.high %v3915_v54, %v3919_v48  ;;  %v3907_v8 = vld [vmem:[%s17216_s3 + $0xe40] sm:$0xff] }
 0x3e0   :  { %6695 = vmatprep.subr.bf16.mxu0 %v13893_v1  ;;  %18561 = vst [vmem:[#allocation45_spill] sm:$0xff] %v13917_v0  ;;  %v13932_v1 = vcombine.low %v3468_v58, %v3472_v44  ;;  %v3911_v24 = vld [vmem:[%s17216_s3 + $0xe60] sm:$0xff]  ;;  %v3452_v58 = vld [vmem:[%s17216_s3 + $0x8] sm:$0xff] }
 0x3e1   :  { %18562 = vst [vmem:[#allocation58_spill] sm:$0xff] %v13920_v16  ;;  %18563 = vst [vmem:[#allocation59_spill] sm:$0xff] %v13929_v51  ;;  %v3456_v44 = vld [vmem:[%s17216_s3 + $0x28] sm:$0xff] }
 0x3e2   :  { %6669 = vmatpush2.bf16.msra.mxu1 %v13896_v46  ;;  %18564 = vst [vmem:[#allocation48_spill] sm:$0xff] %v13932_v1  ;;  %v13941_v46 = vcombine.high %v3460_v13, %v3464_v10 }
 0x3e3   :  { %6670 = vmatprep.subr.bf16.mxu1 %v13905_v61  ;;  %6696 = vmatpush1.bf16.msra.mxu0 %v13908_v28  ;;  %v13944_v61 = vcombine.low %v3915_v54, %v3919_v48  ;;  %v13953_v28 = vcombine.high %v3907_v8, %v3911_v24  ;;  %v3899_v54 = vld [vmem:[%s17216_s3 + $0xe00] sm:$0xff] }
 0x3e4   :  { %6697 = vmatprep.subr.bf16.mxu0 %v13917_v0  ;;  %18565 = vst [vmem:[#allocation60_spill] sm:$0xff] %v13941_v46  ;;  %v13956_v0 = vcombine.low %v3460_v13, %v3464_v10  ;;  %v3903_v48 = vld [vmem:[%s17216_s3 + $0xe20] sm:$0xff]  ;;  %v3572_v13 = vld [vmem:[%s17216_s3 + $0x3c8] sm:$0xff] }
 0x3e5   :  { %18566 = vst [vmem:[#allocation61_spill] sm:$0xff] %v13944_v61  ;;  %18567 = vst [vmem:[#allocation62_spill] sm:$0xff] %v13953_v28  ;;  %v3576_v10 = vld [vmem:[%s17216_s3 + $0x3e8] sm:$0xff] }
 0x3e6   :  { %6671 = vmatpush2.bf16.msra.mxu1 %v13920_v16  ;;  %18568 = vst [vmem:[#allocation63_spill] sm:$0xff] %v13956_v0  ;;  %v13965_v16 = vcombine.high %v3452_v58, %v3456_v44 }
 0x3e7   :  { %6672 = vmatprep.subr.bf16.mxu1 %v13929_v51  ;;  %6698 = vmatpush1.bf16.msra.mxu0 %v13932_v1  ;;  %v13968_v51 = vcombine.low %v3907_v8, %v3911_v24  ;;  %v2916_v1 = vadd.f32 %v12966_v33, %v13141_v59  ;;  %v3636_v8 = vld [vmem:[%s17216_s3 + $0x5c8] sm:$0xff]  ;;  %v13991_v33 = vcombine.high %v3572_v13, %v3576_v10 }
 0x3e8   :  { %6699 = vmatprep.subr.bf16.mxu0 %v13941_v46  ;;  %18569 = vst [vmem:[#allocation64_spill] sm:$0xff] %v13965_v16  ;;  %v13979_v46 = vcombine.high %v3899_v54, %v3903_v48  ;;  %v3640_v24 = vld [vmem:[%s17216_s3 + $0x5e8] sm:$0xff] }
 0x3e9   :  { %18570 = vst [vmem:[#allocation65_spill] sm:$0xff] %v13968_v51  ;;  %18573 = vst [vmem:[#allocation68_spill] sm:$0xff] %v13991_v33  ;;  %v2919_v25 = vmax.f32 %v2916_v1, 0.0  ;;  %v3632_v1 = vld [vmem:[%s17216_s3 + $0x5a8] sm:$0xff] }
 0x3ea   :  { %6673 = vmatpush2.bf16.msra.mxu1 %v13944_v61  ;;  %18571 = vst [vmem:[#allocation66_spill] sm:$0xff] %v13979_v46  ;;  %v13982_v61 = vcombine.low %v3452_v58, %v3456_v44  ;;  %v13997_v58 = vcombine.low %v3899_v54, %v3903_v48  ;;  %v3564_v44 = vld [vmem:[%s17216_s3 + $0x388] sm:$0xff]  ;;  %v14014_v54 = vcombine.low %v3572_v13, %v3576_v10 }
 0x3eb   :  { %6674 = vmatprep.subr.bf16.mxu1 %v13953_v28  ;;  %6700 = vmatpush1.bf16.msra.mxu0 %v13956_v0  ;;  %v3568_v0 = vld [vmem:[%s17216_s3 + $0x3a8] sm:$0xff] }
 0x3ec   :  { %18572 = vst [vmem:[#allocation67_spill] sm:$0xff] %v13982_v61  ;;  %6701 = vmatprep.subr.bf16.mxu0 %v13965_v16  ;;  %18574 = vst [vmem:[#allocation70_spill] sm:$0xff] %v13997_v58  ;;  %v14006_v16 = vcombine.high %v3636_v8, %v3640_v24  ;;  %v3628_v48 = vld [vmem:[%s17216_s3 + $0x588] sm:$0xff] }
 0x3ed   :  { %v3221_v34 = vpop.f32.mrf.mxu1  ;;  %18576 = vst [vmem:[#allocation72_spill] sm:$0xff] %v14014_v54  ;;  %v3556_v13 = vld [vmem:[%s17216_s3 + $0x348] sm:$0xff] }
 0x3ee   :  { %v13994_v28 = vadd.f32 %v13779_v40, %v3221_v34  ;;  %6675 = vmatpush2.bf16.msra.mxu1 %v13968_v51  ;;  %18575 = vst [vmem:[#allocation71_spill] sm:$0xff] %v14006_v16  ;;  %v14023_v51 = vcombine.high %v3564_v44, %v3568_v0  ;;  %v3560_v10 = vld [vmem:[%s17216_s3 + $0x368] sm:$0xff] }
 0x3ef   :  { %v3223_v59 = vpop.f32.mrf.mxu1  ;;  %6676 = vmatprep.subr.bf16.mxu1 %v13979_v46  ;;  %6702 = vmatpush1.bf16.msra.mxu0 %v13982_v61 }
 0x3f0   :  { %v14011_v34 = vadd.f32 %v13793_v18, %v3223_v59  ;;  %6703 = vmatprep.subr.bf16.mxu0 %v13991_v33  ;;  %18577 = vst [vmem:[#allocation73_spill] sm:$0xff] %v14023_v51  ;;  %v14028_v18 = vcombine.low %v3636_v8, %v3640_v24  ;;  %v14039_v33 = vcombine.high %v3628_v48, %v3632_v1  ;;  %v3620_v8 = vld [vmem:[%s17216_s3 + $0x548] sm:$0xff] }
 0x3f1   :  { %v3225_v46 = vpop.f32.mrf.mxu1  ;;  %v14042_v59 = vcombine.low %v3564_v44, %v3568_v0  ;;  %v3624_v24 = vld [vmem:[%s17216_s3 + $0x568] sm:$0xff]  ;;  %v14058_v0 = vcombine.low %v3628_v48, %v3632_v1 }
 0x3f2   :  { %6677 = vmatpush2.bf16.msra.mxu1 %v13997_v58  ;;  %18578 = vst [vmem:[#allocation74_spill] sm:$0xff] %v14028_v18  ;;  %v14036_v46 = vpack.c.bf16 %v2919_v25, %v2919_v25  ;;  %18579 = vst [vmem:[#allocation76_spill] sm:$0xff] %v14039_v33  ;;  %v14054_v25 = vcombine.high %v3556_v13, %v3560_v10  ;;  %v3548_v44 = vld [vmem:[%s17216_s3 + $0x308] sm:$0xff] }
 0x3f3   :  { %v3226_v40 = vpop.f32.mrf.mxu1  ;;  %6728 = vmatprep.subr.bf16.mxu1 %v14006_v16  ;;  %6704 = vmatpush2.bf16.msra.mxu0 %v14014_v54  ;;  %18580 = vst [vmem:[#allocation77_spill] sm:$0xff] %v14042_v59  ;;  %18582 = vst [vmem:[#allocation80_spill] sm:$0xff] %v14058_v0  ;;  %v3612_v48 = vld [vmem:[%s17216_s3 + $0x508] sm:$0xff] }
 0x3f4   :  { %6705 = vmatprep.subr.bf16.mxu0 %v14023_v51  ;;  %18581 = vst [vmem:[#allocation79_spill] sm:$0xff] %v14054_v25  ;;  %v3552_v40 = vld [vmem:[%s17216_s3 + $0x328] sm:$0xff]  ;;  %v14069_v51 = vcombine.high %v3620_v8, %v3624_v24 }
 0x3f5   :  { %v14050_v58 = vpop.f32.mrf.mxu1  ;;  %6679 = vmatmul.mubr.bf16.vlgmr.msra.gmra.mxu1 %v14036_v46  ;;  %v3616_v1 = vld [vmem:[%s17216_s3 + $0x528] sm:$0xff]  ;;  %v14081_v61 = vcombine.high %v3548_v44, %v3552_v40 }
 0x3f6   :  { %6729 = vmatpush1.bf16.msra.mxu1 %v14028_v18  ;;  %6760 = vmatprep.mubr.bf16.mxu1 %v13200_v15  ;;  %18583 = vst [vmem:[#allocation81_spill] sm:$0xff] %v14069_v51  ;;  %v14072_v18 = vcombine.low %v3556_v13, %v3560_v10  ;;  %v3540_v13 = vld [vmem:[%s17216_s3 + $0x2c8] sm:$0xff] }
 0x3f7   :  { %v14066_v54 = vpop.f32.mrf.mxu1  ;;  %6730 = vmatprep.subr.bf16.mxu1 %v14039_v33  ;;  %6706 = vmatpush2.bf16.msra.mxu0 %v14042_v59  ;;  %18585 = vst [vmem:[#allocation85_spill] sm:$0xff] %v14081_v61  ;;  %v14084_v33 = vcombine.low %v3620_v8, %v3624_v24  ;;  %v3544_v10 = vld [vmem:[%s17216_s3 + $0x2e8] sm:$0xff] }
 0x3f8   :  { %18584 = vst [vmem:[#allocation82_spill] sm:$0xff] %v14072_v18  ;;  %6707 = vmatprep.subr.bf16.mxu0 %v14054_v25  ;;  %v14096_v25 = vcombine.low %v3548_v44, %v3552_v40  ;;  %v3604_v8 = vld [vmem:[%s17216_s3 + $0x4c8] sm:$0xff] }
 0x3f9   :  { %v3348_v16 = vpop.f32.mrf.mxu1  ;;  %18586 = vst [vmem:[#allocation83_spill] sm:$0xff] %v14084_v33  ;;  %v3608_v24 = vld [vmem:[%s17216_s3 + $0x4e8] sm:$0xff] }
 0x3fa   :  { %6731 = vmatpush1.bf16.msra.mxu1 %v14058_v0  ;;  %v14093_v16 = vcombine.high %v3612_v48, %v3616_v1  ;;  %18588 = vst [vmem:[#allocation88_spill] sm:$0xff] %v14096_v25  ;;  %v14105_v0 = vcombine.high %v3540_v13, %v3544_v10  ;;  %v3532_v44 = vld [vmem:[%s17216_s3 + $0x288] sm:$0xff] }
 0x3fb   :  { %v3349_v59 = vpop.f32.mrf.mxu1  ;;  %6732 = vmatprep.subr.bf16.mxu1 %v14069_v51  ;;  %6708 = vmatpush2.bf16.msra.mxu0 %v14072_v18  ;;  %v3536_v40 = vld [vmem:[%s17216_s3 + $0x2a8] sm:$0xff]  ;;  %v14117_v18 = vcombine.high %v3604_v8, %v3608_v24 }
 0x3fc   :  { %18587 = vst [vmem:[#allocation84_spill] sm:$0xff] %v14093_v16  ;;  %6709 = vmatprep.subr.bf16.mxu0 %v14081_v61  ;;  %18589 = vst [vmem:[#allocation75_spill] sm:$0xff] %v14105_v0  ;;  %v14108_v59 = vcombine.low %v3612_v48, %v3616_v1  ;;  %v14120_v61 = vcombine.low %v3540_v13, %v3544_v10  ;;  %v3596_v48 = vld [vmem:[%s17216_s3 + $0x488] sm:$0xff] }
 0x3fd   :  { %18591 = vst [vmem:[#allocation89_spill] sm:$0xff] %v14117_v18  ;;  %v3600_v1 = vld [vmem:[%s17216_s3 + $0x4a8] sm:$0xff] }
 0x3fe   :  { %6733 = vmatpush1.bf16.msra.mxu1 %v14084_v33  ;;  %18590 = vst [vmem:[#allocation7_spill] sm:$0xff] %v14108_v59  ;;  %18592 = vst [vmem:[#allocation86_spill] sm:$0xff] %v14120_v61  ;;  %v14129_v33 = vcombine.high %v3532_v44, %v3536_v40  ;;  %v3524_v13 = vld [vmem:[%s17216_s3 + $0x248] sm:$0xff] }
 0x3ff   :  { %6734 = vmatprep.subr.bf16.mxu1 %v14093_v16  ;;  %6710 = vmatpush2.bf16.msra.mxu0 %v14096_v25  ;;  %v14132_v16 = vcombine.low %v3604_v8, %v3608_v24  ;;  %v3528_v10 = vld [vmem:[%s17216_s3 + $0x268] sm:$0xff]  ;;  %v14141_v25 = vcombine.high %v3596_v48, %v3600_v1 }
 0x400   :  { %6711 = vmatprep.subr.bf16.mxu0 %v14105_v0  ;;  %18593 = vst [vmem:[#allocation78_spill] sm:$0xff] %v14129_v33  ;;  %v14144_v0 = vcombine.low %v3532_v44, %v3536_v40  ;;  %v3588_v8 = vld [vmem:[%s17216_s3 + $0x448] sm:$0xff] }
 0x401   :  { %18594 = vst [vmem:[#allocation87_spill] sm:$0xff] %v14132_v16  ;;  %18595 = vst [vmem:[#allocation92_spill] sm:$0xff] %v14141_v25  ;;  %v3592_v24 = vld [vmem:[%s17216_s3 + $0x468] sm:$0xff] }
 0x402   :  { %6735 = vmatpush1.bf16.msra.mxu1 %v14108_v59  ;;  %18596 = vst [vmem:[#allocation90_spill] sm:$0xff] %v14144_v0  ;;  %v14153_v59 = vcombine.high %v3524_v13, %v3528_v10  ;;  %v3516_v44 = vld [vmem:[%s17216_s3 + $0x208] sm:$0xff] }
 0x403   :  { %6736 = vmatprep.subr.bf16.mxu1 %v14117_v18  ;;  %6712 = vmatpush2.bf16.msra.mxu0 %v14120_v61  ;;  %v14156_v18 = vcombine.low %v3596_v48, %v3600_v1  ;;  %v3520_v40 = vld [vmem:[%s17216_s3 + $0x228] sm:$0xff]  ;;  %v14165_v61 = vcombine.high %v3588_v8, %v3592_v24 }
 0x404   :  { %6713 = vmatprep.subr.bf16.mxu0 %v14129_v33  ;;  %18597 = vst [vmem:[#allocation91_spill] sm:$0xff] %v14153_v59  ;;  %v14168_v33 = vcombine.low %v3524_v13, %v3528_v10  ;;  %v3580_v48 = vld [vmem:[%s17216_s3 + $0x408] sm:$0xff] }
 0x405   :  { %18598 = vst [vmem:[#allocation95_spill] sm:$0xff] %v14156_v18  ;;  %18599 = vst [vmem:[#allocation96_spill] sm:$0xff] %v14165_v61  ;;  %v3584_v1 = vld [vmem:[%s17216_s3 + $0x428] sm:$0xff] }
 0x406   :  { %6737 = vmatpush1.bf16.msra.mxu1 %v14132_v16  ;;  %18600 = vst [vmem:[#allocation93_spill] sm:$0xff] %v14168_v33  ;;  %v14177_v16 = vcombine.high %v3516_v44, %v3520_v40  ;;  %v3764_v13 = vld [vmem:[%s17216_s3 + $0x9c8] sm:$0xff]  ;;  %v14189_v51 = vcombine.high %v3580_v48, %v3584_v1 }
 0x407   :  { %6738 = vmatprep.subr.bf16.mxu1 %v14141_v25  ;;  %6714 = vmatpush2.bf16.msra.mxu0 %v14144_v0  ;;  %v14180_v25 = vcombine.low %v3588_v8, %v3592_v24  ;;  %v3768_v10 = vld [vmem:[%s17216_s3 + $0x9e8] sm:$0xff]  ;;  %v14195_v8 = vcombine.low %v3516_v44, %v3520_v40  ;;  %v14210_v44 = vcombine.low %v3580_v48, %v3584_v1 }
 0x408   :  { %6715 = vmatprep.subr.bf16.mxu0 %v14153_v59  ;;  %18601 = vst [vmem:[#allocation94_spill] sm:$0xff] %v14177_v16  ;;  %18602 = vst [vmem:[#allocation99_spill] sm:$0xff] %v14189_v51  ;;  %v3700_v24 = vld [vmem:[%s17216_s3 + $0x7c8] sm:$0xff] }
 0x409   :  { %18603 = vst [vmem:[#allocation100_spill] sm:$0xff] %v14195_v8  ;;  %18605 = vst [vmem:[#allocation69_spill] sm:$0xff] %v14210_v44  ;;  %v3756_v40 = vld [vmem:[%s17216_s3 + $0x988] sm:$0xff] }
 0x40a   :  { %6739 = vmatpush1.bf16.msra.mxu1 %v14156_v18  ;;  %v3303_v0 = vpop.f32.mrf.mxu0  ;;  %v3704_v18 = vld [vmem:[%s17216_s3 + $0x7e8] sm:$0xff] }
 0x40b   :  { %6740 = vmatprep.subr.bf16.mxu1 %v14165_v61  ;;  %v14192_v59 = vadd.f32 %v14050_v58, %v3303_v0  ;;  %6716 = vmatpush2.bf16.msra.mxu0 %v14168_v33  ;;  %v14204_v61 = vcombine.high %v3764_v13, %v3768_v10  ;;  %v3760_v33 = vld [vmem:[%s17216_s3 + $0x9a8] sm:$0xff] }
 0x40c   :  { %v3305_v26 = vpop.f32.mrf.mxu0  ;;  %6717 = vmatprep.subr.bf16.mxu0 %v14177_v16  ;;  %v14219_v16 = vcombine.high %v3700_v24, %v3704_v18  ;;  %v3696_v48 = vld [vmem:[%s17216_s3 + $0x7a8] sm:$0xff]  ;;  %v14232_v1 = vcombine.high %v3756_v40, %v3760_v33 }
 0x40d   :  { %18604 = vst [vmem:[#allocation97_spill] sm:$0xff] %v14204_v61  ;;  %v3347_v0 = vadd.f32 %v14066_v54, %v3305_v26  ;;  %v14223_v26 = vcombine.low %v3764_v13, %v3768_v10  ;;  %v3692_v54 = vld [vmem:[%s17216_s3 + $0x788] sm:$0xff]  ;;  %v14240_v13 = vcombine.low %v3700_v24, %v3704_v18 }
 0x40e   :  { %6741 = vmatpush1.bf16.msra.mxu1 %v14180_v25  ;;  %18606 = vst [vmem:[#allocation104_spill] sm:$0xff] %v14219_v16  ;;  %v3307_v57 = vpop.f32.mrf.mxu0  ;;  %18608 = vst [vmem:[#allocation6_spill] sm:$0xff] %v14232_v1  ;;  %v3748_v10 = vld [vmem:[%s17216_s3 + $0x948] sm:$0xff] }
 0x40f   :  { %6742 = vmatprep.subr.bf16.mxu1 %v14189_v51  ;;  %v3436_v58 = vmax.f32 %v13539_v12, %v3347_v0  ;;  %6718 = vmatpush2.bf16.msra.mxu0 %v14195_v8  ;;  %18607 = vst [vmem:[#allocation101_spill] sm:$0xff] %v14223_v26  ;;  %v18609_v57 = vmax.f32 %v13252_v52, %v13994_v28  ;;  %18610 = vst [vmem:[#allocation103_spill] sm:$0xff] %v14240_v13  ;;  %v3752_v0 = vld [vmem:[%s17216_s3 + $0x968] sm:$0xff] }
 0x410   :  { %6769 = vmatprep.subr.bf16.mxu0 %v14204_v61  ;;  %v3308_v51 = vpop.f32.mrf.mxu0  ;;  %v14256_v28 = vcombine.low %v3756_v40, %v3760_v33  ;;  %v3684_v18 = vld [vmem:[%s17216_s3 + $0x748] sm:$0xff] }
 0x411   :  { %v14237_v12 = vmax.f32 %v18609_v57, %v3436_v58  ;;  %v14250_v51 = vcombine.high %v3692_v54, %v3696_v48  ;;  %v3688_v24 = vld [vmem:[%s17216_s3 + $0x768] sm:$0xff]  ;;  %v14265_v58 = vcombine.high %v3748_v10, %v3752_v0 }
 0x412   :  { %6743 = vmatpush1.bf16.msra.mxu1 %v14210_v44  ;;  %6720 = vmatmul.mubr.bf16.vlgmr.msra.gmra.mxu0 %v13394_v14  ;;  %v14252_v52 = vpop.f32.mrf.mxu0  ;;  %18612 = vst [vmem:[#allocation98_spill] sm:$0xff] %v14256_v28  ;;  %v3740_v33 = vld [vmem:[%s17216_s3 + $0x908] sm:$0xff]  ;;  %v14282_v44 = vcombine.low %v3748_v10, %v3752_v0 }
 0x413   :  { %6744 = vmatprep.subr.bf16.mxu1 %v14219_v16  ;;  %18611 = vst [vmem:[#allocation44_spill] sm:$0xff] %v14250_v51  ;;  %6770 = vmatpush1.bf16.msra.mxu0 %v14223_v26  ;;  %18613 = vst [vmem:[#allocation161_spill] sm:$0xff] %v14265_v58  ;;  %v14270_v26 = vcombine.low %v3692_v54, %v3696_v48  ;;  %v3744_v40 = vld [vmem:[%s17216_s3 + $0x928] sm:$0xff]  ;;  %v14279_v16 = vcombine.high %v3684_v18, %v3688_v24 }
 0x414   :  { %6801 = vmatprep.mubr.bf16.mxu0 %v13399_v35  ;;  %6771 = vmatprep.subr.bf16.mxu0 %v14232_v1  ;;  %v14267_v57 = vpop.f32.mrf.mxu0  ;;  %18616 = vst [vmem:[#allocation164_spill] sm:$0xff] %v14282_v44  ;;  %v3676_v54 = vld [vmem:[%s17216_s3 + $0x708] sm:$0xff] }
 0x415   :  { %18614 = vst [vmem:[#allocation162_spill] sm:$0xff] %v14270_v26  ;;  %18615 = vst [vmem:[#allocation163_spill] sm:$0xff] %v14279_v16  ;;  %v3680_v48 = vld [vmem:[%s17216_s3 + $0x728] sm:$0xff] }
 0x416   :  { %6745 = vmatpush2.bf16.msra.mxu1 %v14240_v13  ;;  %v3430_v1 = vpop.f32.mrf.mxu0  ;;  %v14291_v13 = vcombine.high %v3740_v33, %v3744_v40  ;;  %v3732_v10 = vld [vmem:[%s17216_s3 + $0x8c8] sm:$0xff] }
 0x417   :  { %6746 = vmatprep.subr.bf16.mxu1 %v14250_v51  ;;  %6772 = vmatpush1.bf16.msra.mxu0 %v14256_v28  ;;  %v14294_v1 = vcombine.low %v3684_v18, %v3688_v24  ;;  %v3736_v0 = vld [vmem:[%s17216_s3 + $0x8e8] sm:$0xff]  ;;  %v14303_v28 = vcombine.high %v3676_v54, %v3680_v48 }
 0x418   :  { %6773 = vmatprep.subr.bf16.mxu0 %v14265_v58  ;;  %18617 = vst [vmem:[#allocation165_spill] sm:$0xff] %v14291_v13  ;;  %v3431_v51 = vpop.f32.mrf.mxu0  ;;  %v14306_v58 = vcombine.low %v3740_v33, %v3744_v40  ;;  %v3672_v18 = vld [vmem:[%s17216_s3 + $0x6e8] sm:$0xff]  ;;  %v14315_v24 = vcombine.high %v3732_v10, %v3736_v0 }
 0x419   :  { %18618 = vst [vmem:[#allocation166_spill] sm:$0xff] %v14294_v1  ;;  %18619 = vst [vmem:[#allocation167_spill] sm:$0xff] %v14303_v28  ;;  %v3668_v51 = vld [vmem:[%s17216_s3 + $0x6c8] sm:$0xff] }
 0x41a   :  { %6747 = vmatpush2.bf16.msra.mxu1 %v14270_v26  ;;  %18620 = vst [vmem:[#allocation168_spill] sm:$0xff] %v14306_v58  ;;  %18621 = vst [vmem:[#allocation169_spill] sm:$0xff] %v14315_v24  ;;  %v3724_v33 = vld [vmem:[%s17216_s3 + $0x888] sm:$0xff] }
 0x41b   :  { %6748 = vmatprep.subr.bf16.mxu1 %v14279_v16  ;;  %6774 = vmatpush1.bf16.msra.mxu0 %v14282_v44  ;;  %v14318_v16 = vcombine.low %v3676_v54, %v3680_v48  ;;  %v3728_v40 = vld [vmem:[%s17216_s3 + $0x8a8] sm:$0xff]  ;;  %v14327_v44 = vcombine.high %v3668_v51, %v3672_v18 }
 0x41c   :  { %6775 = vmatprep.subr.bf16.mxu0 %v14291_v13  ;;  %v14330_v13 = vcombine.low %v3732_v10, %v3736_v0  ;;  %v3660_v54 = vld [vmem:[%s17216_s3 + $0x688] sm:$0xff] }
 0x41d   :  { %18622 = vst [vmem:[#allocation170_spill] sm:$0xff] %v14318_v16  ;;  %18623 = vst [vmem:[#allocation171_spill] sm:$0xff] %v14327_v44  ;;  %v3664_v48 = vld [vmem:[%s17216_s3 + $0x6a8] sm:$0xff] }
 0x41e   :  { %6749 = vmatpush2.bf16.msra.mxu1 %v14294_v1  ;;  %18624 = vst [vmem:[#allocation172_spill] sm:$0xff] %v14330_v13  ;;  %v14339_v1 = vcombine.high %v3724_v33, %v3728_v40  ;;  %v3716_v10 = vld [vmem:[%s17216_s3 + $0x848] sm:$0xff] }
 0x41f   :  { %6750 = vmatprep.subr.bf16.mxu1 %v14303_v28  ;;  %6776 = vmatpush1.bf16.msra.mxu0 %v14306_v58  ;;  %v14342_v28 = vcombine.low %v3668_v51, %v3672_v18  ;;  %v3720_v0 = vld [vmem:[%s17216_s3 + $0x868] sm:$0xff]  ;;  %v14351_v58 = vcombine.high %v3660_v54, %v3664_v48 }
 0x420   :  { %6777 = vmatprep.subr.bf16.mxu0 %v14315_v24  ;;  %18625 = vst [vmem:[#allocation173_spill] sm:$0xff] %v14339_v1  ;;  %v14354_v24 = vcombine.low %v3724_v33, %v3728_v40  ;;  %v3652_v51 = vld [vmem:[%s17216_s3 + $0x648] sm:$0xff] }
 0x421   :  { %18626 = vst [vmem:[#allocation174_spill] sm:$0xff] %v14342_v28  ;;  %18627 = vst [vmem:[#allocation175_spill] sm:$0xff] %v14351_v58  ;;  %v3656_v18 = vld [vmem:[%s17216_s3 + $0x668] sm:$0xff] }
 0x422   :  { %6751 = vmatpush2.bf16.msra.mxu1 %v14318_v16  ;;  %18628 = vst [vmem:[#allocation176_spill] sm:$0xff] %v14354_v24  ;;  %v14363_v16 = vcombine.high %v3716_v10, %v3720_v0  ;;  %v3708_v33 = vld [vmem:[%s17216_s3 + $0x808] sm:$0xff] }
 0x423   :  { %6752 = vmatprep.subr.bf16.mxu1 %v14327_v44  ;;  %6778 = vmatpush1.bf16.msra.mxu0 %v14330_v13  ;;  %v14366_v44 = vcombine.low %v3660_v54, %v3664_v48  ;;  %v3712_v40 = vld [vmem:[%s17216_s3 + $0x828] sm:$0xff]  ;;  %v14375_v13 = vcombine.high %v3652_v51, %v3656_v18 }
 0x424   :  { %6779 = vmatprep.subr.bf16.mxu0 %v14339_v1  ;;  %18629 = vst [vmem:[#allocation177_spill] sm:$0xff] %v14363_v16  ;;  %v14378_v1 = vcombine.low %v3716_v10, %v3720_v0  ;;  %v3644_v54 = vld [vmem:[%s17216_s3 + $0x608] sm:$0xff] }
 0x425   :  { %18630 = vst [vmem:[#allocation178_spill] sm:$0xff] %v14366_v44  ;;  %18631 = vst [vmem:[#allocation179_spill] sm:$0xff] %v14375_v13  ;;  %v3648_v48 = vld [vmem:[%s17216_s3 + $0x628] sm:$0xff] }
 0x426   :  { %6753 = vmatpush2.bf16.msra.mxu1 %v14342_v28  ;;  %18632 = vst [vmem:[#allocation180_spill] sm:$0xff] %v14378_v1  ;;  %v14387_v28 = vcombine.high %v3708_v33, %v3712_v40  ;;  %v3828_v10 = vld [vmem:[%s17216_s3 + $0xbc8] sm:$0xff] }
 0x427   :  { %6754 = vmatprep.subr.bf16.mxu1 %v14351_v58  ;;  %6780 = vmatpush1.bf16.msra.mxu0 %v14354_v24  ;;  %v14390_v58 = vcombine.low %v3652_v51, %v3656_v18  ;;  %v3832_v0 = vld [vmem:[%s17216_s3 + $0xbe8] sm:$0xff]  ;;  %v14399_v24 = vcombine.high %v3644_v54, %v3648_v48 }
 0x428   :  { %6781 = vmatprep.subr.bf16.mxu0 %v14363_v16  ;;  %18633 = vst [vmem:[#allocation181_spill] sm:$0xff] %v14387_v28  ;;  %v14402_v16 = vcombine.low %v3708_v33, %v3712_v40  ;;  %v3892_v51 = vld [vmem:[%s17216_s3 + $0xdc8] sm:$0xff] }
 0x429   :  { %18634 = vst [vmem:[#allocation182_spill] sm:$0xff] %v14390_v58  ;;  %18635 = vst [vmem:[#allocation183_spill] sm:$0xff] %v14399_v24  ;;  %v3896_v18 = vld [vmem:[%s17216_s3 + $0xde8] sm:$0xff] }
 0x42a   :  { %6755 = vmatpush2.bf16.msra.mxu1 %v14366_v44  ;;  %18636 = vst [vmem:[#allocation184_spill] sm:$0xff] %v14402_v16  ;;  %v14411_v44 = vcombine.high %v3828_v10, %v3832_v0  ;;  %v3820_v33 = vld [vmem:[%s17216_s3 + $0xb88] sm:$0xff] }
 0x42b   :  { %6756 = vmatprep.subr.bf16.mxu1 %v14375_v13  ;;  %6782 = vmatpush1.bf16.msra.mxu0 %v14378_v1  ;;  %v14414_v13 = vcombine.low %v3644_v54, %v3648_v48  ;;  %v3824_v40 = vld [vmem:[%s17216_s3 + $0xba8] sm:$0xff]  ;;  %v14423_v1 = vcombine.high %v3892_v51, %v3896_v18 }
 0x42c   :  { %6783 = vmatprep.subr.bf16.mxu0 %v14387_v28  ;;  %18637 = vst [vmem:[#allocation185_spill] sm:$0xff] %v14411_v44  ;;  %v14426_v28 = vcombine.low %v3828_v10, %v3832_v0  ;;  %v3884_v54 = vld [vmem:[%s17216_s3 + $0xd88] sm:$0xff] }
 0x42d   :  { %18638 = vst [vmem:[#allocation186_spill] sm:$0xff] %v14414_v13  ;;  %18639 = vst [vmem:[#allocation187_spill] sm:$0xff] %v14423_v1  ;;  %v3888_v48 = vld [vmem:[%s17216_s3 + $0xda8] sm:$0xff] }
 0x42e   :  { %6757 = vmatpush2.bf16.msra.mxu1 %v14390_v58  ;;  %18640 = vst [vmem:[#allocation188_spill] sm:$0xff] %v14426_v28  ;;  %v14435_v58 = vcombine.high %v3820_v33, %v3824_v40  ;;  %v3812_v10 = vld [vmem:[%s17216_s3 + $0xb48] sm:$0xff] }
 0x42f   :  { %6758 = vmatprep.subr.bf16.mxu1 %v14399_v24  ;;  %6784 = vmatpush1.bf16.msra.mxu0 %v14402_v16  ;;  %v14438_v24 = vcombine.low %v3892_v51, %v3896_v18  ;;  %v3816_v0 = vld [vmem:[%s17216_s3 + $0xb68] sm:$0xff]  ;;  %v14447_v16 = vcombine.high %v3884_v54, %v3888_v48 }
 0x430   :  { %6785 = vmatprep.subr.bf16.mxu0 %v14411_v44  ;;  %18641 = vst [vmem:[#allocation189_spill] sm:$0xff] %v14435_v58  ;;  %v14450_v44 = vcombine.low %v3820_v33, %v3824_v40  ;;  %v3876_v51 = vld [vmem:[%s17216_s3 + $0xd48] sm:$0xff]  ;;  %v14465_v33 = vcombine.low %v3884_v54, %v3888_v48  ;;  %v14479_v54 = vcombine.low %v3812_v10, %v3816_v0 }
 0x431   :  { %18642 = vst [vmem:[#allocation190_spill] sm:$0xff] %v14438_v24  ;;  %18643 = vst [vmem:[#allocation191_spill] sm:$0xff] %v14447_v16  ;;  %v3880_v18 = vld [vmem:[%s17216_s3 + $0xd68] sm:$0xff] }
 0x432   :  { %6759 = vmatpush2.bf16.msra.mxu1 %v14414_v13  ;;  %v3804_v40 = vld [vmem:[%s17216_s3 + $0xb08] sm:$0xff]  ;;  %18644 = vst [vmem:[#allocation192_spill] sm:$0xff] %v14479_v54 }
 0x433   :  { %6810 = vmatprep.subr.bf16.mxu1 %v14423_v1  ;;  %6786 = vmatpush2.bf16.msra.mxu0 %v14426_v28  ;;  %v14460_v1 = vcombine.high %v3812_v10, %v3816_v0  ;;  %v3808_v28 = vld [vmem:[%s17216_s3 + $0xb28] sm:$0xff] }
 0x434   :  { %6787 = vmatprep.subr.bf16.mxu0 %v14435_v58  ;;  %v14474_v58 = vcombine.high %v3876_v51, %v3880_v18  ;;  %v3868_v48 = vld [vmem:[%s17216_s3 + $0xd08] sm:$0xff] }
 0x435   :  { %v3385_v13 = vpop.f32.mrf.mxu1  ;;  %6761 = vmatmul.mubr.bf16.vlgmr.msra.gmra.mxu1 %v13618_v19  ;;  %v3796_v10 = vld [vmem:[%s17216_s3 + $0xac8] sm:$0xff] }
 0x436   :  { %v3427_v26 = vadd.f32 %v14252_v52, %v3385_v13  ;;  %6811 = vmatpush1.bf16.msra.mxu1 %v14438_v24  ;;  %6842 = vmatprep.mubr.bf16.mxu1 %v13623_v2  ;;  %v3872_v24 = vld [vmem:[%s17216_s3 + $0xd28] sm:$0xff] }
 0x437   :  { %v3387_v61 = vpop.f32.mrf.mxu1  ;;  %6812 = vmatprep.subr.bf16.mxu1 %v14447_v16  ;;  %6788 = vmatpush2.bf16.msra.mxu0 %v14450_v44  ;;  %v14488_v16 = vcombine.high %v3804_v40, %v3808_v28 }
 0x438   :  { %v3437_v13 = vmax.f32 %v13724_v42, %v3427_v26  ;;  %v3429_v52 = vadd.f32 %v14267_v57, %v3387_v61  ;;  %6789 = vmatprep.subr.bf16.mxu0 %v14460_v1  ;;  %v18646_v42 = vmax.f32 %v13268_v41, %v14011_v34  ;;  %v14497_v57 = vcombine.low %v3876_v51, %v3880_v18  ;;  %v3860_v18 = vld [vmem:[%s17216_s3 + $0xcc8] sm:$0xff] }
 0x439   :  { %v3389_v8 = vpop.f32.mrf.mxu1  ;;  %18645 = vst [vmem:[#allocation193_spill] sm:$0xff] %v14488_v16  ;;  %v14506_v41 = vcombine.high %v3868_v48, %v3872_v24  ;;  %v14514_v51 = vcombine.low %v3804_v40, %v3808_v28  ;;  %v3792_v28 = vld [vmem:[%s17216_s3 + $0xaa8] sm:$0xff] }
 0x43a   :  { %v14493_v61 = vmax.f32 %v18646_v42, %v3437_v13  ;;  %v3438_v26 = vmax.f32 %v13740_v49, %v3429_v52  ;;  %6813 = vmatpush1.bf16.msra.mxu1 %v14465_v33  ;;  %18647 = vst [vmem:[#allocation194_spill] sm:$0xff] %v14497_v57  ;;  %v3800_v8 = vld [vmem:[%s17216_s3 + $0xae8] sm:$0xff]  ;;  %v18649_v49 = vmax.f32 %v13524_v31, %v14192_v59 }
 0x43b   :  { %v3390_v0 = vpop.f32.mrf.mxu1  ;;  %6814 = vmatprep.subr.bf16.mxu1 %v14474_v58  ;;  %18648 = vst [vmem:[#allocation195_spill] sm:$0xff] %v14506_v41  ;;  %6790 = vmatpush2.bf16.msra.mxu0 %v14479_v54  ;;  %18650 = vst [vmem:[#allocation196_spill] sm:$0xff] %v14514_v51  ;;  %v3864_v13 = vld [vmem:[%s17216_s3 + $0xce8] sm:$0xff]  ;;  %v14523_v52 = vcombine.high %v3796_v10, %v3800_v8  ;;  %v14526_v31 = vcombine.low %v3868_v48, %v3872_v24 }
 0x43c   :  { %v14511_v34 = vmax.f32 %v18649_v49, %v3438_v26  ;;  %6791 = vmatprep.subr.bf16.mxu0 %v14488_v16  ;;  %v3788_v59 = vld [vmem:[%s17216_s3 + $0xa88] sm:$0xff]  ;;  %v14535_v40 = vcombine.high %v3860_v18, %v3864_v13  ;;  %v14538_v42 = vcombine.low %v3796_v10, %v3800_v8  ;;  %v14550_v0 = vcombine.low %v3860_v18, %v3864_v13 }
 0x43d   :  { %18651 = vst [vmem:[#allocation197_spill] sm:$0xff] %v14523_v52  ;;  %18652 = vst [vmem:[#allocation198_spill] sm:$0xff] %v14526_v31  ;;  %v3852_v24 = vld [vmem:[%s17216_s3 + $0xc88] sm:$0xff]  ;;  %v14547_v26 = vcombine.high %v3788_v59, %v3792_v28 }
 0x43e   :  { %6815 = vmatpush1.bf16.msra.mxu1 %v14497_v57  ;;  %18653 = vst [vmem:[#allocation199_spill] sm:$0xff] %v14535_v40  ;;  %18654 = vst [vmem:[#allocation200_spill] sm:$0xff] %v14538_v42  ;;  %v3856_v48 = vld [vmem:[%s17216_s3 + $0xca8] sm:$0xff] }
 0x43f   :  { %6816 = vmatprep.subr.bf16.mxu1 %v14506_v41  ;;  %6792 = vmatpush2.bf16.msra.mxu0 %v14514_v51  ;;  %18655 = vst [vmem:[#allocation201_spill] sm:$0xff] %v14547_v26  ;;  %18656 = vst [vmem:[#allocation202_spill] sm:$0xff] %v14550_v0  ;;  %v3780_v10 = vld [vmem:[%s17216_s3 + $0xa48] sm:$0xff]  ;;  %v14559_v49 = vcombine.high %v3852_v24, %v3856_v48 }
 0x440   :  { %6793 = vmatprep.subr.bf16.mxu0 %v14523_v52  ;;  %v3784_v8 = vld [vmem:[%s17216_s3 + $0xa68] sm:$0xff]  ;;  %v14562_v52 = vcombine.low %v3788_v59, %v3792_v28 }
 0x441   :  { %18657 = vst [vmem:[#allocation203_spill] sm:$0xff] %v14559_v49  ;;  %v3844_v18 = vld [vmem:[%s17216_s3 + $0xc48] sm:$0xff] }
 0x442   :  { %6817 = vmatpush1.bf16.msra.mxu1 %v14526_v31  ;;  %18658 = vst [vmem:[#allocation204_spill] sm:$0xff] %v14562_v52  ;;  %v3848_v13 = vld [vmem:[%s17216_s3 + $0xc68] sm:$0xff]  ;;  %v14571_v31 = vcombine.high %v3780_v10, %v3784_v8 }
 0x443   :  { %6818 = vmatprep.subr.bf16.mxu1 %v14535_v40  ;;  %6794 = vmatpush2.bf16.msra.mxu0 %v14538_v42  ;;  %v14574_v40 = vcombine.low %v3852_v24, %v3856_v48  ;;  %v3772_v59 = vld [vmem:[%s17216_s3 + $0xa08] sm:$0xff]  ;;  %v14583_v42 = vcombine.high %v3844_v18, %v3848_v13 }
 0x444   :  { %6795 = vmatprep.subr.bf16.mxu0 %v14547_v26  ;;  %18659 = vst [vmem:[#allocation205_spill] sm:$0xff] %v14571_v31  ;;  %v3776_v28 = vld [vmem:[%s17216_s3 + $0xa28] sm:$0xff]  ;;  %v14586_v26 = vcombine.low %v3780_v10, %v3784_v8  ;;  %v3509_v10 = vld [vmem:[%s17216_s3 + $0x1d0] sm:$0xff] }
 0x445   :  { %18660 = vst [vmem:[#allocation206_spill] sm:$0xff] %v14574_v40  ;;  %18661 = vst [vmem:[#allocation207_spill] sm:$0xff] %v14583_v42  ;;  %v3836_v24 = vld [vmem:[%s17216_s3 + $0xc08] sm:$0xff]  ;;  %v3513_v8 = vld [vmem:[%s17216_s3 + $0x1f0] sm:$0xff] }
 0x446   :  { %6819 = vmatpush1.bf16.msra.mxu1 %v14550_v0  ;;  %18662 = vst [vmem:[#allocation208_spill] sm:$0xff] %v14586_v26  ;;  %v3840_v48 = vld [vmem:[%s17216_s3 + $0xc28] sm:$0xff]  ;;  %v14595_v0 = vcombine.high %v3772_v59, %v3776_v28 }
 0x447   :  { %6820 = vmatprep.subr.bf16.mxu1 %v14559_v49  ;;  %6796 = vmatpush2.bf16.msra.mxu0 %v14562_v52  ;;  %v14598_v49 = vcombine.low %v3844_v18, %v3848_v13  ;;  %v14607_v52 = vcombine.high %v3836_v24, %v3840_v48  ;;  %v3956_v18 = vld [vmem:[%s17216_s3 + $0xfc8] sm:$0xff] }
 0x448   :  { %6797 = vmatprep.subr.bf16.mxu0 %v14571_v31  ;;  %18663 = vst [vmem:[#allocation209_spill] sm:$0xff] %v14595_v0  ;;  %v14610_v31 = vcombine.low %v3772_v59, %v3776_v28  ;;  %v3960_v13 = vld [vmem:[%s17216_s3 + $0xfe8] sm:$0xff]  ;;  %v3501_v59 = vld [vmem:[%s17216_s3 + $0x190] sm:$0xff] }
 0x449   :  { %18664 = vst [vmem:[#allocation210_spill] sm:$0xff] %v14598_v49  ;;  %18665 = vst [vmem:[#allocation211_spill] sm:$0xff] %v14607_v52  ;;  %v3505_v28 = vld [vmem:[%s17216_s3 + $0x1b0] sm:$0xff] }
 0x44a   :  { %6821 = vmatpush1.bf16.msra.mxu1 %v14574_v40  ;;  %18666 = vst [vmem:[#allocation212_spill] sm:$0xff] %v14610_v31  ;;  %v14619_v40 = vcombine.high %v3509_v10, %v3513_v8 }
 0x44b   :  { %6822 = vmatprep.subr.bf16.mxu1 %v14583_v42  ;;  %6798 = vmatpush2.bf16.msra.mxu0 %v14586_v26  ;;  %v14622_v42 = vcombine.low %v3836_v24, %v3840_v48  ;;  %v14631_v26 = vcombine.high %v3956_v18, %v3960_v13  ;;  %v3948_v24 = vld [vmem:[%s17216_s3 + $0xf88] sm:$0xff] }
 0x44c   :  { %6799 = vmatprep.subr.bf16.mxu0 %v14595_v0  ;;  %18667 = vst [vmem:[#allocation213_spill] sm:$0xff] %v14619_v40  ;;  %v14634_v0 = vcombine.low %v3509_v10, %v3513_v8  ;;  %v3952_v48 = vld [vmem:[%s17216_s3 + $0xfa8] sm:$0xff]  ;;  %v3493_v10 = vld [vmem:[%s17216_s3 + $0x150] sm:$0xff] }
 0x44d   :  { %18668 = vst [vmem:[#allocation214_spill] sm:$0xff] %v14622_v42  ;;  %18669 = vst [vmem:[#allocation215_spill] sm:$0xff] %v14631_v26  ;;  %v3497_v8 = vld [vmem:[%s17216_s3 + $0x170] sm:$0xff] }
 0x44e   :  { %6823 = vmatpush1.bf16.msra.mxu1 %v14598_v49  ;;  %18670 = vst [vmem:[#allocation216_spill] sm:$0xff] %v14634_v0  ;;  %v14643_v49 = vcombine.high %v3501_v59, %v3505_v28 }
 0x44f   :  { %6824 = vmatprep.subr.bf16.mxu1 %v14607_v52  ;;  %6800 = vmatpush2.bf16.msra.mxu0 %v14610_v31  ;;  %v14646_v52 = vcombine.low %v3956_v18, %v3960_v13  ;;  %v14662_v18 = vcombine.low %v3501_v59, %v3505_v28  ;;  %v3940_v13 = vld [vmem:[%s17216_s3 + $0xf48] sm:$0xff]  ;;  %v3485_v59 = vld [vmem:[%s17216_s3 + $0x110] sm:$0xff] }
 0x450   :  { %6851 = vmatprep.subr.bf16.mxu0 %v14619_v40  ;;  %18671 = vst [vmem:[#allocation217_spill] sm:$0xff] %v14643_v49  ;;  %v14658_v40 = vcombine.high %v3948_v24, %v3952_v48  ;;  %v3489_v28 = vld [vmem:[%s17216_s3 + $0x130] sm:$0xff] }
 0x451   :  { %18672 = vst [vmem:[#allocation218_spill] sm:$0xff] %v14646_v52  ;;  %18674 = vst [vmem:[#allocation220_spill] sm:$0xff] %v14662_v18 }
 0x452   :  { %6825 = vmatpush1.bf16.msra.mxu1 %v14622_v42  ;;  %v14654_v31 = vpop.f32.mrf.mxu0  ;;  %6802 = vmatmul.mubr.bf16.vlgmr.msra.gmra.mxu0 %v13816_v53  ;;  %18673 = vst [vmem:[#allocation219_spill] sm:$0xff] %v14658_v40  ;;  %v3944_v42 = vld [vmem:[%s17216_s3 + $0xf68] sm:$0xff] }
 0x453   :  { %6826 = vmatprep.subr.bf16.mxu1 %v14631_v26  ;;  %6852 = vmatpush1.bf16.msra.mxu0 %v14634_v0  ;;  %v14673_v26 = vcombine.high %v3493_v10, %v3497_v8  ;;  %v14676_v0 = vcombine.low %v3948_v24, %v3952_v48  ;;  %v14685_v57 = vcombine.high %v3940_v13, %v3944_v42  ;;  %v3932_v24 = vld [vmem:[%s17216_s3 + $0xf08] sm:$0xff] }
 0x454   :  { %6883 = vmatprep.mubr.bf16.mxu0 %v13031_v27  ;;  %v14670_v51 = vpop.f32.mrf.mxu0  ;;  %6853 = vmatprep.subr.bf16.mxu0 %v14643_v49  ;;  %v14688_v49 = vcombine.low %v3493_v10, %v3497_v8  ;;  %v3936_v48 = vld [vmem:[%s17216_s3 + $0xf28] sm:$0xff]  ;;  %v3477_v10 = vld [vmem:[%s17216_s3 + $0xd0] sm:$0xff] }
 0x455   :  { %18675 = vst [vmem:[#allocation221_spill] sm:$0xff] %v14673_v26  ;;  %18676 = vst [vmem:[#allocation222_spill] sm:$0xff] %v14676_v0  ;;  %v3481_v8 = vld [vmem:[%s17216_s3 + $0xf0] sm:$0xff] }
 0x456   :  { %6827 = vmatpush2.bf16.msra.mxu1 %v14646_v52  ;;  %v6561_v41 = vpop.f32.mrf.mxu0  ;;  %18677 = vst [vmem:[#allocation223_spill] sm:$0xff] %v14685_v57  ;;  %18678 = vst [vmem:[#allocation224_spill] sm:$0xff] %v14688_v49 }
 0x457   :  { %6828 = vmatprep.subr.bf16.mxu1 %v14658_v40  ;;  %6854 = vmatpush1.bf16.msra.mxu0 %v14662_v18  ;;  %v14697_v41 = vcombine.high %v3485_v59, %v3489_v28  ;;  %v14700_v40 = vcombine.low %v3940_v13, %v3944_v42  ;;  %v14709_v18 = vcombine.high %v3932_v24, %v3936_v48  ;;  %v3924_v42 = vld [vmem:[%s17216_s3 + $0xec8] sm:$0xff] }
 0x458   :  { %v6562_v52 = vpop.f32.mrf.mxu0  ;;  %6855 = vmatprep.subr.bf16.mxu0 %v14673_v26  ;;  %v3928_v13 = vld [vmem:[%s17216_s3 + $0xee8] sm:$0xff] }
 0x459   :  { %18679 = vst [vmem:[#allocation225_spill] sm:$0xff] %v14697_v41  ;;  %18680 = vst [vmem:[#allocation226_spill] sm:$0xff] %v14700_v40  ;;  %v14712_v52 = vcombine.low %v3485_v59, %v3489_v28  ;;  %v3469_v59 = vld [vmem:[%s17216_s3 + $0x90] sm:$0xff] }
 0x45a   :  { %6829 = vmatpush2.bf16.msra.mxu1 %v14676_v0  ;;  %18681 = vst [vmem:[#allocation227_spill] sm:$0xff] %v14709_v18  ;;  %v14721_v0 = vcombine.high %v3477_v10, %v3481_v8  ;;  %v3473_v28 = vld [vmem:[%s17216_s3 + $0xb0] sm:$0xff] }
 0x45b   :  { %6830 = vmatprep.subr.bf16.mxu1 %v14685_v57  ;;  %6856 = vmatpush1.bf16.msra.mxu0 %v14688_v49  ;;  %18682 = vst [vmem:[#allocation228_spill] sm:$0xff] %v14712_v52  ;;  %v14724_v57 = vcombine.low %v3932_v24, %v3936_v48  ;;  %v14733_v49 = vcombine.high %v3924_v42, %v3928_v13  ;;  %v3916_v24 = vld [vmem:[%s17216_s3 + $0xe88] sm:$0xff] }
 0x45c   :  { %6857 = vmatprep.subr.bf16.mxu0 %v14697_v41  ;;  %18683 = vst [vmem:[#allocation229_spill] sm:$0xff] %v14721_v0  ;;  %v14736_v41 = vcombine.low %v3477_v10, %v3481_v8  ;;  %v3920_v48 = vld [vmem:[%s17216_s3 + $0xea8] sm:$0xff]  ;;  %v3461_v10 = vld [vmem:[%s17216_s3 + $0x50] sm:$0xff] }
 0x45d   :  { %18684 = vst [vmem:[#allocation230_spill] sm:$0xff] %v14724_v57  ;;  %18685 = vst [vmem:[#allocation231_spill] sm:$0xff] %v14733_v49  ;;  %v3465_v8 = vld [vmem:[%s17216_s3 + $0x70] sm:$0xff] }
 0x45e   :  { %6831 = vmatpush2.bf16.msra.mxu1 %v14700_v40  ;;  %18686 = vst [vmem:[#allocation232_spill] sm:$0xff] %v14736_v41  ;;  %v14745_v40 = vcombine.high %v3469_v59, %v3473_v28 }
 0x45f   :  { %6832 = vmatprep.subr.bf16.mxu1 %v14709_v18  ;;  %6858 = vmatpush1.bf16.msra.mxu0 %v14712_v52  ;;  %v14748_v18 = vcombine.low %v3924_v42, %v3928_v13  ;;  %v14757_v52 = vcombine.high %v3916_v24, %v3920_v48  ;;  %v3908_v42 = vld [vmem:[%s17216_s3 + $0xe48] sm:$0xff] }
 0x460   :  { %6859 = vmatprep.subr.bf16.mxu0 %v14721_v0  ;;  %18687 = vst [vmem:[#allocation233_spill] sm:$0xff] %v14745_v40  ;;  %v14760_v0 = vcombine.low %v3469_v59, %v3473_v28  ;;  %v3912_v13 = vld [vmem:[%s17216_s3 + $0xe68] sm:$0xff]  ;;  %v3453_v59 = vld [vmem:[%s17216_s3 + $0x10] sm:$0xff] }
 0x461   :  { %18688 = vst [vmem:[#allocation234_spill] sm:$0xff] %v14748_v18  ;;  %18689 = vst [vmem:[#allocation235_spill] sm:$0xff] %v14757_v52  ;;  %v3457_v28 = vld [vmem:[%s17216_s3 + $0x30] sm:$0xff] }
 0x462   :  { %6833 = vmatpush2.bf16.msra.mxu1 %v14724_v57  ;;  %18690 = vst [vmem:[#allocation236_spill] sm:$0xff] %v14760_v0  ;;  %v14769_v57 = vcombine.high %v3461_v10, %v3465_v8 }
 0x463   :  { %6834 = vmatprep.subr.bf16.mxu1 %v14733_v49  ;;  %6860 = vmatpush1.bf16.msra.mxu0 %v14736_v41  ;;  %v14772_v49 = vcombine.low %v3916_v24, %v3920_v48  ;;  %v14781_v41 = vcombine.high %v3908_v42, %v3912_v13  ;;  %v3900_v24 = vld [vmem:[%s17216_s3 + $0xe08] sm:$0xff] }
 0x464   :  { %6861 = vmatprep.subr.bf16.mxu0 %v14745_v40  ;;  %18691 = vst [vmem:[#allocation237_spill] sm:$0xff] %v14769_v57  ;;  %v14784_v40 = vcombine.low %v3461_v10, %v3465_v8  ;;  %v3904_v48 = vld [vmem:[%s17216_s3 + $0xe28] sm:$0xff]  ;;  %v3573_v10 = vld [vmem:[%s17216_s3 + $0x3d0] sm:$0xff] }
 0x465   :  { %18692 = vst [vmem:[#allocation238_spill] sm:$0xff] %v14772_v49  ;;  %18693 = vst [vmem:[#allocation239_spill] sm:$0xff] %v14781_v41  ;;  %v3577_v8 = vld [vmem:[%s17216_s3 + $0x3f0] sm:$0xff] }
 0x466   :  { %6835 = vmatpush2.bf16.msra.mxu1 %v14748_v18  ;;  %18694 = vst [vmem:[#allocation240_spill] sm:$0xff] %v14784_v40  ;;  %v14793_v18 = vcombine.high %v3453_v59, %v3457_v28 }
 0x467   :  { %6836 = vmatprep.subr.bf16.mxu1 %v14757_v52  ;;  %6862 = vmatpush1.bf16.msra.mxu0 %v14760_v0  ;;  %v14796_v52 = vcombine.low %v3908_v42, %v3912_v13  ;;  %v14805_v0 = vcombine.high %v3900_v24, %v3904_v48  ;;  %v3637_v42 = vld [vmem:[%s17216_s3 + $0x5d0] sm:$0xff] }
 0x468   :  { %6863 = vmatprep.subr.bf16.mxu0 %v14769_v57  ;;  %18695 = vst [vmem:[#allocation241_spill] sm:$0xff] %v14793_v18  ;;  %v14808_v57 = vcombine.low %v3453_v59, %v3457_v28  ;;  %v3641_v13 = vld [vmem:[%s17216_s3 + $0x5f0] sm:$0xff] }
 0x469   :  { %18696 = vst [vmem:[#allocation242_spill] sm:$0xff] %v14796_v52  ;;  %18697 = vst [vmem:[#allocation243_spill] sm:$0xff] %v14805_v0  ;;  %v3565_v59 = vld [vmem:[%s17216_s3 + $0x390] sm:$0xff] }
 0x46a   :  { %6837 = vmatpush2.bf16.msra.mxu1 %v14772_v49  ;;  %18698 = vst [vmem:[#allocation244_spill] sm:$0xff] %v14808_v57  ;;  %v14817_v49 = vcombine.high %v3573_v10, %v3577_v8  ;;  %v3569_v28 = vld [vmem:[%s17216_s3 + $0x3b0] sm:$0xff] }
 0x46b   :  { %6838 = vmatprep.subr.bf16.mxu1 %v14781_v41  ;;  %6864 = vmatpush1.bf16.msra.mxu0 %v14784_v40  ;;  %v14820_v41 = vcombine.low %v3900_v24, %v3904_v48  ;;  %v14829_v40 = vcombine.high %v3637_v42, %v3641_v13  ;;  %v3629_v24 = vld [vmem:[%s17216_s3 + $0x590] sm:$0xff] }
 0x46c   :  { %6865 = vmatprep.subr.bf16.mxu0 %v14793_v18  ;;  %18699 = vst [vmem:[#allocation245_spill] sm:$0xff] %v14817_v49  ;;  %v14832_v18 = vcombine.low %v3573_v10, %v3577_v8  ;;  %v3633_v48 = vld [vmem:[%s17216_s3 + $0x5b0] sm:$0xff] }
 0x46d   :  { %18700 = vst [vmem:[#allocation246_spill] sm:$0xff] %v14820_v41  ;;  %18701 = vst [vmem:[#allocation247_spill] sm:$0xff] %v14829_v40  ;;  %v3557_v10 = vld [vmem:[%s17216_s3 + $0x350] sm:$0xff] }
 0x46e   :  { %6839 = vmatpush2.bf16.msra.mxu1 %v14796_v52  ;;  %18702 = vst [vmem:[#allocation248_spill] sm:$0xff] %v14832_v18  ;;  %v14841_v52 = vcombine.high %v3565_v59, %v3569_v28  ;;  %v3561_v8 = vld [vmem:[%s17216_s3 + $0x370] sm:$0xff] }
 0x46f   :  { %6840 = vmatprep.subr.bf16.mxu1 %v14805_v0  ;;  %6866 = vmatpush1.bf16.msra.mxu0 %v14808_v57  ;;  %v14844_v0 = vcombine.low %v3637_v42, %v3641_v13  ;;  %v14853_v57 = vcombine.high %v3629_v24, %v3633_v48  ;;  %v3621_v42 = vld [vmem:[%s17216_s3 + $0x550] sm:$0xff] }
 0x470   :  { %6867 = vmatprep.subr.bf16.mxu0 %v14817_v49  ;;  %18703 = vst [vmem:[#allocation249_spill] sm:$0xff] %v14841_v52  ;;  %v14856_v49 = vcombine.low %v3565_v59, %v3569_v28  ;;  %v3625_v13 = vld [vmem:[%s17216_s3 + $0x570] sm:$0xff]  ;;  %v14873_v59 = vcombine.low %v3629_v24, %v3633_v48 }
 0x471   :  { %18704 = vst [vmem:[#allocation250_spill] sm:$0xff] %v14844_v0  ;;  %18705 = vst [vmem:[#allocation251_spill] sm:$0xff] %v14853_v57  ;;  %v3549_v28 = vld [vmem:[%s17216_s3 + $0x310] sm:$0xff]  ;;  %v14882_v16 = vcombine.high %v3621_v42, %v3625_v13 }
 0x472   :  { %6841 = vmatpush2.bf16.msra.mxu1 %v14820_v41  ;;  %18706 = vst [vmem:[#allocation252_spill] sm:$0xff] %v14856_v49  ;;  %18708 = vst [vmem:[#allocation254_spill] sm:$0xff] %v14873_v59  ;;  %v3613_v24 = vld [vmem:[%s17216_s3 + $0x510] sm:$0xff] }
 0x473   :  { %6892 = vmatprep.subr.bf16.mxu1 %v14829_v40  ;;  %6868 = vmatpush2.bf16.msra.mxu0 %v14832_v18  ;;  %v14866_v40 = vcombine.high %v3557_v10, %v3561_v8  ;;  %v3553_v18 = vld [vmem:[%s17216_s3 + $0x330] sm:$0xff]  ;;  %18709 = vst [vmem:[#allocation255_spill] sm:$0xff] %v14882_v16 }
 0x474   :  { %6869 = vmatprep.subr.bf16.mxu0 %v14841_v52  ;;  %v3617_v48 = vld [vmem:[%s17216_s3 + $0x530] sm:$0xff] }
 0x475   :  { %v6598_v41 = vpop.f32.mrf.mxu1  ;;  %6843 = vmatmul.mubr.bf16.vlgmr.msra.gmra.mxu1 %v14036_v46  ;;  %18707 = vst [vmem:[#allocation253_spill] sm:$0xff] %v14866_v40 }
 0x476   :  { %v14869_v26 = vadd.f32 %v6598_v41, %v14654_v31  ;;  %6893 = vmatpush1.bf16.msra.mxu1 %v14844_v0  ;;  %6924 = vmatprep.mubr.bf16.mxu1 %v13200_v15  ;;  %v14888_v41 = vcombine.low %v3557_v10, %v3561_v8  ;;  %v3545_v10 = vld [vmem:[%s17216_s3 + $0x2f0] sm:$0xff] }
 0x477   :  { %v6600_v52 = vpop.f32.mrf.mxu1  ;;  %6894 = vmatprep.subr.bf16.mxu1 %v14853_v57  ;;  %6870 = vmatpush2.bf16.msra.mxu0 %v14856_v49  ;;  %v14897_v57 = vcombine.high %v3549_v28, %v3553_v18 }
 0x478   :  { %v14885_v31 = vadd.f32 %v6600_v52, %v14670_v51  ;;  %18710 = vst [vmem:[#allocation256_spill] sm:$0xff] %v14888_v41  ;;  %6871 = vmatprep.subr.bf16.mxu0 %v14866_v40  ;;  %v14900_v51 = vcombine.low %v3621_v42, %v3625_v13  ;;  %v3541_v52 = vld [vmem:[%s17216_s3 + $0x2d0] sm:$0xff]  ;;  %v14912_v40 = vcombine.low %v3549_v28, %v3553_v18 }
 0x479   :  { %v6602_v0 = vpop.f32.mrf.mxu1  ;;  %18711 = vst [vmem:[#allocation257_spill] sm:$0xff] %v14897_v57  ;;  %v3605_v42 = vld [vmem:[%s17216_s3 + $0x4d0] sm:$0xff] }
 0x47a   :  { %6895 = vmatpush1.bf16.msra.mxu1 %v14873_v59  ;;  %18712 = vst [vmem:[#allocation258_spill] sm:$0xff] %v14900_v51  ;;  %v14909_v0 = vcombine.high %v3613_v24, %v3617_v48  ;;  %18714 = vst [vmem:[#allocation260_spill] sm:$0xff] %v14912_v40  ;;  %v3609_v13 = vld [vmem:[%s17216_s3 + $0x4f0] sm:$0xff]  ;;  %v14921_v59 = vcombine.high %v3541_v52, %v3545_v10 }
 0x47b   :  { %v6603_v8 = vpop.f32.mrf.mxu1  ;;  %6896 = vmatprep.subr.bf16.mxu1 %v14882_v16  ;;  %6872 = vmatpush2.bf16.msra.mxu0 %v14888_v41  ;;  %v3533_v18 = vld [vmem:[%s17216_s3 + $0x290] sm:$0xff]  ;;  %v14933_v41 = vcombine.high %v3605_v42, %v3609_v13 }
 0x47c   :  { %18713 = vst [vmem:[#allocation259_spill] sm:$0xff] %v14909_v0  ;;  %6873 = vmatprep.subr.bf16.mxu0 %v14897_v57  ;;  %18715 = vst [vmem:[#allocation261_spill] sm:$0xff] %v14921_v59  ;;  %v14924_v8 = vcombine.low %v3613_v24, %v3617_v48  ;;  %v3537_v28 = vld [vmem:[%s17216_s3 + $0x2b0] sm:$0xff]  ;;  %v14936_v57 = vcombine.low %v3541_v52, %v3545_v10 }
 0x47d   :  { %18717 = vst [vmem:[#allocation263_spill] sm:$0xff] %v14933_v41  ;;  %v3597_v24 = vld [vmem:[%s17216_s3 + $0x490] sm:$0xff] }
 0x47e   :  { %6897 = vmatpush1.bf16.msra.mxu1 %v14900_v51  ;;  %18716 = vst [vmem:[#allocation262_spill] sm:$0xff] %v14924_v8  ;;  %18718 = vst [vmem:[#allocation264_spill] sm:$0xff] %v14936_v57  ;;  %v3601_v48 = vld [vmem:[%s17216_s3 + $0x4b0] sm:$0xff]  ;;  %v14945_v51 = vcombine.high %v3533_v18, %v3537_v28 }
 0x47f   :  { %6898 = vmatprep.subr.bf16.mxu1 %v14909_v0  ;;  %6874 = vmatpush2.bf16.msra.mxu0 %v14912_v40  ;;  %v14948_v0 = vcombine.low %v3605_v42, %v3609_v13  ;;  %v3525_v52 = vld [vmem:[%s17216_s3 + $0x250] sm:$0xff]  ;;  %v14957_v40 = vcombine.high %v3597_v24, %v3601_v48 }
 0x480   :  { %6875 = vmatprep.subr.bf16.mxu0 %v14921_v59  ;;  %18719 = vst [vmem:[#allocation265_spill] sm:$0xff] %v14945_v51  ;;  %v3529_v10 = vld [vmem:[%s17216_s3 + $0x270] sm:$0xff]  ;;  %v14960_v59 = vcombine.low %v3533_v18, %v3537_v28 }
 0x481   :  { %18720 = vst [vmem:[#allocation266_spill] sm:$0xff] %v14948_v0  ;;  %18721 = vst [vmem:[#allocation267_spill] sm:$0xff] %v14957_v40  ;;  %v3589_v42 = vld [vmem:[%s17216_s3 + $0x450] sm:$0xff] }
 0x482   :  { %6899 = vmatpush1.bf16.msra.mxu1 %v14924_v8  ;;  %18722 = vst [vmem:[#allocation268_spill] sm:$0xff] %v14960_v59  ;;  %v3593_v13 = vld [vmem:[%s17216_s3 + $0x470] sm:$0xff]  ;;  %v14969_v8 = vcombine.high %v3525_v52, %v3529_v10 }
 0x483   :  { %6900 = vmatprep.subr.bf16.mxu1 %v14933_v41  ;;  %6876 = vmatpush2.bf16.msra.mxu0 %v14936_v57  ;;  %v14972_v41 = vcombine.low %v3597_v24, %v3601_v48  ;;  %v3517_v18 = vld [vmem:[%s17216_s3 + $0x210] sm:$0xff]  ;;  %v14981_v57 = vcombine.high %v3589_v42, %v3593_v13 }
 0x484   :  { %6877 = vmatprep.subr.bf16.mxu0 %v14945_v51  ;;  %18723 = vst [vmem:[#allocation269_spill] sm:$0xff] %v14969_v8  ;;  %v3521_v28 = vld [vmem:[%s17216_s3 + $0x230] sm:$0xff]  ;;  %v14984_v51 = vcombine.low %v3525_v52, %v3529_v10 }
 0x485   :  { %18724 = vst [vmem:[#allocation270_spill] sm:$0xff] %v14972_v41  ;;  %18725 = vst [vmem:[#allocation271_spill] sm:$0xff] %v14981_v57  ;;  %v3581_v24 = vld [vmem:[%s17216_s3 + $0x410] sm:$0xff] }
 0x486   :  { %6901 = vmatpush1.bf16.msra.mxu1 %v14948_v0  ;;  %18726 = vst [vmem:[#allocation272_spill] sm:$0xff] %v14984_v51  ;;  %v3585_v48 = vld [vmem:[%s17216_s3 + $0x430] sm:$0xff]  ;;  %v14993_v0 = vcombine.high %v3517_v18, %v3521_v28 }
 0x487   :  { %6902 = vmatprep.subr.bf16.mxu1 %v14957_v40  ;;  %6878 = vmatpush2.bf16.msra.mxu0 %v14960_v59  ;;  %v14996_v40 = vcombine.low %v3589_v42, %v3593_v13  ;;  %v3765_v52 = vld [vmem:[%s17216_s3 + $0x9d0] sm:$0xff]  ;;  %v15005_v59 = vcombine.high %v3581_v24, %v3585_v48 }
 0x488   :  { %6879 = vmatprep.subr.bf16.mxu0 %v14969_v8  ;;  %18727 = vst [vmem:[#allocation273_spill] sm:$0xff] %v14993_v0  ;;  %v3769_v10 = vld [vmem:[%s17216_s3 + $0x9f0] sm:$0xff]  ;;  %v15008_v8 = vcombine.low %v3517_v18, %v3521_v28 }
 0x489   :  { %18728 = vst [vmem:[#allocation274_spill] sm:$0xff] %v14996_v40  ;;  %18729 = vst [vmem:[#allocation275_spill] sm:$0xff] %v15005_v59  ;;  %v3701_v42 = vld [vmem:[%s17216_s3 + $0x7d0] sm:$0xff] }
 0x48a   :  { %6903 = vmatpush1.bf16.msra.mxu1 %v14972_v41  ;;  %18730 = vst [vmem:[#allocation276_spill] sm:$0xff] %v15008_v8  ;;  %v3705_v13 = vld [vmem:[%s17216_s3 + $0x7f0] sm:$0xff]  ;;  %v15017_v41 = vcombine.high %v3765_v52, %v3769_v10 }
 0x48b   :  { %6904 = vmatprep.subr.bf16.mxu1 %v14981_v57  ;;  %6880 = vmatpush2.bf16.msra.mxu0 %v14984_v51  ;;  %v15020_v57 = vcombine.low %v3581_v24, %v3585_v48  ;;  %v3757_v18 = vld [vmem:[%s17216_s3 + $0x990] sm:$0xff]  ;;  %v15029_v51 = vcombine.high %v3701_v42, %v3705_v13 }
 0x48c   :  { %6881 = vmatprep.subr.bf16.mxu0 %v14993_v0  ;;  %18731 = vst [vmem:[#allocation277_spill] sm:$0xff] %v15017_v41  ;;  %v3761_v28 = vld [vmem:[%s17216_s3 + $0x9b0] sm:$0xff]  ;;  %v15032_v0 = vcombine.low %v3765_v52, %v3769_v10 }
 0x48d   :  { %18732 = vst [vmem:[#allocation278_spill] sm:$0xff] %v15020_v57  ;;  %18733 = vst [vmem:[#allocation279_spill] sm:$0xff] %v15029_v51  ;;  %v3693_v24 = vld [vmem:[%s17216_s3 + $0x790] sm:$0xff] }
 0x48e   :  { %6905 = vmatpush1.bf16.msra.mxu1 %v14996_v40  ;;  %18734 = vst [vmem:[#allocation280_spill] sm:$0xff] %v15032_v0  ;;  %v3697_v48 = vld [vmem:[%s17216_s3 + $0x7b0] sm:$0xff]  ;;  %v15041_v40 = vcombine.high %v3757_v18, %v3761_v28 }
 0x48f   :  { %6906 = vmatprep.subr.bf16.mxu1 %v15005_v59  ;;  %6882 = vmatpush2.bf16.msra.mxu0 %v15008_v8  ;;  %v15044_v59 = vcombine.low %v3701_v42, %v3705_v13  ;;  %v3749_v52 = vld [vmem:[%s17216_s3 + $0x950] sm:$0xff]  ;;  %v15061_v42 = vcombine.low %v3757_v18, %v3761_v28 }
 0x490   :  { %6933 = vmatprep.subr.bf16.mxu0 %v15017_v41  ;;  %18735 = vst [vmem:[#allocation281_spill] sm:$0xff] %v15041_v40  ;;  %v3753_v10 = vld [vmem:[%s17216_s3 + $0x970] sm:$0xff]  ;;  %v15054_v41 = vcombine.high %v3693_v24, %v3697_v48 }
 0x491   :  { %18736 = vst [vmem:[#allocation282_spill] sm:$0xff] %v15044_v59  ;;  %18738 = vst [vmem:[#allocation284_spill] sm:$0xff] %v15061_v42  ;;  %v3685_v13 = vld [vmem:[%s17216_s3 + $0x750] sm:$0xff]  ;;  %v15070_v49 = vcombine.high %v3749_v52, %v3753_v10 }
 0x492   :  { %6907 = vmatpush1.bf16.msra.mxu1 %v15020_v57  ;;  %v6639_v8 = vpop.f32.mrf.mxu0  ;;  %6884 = vmatmul.mubr.bf16.vlgmr.msra.gmra.mxu0 %v13394_v14  ;;  %18737 = vst [vmem:[#allocation283_spill] sm:$0xff] %v15054_v41  ;;  %v3689_v57 = vld [vmem:[%s17216_s3 + $0x770] sm:$0xff] }
 0x493   :  { %6908 = vmatprep.subr.bf16.mxu1 %v15029_v51  ;;  %v15057_v16 = vadd.f32 %v6639_v8, %v14869_v26  ;;  %6934 = vmatpush1.bf16.msra.mxu0 %v15032_v0  ;;  %18739 = vst [vmem:[#allocation285_spill] sm:$0xff] %v15070_v49  ;;  %v15076_v8 = vcombine.low %v3693_v24, %v3697_v48  ;;  %v3741_v18 = vld [vmem:[%s17216_s3 + $0x910] sm:$0xff] }
 0x494   :  { %6965 = vmatprep.mubr.bf16.mxu0 %v13399_v35  ;;  %v6641_v51 = vpop.f32.mrf.mxu0  ;;  %6935 = vmatprep.subr.bf16.mxu0 %v15041_v40  ;;  %v3745_v28 = vld [vmem:[%s17216_s3 + $0x930] sm:$0xff]  ;;  %v15085_v40 = vcombine.high %v3685_v13, %v3689_v57  ;;  %v15100_v48 = vcombine.low %v3685_v13, %v3689_v57 }
 0x495   :  { %v15074_v26 = vadd.f32 %v6641_v51, %v14885_v31  ;;  %18740 = vst [vmem:[#allocation286_spill] sm:$0xff] %v15076_v8  ;;  %v3677_v31 = vld [vmem:[%s17216_s3 + $0x710] sm:$0xff] }
 0x496   :  { %6909 = vmatpush2.bf16.msra.mxu1 %v15044_v59  ;;  %v6643_v0 = vpop.f32.mrf.mxu0  ;;  %18741 = vst [vmem:[#allocation287_spill] sm:$0xff] %v15085_v40  ;;  %v15088_v59 = vcombine.low %v3749_v52, %v3753_v10  ;;  %v3681_v51 = vld [vmem:[%s17216_s3 + $0x730] sm:$0xff]  ;;  %18744 = vst [vmem:[#allocation290_spill] sm:$0xff] %v15100_v48 }
 0x497   :  { %6910 = vmatprep.subr.bf16.mxu1 %v15054_v41  ;;  %6936 = vmatpush1.bf16.msra.mxu0 %v15061_v42  ;;  %v15097_v0 = vcombine.high %v3741_v18, %v3745_v28  ;;  %v3733_v52 = vld [vmem:[%s17216_s3 + $0x8d0] sm:$0xff]  ;;  %v15109_v42 = vcombine.high %v3677_v31, %v3681_v51 }
 0x498   :  { %18742 = vst [vmem:[#allocation288_spill] sm:$0xff] %v15088_v59  ;;  %v6644_v24 = vpop.f32.mrf.mxu0  ;;  %6937 = vmatprep.subr.bf16.mxu0 %v15070_v49  ;;  %v3737_v10 = vld [vmem:[%s17216_s3 + $0x8f0] sm:$0xff] }
 0x499   :  { %18743 = vst [vmem:[#allocation289_spill] sm:$0xff] %v15097_v0  ;;  %18745 = vst [vmem:[#allocation291_spill] sm:$0xff] %v15109_v42  ;;  %v15112_v24 = vcombine.low %v3741_v18, %v3745_v28  ;;  %v3669_v57 = vld [vmem:[%s17216_s3 + $0x6d0] sm:$0xff] }
 0x49a   :  { %6911 = vmatpush2.bf16.msra.mxu1 %v15076_v8  ;;  %v3673_v13 = vld [vmem:[%s17216_s3 + $0x6f0] sm:$0xff]  ;;  %v15121_v8 = vcombine.high %v3733_v52, %v3737_v10 }
 0x49b   :  { %6912 = vmatprep.subr.bf16.mxu1 %v15085_v40  ;;  %6938 = vmatpush1.bf16.msra.mxu0 %v15088_v59  ;;  %18746 = vst [vmem:[#allocation292_spill] sm:$0xff] %v15112_v24  ;;  %v15124_v40 = vcombine.low %v3677_v31, %v3681_v51  ;;  %v3725_v18 = vld [vmem:[%s17216_s3 + $0x890] sm:$0xff]  ;;  %v15133_v59 = vcombine.high %v3669_v57, %v3673_v13 }
 0x49c   :  { %6939 = vmatprep.subr.bf16.mxu0 %v15097_v0  ;;  %18747 = vst [vmem:[#allocation293_spill] sm:$0xff] %v15121_v8  ;;  %v3729_v28 = vld [vmem:[%s17216_s3 + $0x8b0] sm:$0xff]  ;;  %v15136_v0 = vcombine.low %v3733_v52, %v3737_v10 }
 0x49d   :  { %18748 = vst [vmem:[#allocation294_spill] sm:$0xff] %v15124_v40  ;;  %18749 = vst [vmem:[#allocation295_spill] sm:$0xff] %v15133_v59  ;;  %v3661_v31 = vld [vmem:[%s17216_s3 + $0x690] sm:$0xff] }
 0x49e   :  { %6913 = vmatpush2.bf16.msra.mxu1 %v15100_v48  ;;  %18750 = vst [vmem:[#allocation296_spill] sm:$0xff] %v15136_v0  ;;  %v3665_v51 = vld [vmem:[%s17216_s3 + $0x6b0] sm:$0xff]  ;;  %v15145_v48 = vcombine.high %v3725_v18, %v3729_v28 }
 0x49f   :  { %6914 = vmatprep.subr.bf16.mxu1 %v15109_v42  ;;  %6940 = vmatpush1.bf16.msra.mxu0 %v15112_v24  ;;  %v15148_v42 = vcombine.low %v3669_v57, %v3673_v13  ;;  %v3717_v52 = vld [vmem:[%s17216_s3 + $0x850] sm:$0xff]  ;;  %v15157_v24 = vcombine.high %v3661_v31, %v3665_v51 }
 0x4a0   :  { %6941 = vmatprep.subr.bf16.mxu0 %v15121_v8  ;;  %18751 = vst [vmem:[#allocation297_spill] sm:$0xff] %v15145_v48  ;;  %v3721_v10 = vld [vmem:[%s17216_s3 + $0x870] sm:$0xff]  ;;  %v15160_v8 = vcombine.low %v3725_v18, %v3729_v28 }
 0x4a1   :  { %18752 = vst [vmem:[#allocation298_spill] sm:$0xff] %v15148_v42  ;;  %18753 = vst [vmem:[#allocation299_spill] sm:$0xff] %v15157_v24  ;;  %v3653_v57 = vld [vmem:[%s17216_s3 + $0x650] sm:$0xff] }
 0x4a2   :  { %6915 = vmatpush2.bf16.msra.mxu1 %v15124_v40  ;;  %18754 = vst [vmem:[#allocation300_spill] sm:$0xff] %v15160_v8  ;;  %v3657_v13 = vld [vmem:[%s17216_s3 + $0x670] sm:$0xff]  ;;  %v15169_v40 = vcombine.high %v3717_v52, %v3721_v10 }
 0x4a3   :  { %6916 = vmatprep.subr.bf16.mxu1 %v15133_v59  ;;  %6942 = vmatpush1.bf16.msra.mxu0 %v15136_v0  ;;  %v15172_v59 = vcombine.low %v3661_v31, %v3665_v51  ;;  %v3709_v18 = vld [vmem:[%s17216_s3 + $0x810] sm:$0xff]  ;;  %v15181_v0 = vcombine.high %v3653_v57, %v3657_v13 }
 0x4a4   :  { %6943 = vmatprep.subr.bf16.mxu0 %v15145_v48  ;;  %18755 = vst [vmem:[#allocation301_spill] sm:$0xff] %v15169_v40  ;;  %v3713_v28 = vld [vmem:[%s17216_s3 + $0x830] sm:$0xff]  ;;  %v15184_v48 = vcombine.low %v3717_v52, %v3721_v10 }
 0x4a5   :  { %18756 = vst [vmem:[#allocation302_spill] sm:$0xff] %v15172_v59  ;;  %18757 = vst [vmem:[#allocation303_spill] sm:$0xff] %v15181_v0  ;;  %v3645_v31 = vld [vmem:[%s17216_s3 + $0x610] sm:$0xff] }
 0x4a6   :  { %6917 = vmatpush2.bf16.msra.mxu1 %v15148_v42  ;;  %18758 = vst [vmem:[#allocation304_spill] sm:$0xff] %v15184_v48  ;;  %v3649_v51 = vld [vmem:[%s17216_s3 + $0x630] sm:$0xff]  ;;  %v15193_v42 = vcombine.high %v3709_v18, %v3713_v28 }
 0x4a7   :  { %6918 = vmatprep.subr.bf16.mxu1 %v15157_v24  ;;  %6944 = vmatpush1.bf16.msra.mxu0 %v15160_v8  ;;  %v15196_v24 = vcombine.low %v3653_v57, %v3657_v13  ;;  %v3829_v52 = vld [vmem:[%s17216_s3 + $0xbd0] sm:$0xff]  ;;  %v15205_v8 = vcombine.high %v3645_v31, %v3649_v51 }
 0x4a8   :  { %6945 = vmatprep.subr.bf16.mxu0 %v15169_v40  ;;  %18759 = vst [vmem:[#allocation305_spill] sm:$0xff] %v15193_v42  ;;  %v3833_v10 = vld [vmem:[%s17216_s3 + $0xbf0] sm:$0xff]  ;;  %v15208_v40 = vcombine.low %v3709_v18, %v3713_v28 }
 0x4a9   :  { %18760 = vst [vmem:[#allocation306_spill] sm:$0xff] %v15196_v24  ;;  %18761 = vst [vmem:[#allocation307_spill] sm:$0xff] %v15205_v8  ;;  %v3893_v57 = vld [vmem:[%s17216_s3 + $0xdd0] sm:$0xff] }
 0x4aa   :  { %6919 = vmatpush2.bf16.msra.mxu1 %v15172_v59  ;;  %18762 = vst [vmem:[#allocation308_spill] sm:$0xff] %v15208_v40  ;;  %v3897_v13 = vld [vmem:[%s17216_s3 + $0xdf0] sm:$0xff]  ;;  %v15217_v59 = vcombine.high %v3829_v52, %v3833_v10 }
 0x4ab   :  { %6920 = vmatprep.subr.bf16.mxu1 %v15181_v0  ;;  %6946 = vmatpush1.bf16.msra.mxu0 %v15184_v48  ;;  %v15220_v0 = vcombine.low %v3645_v31, %v3649_v51  ;;  %v3821_v18 = vld [vmem:[%s17216_s3 + $0xb90] sm:$0xff]  ;;  %v15229_v48 = vcombine.high %v3893_v57, %v3897_v13 }
 0x4ac   :  { %6947 = vmatprep.subr.bf16.mxu0 %v15193_v42  ;;  %18763 = vst [vmem:[#allocation309_spill] sm:$0xff] %v15217_v59  ;;  %v3825_v28 = vld [vmem:[%s17216_s3 + $0xbb0] sm:$0xff]  ;;  %v15232_v42 = vcombine.low %v3829_v52, %v3833_v10 }
 0x4ad   :  { %18764 = vst [vmem:[#allocation310_spill] sm:$0xff] %v15220_v0  ;;  %18765 = vst [vmem:[#allocation311_spill] sm:$0xff] %v15229_v48  ;;  %v3885_v31 = vld [vmem:[%s17216_s3 + $0xd90] sm:$0xff] }
 0x4ae   :  { %6921 = vmatpush2.bf16.msra.mxu1 %v15196_v24  ;;  %18766 = vst [vmem:[#allocation312_spill] sm:$0xff] %v15232_v42  ;;  %v3889_v51 = vld [vmem:[%s17216_s3 + $0xdb0] sm:$0xff]  ;;  %v15241_v24 = vcombine.high %v3821_v18, %v3825_v28 }
 0x4af   :  { %6922 = vmatprep.subr.bf16.mxu1 %v15205_v8  ;;  %6948 = vmatpush1.bf16.msra.mxu0 %v15208_v40  ;;  %v15244_v8 = vcombine.low %v3893_v57, %v3897_v13  ;;  %v3813_v52 = vld [vmem:[%s17216_s3 + $0xb50] sm:$0xff]  ;;  %v15253_v40 = vcombine.high %v3885_v31, %v3889_v51 }
 0x4b0   :  { %6949 = vmatprep.subr.bf16.mxu0 %v15217_v59  ;;  %18767 = vst [vmem:[#allocation313_spill] sm:$0xff] %v15241_v24  ;;  %v3817_v10 = vld [vmem:[%s17216_s3 + $0xb70] sm:$0xff]  ;;  %v15256_v59 = vcombine.low %v3821_v18, %v3825_v28  ;;  %v15273_v18 = vcombine.low %v3885_v31, %v3889_v51 }
 0x4b1   :  { %18768 = vst [vmem:[#allocation314_spill] sm:$0xff] %v15244_v8  ;;  %18769 = vst [vmem:[#allocation315_spill] sm:$0xff] %v15253_v40  ;;  %v3877_v57 = vld [vmem:[%s17216_s3 + $0xd50] sm:$0xff] }
 0x4b2   :  { %6923 = vmatpush2.bf16.msra.mxu1 %v15220_v0  ;;  %18770 = vst [vmem:[#allocation316_spill] sm:$0xff] %v15256_v59  ;;  %v3881_v13 = vld [vmem:[%s17216_s3 + $0xd70] sm:$0xff]  ;;  %18772 = vst [vmem:[#allocation318_spill] sm:$0xff] %v15273_v18 }
 0x4b3   :  { %6974 = vmatprep.subr.bf16.mxu1 %v15229_v48  ;;  %6950 = vmatpush2.bf16.msra.mxu0 %v15232_v42  ;;  %v15266_v48 = vcombine.high %v3813_v52, %v3817_v10  ;;  %v3805_v28 = vld [vmem:[%s17216_s3 + $0xb10] sm:$0xff]  ;;  %v15282_v41 = vcombine.high %v3877_v57, %v3881_v13 }
 0x4b4   :  { %6951 = vmatprep.subr.bf16.mxu0 %v15241_v24  ;;  %v3809_v42 = vld [vmem:[%s17216_s3 + $0xb30] sm:$0xff] }
 0x4b5   :  { %v6680_v0 = vpop.f32.mrf.mxu1  ;;  %6925 = vmatmul.mubr.bf16.vlgmr.msra.gmra.mxu1 %v13618_v19  ;;  %18771 = vst [vmem:[#allocation317_spill] sm:$0xff] %v15266_v48  ;;  %18773 = vst [vmem:[#allocation319_spill] sm:$0xff] %v15282_v41  ;;  %v3869_v31 = vld [vmem:[%s17216_s3 + $0xd10] sm:$0xff] }
 0x4b6   :  { %v15269_v49 = vadd.f32 %v6680_v0, %v15057_v16  ;;  %6975 = vmatpush1.bf16.msra.mxu1 %v15244_v8  ;;  %7006 = vmatprep.mubr.bf16.mxu1 %v13623_v2  ;;  %v15288_v0 = vcombine.low %v3813_v52, %v3817_v10  ;;  %v3873_v51 = vld [vmem:[%s17216_s3 + $0xd30] sm:$0xff] }
 0x4b7   :  { %v6682_v24 = vpop.f32.mrf.mxu1  ;;  %6976 = vmatprep.subr.bf16.mxu1 %v15253_v40  ;;  %6952 = vmatpush2.bf16.msra.mxu0 %v15256_v59  ;;  %v15297_v40 = vcombine.high %v3805_v28, %v3809_v42  ;;  %v3801_v52 = vld [vmem:[%s17216_s3 + $0xaf0] sm:$0xff] }
 0x4b8   :  { %v15285_v16 = vadd.f32 %v6682_v24, %v15074_v26  ;;  %18774 = vst [vmem:[#allocation320_spill] sm:$0xff] %v15288_v0  ;;  %6953 = vmatprep.subr.bf16.mxu0 %v15266_v48  ;;  %v15300_v26 = vcombine.low %v3877_v57, %v3881_v13  ;;  %v3797_v24 = vld [vmem:[%s17216_s3 + $0xad0] sm:$0xff]  ;;  %v15312_v48 = vcombine.low %v3805_v28, %v3809_v42 }
 0x4b9   :  { %v6684_v8 = vpop.f32.mrf.mxu1  ;;  %18775 = vst [vmem:[#allocation321_spill] sm:$0xff] %v15297_v40  ;;  %v3861_v57 = vld [vmem:[%s17216_s3 + $0xcd0] sm:$0xff] }
 0x4ba   :  { %6977 = vmatpush1.bf16.msra.mxu1 %v15273_v18  ;;  %18776 = vst [vmem:[#allocation322_spill] sm:$0xff] %v15300_v26  ;;  %v15309_v8 = vcombine.high %v3869_v31, %v3873_v51  ;;  %18778 = vst [vmem:[#allocation324_spill] sm:$0xff] %v15312_v48  ;;  %v3865_v13 = vld [vmem:[%s17216_s3 + $0xcf0] sm:$0xff]  ;;  %v15321_v18 = vcombine.high %v3797_v24, %v3801_v52 }
 0x4bb   :  { %v6685_v10 = vpop.f32.mrf.mxu1  ;;  %6978 = vmatprep.subr.bf16.mxu1 %v15282_v41  ;;  %6954 = vmatpush2.bf16.msra.mxu0 %v15288_v0  ;;  %v3789_v42 = vld [vmem:[%s17216_s3 + $0xa90] sm:$0xff]  ;;  %v15333_v0 = vcombine.high %v3861_v57, %v3865_v13 }
 0x4bc   :  { %18777 = vst [vmem:[#allocation323_spill] sm:$0xff] %v15309_v8  ;;  %6955 = vmatprep.subr.bf16.mxu0 %v15297_v40  ;;  %18779 = vst [vmem:[#allocation325_spill] sm:$0xff] %v15321_v18  ;;  %v15324_v10 = vcombine.low %v3869_v31, %v3873_v51  ;;  %v3793_v28 = vld [vmem:[%s17216_s3 + $0xab0] sm:$0xff]  ;;  %v15336_v40 = vcombine.low %v3797_v24, %v3801_v52 }
 0x4bd   :  { %18781 = vst [vmem:[#allocation327_spill] sm:$0xff] %v15333_v0  ;;  %v3853_v31 = vld [vmem:[%s17216_s3 + $0xc90] sm:$0xff] }
 0x4be   :  { %6979 = vmatpush1.bf16.msra.mxu1 %v15300_v26  ;;  %18780 = vst [vmem:[#allocation326_spill] sm:$0xff] %v15324_v10  ;;  %18782 = vst [vmem:[#allocation328_spill] sm:$0xff] %v15336_v40  ;;  %v3857_v51 = vld [vmem:[%s17216_s3 + $0xcb0] sm:$0xff]  ;;  %v15345_v26 = vcombine.high %v3789_v42, %v3793_v28 }
 0x4bf   :  { %6980 = vmatprep.subr.bf16.mxu1 %v15309_v8  ;;  %6956 = vmatpush2.bf16.msra.mxu0 %v15312_v48  ;;  %v15348_v8 = vcombine.low %v3861_v57, %v3865_v13  ;;  %v3781_v24 = vld [vmem:[%s17216_s3 + $0xa50] sm:$0xff]  ;;  %v15357_v48 = vcombine.high %v3853_v31, %v3857_v51 }
 0x4c0   :  { %6957 = vmatprep.subr.bf16.mxu0 %v15321_v18  ;;  %18783 = vst [vmem:[#allocation329_spill] sm:$0xff] %v15345_v26  ;;  %v3785_v52 = vld [vmem:[%s17216_s3 + $0xa70] sm:$0xff]  ;;  %v15360_v18 = vcombine.low %v3789_v42, %v3793_v28 }
 0x4c1   :  { %18784 = vst [vmem:[#allocation330_spill] sm:$0xff] %v15348_v8  ;;  %18785 = vst [vmem:[#allocation331_spill] sm:$0xff] %v15357_v48  ;;  %v3845_v57 = vld [vmem:[%s17216_s3 + $0xc50] sm:$0xff] }
 0x4c2   :  { %6981 = vmatpush1.bf16.msra.mxu1 %v15324_v10  ;;  %18786 = vst [vmem:[#allocation332_spill] sm:$0xff] %v15360_v18  ;;  %v3849_v13 = vld [vmem:[%s17216_s3 + $0xc70] sm:$0xff]  ;;  %v15369_v10 = vcombine.high %v3781_v24, %v3785_v52 }
 0x4c3   :  { %6982 = vmatprep.subr.bf16.mxu1 %v15333_v0  ;;  %6958 = vmatpush2.bf16.msra.mxu0 %v15336_v40  ;;  %v15372_v0 = vcombine.low %v3853_v31, %v3857_v51  ;;  %v3773_v42 = vld [vmem:[%s17216_s3 + $0xa10] sm:$0xff]  ;;  %v15381_v40 = vcombine.high %v3845_v57, %v3849_v13 }
 0x4c4   :  { %6959 = vmatprep.subr.bf16.mxu0 %v15345_v26  ;;  %18787 = vst [vmem:[#allocation333_spill] sm:$0xff] %v15369_v10  ;;  %v3777_v28 = vld [vmem:[%s17216_s3 + $0xa30] sm:$0xff]  ;;  %v15384_v26 = vcombine.low %v3781_v24, %v3785_v52  ;;  %v3510_v24 = vld [vmem:[%s17216_s3 + $0x1d8] sm:$0xff] }
 0x4c5   :  { %18788 = vst [vmem:[#allocation334_spill] sm:$0xff] %v15372_v0  ;;  %18789 = vst [vmem:[#allocation335_spill] sm:$0xff] %v15381_v40  ;;  %v3837_v31 = vld [vmem:[%s17216_s3 + $0xc10] sm:$0xff]  ;;  %v3514_v52 = vld [vmem:[%s17216_s3 + $0x1f8] sm:$0xff] }
 0x4c6   :  { %6983 = vmatpush1.bf16.msra.mxu1 %v15348_v8  ;;  %18790 = vst [vmem:[#allocation336_spill] sm:$0xff] %v15384_v26  ;;  %v3841_v51 = vld [vmem:[%s17216_s3 + $0xc30] sm:$0xff]  ;;  %v15393_v8 = vcombine.high %v3773_v42, %v3777_v28 }
 0x4c7   :  { %6984 = vmatprep.subr.bf16.mxu1 %v15357_v48  ;;  %6960 = vmatpush2.bf16.msra.mxu0 %v15360_v18  ;;  %v15396_v48 = vcombine.low %v3845_v57, %v3849_v13  ;;  %v15405_v18 = vcombine.high %v3837_v31, %v3841_v51  ;;  %v3957_v57 = vld [vmem:[%s17216_s3 + $0xfd0] sm:$0xff] }
 0x4c8   :  { %6961 = vmatprep.subr.bf16.mxu0 %v15369_v10  ;;  %18791 = vst [vmem:[#allocation337_spill] sm:$0xff] %v15393_v8  ;;  %v15408_v10 = vcombine.low %v3773_v42, %v3777_v28  ;;  %v3961_v13 = vld [vmem:[%s17216_s3 + $0xff0] sm:$0xff]  ;;  %v3502_v42 = vld [vmem:[%s17216_s3 + $0x198] sm:$0xff] }
 0x4c9   :  { %18792 = vst [vmem:[#allocation338_spill] sm:$0xff] %v15396_v48  ;;  %18793 = vst [vmem:[#allocation339_spill] sm:$0xff] %v15405_v18  ;;  %v3506_v28 = vld [vmem:[%s17216_s3 + $0x1b8] sm:$0xff] }
 0x4ca   :  { %6985 = vmatpush1.bf16.msra.mxu1 %v15372_v0  ;;  %18794 = vst [vmem:[#allocation340_spill] sm:$0xff] %v15408_v10  ;;  %v15417_v0 = vcombine.high %v3510_v24, %v3514_v52 }
 0x4cb   :  { %6986 = vmatprep.subr.bf16.mxu1 %v15381_v40  ;;  %6962 = vmatpush2.bf16.msra.mxu0 %v15384_v26  ;;  %v15420_v40 = vcombine.low %v3837_v31, %v3841_v51  ;;  %v15429_v26 = vcombine.high %v3957_v57, %v3961_v13  ;;  %v3949_v31 = vld [vmem:[%s17216_s3 + $0xf90] sm:$0xff] }
 0x4cc   :  { %6963 = vmatprep.subr.bf16.mxu0 %v15393_v8  ;;  %18795 = vst [vmem:[#allocation341_spill] sm:$0xff] %v15417_v0  ;;  %v15432_v8 = vcombine.low %v3510_v24, %v3514_v52  ;;  %v3953_v51 = vld [vmem:[%s17216_s3 + $0xfb0] sm:$0xff]  ;;  %v3494_v24 = vld [vmem:[%s17216_s3 + $0x158] sm:$0xff] }
 0x4cd   :  { %18796 = vst [vmem:[#allocation342_spill] sm:$0xff] %v15420_v40  ;;  %18797 = vst [vmem:[#allocation343_spill] sm:$0xff] %v15429_v26  ;;  %v3498_v52 = vld [vmem:[%s17216_s3 + $0x178] sm:$0xff] }
 0x4ce   :  { %6987 = vmatpush1.bf16.msra.mxu1 %v15396_v48  ;;  %18798 = vst [vmem:[#allocation344_spill] sm:$0xff] %v15432_v8  ;;  %v15441_v48 = vcombine.high %v3502_v42, %v3506_v28 }
 0x4cf   :  { %6988 = vmatprep.subr.bf16.mxu1 %v15405_v18  ;;  %6964 = vmatpush2.bf16.msra.mxu0 %v15408_v10  ;;  %v15444_v18 = vcombine.low %v3957_v57, %v3961_v13  ;;  %v15460_v57 = vcombine.low %v3502_v42, %v3506_v28  ;;  %v3941_v13 = vld [vmem:[%s17216_s3 + $0xf50] sm:$0xff]  ;;  %v3490_v42 = vld [vmem:[%s17216_s3 + $0x138] sm:$0xff] }
 0x4d0   :  { %7015 = vmatprep.subr.bf16.mxu0 %v15417_v0  ;;  %18799 = vst [vmem:[#allocation345_spill] sm:$0xff] %v15441_v48  ;;  %v15456_v0 = vcombine.high %v3949_v31, %v3953_v51 }
 0x4d1   :  { %18800 = vst [vmem:[#allocation346_spill] sm:$0xff] %v15444_v18  ;;  %18802 = vst [vmem:[#allocation348_spill] sm:$0xff] %v15460_v57 }
 0x4d2   :  { %6989 = vmatpush1.bf16.msra.mxu1 %v15420_v40  ;;  %v15452_v10 = vpop.f32.mrf.mxu0  ;;  %6966 = vmatmul.mubr.bf16.vlgmr.msra.gmra.mxu0 %v13816_v53  ;;  %18801 = vst [vmem:[#allocation347_spill] sm:$0xff] %v15456_v0  ;;  %v3945_v40 = vld [vmem:[%s17216_s3 + $0xf70] sm:$0xff] }
 0x4d3   :  { %6990 = vmatprep.subr.bf16.mxu1 %v15429_v26  ;;  %7016 = vmatpush1.bf16.msra.mxu0 %v15432_v8  ;;  %v15471_v26 = vcombine.high %v3494_v24, %v3498_v52  ;;  %v15474_v8 = vcombine.low %v3949_v31, %v3953_v51  ;;  %v15483_v59 = vcombine.high %v3941_v13, %v3945_v40  ;;  %v3933_v31 = vld [vmem:[%s17216_s3 + $0xf10] sm:$0xff] }
 0x4d4   :  { %7047 = vmatprep.mubr.bf16.mxu0 %v13031_v27  ;;  %v15468_v41 = vpop.f32.mrf.mxu0  ;;  %7017 = vmatprep.subr.bf16.mxu0 %v15441_v48  ;;  %v3486_v27 = vld [vmem:[%s17216_s3 + $0x118] sm:$0xff]  ;;  %v15486_v48 = vcombine.low %v3494_v24, %v3498_v52  ;;  %v3937_v51 = vld [vmem:[%s17216_s3 + $0xf30] sm:$0xff] }
 0x4d5   :  { %18803 = vst [vmem:[#allocation349_spill] sm:$0xff] %v15471_v26  ;;  %18804 = vst [vmem:[#allocation350_spill] sm:$0xff] %v15474_v8  ;;  %v3478_v24 = vld [vmem:[%s17216_s3 + $0xd8] sm:$0xff] }
 0x4d6   :  { %6991 = vmatpush2.bf16.msra.mxu1 %v15444_v18  ;;  %v6725_v28 = vpop.f32.mrf.mxu0  ;;  %18805 = vst [vmem:[#allocation351_spill] sm:$0xff] %v15483_v59  ;;  %18806 = vst [vmem:[#allocation352_spill] sm:$0xff] %v15486_v48  ;;  %v3482_v52 = vld [vmem:[%s17216_s3 + $0xf8] sm:$0xff] }
 0x4d7   :  { %6992 = vmatprep.subr.bf16.mxu1 %v15456_v0  ;;  %7018 = vmatpush1.bf16.msra.mxu0 %v15460_v57  ;;  %v15495_v28 = vcombine.high %v3486_v27, %v3490_v42  ;;  %v15498_v0 = vcombine.low %v3941_v13, %v3945_v40  ;;  %v15507_v57 = vcombine.high %v3933_v31, %v3937_v51  ;;  %v3925_v40 = vld [vmem:[%s17216_s3 + $0xed0] sm:$0xff] }
 0x4d8   :  { %v6726_v18 = vpop.f32.mrf.mxu0  ;;  %7019 = vmatprep.subr.bf16.mxu0 %v15471_v26  ;;  %v3929_v13 = vld [vmem:[%s17216_s3 + $0xef0] sm:$0xff] }
 0x4d9   :  { %18807 = vst [vmem:[#allocation353_spill] sm:$0xff] %v15495_v28  ;;  %18808 = vst [vmem:[#allocation354_spill] sm:$0xff] %v15498_v0  ;;  %v15510_v18 = vcombine.low %v3486_v27, %v3490_v42  ;;  %v3470_v27 = vld [vmem:[%s17216_s3 + $0x98] sm:$0xff] }
 0x4da   :  { %6993 = vmatpush2.bf16.msra.mxu1 %v15474_v8  ;;  %18809 = vst [vmem:[#allocation355_spill] sm:$0xff] %v15507_v57  ;;  %v15519_v8 = vcombine.high %v3478_v24, %v3482_v52  ;;  %v3474_v42 = vld [vmem:[%s17216_s3 + $0xb8] sm:$0xff] }
 0x4db   :  { %6994 = vmatprep.subr.bf16.mxu1 %v15483_v59  ;;  %7020 = vmatpush1.bf16.msra.mxu0 %v15486_v48  ;;  %18810 = vst [vmem:[#allocation356_spill] sm:$0xff] %v15510_v18  ;;  %v15522_v59 = vcombine.low %v3933_v31, %v3937_v51  ;;  %v15531_v48 = vcombine.high %v3925_v40, %v3929_v13  ;;  %v3917_v31 = vld [vmem:[%s17216_s3 + $0xe90] sm:$0xff] }
 0x4dc   :  { %7021 = vmatprep.subr.bf16.mxu0 %v15495_v28  ;;  %18811 = vst [vmem:[#allocation357_spill] sm:$0xff] %v15519_v8  ;;  %v15534_v28 = vcombine.low %v3478_v24, %v3482_v52  ;;  %v3921_v51 = vld [vmem:[%s17216_s3 + $0xeb0] sm:$0xff]  ;;  %v3462_v24 = vld [vmem:[%s17216_s3 + $0x58] sm:$0xff] }
 0x4dd   :  { %18812 = vst [vmem:[#allocation358_spill] sm:$0xff] %v15522_v59  ;;  %18813 = vst [vmem:[#allocation359_spill] sm:$0xff] %v15531_v48  ;;  %v3466_v52 = vld [vmem:[%s17216_s3 + $0x78] sm:$0xff] }
 0x4de   :  { %6995 = vmatpush2.bf16.msra.mxu1 %v15498_v0  ;;  %18814 = vst [vmem:[#allocation360_spill] sm:$0xff] %v15534_v28  ;;  %v15543_v0 = vcombine.high %v3470_v27, %v3474_v42 }
 0x4df   :  { %6996 = vmatprep.subr.bf16.mxu1 %v15507_v57  ;;  %7022 = vmatpush1.bf16.msra.mxu0 %v15510_v18  ;;  %v15546_v57 = vcombine.low %v3925_v40, %v3929_v13  ;;  %v15555_v18 = vcombine.high %v3917_v31, %v3921_v51  ;;  %v3909_v40 = vld [vmem:[%s17216_s3 + $0xe50] sm:$0xff] }
 0x4e0   :  { %7023 = vmatprep.subr.bf16.mxu0 %v15519_v8  ;;  %18815 = vst [vmem:[#allocation361_spill] sm:$0xff] %v15543_v0  ;;  %v15558_v8 = vcombine.low %v3470_v27, %v3474_v42  ;;  %v3913_v13 = vld [vmem:[%s17216_s3 + $0xe70] sm:$0xff]  ;;  %v3454_v27 = vld [vmem:[%s17216_s3 + $0x18] sm:$0xff] }
 0x4e1   :  { %18816 = vst [vmem:[#allocation362_spill] sm:$0xff] %v15546_v57  ;;  %18817 = vst [vmem:[#allocation363_spill] sm:$0xff] %v15555_v18  ;;  %v3458_v42 = vld [vmem:[%s17216_s3 + $0x38] sm:$0xff] }
 0x4e2   :  { %6997 = vmatpush2.bf16.msra.mxu1 %v15522_v59  ;;  %18818 = vst [vmem:[#allocation364_spill] sm:$0xff] %v15558_v8  ;;  %v15567_v59 = vcombine.high %v3462_v24, %v3466_v52 }
 0x4e3   :  { %6998 = vmatprep.subr.bf16.mxu1 %v15531_v48  ;;  %7024 = vmatpush1.bf16.msra.mxu0 %v15534_v28  ;;  %v15570_v48 = vcombine.low %v3917_v31, %v3921_v51  ;;  %v15579_v28 = vcombine.high %v3909_v40, %v3913_v13  ;;  %v3901_v31 = vld [vmem:[%s17216_s3 + $0xe10] sm:$0xff] }
 0x4e4   :  { %7025 = vmatprep.subr.bf16.mxu0 %v15543_v0  ;;  %18819 = vst [vmem:[#allocation365_spill] sm:$0xff] %v15567_v59  ;;  %v15582_v0 = vcombine.low %v3462_v24, %v3466_v52  ;;  %v3905_v51 = vld [vmem:[%s17216_s3 + $0xe30] sm:$0xff]  ;;  %v3574_v24 = vld [vmem:[%s17216_s3 + $0x3d8] sm:$0xff] }
 0x4e5   :  { %18820 = vst [vmem:[#allocation366_spill] sm:$0xff] %v15570_v48  ;;  %18821 = vst [vmem:[#allocation367_spill] sm:$0xff] %v15579_v28  ;;  %v3578_v52 = vld [vmem:[%s17216_s3 + $0x3f8] sm:$0xff] }
 0x4e6   :  { %6999 = vmatpush2.bf16.msra.mxu1 %v15546_v57  ;;  %18822 = vst [vmem:[#allocation368_spill] sm:$0xff] %v15582_v0  ;;  %v15591_v57 = vcombine.high %v3454_v27, %v3458_v42 }
 0x4e7   :  { %7000 = vmatprep.subr.bf16.mxu1 %v15555_v18  ;;  %7026 = vmatpush1.bf16.msra.mxu0 %v15558_v8  ;;  %v15594_v18 = vcombine.low %v3909_v40, %v3913_v13  ;;  %v15603_v8 = vcombine.high %v3901_v31, %v3905_v51  ;;  %v3638_v40 = vld [vmem:[%s17216_s3 + $0x5d8] sm:$0xff] }
 0x4e8   :  { %7027 = vmatprep.subr.bf16.mxu0 %v15567_v59  ;;  %18823 = vst [vmem:[#allocation369_spill] sm:$0xff] %v15591_v57  ;;  %v15606_v59 = vcombine.low %v3454_v27, %v3458_v42  ;;  %v3642_v13 = vld [vmem:[%s17216_s3 + $0x5f8] sm:$0xff] }
 0x4e9   :  { %18824 = vst [vmem:[#allocation370_spill] sm:$0xff] %v15594_v18  ;;  %18825 = vst [vmem:[#allocation371_spill] sm:$0xff] %v15603_v8  ;;  %v3566_v27 = vld [vmem:[%s17216_s3 + $0x398] sm:$0xff] }
 0x4ea   :  { %7001 = vmatpush2.bf16.msra.mxu1 %v15570_v48  ;;  %18826 = vst [vmem:[#allocation372_spill] sm:$0xff] %v15606_v59  ;;  %v15615_v48 = vcombine.high %v3574_v24, %v3578_v52  ;;  %v3570_v42 = vld [vmem:[%s17216_s3 + $0x3b8] sm:$0xff] }
 0x4eb   :  { %7002 = vmatprep.subr.bf16.mxu1 %v15579_v28  ;;  %7028 = vmatpush1.bf16.msra.mxu0 %v15582_v0  ;;  %v15618_v28 = vcombine.low %v3901_v31, %v3905_v51  ;;  %v15627_v0 = vcombine.high %v3638_v40, %v3642_v13  ;;  %v3630_v31 = vld [vmem:[%s17216_s3 + $0x598] sm:$0xff] }
 0x4ec   :  { %7029 = vmatprep.subr.bf16.mxu0 %v15591_v57  ;;  %18827 = vst [vmem:[#allocation373_spill] sm:$0xff] %v15615_v48  ;;  %v15630_v57 = vcombine.low %v3574_v24, %v3578_v52  ;;  %v3634_v51 = vld [vmem:[%s17216_s3 + $0x5b8] sm:$0xff] }
 0x4ed   :  { %18828 = vst [vmem:[#allocation374_spill] sm:$0xff] %v15618_v28  ;;  %18829 = vst [vmem:[#allocation375_spill] sm:$0xff] %v15627_v0  ;;  %v3558_v24 = vld [vmem:[%s17216_s3 + $0x358] sm:$0xff] }
 0x4ee   :  { %7003 = vmatpush2.bf16.msra.mxu1 %v15594_v18  ;;  %18830 = vst [vmem:[#allocation376_spill] sm:$0xff] %v15630_v57  ;;  %v15639_v18 = vcombine.high %v3566_v27, %v3570_v42  ;;  %v3562_v52 = vld [vmem:[%s17216_s3 + $0x378] sm:$0xff] }
 0x4ef   :  { %7004 = vmatprep.subr.bf16.mxu1 %v15603_v8  ;;  %7030 = vmatpush1.bf16.msra.mxu0 %v15606_v59  ;;  %v15642_v8 = vcombine.low %v3638_v40, %v3642_v13  ;;  %v15651_v59 = vcombine.high %v3630_v31, %v3634_v51  ;;  %v3622_v40 = vld [vmem:[%s17216_s3 + $0x558] sm:$0xff] }
 0x4f0   :  { %7031 = vmatprep.subr.bf16.mxu0 %v15615_v48  ;;  %18831 = vst [vmem:[#allocation377_spill] sm:$0xff] %v15639_v18  ;;  %v15654_v48 = vcombine.low %v3566_v27, %v3570_v42  ;;  %v3626_v13 = vld [vmem:[%s17216_s3 + $0x578] sm:$0xff]  ;;  %v15671_v27 = vcombine.low %v3630_v31, %v3634_v51 }
 0x4f1   :  { %18832 = vst [vmem:[#allocation378_spill] sm:$0xff] %v15651_v59  ;;  %v3550_v42 = vld [vmem:[%s17216_s3 + $0x318] sm:$0xff]  ;;  %v15680_v54 = vcombine.high %v3622_v40, %v3626_v13 }
 0x4f2   :  { %7005 = vmatpush2.bf16.msra.mxu1 %v15618_v28  ;;  %18834 = vst [vmem:[#allocation380_spill] sm:$0xff] %v15671_v27  ;;  %v3618_v31 = vld [vmem:[%s17216_s3 + $0x538] sm:$0xff] }
 0x4f3   :  { %7056 = vmatprep.subr.bf16.mxu1 %v15627_v0  ;;  %7032 = vmatpush2.bf16.msra.mxu0 %v15630_v57  ;;  %v15664_v0 = vcombine.high %v3558_v24, %v3562_v52  ;;  %v3554_v57 = vld [vmem:[%s17216_s3 + $0x338] sm:$0xff]  ;;  %18835 = vst [vmem:[#allocation381_spill] sm:$0xff] %v15680_v54 }
 0x4f4   :  { %7033 = vmatprep.subr.bf16.mxu0 %v15639_v18 }
 0x4f5   :  { %v6762_v28 = vpop.f32.mrf.mxu1  ;;  %7007 = vmatmul.mubr.bf16.vlgmr.msra.gmra.mxu1 %v14036_v46  ;;  %18833 = vst [vmem:[#allocation379_spill] sm:$0xff] %v15664_v0 }
 0x4f6   :  { %v15667_v26 = vadd.f32 %v6762_v28, %v15452_v10  ;;  %7057 = vmatpush1.bf16.msra.mxu1 %v15642_v8  ;;  %7088 = vmatprep.mubr.bf16.mxu1 %v13200_v15  ;;  %v15686_v15 = vcombine.low %v3558_v24, %v3562_v52  ;;  %v3614_v28 = vld [vmem:[%s17216_s3 + $0x518] sm:$0xff] }
 0x4f7   :  { %v6764_v18 = vpop.f32.mrf.mxu1  ;;  %7058 = vmatprep.subr.bf16.mxu1 %v15651_v59  ;;  %7034 = vmatpush2.bf16.msra.mxu0 %v15654_v48  ;;  %v15695_v59 = vcombine.high %v3550_v42, %v3554_v57  ;;  %v3546_v24 = vld [vmem:[%s17216_s3 + $0x2f8] sm:$0xff] }
 0x4f8   :  { %v15683_v10 = vadd.f32 %v6764_v18, %v15468_v41  ;;  %18836 = vst [vmem:[#allocation382_spill] sm:$0xff] %v15686_v15  ;;  %7035 = vmatprep.subr.bf16.mxu0 %v15664_v0  ;;  %v15698_v41 = vcombine.low %v3622_v40, %v3626_v13  ;;  %v3542_v18 = vld [vmem:[%s17216_s3 + $0x2d8] sm:$0xff]  ;;  %v15710_v0 = vcombine.low %v3550_v42, %v3554_v57 }
 0x4f9   :  { %v6766_v51 = vpop.f32.mrf.mxu1  ;;  %18837 = vst [vmem:[#allocation383_spill] sm:$0xff] %v15695_v59  ;;  %v3606_v40 = vld [vmem:[%s17216_s3 + $0x4d8] sm:$0xff] }
 0x4fa   :  { %7059 = vmatpush1.bf16.msra.mxu1 %v15671_v27  ;;  %18838 = vst [vmem:[#allocation384_spill] sm:$0xff] %v15698_v41  ;;  %v15707_v51 = vcombine.high %v3614_v28, %v3618_v31  ;;  %18840 = vst [vmem:[#allocation386_spill] sm:$0xff] %v15710_v0  ;;  %v3610_v13 = vld [vmem:[%s17216_s3 + $0x4f8] sm:$0xff]  ;;  %v15719_v27 = vcombine.high %v3542_v18, %v3546_v24 }
 0x4fb   :  { %v6767_v52 = vpop.f32.mrf.mxu1  ;;  %7060 = vmatprep.subr.bf16.mxu1 %v15680_v54  ;;  %7036 = vmatpush2.bf16.msra.mxu0 %v15686_v15  ;;  %v3534_v57 = vld [vmem:[%s17216_s3 + $0x298] sm:$0xff]  ;;  %v15731_v15 = vcombine.high %v3606_v40, %v3610_v13 }
 0x4fc   :  { %18839 = vst [vmem:[#allocation385_spill] sm:$0xff] %v15707_v51  ;;  %7037 = vmatprep.subr.bf16.mxu0 %v15695_v59  ;;  %18841 = vst [vmem:[#allocation387_spill] sm:$0xff] %v15719_v27  ;;  %v15722_v52 = vcombine.low %v3614_v28, %v3618_v31  ;;  %v3538_v42 = vld [vmem:[%s17216_s3 + $0x2b8] sm:$0xff]  ;;  %v15734_v59 = vcombine.low %v3542_v18, %v3546_v24 }
 0x4fd   :  { %18843 = vst [vmem:[#allocation389_spill] sm:$0xff] %v15731_v15  ;;  %v3598_v28 = vld [vmem:[%s17216_s3 + $0x498] sm:$0xff] }
 0x4fe   :  { %7061 = vmatpush1.bf16.msra.mxu1 %v15698_v41  ;;  %18842 = vst [vmem:[#allocation388_spill] sm:$0xff] %v15722_v52  ;;  %18844 = vst [vmem:[#allocation390_spill] sm:$0xff] %v15734_v59  ;;  %v3602_v31 = vld [vmem:[%s17216_s3 + $0x4b8] sm:$0xff]  ;;  %v15743_v41 = vcombine.high %v3534_v57, %v3538_v42 }
 0x4ff   :  { %7062 = vmatprep.subr.bf16.mxu1 %v15707_v51  ;;  %7038 = vmatpush2.bf16.msra.mxu0 %v15710_v0  ;;  %v15746_v51 = vcombine.low %v3606_v40, %v3610_v13  ;;  %v3526_v18 = vld [vmem:[%s17216_s3 + $0x258] sm:$0xff]  ;;  %v15755_v0 = vcombine.high %v3598_v28, %v3602_v31 }
 0x500   :  { %7039 = vmatprep.subr.bf16.mxu0 %v15719_v27  ;;  %18845 = vst [vmem:[#allocation391_spill] sm:$0xff] %v15743_v41  ;;  %v3530_v24 = vld [vmem:[%s17216_s3 + $0x278] sm:$0xff]  ;;  %v15758_v27 = vcombine.low %v3534_v57, %v3538_v42 }
 0x501   :  { %18846 = vst [vmem:[#allocation392_spill] sm:$0xff] %v15746_v51  ;;  %18847 = vst [vmem:[#allocation393_spill] sm:$0xff] %v15755_v0  ;;  %v3590_v40 = vld [vmem:[%s17216_s3 + $0x458] sm:$0xff] }
 0x502   :  { %7063 = vmatpush1.bf16.msra.mxu1 %v15722_v52  ;;  %18848 = vst [vmem:[#allocation394_spill] sm:$0xff] %v15758_v27  ;;  %v3594_v13 = vld [vmem:[%s17216_s3 + $0x478] sm:$0xff]  ;;  %v15767_v52 = vcombine.high %v3526_v18, %v3530_v24 }
 0x503   :  { %7064 = vmatprep.subr.bf16.mxu1 %v15731_v15  ;;  %7040 = vmatpush2.bf16.msra.mxu0 %v15734_v59  ;;  %v15770_v15 = vcombine.low %v3598_v28, %v3602_v31  ;;  %v3518_v57 = vld [vmem:[%s17216_s3 + $0x218] sm:$0xff]  ;;  %v15779_v59 = vcombine.high %v3590_v40, %v3594_v13 }
 0x504   :  { %7041 = vmatprep.subr.bf16.mxu0 %v15743_v41  ;;  %18849 = vst [vmem:[#allocation395_spill] sm:$0xff] %v15767_v52  ;;  %v3522_v42 = vld [vmem:[%s17216_s3 + $0x238] sm:$0xff]  ;;  %v15782_v41 = vcombine.low %v3526_v18, %v3530_v24 }
 0x505   :  { %18850 = vst [vmem:[#allocation396_spill] sm:$0xff] %v15770_v15  ;;  %18851 = vst [vmem:[#allocation397_spill] sm:$0xff] %v15779_v59  ;;  %v3582_v28 = vld [vmem:[%s17216_s3 + $0x418] sm:$0xff] }
 0x506   :  { %7065 = vmatpush1.bf16.msra.mxu1 %v15746_v51  ;;  %18852 = vst [vmem:[#allocation398_spill] sm:$0xff] %v15782_v41  ;;  %v3586_v31 = vld [vmem:[%s17216_s3 + $0x438] sm:$0xff]  ;;  %v15791_v51 = vcombine.high %v3518_v57, %v3522_v42 }
 0x507   :  { %7066 = vmatprep.subr.bf16.mxu1 %v15755_v0  ;;  %7042 = vmatpush2.bf16.msra.mxu0 %v15758_v27  ;;  %v15794_v0 = vcombine.low %v3590_v40, %v3594_v13  ;;  %v3766_v18 = vld [vmem:[%s17216_s3 + $0x9d8] sm:$0xff]  ;;  %v15803_v27 = vcombine.high %v3582_v28, %v3586_v31 }
 0x508   :  { %7043 = vmatprep.subr.bf16.mxu0 %v15767_v52  ;;  %18853 = vst [vmem:[#allocation399_spill] sm:$0xff] %v15791_v51  ;;  %v3770_v24 = vld [vmem:[%s17216_s3 + $0x9f8] sm:$0xff]  ;;  %v15806_v52 = vcombine.low %v3518_v57, %v3522_v42 }
 0x509   :  { %18854 = vst [vmem:[#allocation400_spill] sm:$0xff] %v15794_v0  ;;  %18855 = vst [vmem:[#allocation401_spill] sm:$0xff] %v15803_v27  ;;  %v3702_v40 = vld [vmem:[%s17216_s3 + $0x7d8] sm:$0xff] }
 0x50a   :  { %7067 = vmatpush1.bf16.msra.mxu1 %v15770_v15  ;;  %18856 = vst [vmem:[#allocation402_spill] sm:$0xff] %v15806_v52  ;;  %v3706_v13 = vld [vmem:[%s17216_s3 + $0x7f8] sm:$0xff]  ;;  %v15815_v15 = vcombine.high %v3766_v18, %v3770_v24 }
 0x50b   :  { %7068 = vmatprep.subr.bf16.mxu1 %v15779_v59  ;;  %7044 = vmatpush2.bf16.msra.mxu0 %v15782_v41  ;;  %v15818_v59 = vcombine.low %v3582_v28, %v3586_v31  ;;  %v3758_v57 = vld [vmem:[%s17216_s3 + $0x998] sm:$0xff]  ;;  %v15827_v41 = vcombine.high %v3702_v40, %v3706_v13 }
 0x50c   :  { %7045 = vmatprep.subr.bf16.mxu0 %v15791_v51  ;;  %18857 = vst [vmem:[#allocation403_spill] sm:$0xff] %v15815_v15  ;;  %v3762_v42 = vld [vmem:[%s17216_s3 + $0x9b8] sm:$0xff]  ;;  %v15830_v51 = vcombine.low %v3766_v18, %v3770_v24 }
 0x50d   :  { %18858 = vst [vmem:[#allocation404_spill] sm:$0xff] %v15818_v59  ;;  %18859 = vst [vmem:[#allocation405_spill] sm:$0xff] %v15827_v41  ;;  %v3694_v28 = vld [vmem:[%s17216_s3 + $0x798] sm:$0xff] }
 0x50e   :  { %7069 = vmatpush1.bf16.msra.mxu1 %v15794_v0  ;;  %18860 = vst [vmem:[#allocation406_spill] sm:$0xff] %v15830_v51  ;;  %v3698_v31 = vld [vmem:[%s17216_s3 + $0x7b8] sm:$0xff]  ;;  %v15839_v0 = vcombine.high %v3758_v57, %v3762_v42 }
 0x50f   :  { %7070 = vmatprep.subr.bf16.mxu1 %v15803_v27  ;;  %7046 = vmatpush2.bf16.msra.mxu0 %v15806_v52  ;;  %v15842_v27 = vcombine.low %v3702_v40, %v3706_v13  ;;  %v3750_v18 = vld [vmem:[%s17216_s3 + $0x958] sm:$0xff]  ;;  %v15859_v40 = vcombine.low %v3758_v57, %v3762_v42 }
 0x510   :  { %7097 = vmatprep.subr.bf16.mxu0 %v15815_v15  ;;  %18861 = vst [vmem:[#allocation407_spill] sm:$0xff] %v15839_v0  ;;  %v3754_v24 = vld [vmem:[%s17216_s3 + $0x978] sm:$0xff]  ;;  %v15852_v15 = vcombine.high %v3694_v28, %v3698_v31 }
 0x511   :  { %18862 = vst [vmem:[#allocation408_spill] sm:$0xff] %v15842_v27  ;;  %18863 = vst [vmem:[#allocation409_spill] sm:$0xff] %v15859_v40  ;;  %v3686_v13 = vld [vmem:[%s17216_s3 + $0x758] sm:$0xff] }
 0x512   :  { %7071 = vmatpush1.bf16.msra.mxu1 %v15818_v59  ;;  %v6803_v52 = vpop.f32.mrf.mxu0  ;;  %7048 = vmatmul.mubr.bf16.vlgmr.msra.gmra.mxu0 %v13394_v14  ;;  %v3690_v14 = vld [vmem:[%s17216_s3 + $0x778] sm:$0xff]  ;;  %v15868_v59 = vcombine.high %v3750_v18, %v3754_v24 }
 0x513   :  { %7072 = vmatprep.subr.bf16.mxu1 %v15827_v41  ;;  %v15855_v54 = vadd.f32 %v6803_v52, %v15667_v26  ;;  %7098 = vmatpush1.bf16.msra.mxu0 %v15830_v51  ;;  %v15874_v52 = vcombine.low %v3694_v28, %v3698_v31  ;;  %v3742_v57 = vld [vmem:[%s17216_s3 + $0x918] sm:$0xff]  ;;  %v15898_v31 = vcombine.low %v3686_v13, %v3690_v14 }
 0x514   :  { %7129 = vmatprep.mubr.bf16.mxu0 %v13399_v35  ;;  %v6805_v41 = vpop.f32.mrf.mxu0  ;;  %7099 = vmatprep.subr.bf16.mxu0 %v15839_v0  ;;  %18864 = vst [vmem:[#allocation410_spill] sm:$0xff] %v15868_v59  ;;  %v3746_v42 = vld [vmem:[%s17216_s3 + $0x938] sm:$0xff]  ;;  %v15883_v0 = vcombine.high %v3686_v13, %v3690_v14 }
 0x515   :  { %v15872_v26 = vadd.f32 %v6805_v41, %v15683_v10  ;;  %18865 = vst [vmem:[#allocation411_spill] sm:$0xff] %v15874_v52  ;;  %v3678_v10 = vld [vmem:[%s17216_s3 + $0x718] sm:$0xff]  ;;  %18869 = vst [vmem:[#allocation415_spill] sm:$0xff] %v15898_v31 }
 0x516   :  { %7073 = vmatpush2.bf16.msra.mxu1 %v15842_v27  ;;  %v6807_v51 = vpop.f32.mrf.mxu0  ;;  %18866 = vst [vmem:[#allocation412_spill] sm:$0xff] %v15883_v0  ;;  %v15886_v27 = vcombine.low %v3750_v18, %v3754_v24  ;;  %v3682_v41 = vld [vmem:[%s17216_s3 + $0x738] sm:$0xff] }
 0x517   :  { %7074 = vmatprep.subr.bf16.mxu1 %v15852_v15  ;;  %7100 = vmatpush1.bf16.msra.mxu0 %v15859_v40  ;;  %v15895_v51 = vcombine.high %v3742_v57, %v3746_v42  ;;  %v3734_v18 = vld [vmem:[%s17216_s3 + $0x8d8] sm:$0xff]  ;;  %v15907_v40 = vcombine.high %v3678_v10, %v3682_v41 }
 0x518   :  { %18867 = vst [vmem:[#allocation413_spill] sm:$0xff] %v15886_v27  ;;  %v6808_v28 = vpop.f32.mrf.mxu0  ;;  %7101 = vmatprep.subr.bf16.mxu0 %v15868_v59  ;;  %v3738_v24 = vld [vmem:[%s17216_s3 + $0x8f8] sm:$0xff] }
 0x519   :  { %18868 = vst [vmem:[#allocation414_spill] sm:$0xff] %v15895_v51  ;;  %18870 = vst [vmem:[#allocation416_spill] sm:$0xff] %v15907_v40  ;;  %v15910_v28 = vcombine.low %v3742_v57, %v3746_v42  ;;  %v3670_v13 = vld [vmem:[%s17216_s3 + $0x6d8] sm:$0xff] }
 0x51a   :  { %7075 = vmatpush2.bf16.msra.mxu1 %v15874_v52  ;;  %v3674_v14 = vld [vmem:[%s17216_s3 + $0x6f8] sm:$0xff]  ;;  %v15919_v52 = vcombine.high %v3734_v18, %v3738_v24 }
 0x51b   :  { %7076 = vmatprep.subr.bf16.mxu1 %v15883_v0  ;;  %7102 = vmatpush1.bf16.msra.mxu0 %v15886_v27  ;;  %18871 = vst [vmem:[#allocation417_spill] sm:$0xff] %v15910_v28  ;;  %v15922_v0 = vcombine.low %v3678_v10, %v3682_v41  ;;  %v3726_v57 = vld [vmem:[%s17216_s3 + $0x898] sm:$0xff]  ;;  %v15931_v27 = vcombine.high %v3670_v13, %v3674_v14 }
 0x51c   :  { %7103 = vmatprep.subr.bf16.mxu0 %v15895_v51  ;;  %18872 = vst [vmem:[#allocation418_spill] sm:$0xff] %v15919_v52  ;;  %v3730_v42 = vld [vmem:[%s17216_s3 + $0x8b8] sm:$0xff]  ;;  %v15934_v51 = vcombine.low %v3734_v18, %v3738_v24 }
 0x51d   :  { %18873 = vst [vmem:[#allocation419_spill] sm:$0xff] %v15922_v0  ;;  %18874 = vst [vmem:[#allocation420_spill] sm:$0xff] %v15931_v27  ;;  %v3662_v10 = vld [vmem:[%s17216_s3 + $0x698] sm:$0xff] }
 0x51e   :  { %7077 = vmatpush2.bf16.msra.mxu1 %v15898_v31  ;;  %18875 = vst [vmem:[#allocation421_spill] sm:$0xff] %v15934_v51  ;;  %v3666_v41 = vld [vmem:[%s17216_s3 + $0x6b8] sm:$0xff]  ;;  %v15943_v31 = vcombine.high %v3726_v57, %v3730_v42 }
 0x51f   :  { %7078 = vmatprep.subr.bf16.mxu1 %v15907_v40  ;;  %7104 = vmatpush1.bf16.msra.mxu0 %v15910_v28  ;;  %v15946_v40 = vcombine.low %v3670_v13, %v3674_v14  ;;  %v3718_v18 = vld [vmem:[%s17216_s3 + $0x858] sm:$0xff]  ;;  %v15955_v28 = vcombine.high %v3662_v10, %v3666_v41 }
 0x520   :  { %7105 = vmatprep.subr.bf16.mxu0 %v15919_v52  ;;  %18876 = vst [vmem:[#allocation422_spill] sm:$0xff] %v15943_v31  ;;  %v3722_v24 = vld [vmem:[%s17216_s3 + $0x878] sm:$0xff]  ;;  %v15958_v52 = vcombine.low %v3726_v57, %v3730_v42 }
 0x521   :  { %18877 = vst [vmem:[#allocation423_spill] sm:$0xff] %v15946_v40  ;;  %18878 = vst [vmem:[#allocation424_spill] sm:$0xff] %v15955_v28  ;;  %v3654_v13 = vld [vmem:[%s17216_s3 + $0x658] sm:$0xff] }
 0x522   :  { %7079 = vmatpush2.bf16.msra.mxu1 %v15922_v0  ;;  %18879 = vst [vmem:[#allocation425_spill] sm:$0xff] %v15958_v52  ;;  %v3658_v14 = vld [vmem:[%s17216_s3 + $0x678] sm:$0xff]  ;;  %v15967_v0 = vcombine.high %v3718_v18, %v3722_v24 }
 0x523   :  { %7080 = vmatprep.subr.bf16.mxu1 %v15931_v27  ;;  %7106 = vmatpush1.bf16.msra.mxu0 %v15934_v51  ;;  %v15970_v27 = vcombine.low %v3662_v10, %v3666_v41  ;;  %v3710_v57 = vld [vmem:[%s17216_s3 + $0x818] sm:$0xff]  ;;  %v15979_v51 = vcombine.high %v3654_v13, %v3658_v14 }
 0x524   :  { %7107 = vmatprep.subr.bf16.mxu0 %v15943_v31  ;;  %18880 = vst [vmem:[#allocation426_spill] sm:$0xff] %v15967_v0  ;;  %v3714_v42 = vld [vmem:[%s17216_s3 + $0x838] sm:$0xff]  ;;  %v15982_v31 = vcombine.low %v3718_v18, %v3722_v24 }
 0x525   :  { %18881 = vst [vmem:[#allocation427_spill] sm:$0xff] %v15970_v27  ;;  %18882 = vst [vmem:[#allocation428_spill] sm:$0xff] %v15979_v51  ;;  %v3646_v10 = vld [vmem:[%s17216_s3 + $0x618] sm:$0xff] }
 0x526   :  { %7081 = vmatpush2.bf16.msra.mxu1 %v15946_v40  ;;  %18883 = vst [vmem:[#allocation429_spill] sm:$0xff] %v15982_v31  ;;  %v3650_v41 = vld [vmem:[%s17216_s3 + $0x638] sm:$0xff]  ;;  %v15991_v40 = vcombine.high %v3710_v57, %v3714_v42 }
 0x527   :  { %7082 = vmatprep.subr.bf16.mxu1 %v15955_v28  ;;  %7108 = vmatpush1.bf16.msra.mxu0 %v15958_v52  ;;  %v15994_v28 = vcombine.low %v3654_v13, %v3658_v14  ;;  %v3830_v18 = vld [vmem:[%s17216_s3 + $0xbd8] sm:$0xff]  ;;  %v16003_v52 = vcombine.high %v3646_v10, %v3650_v41 }
 0x528   :  { %7109 = vmatprep.subr.bf16.mxu0 %v15967_v0  ;;  %18884 = vst [vmem:[#allocation430_spill] sm:$0xff] %v15991_v40  ;;  %v3834_v24 = vld [vmem:[%s17216_s3 + $0xbf8] sm:$0xff]  ;;  %v16006_v0 = vcombine.low %v3710_v57, %v3714_v42 }
 0x529   :  { %18885 = vst [vmem:[#allocation431_spill] sm:$0xff] %v15994_v28  ;;  %18886 = vst [vmem:[#allocation432_spill] sm:$0xff] %v16003_v52  ;;  %v3894_v13 = vld [vmem:[%s17216_s3 + $0xdd8] sm:$0xff] }
 0x52a   :  { %7083 = vmatpush2.bf16.msra.mxu1 %v15970_v27  ;;  %18887 = vst [vmem:[#allocation433_spill] sm:$0xff] %v16006_v0  ;;  %v3898_v14 = vld [vmem:[%s17216_s3 + $0xdf8] sm:$0xff]  ;;  %v16015_v27 = vcombine.high %v3830_v18, %v3834_v24 }
 0x52b   :  { %7084 = vmatprep.subr.bf16.mxu1 %v15979_v51  ;;  %7110 = vmatpush1.bf16.msra.mxu0 %v15982_v31  ;;  %v16018_v51 = vcombine.low %v3646_v10, %v3650_v41  ;;  %v3822_v57 = vld [vmem:[%s17216_s3 + $0xb98] sm:$0xff]  ;;  %v16027_v31 = vcombine.high %v3894_v13, %v3898_v14 }
 0x52c   :  { %7111 = vmatprep.subr.bf16.mxu0 %v15991_v40  ;;  %18888 = vst [vmem:[#allocation434_spill] sm:$0xff] %v16015_v27  ;;  %v3826_v42 = vld [vmem:[%s17216_s3 + $0xbb8] sm:$0xff]  ;;  %v16030_v40 = vcombine.low %v3830_v18, %v3834_v24 }
 0x52d   :  { %18889 = vst [vmem:[#allocation435_spill] sm:$0xff] %v16018_v51  ;;  %18890 = vst [vmem:[#allocation436_spill] sm:$0xff] %v16027_v31  ;;  %v3886_v10 = vld [vmem:[%s17216_s3 + $0xd98] sm:$0xff] }
 0x52e   :  { %7085 = vmatpush2.bf16.msra.mxu1 %v15994_v28  ;;  %18891 = vst [vmem:[#allocation437_spill] sm:$0xff] %v16030_v40  ;;  %v3890_v41 = vld [vmem:[%s17216_s3 + $0xdb8] sm:$0xff]  ;;  %v16039_v28 = vcombine.high %v3822_v57, %v3826_v42 }
 0x52f   :  { %7086 = vmatprep.subr.bf16.mxu1 %v16003_v52  ;;  %7112 = vmatpush1.bf16.msra.mxu0 %v16006_v0  ;;  %v16042_v52 = vcombine.low %v3894_v13, %v3898_v14  ;;  %v3814_v18 = vld [vmem:[%s17216_s3 + $0xb58] sm:$0xff]  ;;  %v16051_v0 = vcombine.high %v3886_v10, %v3890_v41 }
 0x530   :  { %7113 = vmatprep.subr.bf16.mxu0 %v16015_v27  ;;  %18892 = vst [vmem:[#allocation438_spill] sm:$0xff] %v16039_v28  ;;  %v3818_v24 = vld [vmem:[%s17216_s3 + $0xb78] sm:$0xff]  ;;  %v16054_v27 = vcombine.low %v3822_v57, %v3826_v42  ;;  %v16071_v57 = vcombine.low %v3886_v10, %v3890_v41 }
 0x531   :  { %18893 = vst [vmem:[#allocation439_spill] sm:$0xff] %v16042_v52  ;;  %18894 = vst [vmem:[#allocation440_spill] sm:$0xff] %v16051_v0  ;;  %v3878_v13 = vld [vmem:[%s17216_s3 + $0xd58] sm:$0xff] }
 0x532   :  { %7087 = vmatpush2.bf16.msra.mxu1 %v16018_v51  ;;  %v3882_v14 = vld [vmem:[%s17216_s3 + $0xd78] sm:$0xff]  ;;  %18896 = vst [vmem:[#allocation442_spill] sm:$0xff] %v16071_v57 }
 0x533   :  { %7138 = vmatprep.subr.bf16.mxu1 %v16027_v31  ;;  %7114 = vmatpush2.bf16.msra.mxu0 %v16030_v40  ;;  %v16064_v31 = vcombine.high %v3814_v18, %v3818_v24  ;;  %v3806_v42 = vld [vmem:[%s17216_s3 + $0xb18] sm:$0xff]  ;;  %v16080_v40 = vcombine.high %v3878_v13, %v3882_v14 }
 0x534   :  { %7115 = vmatprep.subr.bf16.mxu0 %v16039_v28  ;;  %v3870_v10 = vld [vmem:[%s17216_s3 + $0xd18] sm:$0xff] }
 0x535   :  { %v6844_v51 = vpop.f32.mrf.mxu1  ;;  %7089 = vmatmul.mubr.bf16.vlgmr.msra.gmra.mxu1 %v13618_v19  ;;  %18895 = vst [vmem:[#allocation441_spill] sm:$0xff] %v16064_v31  ;;  %v3810_v19 = vld [vmem:[%s17216_s3 + $0xb38] sm:$0xff] }
 0x536   :  { %v16067_v59 = vadd.f32 %v6844_v51, %v15855_v54  ;;  %7139 = vmatpush1.bf16.msra.mxu1 %v16042_v52  ;;  %7170 = vmatprep.mubr.bf16.mxu1 %v13623_v2  ;;  %v16086_v51 = vcombine.low %v3814_v18, %v3818_v24  ;;  %v3874_v41 = vld [vmem:[%s17216_s3 + $0xd38] sm:$0xff] }
 0x537   :  { %v6846_v28 = vpop.f32.mrf.mxu1  ;;  %7140 = vmatprep.subr.bf16.mxu1 %v16051_v0  ;;  %7116 = vmatpush2.bf16.msra.mxu0 %v16054_v27  ;;  %v16095_v0 = vcombine.high %v3806_v42, %v3810_v19  ;;  %v3802_v18 = vld [vmem:[%s17216_s3 + $0xaf8] sm:$0xff] }
 0x538   :  { %v16083_v54 = vadd.f32 %v6846_v28, %v15872_v26  ;;  %18897 = vst [vmem:[#allocation443_spill] sm:$0xff] %v16086_v51  ;;  %7117 = vmatprep.subr.bf16.mxu0 %v16064_v31  ;;  %v16098_v26 = vcombine.low %v3878_v13, %v3882_v14  ;;  %v3798_v28 = vld [vmem:[%s17216_s3 + $0xad8] sm:$0xff]  ;;  %v16110_v31 = vcombine.low %v3806_v42, %v3810_v19 }
 0x539   :  { %v6848_v52 = vpop.f32.mrf.mxu1  ;;  %18898 = vst [vmem:[#allocation444_spill] sm:$0xff] %v16095_v0  ;;  %v3862_v13 = vld [vmem:[%s17216_s3 + $0xcd8] sm:$0xff] }
 0x53a   :  { %7141 = vmatpush1.bf16.msra.mxu1 %v16071_v57  ;;  %18899 = vst [vmem:[#allocation445_spill] sm:$0xff] %v16098_v26  ;;  %v16107_v52 = vcombine.high %v3870_v10, %v3874_v41  ;;  %18901 = vst [vmem:[#allocation447_spill] sm:$0xff] %v16110_v31  ;;  %v3866_v14 = vld [vmem:[%s17216_s3 + $0xcf8] sm:$0xff]  ;;  %v16119_v57 = vcombine.high %v3798_v28, %v3802_v18 }
 0x53b   :  { %v6849_v24 = vpop.f32.mrf.mxu1  ;;  %7142 = vmatprep.subr.bf16.mxu1 %v16080_v40  ;;  %7118 = vmatpush2.bf16.msra.mxu0 %v16086_v51  ;;  %v3790_v42 = vld [vmem:[%s17216_s3 + $0xa98] sm:$0xff]  ;;  %v16131_v51 = vcombine.high %v3862_v13, %v3866_v14 }
 0x53c   :  { %18900 = vst [vmem:[#allocation446_spill] sm:$0xff] %v16107_v52  ;;  %7119 = vmatprep.subr.bf16.mxu0 %v16095_v0  ;;  %18902 = vst [vmem:[#allocation448_spill] sm:$0xff] %v16119_v57  ;;  %v16122_v24 = vcombine.low %v3870_v10, %v3874_v41  ;;  %v3794_v19 = vld [vmem:[%s17216_s3 + $0xab8] sm:$0xff]  ;;  %v16134_v0 = vcombine.low %v3798_v28, %v3802_v18 }
 0x53d   :  { %18904 = vst [vmem:[#allocation450_spill] sm:$0xff] %v16131_v51  ;;  %v3854_v10 = vld [vmem:[%s17216_s3 + $0xc98] sm:$0xff] }
 0x53e   :  { %7143 = vmatpush1.bf16.msra.mxu1 %v16098_v26  ;;  %18903 = vst [vmem:[#allocation449_spill] sm:$0xff] %v16122_v24  ;;  %18905 = vst [vmem:[#allocation451_spill] sm:$0xff] %v16134_v0  ;;  %v3858_v41 = vld [vmem:[%s17216_s3 + $0xcb8] sm:$0xff]  ;;  %v16143_v26 = vcombine.high %v3790_v42, %v3794_v19 }
 0x53f   :  { %7144 = vmatprep.subr.bf16.mxu1 %v16107_v52  ;;  %7120 = vmatpush2.bf16.msra.mxu0 %v16110_v31  ;;  %v16146_v52 = vcombine.low %v3862_v13, %v3866_v14  ;;  %v3782_v28 = vld [vmem:[%s17216_s3 + $0xa58] sm:$0xff]  ;;  %v16155_v31 = vcombine.high %v3854_v10, %v3858_v41 }
 0x540   :  { %7121 = vmatprep.subr.bf16.mxu0 %v16119_v57  ;;  %18906 = vst [vmem:[#allocation452_spill] sm:$0xff] %v16143_v26  ;;  %v3786_v18 = vld [vmem:[%s17216_s3 + $0xa78] sm:$0xff]  ;;  %v16158_v57 = vcombine.low %v3790_v42, %v3794_v19 }
 0x541   :  { %18907 = vst [vmem:[#allocation453_spill] sm:$0xff] %v16146_v52  ;;  %18908 = vst [vmem:[#allocation454_spill] sm:$0xff] %v16155_v31  ;;  %v3846_v13 = vld [vmem:[%s17216_s3 + $0xc58] sm:$0xff] }
 0x542   :  { %7145 = vmatpush1.bf16.msra.mxu1 %v16122_v24  ;;  %18909 = vst [vmem:[#allocation455_spill] sm:$0xff] %v16158_v57  ;;  %v3850_v14 = vld [vmem:[%s17216_s3 + $0xc78] sm:$0xff]  ;;  %v16167_v24 = vcombine.high %v3782_v28, %v3786_v18 }
 0x543   :  { %7146 = vmatprep.subr.bf16.mxu1 %v16131_v51  ;;  %7122 = vmatpush2.bf16.msra.mxu0 %v16134_v0  ;;  %v16170_v51 = vcombine.low %v3854_v10, %v3858_v41  ;;  %v3774_v42 = vld [vmem:[%s17216_s3 + $0xa18] sm:$0xff]  ;;  %v16179_v0 = vcombine.high %v3846_v13, %v3850_v14 }
 0x544   :  { %7123 = vmatprep.subr.bf16.mxu0 %v16143_v26  ;;  %18910 = vst [vmem:[#allocation456_spill] sm:$0xff] %v16167_v24  ;;  %v3778_v19 = vld [vmem:[%s17216_s3 + $0xa38] sm:$0xff]  ;;  %v16182_v26 = vcombine.low %v3782_v28, %v3786_v18 }
 0x545   :  { %v3838_v10 = vld [vmem:[%s17216_s3 + $0xc18] sm:$0xff]  ;;  %v16200_v18 = vcombine.low %v3774_v42, %v3778_v19 }
 0x546   :  { %7147 = vmatpush1.bf16.msra.mxu1 %v16146_v52  ;;  %v3842_v41 = vld [vmem:[%s17216_s3 + $0xc38] sm:$0xff]  ;;  %v16191_v52 = vcombine.high %v3774_v42, %v3778_v19 }
 0x547   :  { %7148 = vmatprep.subr.bf16.mxu1 %v16155_v31  ;;  %7124 = vmatpush2.bf16.msra.mxu0 %v16158_v57  ;;  %v16194_v31 = vcombine.low %v3846_v13, %v3850_v14  ;;  %v16197_v28 = vcombine.high %v3838_v10, %v3842_v41  ;;  %18913 = vst [vmem:[#allocation459_spill] sm:$0xff] %v16200_v18  ;;  %v3958_v57 = vld [vmem:[%s17216_s3 + $0xfd8] sm:$0xff] }
 0x548   :  { %7125 = vmatprep.subr.bf16.mxu0 %v16167_v24  ;;  %v3962_v24 = vld [vmem:[%s17216_s3 + $0xff8] sm:$0xff]  ;;  %v16210_v13 = vcombine.low %v3838_v10, %v3842_v41 }
 0x549   :  { %18911 = vst [vmem:[#allocation457_spill] sm:$0xff] %v16194_v31  ;;  %18912 = vst [vmem:[#allocation458_spill] sm:$0xff] %v16197_v28  ;;  %v16213_v14 = vcombine.high %v3958_v57, %v3962_v24  ;;  %v3950_v42 = vld [vmem:[%s17216_s3 + $0xf98] sm:$0xff]  ;;  %v16224_v10 = vcombine.low %v3958_v57, %v3962_v24 }
 0x54a   :  { %7149 = vmatpush1.bf16.msra.mxu1 %v16170_v51  ;;  %18914 = vst [vmem:[#allocation460_spill] sm:$0xff] %v16210_v13  ;;  %v3954_v19 = vld [vmem:[%s17216_s3 + $0xfb8] sm:$0xff] }
 0x54b   :  { %7150 = vmatprep.subr.bf16.mxu1 %v16179_v0  ;;  %7126 = vmatpush2.bf16.msra.mxu0 %v16182_v26  ;;  %18915 = vst [vmem:[#allocation461_spill] sm:$0xff] %v16213_v14  ;;  %v3946_v57 = vld [vmem:[%s17216_s3 + $0xf78] sm:$0xff] }
 0x54c   :  { %7127 = vmatprep.subr.bf16.mxu0 %v16191_v52 }
 0x54e   :  { %7151 = vmatpush1.bf16.msra.mxu1 %v16194_v31  ;;  %v3938_v31 = vld [vmem:[%s17216_s3 + $0xf38] sm:$0xff] }
 0x54f   :  { %7152 = vmatprep.subr.bf16.mxu1 %v16197_v28  ;;  %7128 = vmatpush2.bf16.msra.mxu0 %v16200_v18  ;;  %v16230_v18 = vcombine.high %v3950_v42, %v3954_v19  ;;  %v3934_v28 = vld [vmem:[%s17216_s3 + $0xf18] sm:$0xff] }
 0x550   :  { %7201 = vmatprep.subr.bf16.mxu0 %v13014_v6  ;;  %v3942_v6 = vld [vmem:[%s17216_s3 + $0xf58] sm:$0xff] }
 0x552   :  { %7153 = vmatpush1.bf16.msra.mxu1 %v16210_v13  ;;  %v16226_v41 = vpop.f32.mrf.mxu0  ;;  %7130 = vmatmul.mubr.bf16.vlgmr.msra.gmra.mxu0 %v13816_v53 }
 0x553   :  { %7154 = vmatprep.subr.bf16.mxu1 %v16213_v14  ;;  %7202 = vmatpush1.bf16.msra.mxu0 %v13025_v20  ;;  %v16244_v14 = vcombine.low %v3950_v42, %v3954_v19  ;;  %v16247_v20 = vcombine.high %v3942_v6, %v3946_v57  ;;  %v16261_v42 = vcombine.high %v3934_v28, %v3938_v31  ;;  %v3930_v19 = vld [vmem:[%s17216_s3 + $0xef8] sm:$0xff] }
 0x554   :  { %7233 = vmatprep.mubr.bf16.mxu0 %v13399_v35  ;;  %v16240_v24 = vpop.f32.mrf.mxu0  ;;  %7203 = vmatprep.subr.bf16.mxu0 %v13028_v5 }
 0x556   :  { %7155 = vmatpush2.bf16.msra.mxu1 %v16224_v10  ;;  %v6889_v13 = vpop.f32.mrf.mxu0 }
 0x557   :  { %7156 = vmatprep.subr.bf16.mxu1 %v16230_v18  ;;  %7204 = vmatpush1.bf16.msra.mxu0 %v13044_v38  ;;  %v16258_v13 = vcombine.low %v3942_v6, %v3946_v57  ;;  %v3926_v38 = vld [vmem:[%s17216_s3 + $0xed8] sm:$0xff] }
 0x558   :  { %v6890_v5 = vpop.f32.mrf.mxu0  ;;  %7205 = vmatprep.subr.bf16.mxu0 %v13047_v9  ;;  %v16272_v9 = vcombine.low %v3934_v28, %v3938_v31  ;;  %v16275_v6 = vcombine.high %v3926_v38, %v3930_v19  ;;  %v3922_v57 = vld [vmem:[%s17216_s3 + $0xeb8] sm:$0xff] }
 0x559   :  { %v3914_v28 = vld [vmem:[%s17216_s3 + $0xe78] sm:$0xff] }
 0x55a   :  { %7157 = vmatpush2.bf16.msra.mxu1 %v16244_v14 }
 0x55b   :  { %7158 = vmatprep.subr.bf16.mxu1 %v16247_v20  ;;  %7206 = vmatpush1.bf16.msra.mxu0 %v13058_v47  ;;  %v3918_v47 = vld [vmem:[%s17216_s3 + $0xe98] sm:$0xff] }
 0x55c   :  { %7207 = vmatprep.subr.bf16.mxu0 %v13061_v3  ;;  %v16286_v3 = vcombine.low %v3926_v38, %v3930_v19  ;;  %v16289_v31 = vcombine.high %v3918_v47, %v3922_v57  ;;  %v3906_v38 = vld [vmem:[%s17216_s3 + $0xe38] sm:$0xff] }
 0x55e   :  { %7159 = vmatpush2.bf16.msra.mxu1 %v16258_v13 }
 0x55f   :  { %7160 = vmatprep.subr.bf16.mxu1 %v16261_v42  ;;  %7208 = vmatpush1.bf16.msra.mxu0 %v13072_v43  ;;  %v3910_v43 = vld [vmem:[%s17216_s3 + $0xe58] sm:$0xff] }
 0x560   :  { %7209 = vmatprep.subr.bf16.mxu0 %v13075_v62  ;;  %v16300_v62 = vcombine.low %v3918_v47, %v3922_v57  ;;  %v16303_v5 = vcombine.high %v3910_v43, %v3914_v28  ;;  %v18928_v47 = vld [vmem:[#allocation105_spill] sm:$0xff] }
 0x561   :  { %v3442_v57 = vadd.f32 %v14237_v12, %v18928_v47  ;;  %v18943_v47 = vld [vmem:[#allocation131_spill] sm:$0xff] }
 0x562   :  { %7161 = vmatpush2.bf16.msra.mxu1 %v16272_v9 }
 0x563   :  { %7162 = vmatprep.subr.bf16.mxu1 %v16275_v6  ;;  %7210 = vmatpush1.bf16.msra.mxu0 %v13092_v11  ;;  %v3902_v11 = vld [vmem:[%s17216_s3 + $0xe18] sm:$0xff] }
 0x564   :  { %7211 = vmatprep.subr.bf16.mxu0 %v13095_v4  ;;  %v16314_v4 = vcombine.low %v3910_v43, %v3914_v28  ;;  %v16317_v19 = vcombine.high %v3902_v11, %v3906_v38  ;;  %v18929_v43 = vld [vmem:[#allocation117_spill] sm:$0xff]  ;;  %v18930_v28 = vld [vmem:[#allocation118_spill] sm:$0xff] }
 0x566   :  { %7163 = vmatpush2.bf16.msra.mxu1 %v16286_v3 }
 0x567   :  { %7164 = vmatprep.subr.bf16.mxu1 %v16289_v31  ;;  %7212 = vmatpush1.bf16.msra.mxu0 %v13114_v29  ;;  %v16322_v29 = vcombine.low %v3902_v11, %v3906_v38  ;;  %v18931_v11 = vld [vmem:[#allocation119_spill] sm:$0xff]  ;;  %v18932_v38 = vld [vmem:[#allocation120_spill] sm:$0xff] }
 0x568   :  { %7213 = vmatprep.subr.bf16.mxu0 %v13119_v45 }
 0x56a   :  { %7165 = vmatpush2.bf16.msra.mxu1 %v16300_v62 }
 0x56b   :  { %7166 = vmatprep.subr.bf16.mxu1 %v16303_v5  ;;  %7214 = vmatpush1.bf16.msra.mxu0 %v13133_v23 }
 0x56c   :  { %7215 = vmatprep.subr.bf16.mxu0 %v13136_v63 }
 0x56e   :  { %7167 = vmatpush2.bf16.msra.mxu1 %v16314_v4 }
 0x56f   :  { %7168 = vmatprep.subr.bf16.mxu1 %v16317_v19  ;;  %7216 = vmatpush1.bf16.msra.mxu0 %v13154_v39 }
 0x570   :  { %7217 = vmatprep.subr.bf16.mxu0 %v13163_v37 }
 0x572   :  { %7169 = vmatpush2.bf16.msra.mxu1 %v16322_v29 }
 0x573   :  { %7242 = vmatprep.subr.bf16.mxu1 %v13173_v7  ;;  %7218 = vmatpush2.bf16.msra.mxu0 %v13176_v36  ;;  %v18916_v36 = vld [vmem:[#allocation106_spill] sm:$0xff] }
 0x574   :  { %7219 = vmatprep.subr.bf16.mxu0 %v13185_v56  ;;  %v18917_v56 = vld [vmem:[#allocation110_spill] sm:$0xff] }
 0x575   :  { %v6926_v45 = vpop.f32.mrf.mxu1  ;;  %7171 = vmatmul.mubr.bf16.vlgmr.msra.gmra.mxu1 %v14036_v46 }
 0x576   :  { %v6927_v23 = vadd.f32 %v6926_v45, %v16226_v41  ;;  %7243 = vmatpush1.bf16.msra.mxu1 %v13188_v30  ;;  %7274 = vmatprep.mubr.bf16.mxu1 %v13623_v2  ;;  %v18918_v30 = vld [vmem:[#allocation111_spill] sm:$0xff]  ;;  %v18923_v41 = vld [vmem:[#allocation112_spill] sm:$0xff]  ;;  %v3445_v45 = vmax.f32 %v3442_v57, 0.0 }
 0x577   :  { %v6928_v63 = vpop.f32.mrf.mxu1  ;;  %7244 = vmatprep.subr.bf16.mxu1 %v13197_v22  ;;  %7220 = vmatpush2.bf16.msra.mxu0 %v13202_v21  ;;  %v18919_v22 = vld [vmem:[#allocation108_spill] sm:$0xff]  ;;  %v18920_v21 = vld [vmem:[#allocation109_spill] sm:$0xff] }
 0x578   :  { %v6929_v39 = vadd.f32 %v6928_v63, %v16240_v24  ;;  %7221 = vmatprep.subr.bf16.mxu0 %v13212_v60  ;;  %v18921_v60 = vld [vmem:[#allocation113_spill] sm:$0xff]  ;;  %v18927_v24 = vld [vmem:[#allocation3_spill] sm:$0xff]  ;;  %v16366_v12 = vpack.c.bf16 %v3445_v45, %v3445_v45 }
 0x579   :  { %v6930_v37 = vpop.f32.mrf.mxu1  ;;  %v18933_v63 = vld [vmem:[#allocation121_spill] sm:$0xff] }
 0x57a   :  { %7245 = vmatpush1.bf16.msra.mxu1 %v13216_v50  ;;  %v18922_v50 = vld [vmem:[#allocation114_spill] sm:$0xff]  ;;  %v18949_v45 = vld [vmem:[#allocation137_spill] sm:$0xff] }
 0x57b   :  { %v6931_v7 = vpop.f32.mrf.mxu1  ;;  %7246 = vmatprep.subr.bf16.mxu1 %v13225_v55  ;;  %7222 = vmatpush2.bf16.msra.mxu0 %v13228_v17  ;;  %v18924_v55 = vld [vmem:[#allocation2_spill] sm:$0xff]  ;;  %v18925_v17 = vld [vmem:[#allocation115_spill] sm:$0xff] }
 0x57c   :  { %7223 = vmatprep.subr.bf16.mxu0 %v13237_v32  ;;  %v18926_v32 = vld [vmem:[#allocation116_spill] sm:$0xff]  ;;  %v18934_v37 = vld [vmem:[#allocation122_spill] sm:$0xff]  ;;  %v18935_v7 = vld [vmem:[#allocation123_spill] sm:$0xff] }
 0x57e   :  { %7247 = vmatpush1.bf16.msra.mxu1 %v18916_v36  ;;  %v18936_v36 = vld [vmem:[#allocation124_spill] sm:$0xff] }
 0x57f   :  { %7248 = vmatprep.subr.bf16.mxu1 %v18917_v56  ;;  %7224 = vmatpush2.bf16.msra.mxu0 %v18918_v30  ;;  %v18937_v56 = vld [vmem:[#allocation125_spill] sm:$0xff] }
 0x580   :  { %7225 = vmatprep.subr.bf16.mxu0 %v18919_v22  ;;  %v18938_v22 = vld [vmem:[#allocation126_spill] sm:$0xff] }
 0x582   :  { %7249 = vmatpush1.bf16.msra.mxu1 %v18920_v21 }
 0x583   :  { %7250 = vmatprep.subr.bf16.mxu1 %v18921_v60  ;;  %7226 = vmatpush2.bf16.msra.mxu0 %v18922_v50  ;;  %v18939_v60 = vld [vmem:[#allocation127_spill] sm:$0xff] }
 0x584   :  { %7227 = vmatprep.subr.bf16.mxu0 %v18923_v41  ;;  %v18940_v41 = vld [vmem:[#allocation128_spill] sm:$0xff] }
 0x586   :  { %7251 = vmatpush1.bf16.msra.mxu1 %v18924_v55  ;;  %v18941_v55 = vld [vmem:[#allocation129_spill] sm:$0xff] }
 0x587   :  { %7252 = vmatprep.subr.bf16.mxu1 %v18925_v17  ;;  %7228 = vmatpush2.bf16.msra.mxu0 %v18926_v32 }
 0x588   :  { %7229 = vmatprep.subr.bf16.mxu0 %v18927_v24  ;;  %v18942_v24 = vld [vmem:[#allocation130_spill] sm:$0xff] }
 0x58a   :  { %7253 = vmatpush1.bf16.msra.mxu1 %v18929_v43  ;;  %v18944_v43 = vld [vmem:[#allocation132_spill] sm:$0xff] }
 0x58b   :  { %7254 = vmatprep.subr.bf16.mxu1 %v18930_v28  ;;  %7230 = vmatpush2.bf16.msra.mxu0 %v18931_v11  ;;  %v18945_v28 = vld [vmem:[#allocation133_spill] sm:$0xff]  ;;  %v18947_v11 = vld [vmem:[#allocation135_spill] sm:$0xff] }
 0x58c   :  { %7231 = vmatprep.subr.bf16.mxu0 %v18932_v38  ;;  %v18948_v38 = vld [vmem:[#allocation136_spill] sm:$0xff] }
 0x58e   :  { %7255 = vmatpush1.bf16.msra.mxu1 %v18933_v63  ;;  %v18950_v63 = vld [vmem:[#allocation138_spill] sm:$0xff] }
 0x58f   :  { %7256 = vmatprep.subr.bf16.mxu1 %v18934_v37  ;;  %7232 = vmatpush2.bf16.msra.mxu0 %v18935_v7  ;;  %v18952_v37 = vld [vmem:[#allocation140_spill] sm:$0xff] }
 0x590   :  { %7283 = vmatprep.subr.bf16.mxu0 %v18936_v36  ;;  %v18953_v7 = vld [vmem:[#allocation4_spill] sm:$0xff]  ;;  %v18954_v36 = vld [vmem:[#allocation141_spill] sm:$0xff] }
 0x592   :  { %7257 = vmatpush1.bf16.msra.mxu1 %v18937_v56  ;;  %v6967_v30 = vpop.f32.mrf.mxu0  ;;  %7234 = vmatmul.mubr.bf16.vlgmr.msra.gmra.mxu0 %v13816_v53  ;;  %v18955_v56 = vld [vmem:[#allocation142_spill] sm:$0xff] }
 0x593   :  { %7258 = vmatprep.subr.bf16.mxu1 %v18938_v22  ;;  %v6968_v21 = vadd.f32 %v6967_v30, %v6927_v23  ;;  %7284 = vmatpush1.bf16.msra.mxu0 %v18939_v60  ;;  %v18946_v23 = vld [vmem:[#allocation134_spill] sm:$0xff]  ;;  %v18956_v30 = vld [vmem:[#allocation5_spill] sm:$0xff]  ;;  %v18957_v22 = vld [vmem:[#allocation143_spill] sm:$0xff] }
 0x594   :  { %7315 = vmatprep.mubr.bf16.mxu0 %v16366_v12  ;;  %v6969_v50 = vpop.f32.mrf.mxu0  ;;  %7285 = vmatprep.subr.bf16.mxu0 %v18940_v41  ;;  %v18958_v60 = vld [vmem:[#allocation144_spill] sm:$0xff]  ;;  %v18960_v41 = vld [vmem:[#allocation146_spill] sm:$0xff] }
 0x595   :  { %v6970_v17 = vadd.f32 %v6969_v50, %v6929_v39  ;;  %v18951_v39 = vld [vmem:[#allocation139_spill] sm:$0xff]  ;;  %v18959_v50 = vld [vmem:[#allocation145_spill] sm:$0xff] }
 0x596   :  { %7259 = vmatpush2.bf16.msra.mxu1 %v18941_v55  ;;  %v6971_v32 = vpop.f32.mrf.mxu0  ;;  %v18961_v55 = vld [vmem:[#allocation147_spill] sm:$0xff] }
 0x597   :  { %7260 = vmatprep.subr.bf16.mxu1 %v18942_v24  ;;  %7286 = vmatpush1.bf16.msra.mxu0 %v18943_v47  ;;  %v18962_v32 = vld [vmem:[#allocation148_spill] sm:$0xff] }
 0x598   :  { %v6972_v57 = vpop.f32.mrf.mxu0  ;;  %7287 = vmatprep.subr.bf16.mxu0 %v18944_v43  ;;  %v18963_v24 = vld [vmem:[#allocation160_spill] sm:$0xff]  ;;  %v18965_v43 = vld [vmem:[#allocation150_spill] sm:$0xff] }
 0x599   :  { %v3444_v47 = vadd.f32 %v14511_v34, %v18963_v24  ;;  %v18964_v57 = vld [vmem:[#allocation149_spill] sm:$0xff] }
 0x59a   :  { %7261 = vmatpush2.bf16.msra.mxu1 %v18945_v28  ;;  %v18966_v28 = vld [vmem:[#allocation151_spill] sm:$0xff] }
 0x59b   :  { %7262 = vmatprep.subr.bf16.mxu1 %v18946_v23  ;;  %7288 = vmatpush1.bf16.msra.mxu0 %v18947_v11  ;;  %v18967_v23 = vld [vmem:[#allocation152_spill] sm:$0xff]  ;;  %v3447_v11 = vmax.f32 %v3444_v47, 0.0  ;;  %v18977_v47 = vld [vmem:[#allocation15_spill] sm:$0xff] }
 0x59c   :  { %7289 = vmatprep.subr.bf16.mxu0 %v18948_v38  ;;  %v18968_v38 = vld [vmem:[#allocation153_spill] sm:$0xff] }
 0x59d   :  { %v16406_v34 = vpack.c.bf16 %v3447_v11, %v3447_v11  ;;  %v18981_v11 = vld [vmem:[#allocation11_spill] sm:$0xff] }
 0x59e   :  { %7263 = vmatpush2.bf16.msra.mxu1 %v18949_v45  ;;  %v18969_v45 = vld [vmem:[#allocation154_spill] sm:$0xff] }
 0x59f   :  { %7264 = vmatprep.subr.bf16.mxu1 %v18950_v63  ;;  %7290 = vmatpush1.bf16.msra.mxu0 %v18951_v39  ;;  %v18970_v63 = vld [vmem:[#allocation155_spill] sm:$0xff]  ;;  %v18971_v39 = vld [vmem:[#allocation156_spill] sm:$0xff] }
 0x5a0   :  { %7291 = vmatprep.subr.bf16.mxu0 %v18952_v37  ;;  %v18972_v37 = vld [vmem:[#allocation157_spill] sm:$0xff] }
 0x5a2   :  { %7265 = vmatpush2.bf16.msra.mxu1 %v18953_v7 }
 0x5a3   :  { %7266 = vmatprep.subr.bf16.mxu1 %v18954_v36  ;;  %7292 = vmatpush1.bf16.msra.mxu0 %v18955_v56  ;;  %v18973_v36 = vld [vmem:[#allocation158_spill] sm:$0xff] }
 0x5a4   :  { %7293 = vmatprep.subr.bf16.mxu0 %v18956_v30  ;;  %v18974_v30 = vld [vmem:[#allocation12_spill] sm:$0xff] }
 0x5a6   :  { %7267 = vmatpush2.bf16.msra.mxu1 %v18957_v22 }
 0x5a7   :  { %7268 = vmatprep.subr.bf16.mxu1 %v18958_v60  ;;  %7294 = vmatpush1.bf16.msra.mxu0 %v18959_v50  ;;  %v18975_v60 = vld [vmem:[#allocation8_spill] sm:$0xff] }
 0x5a8   :  { %7295 = vmatprep.subr.bf16.mxu0 %v18960_v41 }
 0x5aa   :  { %7269 = vmatpush2.bf16.msra.mxu1 %v18961_v55  ;;  %v18976_v55 = vld [vmem:[#allocation9_spill] sm:$0xff] }
 0x5ab   :  { %7270 = vmatprep.subr.bf16.mxu1 %v18962_v32  ;;  %7296 = vmatpush1.bf16.msra.mxu0 %v18964_v57  ;;  %v18978_v57 = vld [vmem:[#allocation16_spill] sm:$0xff] }
 0x5ac   :  { %7297 = vmatprep.subr.bf16.mxu0 %v18965_v43 }
 0x5ae   :  { %7271 = vmatpush2.bf16.msra.mxu1 %v18966_v28  ;;  %v18979_v28 = vld [vmem:[#allocation38_spill] sm:$0xff] }
 0x5af   :  { %7272 = vmatprep.subr.bf16.mxu1 %v18967_v23  ;;  %7298 = vmatpush1.bf16.msra.mxu0 %v18968_v38  ;;  %v18980_v23 = vld [vmem:[#allocation10_spill] sm:$0xff]  ;;  %v18982_v38 = vld [vmem:[#allocation41_spill] sm:$0xff] }
 0x5b0   :  { %7299 = vmatprep.subr.bf16.mxu0 %v18969_v45  ;;  %v18984_v45 = vld [vmem:[#allocation20_spill] sm:$0xff] }
 0x5b2   :  { %7273 = vmatpush2.bf16.msra.mxu1 %v18970_v63  ;;  %v18985_v63 = vld [vmem:[#allocation13_spill] sm:$0xff] }
 0x5b3   :  { %7324 = vmatprep.subr.bf16.mxu1 %v18971_v39  ;;  %7300 = vmatpush2.bf16.msra.mxu0 %v18972_v37  ;;  %v18986_v39 = vld [vmem:[#allocation14_spill] sm:$0xff]  ;;  %v18987_v37 = vld [vmem:[#allocation23_spill] sm:$0xff] }
 0x5b4   :  { %7301 = vmatprep.subr.bf16.mxu0 %v18973_v36  ;;  %v18989_v36 = vld [vmem:[#allocation17_spill] sm:$0xff] }
 0x5b5   :  { %v7008_v7 = vpop.f32.mrf.mxu1  ;;  %7275 = vmatmul.mubr.bf16.vlgmr.msra.gmra.mxu1 %v14036_v46 }
 0x5b6   :  { %v16410_v56 = vadd.f32 %v7008_v7, %v6968_v21  ;;  %7325 = vmatpush1.bf16.msra.mxu1 %v18974_v30  ;;  %7356 = vmatprep.mubr.bf16.mxu1 %v16406_v34  ;;  %v18988_v7 = vld [vmem:[#allocation24_spill] sm:$0xff]  ;;  %v18990_v30 = vld [vmem:[#allocation18_spill] sm:$0xff] }
 0x5b7   :  { %v7010_v22 = vpop.f32.mrf.mxu1  ;;  %7326 = vmatprep.subr.bf16.mxu1 %v18975_v60  ;;  %7302 = vmatpush2.bf16.msra.mxu0 %v18976_v55  ;;  %v18992_v60 = vld [vmem:[#allocation28_spill] sm:$0xff]  ;;  %v18993_v55 = vld [vmem:[#allocation107_spill] sm:$0xff] }
 0x5b8   :  { %v7179_v50 = vmax.f32 %v15269_v49, %v16410_v56  ;;  %v16417_v41 = vadd.f32 %v7010_v22, %v6970_v17  ;;  %7303 = vmatprep.subr.bf16.mxu0 %v18977_v47  ;;  %v18983_v17 = vld [vmem:[#allocation19_spill] sm:$0xff]  ;;  %v18994_v47 = vld [vmem:[#allocation21_spill] sm:$0xff]  ;;  %v19109_v56 = vld [vmem:[#allocation196_spill] sm:$0xff] }
 0x5b9   :  { %v7012_v32 = vpop.f32.mrf.mxu1  ;;  %v18991_v22 = vld [vmem:[#allocation27_spill] sm:$0xff] }
 0x5ba   :  { %v7180_v21 = vmax.f32 %v15285_v16, %v16417_v41  ;;  %7327 = vmatpush1.bf16.msra.mxu1 %v18978_v57  ;;  %v2918_v32 = vadd.f32 %v18993_v55, %v18963_v24  ;;  %v18995_v57 = vld [vmem:[#allocation22_spill] sm:$0xff]  ;;  %v19002_v24 = vld [vmem:[#allocation29_spill] sm:$0xff]  ;;  %v19108_v49 = vld [vmem:[#allocation195_spill] sm:$0xff] }
 0x5bb   :  { %v7013_v43 = vpop.f32.mrf.mxu1  ;;  %7328 = vmatprep.subr.bf16.mxu1 %v18979_v28  ;;  %7304 = vmatpush2.bf16.msra.mxu0 %v18980_v23  ;;  %v18997_v28 = vld [vmem:[#allocation32_spill] sm:$0xff]  ;;  %v19114_v16 = vld [vmem:[#allocation201_spill] sm:$0xff]  ;;  %v19115_v41 = vld [vmem:[#allocation202_spill] sm:$0xff] }
 0x5bc   :  { %7305 = vmatprep.subr.bf16.mxu0 %v18981_v11  ;;  %v18996_v43 = vld [vmem:[#allocation31_spill] sm:$0xff]  ;;  %v2921_v23 = vmax.f32 %v2918_v32, 0.0  ;;  %v18998_v11 = vld [vmem:[#allocation25_spill] sm:$0xff]  ;;  %v19008_v32 = vld [vmem:[#allocation42_spill] sm:$0xff] }
 0x5be   :  { %7329 = vmatpush1.bf16.msra.mxu1 %v18982_v38  ;;  %v18999_v38 = vld [vmem:[#allocation26_spill] sm:$0xff] }
 0x5bf   :  { %7330 = vmatprep.subr.bf16.mxu1 %v18983_v17  ;;  %7306 = vmatpush2.bf16.msra.mxu0 %v18984_v45  ;;  %v19000_v17 = vld [vmem:[#allocation35_spill] sm:$0xff]  ;;  %v19001_v45 = vld [vmem:[#allocation36_spill] sm:$0xff] }
 0x5c0   :  { %7307 = vmatprep.subr.bf16.mxu0 %v18985_v63  ;;  %v16448_v63 = vpack.c.bf16 %v2921_v23, %v2921_v23  ;;  %v19012_v23 = vld [vmem:[#allocation47_spill] sm:$0xff] }
 0x5c2   :  { %7331 = vmatpush1.bf16.msra.mxu1 %v18986_v39  ;;  %v19003_v39 = vld [vmem:[#allocation30_spill] sm:$0xff] }
 0x5c3   :  { %7332 = vmatprep.subr.bf16.mxu1 %v18987_v37  ;;  %7308 = vmatpush2.bf16.msra.mxu0 %v18988_v7  ;;  %v19004_v7 = vld [vmem:[#allocation39_spill] sm:$0xff] }
 0x5c4   :  { %7309 = vmatprep.subr.bf16.mxu0 %v18989_v36  ;;  %v19005_v36 = vld [vmem:[#allocation40_spill] sm:$0xff] }
 0x5c6   :  { %7333 = vmatpush1.bf16.msra.mxu1 %v18990_v30 }
 0x5c7   :  { %7334 = vmatprep.subr.bf16.mxu1 %v18991_v22  ;;  %7310 = vmatpush2.bf16.msra.mxu0 %v18992_v60  ;;  %v19006_v22 = vld [vmem:[#allocation33_spill] sm:$0xff]  ;;  %v19007_v60 = vld [vmem:[#allocation34_spill] sm:$0xff] }
 0x5c8   :  { %7311 = vmatprep.subr.bf16.mxu0 %v18994_v47  ;;  %v19009_v47 = vld [vmem:[#allocation43_spill] sm:$0xff] }
 0x5ca   :  { %7335 = vmatpush1.bf16.msra.mxu1 %v18995_v57 }
 0x5cb   :  { %7336 = vmatprep.subr.bf16.mxu1 %v18996_v43  ;;  %7312 = vmatpush2.bf16.msra.mxu0 %v18997_v28  ;;  %v19010_v43 = vld [vmem:[#allocation37_spill] sm:$0xff]  ;;  %v19011_v28 = vld [vmem:[#allocation46_spill] sm:$0xff] }
 0x5cc   :  { %7313 = vmatprep.subr.bf16.mxu0 %v18998_v11  ;;  %v19013_v11 = vld [vmem:[#allocation49_spill] sm:$0xff] }
 0x5ce   :  { %7337 = vmatpush1.bf16.msra.mxu1 %v18999_v38  ;;  %v19014_v38 = vld [vmem:[#allocation50_spill] sm:$0xff] }
 0x5cf   :  { %7338 = vmatprep.subr.bf16.mxu1 %v19000_v17  ;;  %7314 = vmatpush2.bf16.msra.mxu0 %v19001_v45  ;;  %v19015_v17 = vld [vmem:[#allocation51_spill] sm:$0xff]  ;;  %v19016_v45 = vld [vmem:[#allocation52_spill] sm:$0xff] }
 0x5d0   :  { %7365 = vmatprep.subr.bf16.mxu0 %v19002_v24  ;;  %v19017_v24 = vld [vmem:[#allocation53_spill] sm:$0xff] }
 0x5d2   :  { %7339 = vmatpush1.bf16.msra.mxu1 %v19003_v39  ;;  %v7049_v37 = vpop.f32.mrf.mxu0  ;;  %7316 = vmatmul.mubr.bf16.vlgmr.msra.gmra.mxu0 %v16448_v63  ;;  %v19018_v39 = vld [vmem:[#allocation54_spill] sm:$0xff] }
 0x5d3   :  { %7340 = vmatprep.subr.bf16.mxu1 %v19004_v7  ;;  %7366 = vmatpush1.bf16.msra.mxu0 %v19005_v36  ;;  %v19019_v7 = vld [vmem:[#allocation55_spill] sm:$0xff]  ;;  %v19020_v36 = vld [vmem:[#allocation56_spill] sm:$0xff] }
 0x5d4   :  { %7397 = vmatprep.mubr.bf16.mxu0 %v13399_v35  ;;  %v7051_v30 = vpop.f32.mrf.mxu0  ;;  %7367 = vmatprep.subr.bf16.mxu0 %v19006_v22  ;;  %v19021_v22 = vld [vmem:[#allocation57_spill] sm:$0xff] }
 0x5d6   :  { %7341 = vmatpush2.bf16.msra.mxu1 %v19007_v60  ;;  %v7053_v55 = vpop.f32.mrf.mxu0  ;;  %v19022_v60 = vld [vmem:[#allocation45_spill] sm:$0xff] }
 0x5d7   :  { %7342 = vmatprep.subr.bf16.mxu1 %v19008_v32  ;;  %7368 = vmatpush1.bf16.msra.mxu0 %v19009_v47  ;;  %v19023_v55 = vld [vmem:[#allocation58_spill] sm:$0xff]  ;;  %v19024_v32 = vld [vmem:[#allocation59_spill] sm:$0xff]  ;;  %v19025_v47 = vld [vmem:[#allocation48_spill] sm:$0xff] }
 0x5d8   :  { %v7054_v57 = vpop.f32.mrf.mxu0  ;;  %7369 = vmatprep.subr.bf16.mxu0 %v19010_v43  ;;  %v19027_v43 = vld [vmem:[#allocation61_spill] sm:$0xff] }
 0x5d9   :  { %v19026_v57 = vld [vmem:[#allocation60_spill] sm:$0xff] }
 0x5da   :  { %7343 = vmatpush2.bf16.msra.mxu1 %v19011_v28  ;;  %v19028_v28 = vld [vmem:[#allocation102_spill] sm:$0xff] }
 0x5db   :  { %7344 = vmatprep.subr.bf16.mxu1 %v19012_v23  ;;  %7370 = vmatpush1.bf16.msra.mxu0 %v19013_v11  ;;  %v3443_v23 = vadd.f32 %v14493_v61, %v19028_v28  ;;  %v19029_v11 = vld [vmem:[#allocation62_spill] sm:$0xff]  ;;  %v19037_v61 = vld [vmem:[#allocation71_spill] sm:$0xff] }
 0x5dc   :  { %7371 = vmatprep.subr.bf16.mxu0 %v19014_v38  ;;  %v19030_v38 = vld [vmem:[#allocation63_spill] sm:$0xff] }
 0x5de   :  { %7345 = vmatpush2.bf16.msra.mxu1 %v19015_v17  ;;  %v19031_v17 = vld [vmem:[#allocation64_spill] sm:$0xff] }
 0x5df   :  { %7346 = vmatprep.subr.bf16.mxu1 %v19016_v45  ;;  %7372 = vmatpush1.bf16.msra.mxu0 %v19017_v24  ;;  %v19032_v45 = vld [vmem:[#allocation65_spill] sm:$0xff]  ;;  %v3446_v24 = vmax.f32 %v3443_v23, 0.0  ;;  %v19041_v23 = vld [vmem:[#allocation76_spill] sm:$0xff] }
 0x5e0   :  { %7373 = vmatprep.subr.bf16.mxu0 %v19018_v39  ;;  %v19033_v39 = vld [vmem:[#allocation66_spill] sm:$0xff] }
 0x5e2   :  { %7347 = vmatpush2.bf16.msra.mxu1 %v19019_v7  ;;  %v19034_v7 = vld [vmem:[#allocation67_spill] sm:$0xff] }
 0x5e3   :  { %7348 = vmatprep.subr.bf16.mxu1 %v19020_v36  ;;  %7374 = vmatpush1.bf16.msra.mxu0 %v19021_v22  ;;  %v19035_v36 = vld [vmem:[#allocation68_spill] sm:$0xff]  ;;  %v19036_v22 = vld [vmem:[#allocation70_spill] sm:$0xff] }
 0x5e4   :  { %7375 = vmatprep.subr.bf16.mxu0 %v19022_v60  ;;  %v16488_v60 = vpack.c.bf16 %v3446_v24, %v3446_v24  ;;  %v19044_v24 = vld [vmem:[#allocation80_spill] sm:$0xff] }
 0x5e6   :  { %7349 = vmatpush2.bf16.msra.mxu1 %v19023_v55  ;;  %v19038_v55 = vld [vmem:[#allocation72_spill] sm:$0xff] }
 0x5e7   :  { %7350 = vmatprep.subr.bf16.mxu1 %v19024_v32  ;;  %7376 = vmatpush1.bf16.msra.mxu0 %v19025_v47  ;;  %v19039_v47 = vld [vmem:[#allocation73_spill] sm:$0xff] }
 0x5e8   :  { %7377 = vmatprep.subr.bf16.mxu0 %v19026_v57 }
 0x5ea   :  { %7351 = vmatpush2.bf16.msra.mxu1 %v19027_v43  ;;  %v19040_v43 = vld [vmem:[#allocation74_spill] sm:$0xff] }
 0x5eb   :  { %7352 = vmatprep.subr.bf16.mxu1 %v19029_v11  ;;  %7378 = vmatpush1.bf16.msra.mxu0 %v19030_v38  ;;  %v19042_v38 = vld [vmem:[#allocation77_spill] sm:$0xff] }
 0x5ec   :  { %7379 = vmatprep.subr.bf16.mxu0 %v19031_v17 }
 0x5ee   :  { %7353 = vmatpush2.bf16.msra.mxu1 %v19032_v45  ;;  %v19043_v45 = vld [vmem:[#allocation79_spill] sm:$0xff] }
 0x5ef   :  { %7354 = vmatprep.subr.bf16.mxu1 %v19033_v39  ;;  %7380 = vmatpush1.bf16.msra.mxu0 %v19034_v7  ;;  %v19045_v7 = vld [vmem:[#allocation81_spill] sm:$0xff] }
 0x5f0   :  { %7381 = vmatprep.subr.bf16.mxu0 %v19035_v36  ;;  %v19046_v36 = vld [vmem:[#allocation82_spill] sm:$0xff] }
 0x5f2   :  { %7355 = vmatpush2.bf16.msra.mxu1 %v19036_v22  ;;  %v19048_v22 = vld [vmem:[#allocation83_spill] sm:$0xff] }
 0x5f3   :  { %7406 = vmatprep.subr.bf16.mxu1 %v19037_v61  ;;  %7382 = vmatpush2.bf16.msra.mxu0 %v19038_v55  ;;  %v19049_v61 = vld [vmem:[#allocation84_spill] sm:$0xff] }
 0x5f4   :  { %7383 = vmatprep.subr.bf16.mxu0 %v19039_v47  ;;  %v19050_v55 = vld [vmem:[#allocation88_spill] sm:$0xff]  ;;  %v19053_v47 = vld [vmem:[#allocation89_spill] sm:$0xff] }
 0x5f5   :  { %v7090_v32 = vpop.f32.mrf.mxu1  ;;  %7357 = vmatmul.mubr.bf16.vlgmr.msra.gmra.mxu1 %v16488_v60 }
 0x5f6   :  { %v7091_v57 = vadd.f32 %v7090_v32, %v7049_v37  ;;  %7407 = vmatpush1.bf16.msra.mxu1 %v19040_v43  ;;  %7438 = vmatprep.mubr.bf16.mxu1 %v13623_v2  ;;  %v19047_v37 = vld [vmem:[#allocation85_spill] sm:$0xff]  ;;  %v19052_v32 = vld [vmem:[#allocation7_spill] sm:$0xff]  ;;  %v19054_v43 = vld [vmem:[#allocation86_spill] sm:$0xff] }
 0x5f7   :  { %v7092_v28 = vpop.f32.mrf.mxu1  ;;  %7408 = vmatprep.subr.bf16.mxu1 %v19041_v23  ;;  %7384 = vmatpush2.bf16.msra.mxu0 %v19042_v38  ;;  %v19056_v23 = vld [vmem:[#allocation87_spill] sm:$0xff]  ;;  %v19057_v38 = vld [vmem:[#allocation92_spill] sm:$0xff] }
 0x5f8   :  { %v7093_v11 = vadd.f32 %v7092_v28, %v7051_v30  ;;  %7385 = vmatprep.subr.bf16.mxu0 %v19043_v45  ;;  %v19051_v30 = vld [vmem:[#allocation75_spill] sm:$0xff]  ;;  %v19055_v28 = vld [vmem:[#allocation78_spill] sm:$0xff] }
 0x5f9   :  { %v7094_v17 = vpop.f32.mrf.mxu1  ;;  %v19059_v45 = vld [vmem:[#allocation91_spill] sm:$0xff] }
 0x5fa   :  { %7409 = vmatpush1.bf16.msra.mxu1 %v19044_v24  ;;  %v19058_v17 = vld [vmem:[#allocation90_spill] sm:$0xff]  ;;  %v19060_v24 = vld [vmem:[#allocation95_spill] sm:$0xff] }
 0x5fb   :  { %v7095_v39 = vpop.f32.mrf.mxu1  ;;  %7410 = vmatprep.subr.bf16.mxu1 %v19045_v7  ;;  %7386 = vmatpush2.bf16.msra.mxu0 %v19046_v36  ;;  %v19062_v7 = vld [vmem:[#allocation93_spill] sm:$0xff]  ;;  %v19063_v36 = vld [vmem:[#allocation94_spill] sm:$0xff] }
 0x5fc   :  { %7387 = vmatprep.subr.bf16.mxu0 %v19047_v37  ;;  %v19061_v39 = vld [vmem:[#allocation96_spill] sm:$0xff]  ;;  %v19064_v37 = vld [vmem:[#allocation99_spill] sm:$0xff] }
 0x5fe   :  { %7411 = vmatpush1.bf16.msra.mxu1 %v19048_v22  ;;  %v19065_v22 = vld [vmem:[#allocation100_spill] sm:$0xff] }
 0x5ff   :  { %7412 = vmatprep.subr.bf16.mxu1 %v19049_v61  ;;  %7388 = vmatpush2.bf16.msra.mxu0 %v19050_v55  ;;  %v19066_v61 = vld [vmem:[#allocation97_spill] sm:$0xff] }
 0x600   :  { %7389 = vmatprep.subr.bf16.mxu0 %v19051_v30  ;;  %v19067_v55 = vld [vmem:[#allocation69_spill] sm:$0xff] }
 0x602   :  { %7413 = vmatpush1.bf16.msra.mxu1 %v19052_v32  ;;  %v19068_v32 = vld [vmem:[#allocation104_spill] sm:$0xff] }
 0x603   :  { %7414 = vmatprep.subr.bf16.mxu1 %v19053_v47  ;;  %7390 = vmatpush2.bf16.msra.mxu0 %v19054_v43  ;;  %v19069_v43 = vld [vmem:[#allocation101_spill] sm:$0xff] }
 0x604   :  { %7391 = vmatprep.subr.bf16.mxu0 %v19055_v28 }
 0x606   :  { %7415 = vmatpush1.bf16.msra.mxu1 %v19056_v23  ;;  %v19071_v23 = vld [vmem:[#allocation103_spill] sm:$0xff] }
 0x607   :  { %7416 = vmatprep.subr.bf16.mxu1 %v19057_v38  ;;  %7392 = vmatpush2.bf16.msra.mxu0 %v19058_v17 }
 0x608   :  { %7393 = vmatprep.subr.bf16.mxu0 %v19059_v45  ;;  %v19072_v45 = vld [vmem:[#allocation44_spill] sm:$0xff] }
 0x60a   :  { %7417 = vmatpush1.bf16.msra.mxu1 %v19060_v24  ;;  %v19073_v24 = vld [vmem:[#allocation98_spill] sm:$0xff] }
 0x60b   :  { %7418 = vmatprep.subr.bf16.mxu1 %v19061_v39  ;;  %7394 = vmatpush2.bf16.msra.mxu0 %v19062_v7  ;;  %v19074_v7 = vld [vmem:[#allocation161_spill] sm:$0xff] }
 0x60c   :  { %7395 = vmatprep.subr.bf16.mxu0 %v19063_v36  ;;  %v19075_v36 = vld [vmem:[#allocation162_spill] sm:$0xff] }
 0x60e   :  { %7419 = vmatpush1.bf16.msra.mxu1 %v14180_v25  ;;  %v19070_v25 = vld [vmem:[#allocation6_spill] sm:$0xff] }
 0x60f   :  { %7420 = vmatprep.subr.bf16.mxu1 %v19064_v37  ;;  %7396 = vmatpush2.bf16.msra.mxu0 %v19065_v22  ;;  %v19077_v37 = vld [vmem:[#allocation164_spill] sm:$0xff]  ;;  %v19078_v22 = vld [vmem:[#allocation165_spill] sm:$0xff] }
 0x610   :  { %7447 = vmatprep.subr.bf16.mxu0 %v19066_v61  ;;  %v19079_v61 = vld [vmem:[#allocation166_spill] sm:$0xff] }
 0x612   :  { %7421 = vmatpush1.bf16.msra.mxu1 %v19067_v55  ;;  %v7131_v30 = vpop.f32.mrf.mxu0  ;;  %7398 = vmatmul.mubr.bf16.vlgmr.msra.gmra.mxu0 %v13816_v53  ;;  %v19080_v55 = vld [vmem:[#allocation167_spill] sm:$0xff] }
 0x613   :  { %7422 = vmatprep.subr.bf16.mxu1 %v19068_v32  ;;  %v7132_v47 = vadd.f32 %v7131_v30, %v7091_v57  ;;  %7448 = vmatpush1.bf16.msra.mxu0 %v19069_v43  ;;  %v19076_v57 = vld [vmem:[#allocation163_spill] sm:$0xff]  ;;  %v19082_v30 = vld [vmem:[#allocation169_spill] sm:$0xff]  ;;  %v19083_v32 = vld [vmem:[#allocation170_spill] sm:$0xff] }
 0x614   :  { %7479 = vmatprep.mubr.bf16.mxu0 %v16366_v12  ;;  %v7133_v28 = vpop.f32.mrf.mxu0  ;;  %7449 = vmatprep.subr.bf16.mxu0 %v19070_v25  ;;  %v19084_v43 = vld [vmem:[#allocation171_spill] sm:$0xff]  ;;  %v19086_v25 = vld [vmem:[#allocation173_spill] sm:$0xff] }
 0x615   :  { %v7134_v38 = vadd.f32 %v7133_v28, %v7093_v11  ;;  %v19081_v11 = vld [vmem:[#allocation168_spill] sm:$0xff] }
 0x616   :  { %7423 = vmatpush2.bf16.msra.mxu1 %v19071_v23  ;;  %v7135_v17 = vpop.f32.mrf.mxu0  ;;  %v19085_v28 = vld [vmem:[#allocation172_spill] sm:$0xff]  ;;  %v19087_v23 = vld [vmem:[#allocation174_spill] sm:$0xff] }
 0x617   :  { %7424 = vmatprep.subr.bf16.mxu1 %v19072_v45  ;;  %7450 = vmatpush1.bf16.msra.mxu0 %v19073_v24  ;;  %v19088_v17 = vld [vmem:[#allocation175_spill] sm:$0xff]  ;;  %v19089_v45 = vld [vmem:[#allocation176_spill] sm:$0xff]  ;;  %v19090_v24 = vld [vmem:[#allocation177_spill] sm:$0xff] }
 0x618   :  { %v7136_v39 = vpop.f32.mrf.mxu0  ;;  %7451 = vmatprep.subr.bf16.mxu0 %v19074_v7  ;;  %v19092_v7 = vld [vmem:[#allocation179_spill] sm:$0xff] }
 0x619   :  { %v19091_v39 = vld [vmem:[#allocation178_spill] sm:$0xff] }
 0x61a   :  { %7425 = vmatpush2.bf16.msra.mxu1 %v19075_v36  ;;  %v19093_v36 = vld [vmem:[#allocation180_spill] sm:$0xff] }
 0x61b   :  { %7426 = vmatprep.subr.bf16.mxu1 %v19076_v57  ;;  %7452 = vmatpush1.bf16.msra.mxu0 %v19077_v37  ;;  %v19094_v57 = vld [vmem:[#allocation181_spill] sm:$0xff]  ;;  %v19095_v37 = vld [vmem:[#allocation182_spill] sm:$0xff] }
 0x61c   :  { %7453 = vmatprep.subr.bf16.mxu0 %v19078_v22  ;;  %v19096_v22 = vld [vmem:[#allocation183_spill] sm:$0xff] }
 0x61e   :  { %7427 = vmatpush2.bf16.msra.mxu1 %v19079_v61  ;;  %v19097_v61 = vld [vmem:[#allocation184_spill] sm:$0xff] }
 0x61f   :  { %7428 = vmatprep.subr.bf16.mxu1 %v19080_v55  ;;  %7454 = vmatpush1.bf16.msra.mxu0 %v19081_v11  ;;  %v19098_v55 = vld [vmem:[#allocation185_spill] sm:$0xff]  ;;  %v19099_v11 = vld [vmem:[#allocation186_spill] sm:$0xff] }
 0x620   :  { %7455 = vmatprep.subr.bf16.mxu0 %v19082_v30  ;;  %v19100_v30 = vld [vmem:[#allocation187_spill] sm:$0xff] }
 0x622   :  { %7429 = vmatpush2.bf16.msra.mxu1 %v19083_v32  ;;  %v19101_v32 = vld [vmem:[#allocation188_spill] sm:$0xff] }
 0x623   :  { %7430 = vmatprep.subr.bf16.mxu1 %v19084_v43  ;;  %7456 = vmatpush1.bf16.msra.mxu0 %v19085_v28  ;;  %v19102_v28 = vld [vmem:[#allocation189_spill] sm:$0xff] }
 0x624   :  { %7457 = vmatprep.subr.bf16.mxu0 %v19086_v25 }
 0x626   :  { %7431 = vmatpush2.bf16.msra.mxu1 %v19087_v23  ;;  %v19103_v23 = vld [vmem:[#allocation190_spill] sm:$0xff] }
 0x627   :  { %7432 = vmatprep.subr.bf16.mxu1 %v19088_v17  ;;  %7458 = vmatpush1.bf16.msra.mxu0 %v19089_v45  ;;  %v19104_v45 = vld [vmem:[#allocation191_spill] sm:$0xff] }
 0x628   :  { %7459 = vmatprep.subr.bf16.mxu0 %v19090_v24 }
 0x62a   :  { %7433 = vmatpush2.bf16.msra.mxu1 %v19091_v39 }
 0x62b   :  { %7434 = vmatprep.subr.bf16.mxu1 %v19092_v7  ;;  %7460 = vmatpush1.bf16.msra.mxu0 %v19093_v36 }
 0x62c   :  { %7461 = vmatprep.subr.bf16.mxu0 %v19094_v57 }
 0x62e   :  { %7435 = vmatpush2.bf16.msra.mxu1 %v19095_v37  ;;  %v19117_v37 = vld [vmem:[#allocation204_spill] sm:$0xff] }
 0x62f   :  { %7436 = vmatprep.subr.bf16.mxu1 %v19096_v22  ;;  %7462 = vmatpush1.bf16.msra.mxu0 %v19097_v61  ;;  %v19118_v22 = vld [vmem:[#allocation205_spill] sm:$0xff]  ;;  %v19119_v61 = vld [vmem:[#allocation206_spill] sm:$0xff] }
 0x630   :  { %7463 = vmatprep.subr.bf16.mxu0 %v19098_v55  ;;  %v19120_v55 = vld [vmem:[#allocation207_spill] sm:$0xff] }
 0x632   :  { %7437 = vmatpush2.bf16.msra.mxu1 %v19099_v11  ;;  %v19121_v11 = vld [vmem:[#allocation208_spill] sm:$0xff] }
 0x633   :  { %7488 = vmatprep.subr.bf16.mxu1 %v19100_v30  ;;  %7464 = vmatpush2.bf16.msra.mxu0 %v19101_v32  ;;  %v19122_v30 = vld [vmem:[#allocation209_spill] sm:$0xff]  ;;  %v19123_v32 = vld [vmem:[#allocation210_spill] sm:$0xff] }
 0x634   :  { %7465 = vmatprep.subr.bf16.mxu0 %v19102_v28  ;;  %v19125_v28 = vld [vmem:[#allocation212_spill] sm:$0xff] }
 0x635   :  { %v7172_v43 = vpop.f32.mrf.mxu1  ;;  %7439 = vmatmul.mubr.bf16.vlgmr.msra.gmra.mxu1 %v14036_v46 }
 0x636   :  { %v7173_v25 = vadd.f32 %v7172_v43, %v7132_v47  ;;  %7489 = vmatpush1.bf16.msra.mxu1 %v19103_v23  ;;  %7520 = vmatprep.mubr.bf16.mxu1 %v16406_v34  ;;  %v19124_v43 = vld [vmem:[#allocation211_spill] sm:$0xff]  ;;  %v19127_v23 = vld [vmem:[#allocation214_spill] sm:$0xff] }
 0x637   :  { %v7174_v17 = vpop.f32.mrf.mxu1  ;;  %7490 = vmatprep.subr.bf16.mxu1 %v19104_v45  ;;  %7466 = vmatpush2.bf16.msra.mxu0 %v14450_v44  ;;  %v19105_v44 = vld [vmem:[#allocation192_spill] sm:$0xff]  ;;  %v19128_v45 = vld [vmem:[#allocation215_spill] sm:$0xff] }
 0x638   :  { %v7181_v24 = vmax.f32 %v16067_v59, %v7173_v25  ;;  %v7175_v39 = vadd.f32 %v7174_v17, %v7134_v38  ;;  %7467 = vmatprep.subr.bf16.mxu0 %v14460_v1  ;;  %v19106_v1 = vld [vmem:[#allocation193_spill] sm:$0xff]  ;;  %v19107_v38 = vld [vmem:[#allocation194_spill] sm:$0xff] }
 0x639   :  { %v7176_v7 = vpop.f32.mrf.mxu1  ;;  %v19126_v25 = vld [vmem:[#allocation213_spill] sm:$0xff] }
 0x63a   :  { %v16571_v36 = vmax.f32 %v7179_v50, %v7181_v24  ;;  %v7182_v47 = vmax.f32 %v16083_v54, %v7175_v39  ;;  %7491 = vmatpush1.bf16.msra.mxu1 %v14465_v33  ;;  %v19110_v54 = vld [vmem:[#allocation197_spill] sm:$0xff]  ;;  %v19111_v33 = vld [vmem:[#allocation198_spill] sm:$0xff]  ;;  %v19113_v50 = vld [vmem:[#allocation200_spill] sm:$0xff] }
 0x63b   :  { %v7177_v57 = vpop.f32.mrf.mxu1  ;;  %7492 = vmatprep.subr.bf16.mxu1 %v14474_v58  ;;  %7468 = vmatpush2.bf16.msra.mxu0 %v19105_v44  ;;  %v19112_v58 = vld [vmem:[#allocation199_spill] sm:$0xff]  ;;  %v19129_v24 = vld [vmem:[#allocation216_spill] sm:$0xff]  ;;  %v19130_v7 = vld [vmem:[#allocation217_spill] sm:$0xff] }
 0x63c   :  { %v16579_v59 = vmax.f32 %v7180_v21, %v7182_v47  ;;  %7469 = vmatprep.subr.bf16.mxu0 %v19106_v1  ;;  %v19116_v21 = vld [vmem:[#allocation203_spill] sm:$0xff]  ;;  %v19131_v47 = vld [vmem:[#allocation218_spill] sm:$0xff]  ;;  %v19133_v1 = vld [vmem:[#allocation220_spill] sm:$0xff] }
 0x63d   :  { %v19132_v44 = vld [vmem:[#allocation219_spill] sm:$0xff] }
 0x63e   :  { %7493 = vmatpush1.bf16.msra.mxu1 %v19107_v38 }
 0x63f   :  { %7494 = vmatprep.subr.bf16.mxu1 %v19108_v49  ;;  %7470 = vmatpush2.bf16.msra.mxu0 %v19109_v56  ;;  %v19134_v49 = vld [vmem:[#allocation221_spill] sm:$0xff]  ;;  %v19135_v56 = vld [vmem:[#allocation222_spill] sm:$0xff] }
 0x640   :  { %7471 = vmatprep.subr.bf16.mxu0 %v19110_v54  ;;  %v19136_v54 = vld [vmem:[#allocation223_spill] sm:$0xff] }
 0x642   :  { %7495 = vmatpush1.bf16.msra.mxu1 %v19111_v33  ;;  %v19137_v33 = vld [vmem:[#allocation224_spill] sm:$0xff] }
 0x643   :  { %7496 = vmatprep.subr.bf16.mxu1 %v19112_v58  ;;  %7472 = vmatpush2.bf16.msra.mxu0 %v19113_v50  ;;  %v19138_v58 = vld [vmem:[#allocation225_spill] sm:$0xff]  ;;  %v19139_v50 = vld [vmem:[#allocation226_spill] sm:$0xff] }
 0x644   :  { %7473 = vmatprep.subr.bf16.mxu0 %v19114_v16  ;;  %v19140_v16 = vld [vmem:[#allocation227_spill] sm:$0xff] }
 0x646   :  { %7497 = vmatpush1.bf16.msra.mxu1 %v19115_v41  ;;  %v19141_v41 = vld [vmem:[#allocation228_spill] sm:$0xff] }
 0x647   :  { %7498 = vmatprep.subr.bf16.mxu1 %v19116_v21  ;;  %7474 = vmatpush2.bf16.msra.mxu0 %v19117_v37  ;;  %v19142_v21 = vld [vmem:[#allocation229_spill] sm:$0xff]  ;;  %v19143_v37 = vld [vmem:[#allocation230_spill] sm:$0xff] }
 0x648   :  { %7475 = vmatprep.subr.bf16.mxu0 %v19118_v22  ;;  %v19144_v22 = vld [vmem:[#allocation231_spill] sm:$0xff] }
 0x64a   :  { %7499 = vmatpush1.bf16.msra.mxu1 %v19119_v61  ;;  %v19145_v61 = vld [vmem:[#allocation232_spill] sm:$0xff] }
 0x64b   :  { %7500 = vmatprep.subr.bf16.mxu1 %v19120_v55  ;;  %7476 = vmatpush2.bf16.msra.mxu0 %v19121_v11  ;;  %v19146_v55 = vld [vmem:[#allocation233_spill] sm:$0xff]  ;;  %v19147_v11 = vld [vmem:[#allocation234_spill] sm:$0xff] }
 0x64c   :  { %7477 = vmatprep.subr.bf16.mxu0 %v19122_v30  ;;  %v19148_v30 = vld [vmem:[#allocation235_spill] sm:$0xff] }
 0x64e   :  { %7501 = vmatpush1.bf16.msra.mxu1 %v19123_v32  ;;  %v19149_v32 = vld [vmem:[#allocation236_spill] sm:$0xff] }
 0x64f   :  { %7502 = vmatprep.subr.bf16.mxu1 %v19124_v43  ;;  %7478 = vmatpush2.bf16.msra.mxu0 %v19125_v28  ;;  %v19150_v43 = vld [vmem:[#allocation237_spill] sm:$0xff]  ;;  %v19151_v28 = vld [vmem:[#allocation238_spill] sm:$0xff] }
 0x650   :  { %7529 = vmatprep.subr.bf16.mxu0 %v19126_v25  ;;  %v19152_v25 = vld [vmem:[#allocation239_spill] sm:$0xff] }
 0x652   :  { %7503 = vmatpush1.bf16.msra.mxu1 %v19127_v23  ;;  %v7235_v17 = vpop.f32.mrf.mxu0  ;;  %7480 = vmatmul.mubr.bf16.vlgmr.msra.gmra.mxu0 %v16448_v63  ;;  %v19153_v23 = vld [vmem:[#allocation240_spill] sm:$0xff] }
 0x653   :  { %7504 = vmatprep.subr.bf16.mxu1 %v19128_v45  ;;  %7530 = vmatpush1.bf16.msra.mxu0 %v19129_v24  ;;  %v19154_v45 = vld [vmem:[#allocation241_spill] sm:$0xff]  ;;  %v19155_v24 = vld [vmem:[#allocation242_spill] sm:$0xff] }
 0x654   :  { %7561 = vmatprep.mubr.bf16.mxu0 %v13399_v35  ;;  %v7237_v39 = vpop.f32.mrf.mxu0  ;;  %7531 = vmatprep.subr.bf16.mxu0 %v19130_v7  ;;  %v19156_v7 = vld [vmem:[#allocation243_spill] sm:$0xff] }
 0x656   :  { %7505 = vmatpush2.bf16.msra.mxu1 %v19131_v47  ;;  %v7239_v57 = vpop.f32.mrf.mxu0  ;;  %v19157_v47 = vld [vmem:[#allocation244_spill] sm:$0xff] }
 0x657   :  { %7506 = vmatprep.subr.bf16.mxu1 %v19132_v44  ;;  %7532 = vmatpush1.bf16.msra.mxu0 %v19133_v1  ;;  %v19158_v57 = vld [vmem:[#allocation245_spill] sm:$0xff]  ;;  %v19159_v44 = vld [vmem:[#allocation246_spill] sm:$0xff]  ;;  %v19160_v1 = vld [vmem:[#allocation247_spill] sm:$0xff] }
 0x658   :  { %v7240_v38 = vpop.f32.mrf.mxu0  ;;  %7533 = vmatprep.subr.bf16.mxu0 %v19134_v49 }
 0x659   :  { %v19161_v38 = vld [vmem:[#allocation248_spill] sm:$0xff] }
 0x65a   :  { %7507 = vmatpush2.bf16.msra.mxu1 %v19135_v56  ;;  %v19162_v56 = vld [vmem:[#allocation249_spill] sm:$0xff] }
 0x65b   :  { %7508 = vmatprep.subr.bf16.mxu1 %v19136_v54  ;;  %7534 = vmatpush1.bf16.msra.mxu0 %v19137_v33  ;;  %v19163_v33 = vld [vmem:[#allocation250_spill] sm:$0xff] }
 0x65c   :  { %7535 = vmatprep.subr.bf16.mxu0 %v19138_v58 }
 0x65e   :  { %7509 = vmatpush2.bf16.msra.mxu1 %v19139_v50  ;;  %v19164_v50 = vld [vmem:[#allocation251_spill] sm:$0xff] }
 0x65f   :  { %7510 = vmatprep.subr.bf16.mxu1 %v19140_v16  ;;  %7536 = vmatpush1.bf16.msra.mxu0 %v19141_v41  ;;  %v19165_v41 = vld [vmem:[#allocation252_spill] sm:$0xff] }
 0x660   :  { %7537 = vmatprep.subr.bf16.mxu0 %v19142_v21 }
 0x662   :  { %7511 = vmatpush2.bf16.msra.mxu1 %v19143_v37  ;;  %v19166_v37 = vld [vmem:[#allocation253_spill] sm:$0xff] }
 0x663   :  { %7512 = vmatprep.subr.bf16.mxu1 %v19144_v22  ;;  %7538 = vmatpush1.bf16.msra.mxu0 %v19145_v61  ;;  %v19167_v22 = vld [vmem:[#allocation254_spill] sm:$0xff] }
 0x664   :  { %7539 = vmatprep.subr.bf16.mxu0 %v19146_v55  ;;  %v19168_v55 = vld [vmem:[#allocation255_spill] sm:$0xff] }
 0x666   :  { %7513 = vmatpush2.bf16.msra.mxu1 %v19147_v11  ;;  %v19169_v11 = vld [vmem:[#allocation256_spill] sm:$0xff] }
 0x667   :  { %7514 = vmatprep.subr.bf16.mxu1 %v19148_v30  ;;  %7540 = vmatpush1.bf16.msra.mxu0 %v19149_v32  ;;  %v19171_v30 = vld [vmem:[#allocation258_spill] sm:$0xff]  ;;  %v19172_v32 = vld [vmem:[#allocation259_spill] sm:$0xff] }
 0x668   :  { %7541 = vmatprep.subr.bf16.mxu0 %v19150_v43  ;;  %v19173_v43 = vld [vmem:[#allocation260_spill] sm:$0xff] }
 0x66a   :  { %7515 = vmatpush2.bf16.msra.mxu1 %v19151_v28  ;;  %v19175_v28 = vld [vmem:[#allocation262_spill] sm:$0xff] }
 0x66b   :  { %7516 = vmatprep.subr.bf16.mxu1 %v19152_v25  ;;  %7542 = vmatpush1.bf16.msra.mxu0 %v19153_v23  ;;  %v19176_v25 = vld [vmem:[#allocation263_spill] sm:$0xff]  ;;  %v19177_v23 = vld [vmem:[#allocation264_spill] sm:$0xff] }
 0x66c   :  { %7543 = vmatprep.subr.bf16.mxu0 %v19154_v45  ;;  %v19178_v45 = vld [vmem:[#allocation265_spill] sm:$0xff] }
 0x66e   :  { %7517 = vmatpush2.bf16.msra.mxu1 %v19155_v24  ;;  %v19179_v24 = vld [vmem:[#allocation266_spill] sm:$0xff] }
 0x66f   :  { %7518 = vmatprep.subr.bf16.mxu1 %v19156_v7  ;;  %7544 = vmatpush1.bf16.msra.mxu0 %v19157_v47  ;;  %v19180_v7 = vld [vmem:[#allocation267_spill] sm:$0xff]  ;;  %v19181_v47 = vld [vmem:[#allocation268_spill] sm:$0xff] }
 0x670   :  { %7545 = vmatprep.subr.bf16.mxu0 %v19158_v57  ;;  %v19182_v57 = vld [vmem:[#allocation269_spill] sm:$0xff] }
 0x672   :  { %7519 = vmatpush2.bf16.msra.mxu1 %v19159_v44  ;;  %v19183_v44 = vld [vmem:[#allocation270_spill] sm:$0xff] }
 0x673   :  { %7570 = vmatprep.subr.bf16.mxu1 %v19160_v1  ;;  %7546 = vmatpush2.bf16.msra.mxu0 %v19161_v38  ;;  %v19184_v1 = vld [vmem:[#allocation271_spill] sm:$0xff]  ;;  %v19185_v38 = vld [vmem:[#allocation272_spill] sm:$0xff] }
 0x674   :  { %7547 = vmatprep.subr.bf16.mxu0 %v19162_v56  ;;  %v19187_v56 = vld [vmem:[#allocation274_spill] sm:$0xff] }
 0x675   :  { %v7276_v49 = vpop.f32.mrf.mxu1  ;;  %7521 = vmatmul.mubr.bf16.vlgmr.msra.gmra.mxu1 %v16488_v60 }
 0x676   :  { %v7277_v54 = vadd.f32 %v7276_v49, %v7235_v17  ;;  %7571 = vmatpush1.bf16.msra.mxu1 %v19163_v33  ;;  %7602 = vmatprep.mubr.bf16.mxu1 %v13623_v2  ;;  %v19170_v17 = vld [vmem:[#allocation257_spill] sm:$0xff]  ;;  %v19188_v33 = vld [vmem:[#allocation275_spill] sm:$0xff] }
 0x677   :  { %v7278_v58 = vpop.f32.mrf.mxu1  ;;  %7572 = vmatprep.subr.bf16.mxu1 %v19164_v50  ;;  %7548 = vmatpush2.bf16.msra.mxu0 %v19165_v41  ;;  %v19186_v49 = vld [vmem:[#allocation273_spill] sm:$0xff]  ;;  %v19191_v41 = vld [vmem:[#allocation278_spill] sm:$0xff] }
 0x678   :  { %v7279_v16 = vadd.f32 %v7278_v58, %v7237_v39  ;;  %7549 = vmatprep.subr.bf16.mxu0 %v19166_v37  ;;  %v19174_v39 = vld [vmem:[#allocation261_spill] sm:$0xff]  ;;  %v19189_v58 = vld [vmem:[#allocation276_spill] sm:$0xff]  ;;  %v19192_v37 = vld [vmem:[#allocation279_spill] sm:$0xff] }
 0x679   :  { %v7280_v21 = vpop.f32.mrf.mxu1  ;;  %v19190_v50 = vld [vmem:[#allocation277_spill] sm:$0xff] }
 0x67a   :  { %7573 = vmatpush1.bf16.msra.mxu1 %v19167_v22 }
 0x67b   :  { %v7281_v61 = vpop.f32.mrf.mxu1  ;;  %7574 = vmatprep.subr.bf16.mxu1 %v19168_v55  ;;  %7550 = vmatpush2.bf16.msra.mxu0 %v19169_v11  ;;  %v19194_v11 = vld [vmem:[#allocation281_spill] sm:$0xff] }
 0x67c   :  { %7551 = vmatprep.subr.bf16.mxu0 %v19170_v17  ;;  %v19193_v61 = vld [vmem:[#allocation280_spill] sm:$0xff]  ;;  %v19195_v17 = vld [vmem:[#allocation282_spill] sm:$0xff] }
 0x67e   :  { %7575 = vmatpush1.bf16.msra.mxu1 %v19171_v30 }
 0x67f   :  { %7576 = vmatprep.subr.bf16.mxu1 %v19172_v32  ;;  %7552 = vmatpush2.bf16.msra.mxu0 %v19173_v43  ;;  %v19196_v43 = vld [vmem:[#allocation283_spill] sm:$0xff] }
 0x680   :  { %7553 = vmatprep.subr.bf16.mxu0 %v19174_v39  ;;  %v19197_v39 = vld [vmem:[#allocation284_spill] sm:$0xff] }
 0x682   :  { %7577 = vmatpush1.bf16.msra.mxu1 %v19175_v28 }
 0x683   :  { %7578 = vmatprep.subr.bf16.mxu1 %v19176_v25  ;;  %7554 = vmatpush2.bf16.msra.mxu0 %v19177_v23  ;;  %v19198_v25 = vld [vmem:[#allocation285_spill] sm:$0xff]  ;;  %v19199_v23 = vld [vmem:[#allocation286_spill] sm:$0xff] }
 0x684   :  { %7555 = vmatprep.subr.bf16.mxu0 %v19178_v45  ;;  %v19201_v45 = vld [vmem:[#allocation288_spill] sm:$0xff] }
 0x686   :  { %7579 = vmatpush1.bf16.msra.mxu1 %v19179_v24  ;;  %v19202_v24 = vld [vmem:[#allocation289_spill] sm:$0xff] }
 0x687   :  { %7580 = vmatprep.subr.bf16.mxu1 %v19180_v7  ;;  %7556 = vmatpush2.bf16.msra.mxu0 %v19181_v47  ;;  %v19203_v7 = vld [vmem:[#allocation290_spill] sm:$0xff]  ;;  %v19204_v47 = vld [vmem:[#allocation291_spill] sm:$0xff] }
 0x688   :  { %7557 = vmatprep.subr.bf16.mxu0 %v19182_v57  ;;  %v19206_v57 = vld [vmem:[#allocation293_spill] sm:$0xff] }
 0x68a   :  { %7581 = vmatpush1.bf16.msra.mxu1 %v19183_v44  ;;  %v19207_v44 = vld [vmem:[#allocation294_spill] sm:$0xff] }
 0x68b   :  { %7582 = vmatprep.subr.bf16.mxu1 %v19184_v1  ;;  %7558 = vmatpush2.bf16.msra.mxu0 %v19185_v38  ;;  %v19208_v1 = vld [vmem:[#allocation295_spill] sm:$0xff]  ;;  %v19209_v38 = vld [vmem:[#allocation296_spill] sm:$0xff] }
 0x68c   :  { %7559 = vmatprep.subr.bf16.mxu0 %v19186_v49  ;;  %v19210_v49 = vld [vmem:[#allocation297_spill] sm:$0xff] }
 0x68e   :  { %7583 = vmatpush1.bf16.msra.mxu1 %v19187_v56  ;;  %v19211_v56 = vld [vmem:[#allocation298_spill] sm:$0xff] }
 0x68f   :  { %7584 = vmatprep.subr.bf16.mxu1 %v19188_v33  ;;  %7560 = vmatpush2.bf16.msra.mxu0 %v19189_v58  ;;  %v19212_v33 = vld [vmem:[#allocation299_spill] sm:$0xff]  ;;  %v19213_v58 = vld [vmem:[#allocation300_spill] sm:$0xff] }
 0x690   :  { %7611 = vmatprep.subr.bf16.mxu0 %v19190_v50  ;;  %v19214_v50 = vld [vmem:[#allocation301_spill] sm:$0xff] }
 0x692   :  { %7585 = vmatpush1.bf16.msra.mxu1 %v19191_v41  ;;  %v7317_v21 = vpop.f32.mrf.mxu0  ;;  %7562 = vmatmul.mubr.bf16.vlgmr.msra.gmra.mxu0 %v13816_v53  ;;  %v19215_v41 = vld [vmem:[#allocation302_spill] sm:$0xff] }
 0x693   :  { %7586 = vmatprep.subr.bf16.mxu1 %v19192_v37  ;;  %v7318_v22 = vadd.f32 %v7317_v21, %v7277_v54  ;;  %7612 = vmatpush1.bf16.msra.mxu0 %v19193_v61  ;;  %v19200_v54 = vld [vmem:[#allocation287_spill] sm:$0xff]  ;;  %v19217_v37 = vld [vmem:[#allocation304_spill] sm:$0xff]  ;;  %v19218_v61 = vld [vmem:[#allocation305_spill] sm:$0xff] }
 0x694   :  { %7643 = vmatprep.mubr.bf16.mxu0 %v16366_v12  ;;  %v7319_v55 = vpop.f32.mrf.mxu0  ;;  %7613 = vmatprep.subr.bf16.mxu0 %v19194_v11  ;;  %v19216_v21 = vld [vmem:[#allocation303_spill] sm:$0xff] }
 0x695   :  { %v7320_v30 = vadd.f32 %v7319_v55, %v7279_v16  ;;  %v19205_v16 = vld [vmem:[#allocation292_spill] sm:$0xff]  ;;  %v19219_v55 = vld [vmem:[#allocation306_spill] sm:$0xff]  ;;  %v19220_v11 = vld [vmem:[#allocation307_spill] sm:$0xff] }
 0x696   :  { %7587 = vmatpush2.bf16.msra.mxu1 %v19195_v17  ;;  %v7321_v32 = vpop.f32.mrf.mxu0  ;;  %v19221_v17 = vld [vmem:[#allocation308_spill] sm:$0xff] }
 0x697   :  { %7588 = vmatprep.subr.bf16.mxu1 %v19196_v43  ;;  %7614 = vmatpush1.bf16.msra.mxu0 %v19197_v39  ;;  %v19222_v32 = vld [vmem:[#allocation309_spill] sm:$0xff]  ;;  %v19223_v43 = vld [vmem:[#allocation310_spill] sm:$0xff]  ;;  %v19224_v39 = vld [vmem:[#allocation311_spill] sm:$0xff] }
 0x698   :  { %v7322_v28 = vpop.f32.mrf.mxu0  ;;  %7615 = vmatprep.subr.bf16.mxu0 %v19198_v25 }
 0x699   :  { %v19225_v28 = vld [vmem:[#allocation312_spill] sm:$0xff] }
 0x69a   :  { %7589 = vmatpush2.bf16.msra.mxu1 %v19199_v23  ;;  %v19226_v23 = vld [vmem:[#allocation313_spill] sm:$0xff] }
 0x69b   :  { %7590 = vmatprep.subr.bf16.mxu1 %v19200_v54  ;;  %7616 = vmatpush1.bf16.msra.mxu0 %v19201_v45  ;;  %v19227_v45 = vld [vmem:[#allocation314_spill] sm:$0xff] }
 0x69c   :  { %7617 = vmatprep.subr.bf16.mxu0 %v19202_v24 }
 0x69e   :  { %7591 = vmatpush2.bf16.msra.mxu1 %v19203_v7  ;;  %v19228_v7 = vld [vmem:[#allocation315_spill] sm:$0xff] }
 0x69f   :  { %7592 = vmatprep.subr.bf16.mxu1 %v19204_v47  ;;  %7618 = vmatpush1.bf16.msra.mxu0 %v19205_v16  ;;  %v19229_v16 = vld [vmem:[#allocation316_spill] sm:$0xff] }
 0x6a0   :  { %7619 = vmatprep.subr.bf16.mxu0 %v19206_v57 }
 0x6a2   :  { %7593 = vmatpush2.bf16.msra.mxu1 %v19207_v44  ;;  %v19230_v44 = vld [vmem:[#allocation317_spill] sm:$0xff] }
 0x6a3   :  { %7594 = vmatprep.subr.bf16.mxu1 %v19208_v1  ;;  %7620 = vmatpush1.bf16.msra.mxu0 %v19209_v38  ;;  %v19231_v1 = vld [vmem:[#allocation318_spill] sm:$0xff] }
 0x6a4   :  { %7621 = vmatprep.subr.bf16.mxu0 %v19210_v49  ;;  %v19232_v49 = vld [vmem:[#allocation319_spill] sm:$0xff] }
 0x6a6   :  { %7595 = vmatpush2.bf16.msra.mxu1 %v19211_v56  ;;  %v19234_v56 = vld [vmem:[#allocation321_spill] sm:$0xff] }
 0x6a7   :  { %7596 = vmatprep.subr.bf16.mxu1 %v19212_v33  ;;  %7622 = vmatpush1.bf16.msra.mxu0 %v19213_v58  ;;  %v19235_v33 = vld [vmem:[#allocation322_spill] sm:$0xff]  ;;  %v19236_v58 = vld [vmem:[#allocation323_spill] sm:$0xff] }
 0x6a8   :  { %7623 = vmatprep.subr.bf16.mxu0 %v19214_v50  ;;  %v19238_v50 = vld [vmem:[#allocation325_spill] sm:$0xff] }
 0x6aa   :  { %7597 = vmatpush2.bf16.msra.mxu1 %v19215_v41  ;;  %v19239_v41 = vld [vmem:[#allocation326_spill] sm:$0xff] }
 0x6ab   :  { %7598 = vmatprep.subr.bf16.mxu1 %v19216_v21  ;;  %7624 = vmatpush1.bf16.msra.mxu0 %v19217_v37  ;;  %v19240_v21 = vld [vmem:[#allocation327_spill] sm:$0xff]  ;;  %v19241_v37 = vld [vmem:[#allocation328_spill] sm:$0xff] }
 0x6ac   :  { %7625 = vmatprep.subr.bf16.mxu0 %v19218_v61  ;;  %v19242_v61 = vld [vmem:[#allocation329_spill] sm:$0xff] }
 0x6ae   :  { %7599 = vmatpush2.bf16.msra.mxu1 %v19219_v55  ;;  %v19243_v55 = vld [vmem:[#allocation330_spill] sm:$0xff] }
 0x6af   :  { %7600 = vmatprep.subr.bf16.mxu1 %v19220_v11  ;;  %7626 = vmatpush1.bf16.msra.mxu0 %v19221_v17  ;;  %v19244_v11 = vld [vmem:[#allocation331_spill] sm:$0xff]  ;;  %v19245_v17 = vld [vmem:[#allocation332_spill] sm:$0xff] }
 0x6b0   :  { %7627 = vmatprep.subr.bf16.mxu0 %v19222_v32  ;;  %v19246_v32 = vld [vmem:[#allocation333_spill] sm:$0xff] }
 0x6b2   :  { %7601 = vmatpush2.bf16.msra.mxu1 %v19223_v43  ;;  %v19247_v43 = vld [vmem:[#allocation334_spill] sm:$0xff] }
 0x6b3   :  { %7652 = vmatprep.subr.bf16.mxu1 %v19224_v39  ;;  %7628 = vmatpush2.bf16.msra.mxu0 %v19225_v28  ;;  %v19248_v39 = vld [vmem:[#allocation335_spill] sm:$0xff]  ;;  %v19249_v28 = vld [vmem:[#allocation336_spill] sm:$0xff] }
 0x6b4   :  { %7629 = vmatprep.subr.bf16.mxu0 %v19226_v23  ;;  %v19251_v23 = vld [vmem:[#allocation338_spill] sm:$0xff] }
 0x6b5   :  { %v7358_v25 = vpop.f32.mrf.mxu1  ;;  %7603 = vmatmul.mubr.bf16.vlgmr.msra.gmra.mxu1 %v14036_v46 }
 0x6b6   :  { %v16710_v54 = vadd.f32 %v7358_v25, %v7318_v22  ;;  %7653 = vmatpush1.bf16.msra.mxu1 %v19227_v45  ;;  %7684 = vmatprep.mubr.bf16.mxu1 %v16406_v34  ;;  %v19233_v22 = vld [vmem:[#allocation320_spill] sm:$0xff]  ;;  %v19250_v25 = vld [vmem:[#allocation337_spill] sm:$0xff]  ;;  %v19252_v45 = vld [vmem:[#allocation339_spill] sm:$0xff] }
 0x6b7   :  { %v7360_v24 = vpop.f32.mrf.mxu1  ;;  %7654 = vmatprep.subr.bf16.mxu1 %v19228_v7  ;;  %7630 = vmatpush2.bf16.msra.mxu0 %v19229_v16  ;;  %v19254_v7 = vld [vmem:[#allocation341_spill] sm:$0xff]  ;;  %v19255_v16 = vld [vmem:[#allocation342_spill] sm:$0xff] }
 0x6b8   :  { %v16715_v47 = vadd.f32 %v7360_v24, %v7320_v30  ;;  %7631 = vmatprep.subr.bf16.mxu0 %v19230_v44  ;;  %v19237_v30 = vld [vmem:[#allocation324_spill] sm:$0xff]  ;;  %v19256_v44 = vld [vmem:[#allocation343_spill] sm:$0xff] }
 0x6b9   :  { %v7362_v57 = vpop.f32.mrf.mxu1  ;;  %v19253_v24 = vld [vmem:[#allocation340_spill] sm:$0xff] }
 0x6ba   :  { %7655 = vmatpush1.bf16.msra.mxu1 %v19231_v1  ;;  %v19257_v1 = vld [vmem:[#allocation344_spill] sm:$0xff] }
 0x6bb   :  { %v7363_v38 = vpop.f32.mrf.mxu1  ;;  %7656 = vmatprep.subr.bf16.mxu1 %v19232_v49  ;;  %7632 = vmatpush2.bf16.msra.mxu0 %v19233_v22  ;;  %v19258_v49 = vld [vmem:[#allocation345_spill] sm:$0xff]  ;;  %v19259_v22 = vld [vmem:[#allocation346_spill] sm:$0xff] }
 0x6bc   :  { %7633 = vmatprep.subr.bf16.mxu0 %v19234_v56 }
 0x6be   :  { %7657 = vmatpush1.bf16.msra.mxu1 %v19235_v33  ;;  %v19260_v33 = vld [vmem:[#allocation347_spill] sm:$0xff] }
 0x6bf   :  { %7658 = vmatprep.subr.bf16.mxu1 %v19236_v58  ;;  %7634 = vmatpush2.bf16.msra.mxu0 %v19237_v30  ;;  %v19261_v58 = vld [vmem:[#allocation348_spill] sm:$0xff] }
 0x6c0   :  { %7635 = vmatprep.subr.bf16.mxu0 %v19238_v50  ;;  %v19262_v50 = vld [vmem:[#allocation349_spill] sm:$0xff] }
 0x6c2   :  { %7659 = vmatpush1.bf16.msra.mxu1 %v19239_v41  ;;  %v19263_v41 = vld [vmem:[#allocation350_spill] sm:$0xff] }
 0x6c3   :  { %7660 = vmatprep.subr.bf16.mxu1 %v19240_v21  ;;  %7636 = vmatpush2.bf16.msra.mxu0 %v19241_v37  ;;  %v19264_v21 = vld [vmem:[#allocation351_spill] sm:$0xff]  ;;  %v19265_v37 = vld [vmem:[#allocation352_spill] sm:$0xff] }
 0x6c4   :  { %7637 = vmatprep.subr.bf16.mxu0 %v19242_v61  ;;  %v19267_v61 = vld [vmem:[#allocation354_spill] sm:$0xff] }
 0x6c6   :  { %7661 = vmatpush1.bf16.msra.mxu1 %v19243_v55  ;;  %v19268_v55 = vld [vmem:[#allocation355_spill] sm:$0xff] }
 0x6c7   :  { %7662 = vmatprep.subr.bf16.mxu1 %v19244_v11  ;;  %7638 = vmatpush2.bf16.msra.mxu0 %v19245_v17  ;;  %v19269_v11 = vld [vmem:[#allocation356_spill] sm:$0xff]  ;;  %v19270_v17 = vld [vmem:[#allocation357_spill] sm:$0xff] }
 0x6c8   :  { %7639 = vmatprep.subr.bf16.mxu0 %v19246_v32  ;;  %v19271_v32 = vld [vmem:[#allocation358_spill] sm:$0xff] }
 0x6ca   :  { %7663 = vmatpush1.bf16.msra.mxu1 %v19247_v43  ;;  %v19272_v43 = vld [vmem:[#allocation359_spill] sm:$0xff] }
 0x6cb   :  { %7664 = vmatprep.subr.bf16.mxu1 %v19248_v39  ;;  %7640 = vmatpush2.bf16.msra.mxu0 %v19249_v28  ;;  %v19273_v39 = vld [vmem:[#allocation360_spill] sm:$0xff]  ;;  %v19274_v28 = vld [vmem:[#allocation361_spill] sm:$0xff] }
 0x6cc   :  { %7641 = vmatprep.subr.bf16.mxu0 %v19250_v25  ;;  %v19275_v25 = vld [vmem:[#allocation362_spill] sm:$0xff] }
 0x6ce   :  { %7665 = vmatpush1.bf16.msra.mxu1 %v19251_v23  ;;  %v19276_v23 = vld [vmem:[#allocation363_spill] sm:$0xff] }
 0x6cf   :  { %7666 = vmatprep.subr.bf16.mxu1 %v19252_v45  ;;  %7642 = vmatpush2.bf16.msra.mxu0 %v19253_v24  ;;  %v19277_v45 = vld [vmem:[#allocation364_spill] sm:$0xff]  ;;  %v19278_v24 = vld [vmem:[#allocation365_spill] sm:$0xff] }
 0x6d0   :  { %7693 = vmatprep.subr.bf16.mxu0 %v19254_v7  ;;  %v19279_v7 = vld [vmem:[#allocation366_spill] sm:$0xff] }
 0x6d2   :  { %7667 = vmatpush1.bf16.msra.mxu1 %v19255_v16  ;;  %v7399_v57 = vpop.f32.mrf.mxu0  ;;  %7644 = vmatmul.mubr.bf16.vlgmr.msra.gmra.mxu0 %v16448_v63  ;;  %v19280_v16 = vld [vmem:[#allocation367_spill] sm:$0xff] }
 0x6d3   :  { %7668 = vmatprep.subr.bf16.mxu1 %v19256_v44  ;;  %7694 = vmatpush1.bf16.msra.mxu0 %v19257_v1  ;;  %v19281_v44 = vld [vmem:[#allocation368_spill] sm:$0xff]  ;;  %v19282_v1 = vld [vmem:[#allocation369_spill] sm:$0xff] }
 0x6d4   :  { %7725 = vmatprep.mubr.bf16.mxu0 %v13399_v35  ;;  %v7401_v38 = vpop.f32.mrf.mxu0  ;;  %7695 = vmatprep.subr.bf16.mxu0 %v19258_v49  ;;  %v19266_v35 = vld [vmem:[#allocation353_spill] sm:$0xff]  ;;  %v19283_v49 = vld [vmem:[#allocation370_spill] sm:$0xff] }
 0x6d6   :  { %7669 = vmatpush2.bf16.msra.mxu1 %v19259_v22  ;;  %v7403_v56 = vpop.f32.mrf.mxu0  ;;  %v19284_v22 = vld [vmem:[#allocation371_spill] sm:$0xff] }
 0x6d7   :  { %7670 = vmatprep.subr.bf16.mxu1 %v19260_v33  ;;  %7696 = vmatpush1.bf16.msra.mxu0 %v19261_v58  ;;  %v19285_v56 = vld [vmem:[#allocation372_spill] sm:$0xff]  ;;  %v19286_v33 = vld [vmem:[#allocation373_spill] sm:$0xff]  ;;  %v19287_v58 = vld [vmem:[#allocation374_spill] sm:$0xff] }
 0x6d8   :  { %v7404_v30 = vpop.f32.mrf.mxu0  ;;  %7697 = vmatprep.subr.bf16.mxu0 %v19262_v50  ;;  %v19289_v50 = vld [vmem:[#allocation376_spill] sm:$0xff] }
 0x6d9   :  { %v19288_v30 = vld [vmem:[#allocation375_spill] sm:$0xff] }
 0x6da   :  { %7671 = vmatpush2.bf16.msra.mxu1 %v19263_v41 }
 0x6db   :  { %7672 = vmatprep.subr.bf16.mxu1 %v19264_v21  ;;  %7698 = vmatpush1.bf16.msra.mxu0 %v19265_v37  ;;  %v19290_v21 = vld [vmem:[#allocation377_spill] sm:$0xff] }
 0x6dc   :  { %7699 = vmatprep.subr.bf16.mxu0 %v19266_v35 }
 0x6de   :  { %7673 = vmatpush2.bf16.msra.mxu1 %v19267_v61  ;;  %v19291_v61 = vld [vmem:[#allocation378_spill] sm:$0xff] }
 0x6df   :  { %7674 = vmatprep.subr.bf16.mxu1 %v19268_v55  ;;  %7700 = vmatpush1.bf16.msra.mxu0 %v19269_v11 }
 0x6e0   :  { %7701 = vmatprep.subr.bf16.mxu0 %v19270_v17  ;;  %v19292_v17 = vld [vmem:[#allocation379_spill] sm:$0xff] }
 0x6e2   :  { %7675 = vmatpush2.bf16.msra.mxu1 %v19271_v32  ;;  %v19293_v32 = vld [vmem:[#allocation380_spill] sm:$0xff] }
 0x6e3   :  { %7676 = vmatprep.subr.bf16.mxu1 %v19272_v43  ;;  %7702 = vmatpush1.bf16.msra.mxu0 %v19273_v39  ;;  %v19294_v39 = vld [vmem:[#allocation381_spill] sm:$0xff] }
 0x6e4   :  { %7703 = vmatprep.subr.bf16.mxu0 %v19274_v28  ;;  %v19295_v28 = vld [vmem:[#allocation382_spill] sm:$0xff] }
 0x6e6   :  { %7677 = vmatpush2.bf16.msra.mxu1 %v19275_v25  ;;  %v19299_v25 = vld [vmem:[#allocation386_spill] sm:$0xff] }
 0x6e7   :  { %7678 = vmatprep.subr.bf16.mxu1 %v19276_v23  ;;  %7704 = vmatpush1.bf16.msra.mxu0 %v19277_v45  ;;  %v19302_v23 = vld [vmem:[#allocation389_spill] sm:$0xff]  ;;  %v19303_v45 = vld [vmem:[#allocation390_spill] sm:$0xff] }
 0x6e8   :  { %7705 = vmatprep.subr.bf16.mxu0 %v19278_v24  ;;  %v19304_v24 = vld [vmem:[#allocation391_spill] sm:$0xff] }
 0x6ea   :  { %7679 = vmatpush2.bf16.msra.mxu1 %v19279_v7  ;;  %v19305_v7 = vld [vmem:[#allocation392_spill] sm:$0xff] }
 0x6eb   :  { %7680 = vmatprep.subr.bf16.mxu1 %v19280_v16  ;;  %7706 = vmatpush1.bf16.msra.mxu0 %v19281_v44  ;;  %v19306_v16 = vld [vmem:[#allocation393_spill] sm:$0xff]  ;;  %v19307_v44 = vld [vmem:[#allocation394_spill] sm:$0xff] }
 0x6ec   :  { %7707 = vmatprep.subr.bf16.mxu0 %v19282_v1  ;;  %v19308_v1 = vld [vmem:[#allocation395_spill] sm:$0xff] }
 0x6ee   :  { %7681 = vmatpush2.bf16.msra.mxu1 %v19283_v49  ;;  %v19309_v49 = vld [vmem:[#allocation396_spill] sm:$0xff] }
 0x6ef   :  { %7682 = vmatprep.subr.bf16.mxu1 %v19284_v22  ;;  %7708 = vmatpush1.bf16.msra.mxu0 %v19285_v56  ;;  %v19310_v22 = vld [vmem:[#allocation397_spill] sm:$0xff]  ;;  %v19311_v56 = vld [vmem:[#allocation398_spill] sm:$0xff] }
 0x6f0   :  { %7709 = vmatprep.subr.bf16.mxu0 %v19286_v33  ;;  %v19312_v33 = vld [vmem:[#allocation399_spill] sm:$0xff] }
 0x6f2   :  { %7683 = vmatpush2.bf16.msra.mxu1 %v19287_v58  ;;  %v19313_v58 = vld [vmem:[#allocation400_spill] sm:$0xff] }
 0x6f3   :  { %7734 = vmatprep.subr.bf16.mxu1 %v19288_v30  ;;  %7710 = vmatpush2.bf16.msra.mxu0 %v19289_v50  ;;  %v19314_v30 = vld [vmem:[#allocation401_spill] sm:$0xff]  ;;  %v19315_v50 = vld [vmem:[#allocation402_spill] sm:$0xff] }
 0x6f4   :  { %7711 = vmatprep.subr.bf16.mxu0 %v19290_v21  ;;  %v19317_v21 = vld [vmem:[#allocation404_spill] sm:$0xff] }
 0x6f5   :  { %v7440_v41 = vpop.f32.mrf.mxu1  ;;  %7685 = vmatmul.mubr.bf16.vlgmr.msra.gmra.mxu1 %v16488_v60 }
 0x6f6   :  { %v7441_v37 = vadd.f32 %v7440_v41, %v7399_v57  ;;  %7735 = vmatpush1.bf16.msra.mxu1 %v15642_v8  ;;  %7766 = vmatprep.mubr.bf16.mxu1 %v13623_v2  ;;  %v19296_v57 = vld [vmem:[#allocation383_spill] sm:$0xff]  ;;  %v19297_v8 = vld [vmem:[#allocation384_spill] sm:$0xff]  ;;  %v19298_v2 = vld [vmem:[#allocation385_spill] sm:$0xff] }
 0x6f7   :  { %v7442_v35 = vpop.f32.mrf.mxu1  ;;  %7736 = vmatprep.subr.bf16.mxu1 %v19291_v61  ;;  %7712 = vmatpush2.bf16.msra.mxu0 %v15654_v48  ;;  %v19301_v48 = vld [vmem:[#allocation388_spill] sm:$0xff]  ;;  %v19316_v41 = vld [vmem:[#allocation403_spill] sm:$0xff]  ;;  %v19318_v61 = vld [vmem:[#allocation405_spill] sm:$0xff] }
 0x6f8   :  { %v7443_v55 = vadd.f32 %v7442_v35, %v7401_v38  ;;  %7713 = vmatprep.subr.bf16.mxu0 %v19292_v17  ;;  %v19300_v38 = vld [vmem:[#allocation387_spill] sm:$0xff]  ;;  %v19319_v17 = vld [vmem:[#allocation406_spill] sm:$0xff] }
 0x6f9   :  { %v7444_v11 = vpop.f32.mrf.mxu1 }
 0x6fa   :  { %7737 = vmatpush1.bf16.msra.mxu1 %v19293_v32 }
 0x6fb   :  { %v7445_v43 = vpop.f32.mrf.mxu1  ;;  %7738 = vmatprep.subr.bf16.mxu1 %v19294_v39  ;;  %7714 = vmatpush2.bf16.msra.mxu0 %v19295_v28  ;;  %v19321_v39 = vld [vmem:[#allocation408_spill] sm:$0xff] }
 0x6fc   :  { %7715 = vmatprep.subr.bf16.mxu0 %v19296_v57  ;;  %v19320_v43 = vld [vmem:[#allocation407_spill] sm:$0xff] }
 0x6fe   :  { %7739 = vmatpush1.bf16.msra.mxu1 %v19297_v8  ;;  %v19322_v8 = vld [vmem:[#allocation409_spill] sm:$0xff] }
 0x6ff   :  { %7740 = vmatprep.subr.bf16.mxu1 %v19298_v2  ;;  %7716 = vmatpush2.bf16.msra.mxu0 %v19299_v25  ;;  %v19324_v25 = vld [vmem:[#allocation411_spill] sm:$0xff] }
 0x700   :  { %7717 = vmatprep.subr.bf16.mxu0 %v19300_v38  ;;  %v19326_v38 = vld [vmem:[#allocation413_spill] sm:$0xff] }
 0x702   :  { %7741 = vmatpush1.bf16.msra.mxu1 %v19301_v48  ;;  %v19328_v48 = vld [vmem:[#allocation415_spill] sm:$0xff] }
 0x703   :  { %7742 = vmatprep.subr.bf16.mxu1 %v19302_v23  ;;  %7718 = vmatpush2.bf16.msra.mxu0 %v19303_v45  ;;  %v19329_v23 = vld [vmem:[#allocation416_spill] sm:$0xff]  ;;  %v19332_v45 = vld [vmem:[#allocation419_spill] sm:$0xff] }
 0x704   :  { %7719 = vmatprep.subr.bf16.mxu0 %v19304_v24  ;;  %v19333_v24 = vld [vmem:[#allocation420_spill] sm:$0xff] }
 0x706   :  { %7743 = vmatpush1.bf16.msra.mxu1 %v19305_v7  ;;  %v19334_v7 = vld [vmem:[#allocation421_spill] sm:$0xff] }
 0x707   :  { %7744 = vmatprep.subr.bf16.mxu1 %v19306_v16  ;;  %7720 = vmatpush2.bf16.msra.mxu0 %v19307_v44  ;;  %v19335_v16 = vld [vmem:[#allocation422_spill] sm:$0xff]  ;;  %v19336_v44 = vld [vmem:[#allocation423_spill] sm:$0xff] }
 0x708   :  { %7721 = vmatprep.subr.bf16.mxu0 %v19308_v1  ;;  %v19337_v1 = vld [vmem:[#allocation424_spill] sm:$0xff] }
 0x70a   :  { %7745 = vmatpush1.bf16.msra.mxu1 %v19309_v49  ;;  %v19338_v49 = vld [vmem:[#allocation425_spill] sm:$0xff] }
 0x70b   :  { %7746 = vmatprep.subr.bf16.mxu1 %v19310_v22  ;;  %7722 = vmatpush2.bf16.msra.mxu0 %v19311_v56  ;;  %v19339_v22 = vld [vmem:[#allocation426_spill] sm:$0xff]  ;;  %v19340_v56 = vld [vmem:[#allocation427_spill] sm:$0xff] }
 0x70c   :  { %7723 = vmatprep.subr.bf16.mxu0 %v19312_v33  ;;  %v19341_v33 = vld [vmem:[#allocation428_spill] sm:$0xff] }
 0x70e   :  { %7747 = vmatpush1.bf16.msra.mxu1 %v19313_v58  ;;  %v19342_v58 = vld [vmem:[#allocation429_spill] sm:$0xff] }
 0x70f   :  { %7748 = vmatprep.subr.bf16.mxu1 %v19314_v30  ;;  %7724 = vmatpush2.bf16.msra.mxu0 %v19315_v50  ;;  %v19343_v30 = vld [vmem:[#allocation430_spill] sm:$0xff]  ;;  %v19344_v50 = vld [vmem:[#allocation431_spill] sm:$0xff] }
 0x710   :  { %7775 = vmatprep.subr.bf16.mxu0 %v19316_v41  ;;  %v19345_v41 = vld [vmem:[#allocation432_spill] sm:$0xff] }
 0x712   :  { %7749 = vmatpush1.bf16.msra.mxu1 %v19317_v21  ;;  %v7481_v35 = vpop.f32.mrf.mxu0  ;;  %7726 = vmatmul.mubr.bf16.vlgmr.msra.gmra.mxu0 %v13816_v53  ;;  %v19323_v53 = vld [vmem:[#allocation410_spill] sm:$0xff]  ;;  %v19346_v21 = vld [vmem:[#allocation433_spill] sm:$0xff] }
 0x713   :  { %7750 = vmatprep.subr.bf16.mxu1 %v19318_v61  ;;  %v7482_v11 = vadd.f32 %v7481_v35, %v7441_v37  ;;  %7776 = vmatpush1.bf16.msra.mxu0 %v19319_v17  ;;  %v19325_v37 = vld [vmem:[#allocation412_spill] sm:$0xff]  ;;  %v19347_v35 = vld [vmem:[#allocation434_spill] sm:$0xff]  ;;  %v19348_v61 = vld [vmem:[#allocation435_spill] sm:$0xff] }
 0x714   :  { %7807 = vmatprep.mubr.bf16.mxu0 %v16366_v12  ;;  %v7483_v32 = vpop.f32.mrf.mxu0  ;;  %7777 = vmatprep.subr.bf16.mxu0 %v19320_v43  ;;  %v19327_v12 = vld [vmem:[#allocation414_spill] sm:$0xff]  ;;  %v19349_v17 = vld [vmem:[#allocation436_spill] sm:$0xff] }
 0x715   :  { %v7484_v28 = vadd.f32 %v7483_v32, %v7443_v55  ;;  %v19330_v55 = vld [vmem:[#allocation417_spill] sm:$0xff] }
 0x716   :  { %7751 = vmatpush2.bf16.msra.mxu1 %v19321_v39  ;;  %v7485_v57 = vpop.f32.mrf.mxu0  ;;  %v19350_v32 = vld [vmem:[#allocation437_spill] sm:$0xff]  ;;  %v19351_v39 = vld [vmem:[#allocation438_spill] sm:$0xff] }
 0x717   :  { %7752 = vmatprep.subr.bf16.mxu1 %v15852_v15  ;;  %7778 = vmatpush1.bf16.msra.mxu0 %v19322_v8  ;;  %v19331_v15 = vld [vmem:[#allocation418_spill] sm:$0xff]  ;;  %v19352_v8 = vld [vmem:[#allocation439_spill] sm:$0xff] }
 0x718   :  { %v7486_v2 = vpop.f32.mrf.mxu0  ;;  %7779 = vmatprep.subr.bf16.mxu0 %v19323_v53  ;;  %v19353_v53 = vld [vmem:[#allocation440_spill] sm:$0xff] }
 0x71a   :  { %7753 = vmatpush2.bf16.msra.mxu1 %v19324_v25 }
 0x71b   :  { %7754 = vmatprep.subr.bf16.mxu1 %v19325_v37  ;;  %7780 = vmatpush1.bf16.msra.mxu0 %v19326_v38  ;;  %v19354_v38 = vld [vmem:[#allocation441_spill] sm:$0xff] }
 0x71c   :  { %7781 = vmatprep.subr.bf16.mxu0 %v19327_v12  ;;  %v19355_v12 = vld [vmem:[#allocation442_spill] sm:$0xff] }
 0x71e   :  { %7755 = vmatpush2.bf16.msra.mxu1 %v19328_v48  ;;  %v19357_v48 = vld [vmem:[#allocation444_spill] sm:$0xff] }
 0x71f   :  { %7756 = vmatprep.subr.bf16.mxu1 %v19329_v23  ;;  %7782 = vmatpush1.bf16.msra.mxu0 %v19330_v55  ;;  %v19359_v23 = vld [vmem:[#allocation446_spill] sm:$0xff]  ;;  %v19361_v55 = vld [vmem:[#allocation448_spill] sm:$0xff] }
 0x720   :  { %7783 = vmatprep.subr.bf16.mxu0 %v19331_v15  ;;  %v19363_v15 = vld [vmem:[#allocation450_spill] sm:$0xff] }
 0x722   :  { %7757 = vmatpush2.bf16.msra.mxu1 %v19332_v45  ;;  %v19364_v45 = vld [vmem:[#allocation451_spill] sm:$0xff] }
 0x723   :  { %7758 = vmatprep.subr.bf16.mxu1 %v19333_v24  ;;  %7784 = vmatpush1.bf16.msra.mxu0 %v19334_v7  ;;  %v19365_v24 = vld [vmem:[#allocation452_spill] sm:$0xff]  ;;  %v19367_v7 = vld [vmem:[#allocation454_spill] sm:$0xff] }
 0x724   :  { %7785 = vmatprep.subr.bf16.mxu0 %v19335_v16  ;;  %v19368_v16 = vld [vmem:[#allocation455_spill] sm:$0xff] }
 0x726   :  { %7759 = vmatpush2.bf16.msra.mxu1 %v19336_v44  ;;  %v16877_v44 = vld [vmem:[%s17217_s4] sm:$0x3] }
 0x727   :  { %7760 = vmatprep.subr.bf16.mxu1 %v19337_v1  ;;  %7786 = vmatpush1.bf16.msra.mxu0 %v19338_v49  ;;  %v19369_v1 = vld [vmem:[#allocation456_spill] sm:$0xff]  ;;  %v19370_v49 = vld [vmem:[#allocation159_spill] sm:$0xff] }
 0x728   :  { %7787 = vmatprep.subr.bf16.mxu0 %v19339_v22  ;;  %v19371_v22 = vsub.s32 1, %v19370_v49 }
 0x72a   :  { %7761 = vmatpush2.bf16.msra.mxu1 %v19340_v56  ;;  %v16884_v56 = vrot.slane %v16877_v44, %v19371_v22 }
 0x72b   :  { %7762 = vmatprep.subr.bf16.mxu1 %v19341_v33  ;;  %7788 = vmatpush1.bf16.msra.mxu0 %v19342_v58  ;;  %v19372_v33 = vld [vmem:[#allocation457_spill] sm:$0xff] }
 0x72c   :  { %7789 = vmatprep.subr.bf16.mxu0 %v19343_v30  ;;  %v7898_v58 = vld [vmem:[%s17218_s5 + $0xf8] sm:$0xff]  ;;  %v19373_v30 = vld [vmem:[#allocation458_spill] sm:$0xff] }
 0x72e   :  { %7763 = vmatpush2.bf16.msra.mxu1 %v19344_v50  ;;  %v19374_v50 = vld [vmem:[#allocation459_spill] sm:$0xff] }
 0x72f   :  { %7764 = vmatprep.subr.bf16.mxu1 %v19345_v41  ;;  %7790 = vmatpush1.bf16.msra.mxu0 %v19346_v21  ;;  %v7897_v41 = vld [vmem:[%s17218_s5 + $0xf0] sm:$0xff] }
 0x730   :  { %7791 = vmatprep.subr.bf16.mxu0 %v19347_v35  ;;  %v7881_v35 = vld [vmem:[%s17218_s5 + $0x70] sm:$0xff] }
 0x732   :  { %7765 = vmatpush2.bf16.msra.mxu1 %v19348_v61  ;;  %v7896_v61 = vld [vmem:[%s17218_s5 + $0xe8] sm:$0xff] }
 0x733   :  { %7816 = vmatprep.subr.bf16.mxu1 %v19349_v17  ;;  %7792 = vmatpush2.bf16.msra.mxu0 %v19350_v32  ;;  %v7880_v32 = vld [vmem:[%s17218_s5 + $0x68] sm:$0xff] }
 0x734   :  { %7793 = vmatprep.subr.bf16.mxu0 %v19351_v39  ;;  %v7879_v39 = vld [vmem:[%s17218_s5 + $0x60] sm:$0xff] }
 0x735   :  { %v7522_v43 = vpop.f32.mrf.mxu1  ;;  %7767 = vmatmul.mubr.bf16.vlgmr.msra.gmra.mxu1 %v14036_v46 }
 0x736   :  { %v16850_v57 = vadd.f32 %v7522_v43, %v7482_v11  ;;  %7817 = vmatpush1.bf16.msra.mxu1 %v19352_v8  ;;  %7848 = vmatprep.mubr.bf16.mxu1 %v16406_v34  ;;  %v19356_v11 = vld [vmem:[#allocation443_spill] sm:$0xff]  ;;  %v19358_v34 = vld [vmem:[#allocation445_spill] sm:$0xff] }
 0x737   :  { %v7524_v2 = vpop.f32.mrf.mxu1  ;;  %7818 = vmatprep.subr.bf16.mxu1 %v19353_v53  ;;  %7794 = vmatpush2.bf16.msra.mxu0 %v16054_v27  ;;  %v19362_v27 = vld [vmem:[#allocation449_spill] sm:$0xff]  ;;  %v7877_v53 = vld [vmem:[%s17218_s5 + $0x50] sm:$0xff] }
 0x738   :  { %v16855_v25 = vadd.f32 %v7524_v2, %v7484_v28  ;;  %7795 = vmatprep.subr.bf16.mxu0 %v19354_v38  ;;  %v19360_v28 = vld [vmem:[#allocation447_spill] sm:$0xff]  ;;  %v7894_v8 = vld [vmem:[%s17218_s5 + $0xd8] sm:$0xff]  ;;  %v7875_v38 = vld [vmem:[%s17218_s5 + $0x40] sm:$0xff] }
 0x739   :  { %v7526_v37 = vpop.f32.mrf.mxu1 }
 0x73a   :  { %7819 = vmatpush1.bf16.msra.mxu1 %v19355_v12  ;;  %v7892_v37 = vld [vmem:[%s17218_s5 + $0xc8] sm:$0xff]  ;;  %v7890_v12 = vld [vmem:[%s17218_s5 + $0xb8] sm:$0xff] }
 0x73b   :  { %v7527_v46 = vpop.f32.mrf.mxu1  ;;  %7820 = vmatprep.subr.bf16.mxu1 %v16080_v40  ;;  %7796 = vmatpush2.bf16.msra.mxu0 %v19356_v11  ;;  %v19366_v40 = vld [vmem:[#allocation453_spill] sm:$0xff]  ;;  %v7888_v11 = vld [vmem:[%s17218_s5 + $0xa8] sm:$0xff] }
 0x73c   :  { %7797 = vmatprep.subr.bf16.mxu0 %v19357_v48  ;;  %v7873_v46 = vld [vmem:[%s17218_s5 + $0x30] sm:$0xff]  ;;  %v7871_v48 = vld [vmem:[%s17218_s5 + $0x20] sm:$0xff] }
 0x73e   :  { %7821 = vmatpush1.bf16.msra.mxu1 %v19358_v34  ;;  %v7886_v34 = vld [vmem:[%s17218_s5 + $0x98] sm:$0xff] }
 0x73f   :  { %7822 = vmatprep.subr.bf16.mxu1 %v19359_v23  ;;  %7798 = vmatpush2.bf16.msra.mxu0 %v19360_v28  ;;  %v19377_v23 = vsub.s32 0, %v19370_v49  ;;  %v7885_v28 = vld [vmem:[%s17218_s5 + $0x90] sm:$0xff] }
 0x740   :  { %7799 = vmatprep.subr.bf16.mxu0 %v19361_v55  ;;  %v7869_v55 = vld [vmem:[%s17218_s5 + $0x10] sm:$0xff] }
 0x742   :  { %7823 = vmatpush1.bf16.msra.mxu1 %v19362_v27  ;;  %v7884_v27 = vld [vmem:[%s17218_s5 + $0x88] sm:$0xff] }
 0x743   :  { %7824 = vmatprep.subr.bf16.mxu1 %v19363_v15  ;;  %7800 = vmatpush2.bf16.msra.mxu0 %v19364_v45  ;;  %v7868_v15 = vld [vmem:[%s17218_s5 + $0x8] sm:$0xff]  ;;  %v7867_v45 = vld [vmem:[%s17218_s5] sm:$0xff] }
 0x744   :  { %7801 = vmatprep.subr.bf16.mxu0 %v19365_v24 }
 0x746   :  { %7825 = vmatpush1.bf16.msra.mxu1 %v19366_v40 }
 0x747   :  { %7826 = vmatprep.subr.bf16.mxu1 %v19367_v7  ;;  %7802 = vmatpush2.bf16.msra.mxu0 %v19368_v16 }
 0x748   :  { %7803 = vmatprep.subr.bf16.mxu0 %v19369_v1 }
 0x74a   :  { %7827 = vmatpush1.bf16.msra.mxu1 %v16170_v51  ;;  %v7198_v51 = vadd.f32 %v16884_v56, %v16579_v59  ;;  %v19376_v59 = vld [vmem:[#allocation461_spill] sm:$0xff] }
 0x74b   :  { %7828 = vmatprep.subr.bf16.mxu1 %v16179_v0  ;;  %7804 = vmatpush2.bf16.msra.mxu0 %v16182_v26  ;;  %v7882_v0 = vld [vmem:[%s17218_s5 + $0x78] sm:$0xff]  ;;  %v19375_v26 = vld [vmem:[#allocation460_spill] sm:$0xff] }
 0x74c   :  { %7805 = vmatprep.subr.bf16.mxu0 %v16191_v52  ;;  %v7200_v52 = vmax.f32 %v7198_v51, 0.0  ;;  %v7929_v51 = vld [vmem:[%s17218_s5 + $0x1f0] sm:$0xff] }
 0x74e   :  { %7829 = vmatpush1.bf16.msra.mxu1 %v19372_v33 }
 0x74f   :  { %7830 = vmatprep.subr.bf16.mxu1 %v19373_v30  ;;  %7806 = vmatpush2.bf16.msra.mxu0 %v19374_v50  ;;  %v7913_v30 = vld [vmem:[%s17218_s5 + $0x170] sm:$0xff]  ;;  %v7928_v50 = vld [vmem:[%s17218_s5 + $0x1e8] sm:$0xff] }
 0x750   :  { %8988 = vmatprep.subr.mxu0 %v7898_v58 }
 0x752   :  { %7831 = vmatpush1.bf16.msra.mxu1 %v19375_v26  ;;  %v16904_v21 = vpop.f32.mrf.mxu0  ;;  %7808 = vmatmul.mubr.bf16.vlgmr.msra.gmra.mxu0 %v16448_v63  ;;  %v7895_v63 = vld [vmem:[%s17218_s5 + $0xe0] sm:$0xff] }
 0x753   :  { %7832 = vmatprep.subr.bf16.mxu1 %v19376_v59  ;;  %8989 = vmatpush3.msra.mxu0 %v7882_v0  ;;  %v7912_v0 = vld [vmem:[%s17218_s5 + $0x168] sm:$0xff]  ;;  %v7927_v26 = vld [vmem:[%s17218_s5 + $0x1e0] sm:$0xff]  ;;  %v7925_v59 = vld [vmem:[%s17218_s5 + $0x1d0] sm:$0xff] }
 0x754   :  { %8002 = vmatprep.mubr.f32.mxu0 %v7200_v52  ;;  %v16914_v17 = vpop.f32.mrf.mxu0  ;;  %8990 = vmatprep.subr.mxu0 %v7897_v41  ;;  %v7911_v52 = vld [vmem:[%s17218_s5 + $0x160] sm:$0xff]  ;;  %v7926_v41 = vld [vmem:[%s17218_s5 + $0x1d8] sm:$0xff] }
 0x755   :  { %8991 = vmatpush3.msra.mxu0 %v7881_v35  ;;  %v7909_v35 = vld [vmem:[%s17218_s5 + $0x150] sm:$0xff] }
 0x756   :  { %7833 = vmatpush2.bf16.msra.mxu1 %v16224_v10  ;;  %v7567_v43 = vpop.f32.mrf.mxu0  ;;  %8992 = vmatprep.subr.mxu0 %v7896_v61  ;;  %v7878_v10 = vld [vmem:[%s17218_s5 + $0x58] sm:$0xff]  ;;  %v7924_v61 = vld [vmem:[%s17218_s5 + $0x1c8] sm:$0xff] }
 0x757   :  { %7834 = vmatprep.subr.bf16.mxu1 %v16230_v18  ;;  %8993 = vmatpush3.msra.mxu0 %v7880_v32  ;;  %v7893_v18 = vld [vmem:[%s17218_s5 + $0xd0] sm:$0xff]  ;;  %v7923_v32 = vld [vmem:[%s17218_s5 + $0x1c0] sm:$0xff]  ;;  %v7922_v43 = vld [vmem:[%s17218_s5 + $0x1b8] sm:$0xff] }
 0x758   :  { %v7568_v2 = vpop.f32.mrf.mxu0  ;;  %8994 = vmatprep.subr.mxu0 %v7895_v63  ;;  %v7907_v63 = vld [vmem:[%s17218_s5 + $0x140] sm:$0xff] }
 0x759   :  { %8995 = vmatpush3.msra.mxu0 %v7879_v39  ;;  %v7906_v39 = vld [vmem:[%s17218_s5 + $0x138] sm:$0xff] }
 0x75a   :  { %7835 = vmatpush2.bf16.msra.mxu1 %v16244_v14  ;;  %8996 = vmatprep.subr.mxu0 %v7894_v8  ;;  %v7876_v14 = vld [vmem:[%s17218_s5 + $0x48] sm:$0xff]  ;;  %v7921_v8 = vld [vmem:[%s17218_s5 + $0x1b0] sm:$0xff] }
 0x75b   :  { %7836 = vmatprep.subr.bf16.mxu1 %v16247_v20  ;;  %8997 = vmatpush3.msra.mxu0 %v7878_v10  ;;  %v7891_v20 = vld [vmem:[%s17218_s5 + $0xc0] sm:$0xff]  ;;  %v7905_v10 = vld [vmem:[%s17218_s5 + $0x130] sm:$0xff] }
 0x75c   :  { %8998 = vmatprep.subr.mxu0 %v7893_v18 }
 0x75d   :  { %8999 = vmatpush3.msra.mxu0 %v7877_v53  ;;  %v7920_v53 = vld [vmem:[%s17218_s5 + $0x1a8] sm:$0xff] }
 0x75e   :  { %7837 = vmatpush2.bf16.msra.mxu1 %v16258_v13  ;;  %9000 = vmatprep.subr.mxu0 %v7892_v37  ;;  %v7874_v13 = vld [vmem:[%s17218_s5 + $0x38] sm:$0xff] }
 0x75f   :  { %7838 = vmatprep.subr.bf16.mxu1 %v16261_v42  ;;  %9001 = vmatpush3.msra.mxu0 %v7876_v14  ;;  %v7889_v42 = vld [vmem:[%s17218_s5 + $0xb0] sm:$0xff]  ;;  %v7904_v14 = vld [vmem:[%s17218_s5 + $0x128] sm:$0xff] }
 0x760   :  { %9002 = vmatprep.subr.mxu0 %v7891_v20 }
 0x761   :  { %9003 = vmatpush3.msra.mxu0 %v7875_v38 }
 0x762   :  { %7839 = vmatpush2.bf16.msra.mxu1 %v16272_v9  ;;  %9004 = vmatprep.subr.mxu0 %v7890_v12  ;;  %v7872_v9 = vld [vmem:[%s17218_s5 + $0x28] sm:$0xff]  ;;  %v7919_v12 = vld [vmem:[%s17218_s5 + $0x1a0] sm:$0xff] }
 0x763   :  { %7840 = vmatprep.subr.bf16.mxu1 %v16275_v6  ;;  %9005 = vmatpush3.msra.mxu0 %v7874_v13  ;;  %v7887_v6 = vld [vmem:[%s17218_s5 + $0xa0] sm:$0xff] }
 0x764   :  { %9006 = vmatprep.subr.mxu0 %v7889_v42  ;;  %v7903_v42 = vld [vmem:[%s17218_s5 + $0x120] sm:$0xff] }
 0x765   :  { %9007 = vmatpush3.msra.mxu0 %v7873_v46 }
 0x766   :  { %7841 = vmatpush2.bf16.msra.mxu1 %v16286_v3  ;;  %9008 = vmatprep.subr.mxu0 %v7888_v11  ;;  %v16989_v3 = vrot.slane %v16877_v44, %v19377_v23  ;;  %v7918_v11 = vld [vmem:[%s17218_s5 + $0x198] sm:$0xff]  ;;  %v7916_v23 = vld [vmem:[%s17218_s5 + $0x188] sm:$0xff] }
 0x767   :  { %7842 = vmatprep.subr.bf16.mxu1 %v16289_v31  ;;  %9009 = vmatpush3.msra.mxu0 %v7872_v9  ;;  %v7870_v31 = vld [vmem:[%s17218_s5 + $0x18] sm:$0xff] }
 0x768   :  { %9010 = vmatprep.subr.mxu0 %v7887_v6  ;;  %v7902_v6 = vld [vmem:[%s17218_s5 + $0x118] sm:$0xff] }
 0x769   :  { %9011 = vmatpush3.msra.mxu0 %v7871_v48  ;;  %v7917_v48 = vld [vmem:[%s17218_s5 + $0x190] sm:$0xff] }
 0x76a   :  { %7843 = vmatpush2.bf16.msra.mxu1 %v16300_v62  ;;  %9012 = vmatprep.subr.mxu0 %v7886_v34  ;;  %v7197_v62 = vadd.f32 %v16989_v3, %v16571_v36  ;;  %v7901_v34 = vld [vmem:[%s17218_s5 + $0x110] sm:$0xff] }
 0x76b   :  { %7844 = vmatprep.subr.bf16.mxu1 %v16303_v5  ;;  %9013 = vmatpush3.msra.mxu0 %v7870_v31  ;;  %v7883_v5 = vld [vmem:[%s17218_s5 + $0x80] sm:$0xff]  ;;  %v7900_v31 = vld [vmem:[%s17218_s5 + $0x108] sm:$0xff] }
 0x76c   :  { %9014 = vmatprep.subr.mxu0 %v7885_v28  ;;  %v7199_v36 = vmax.f32 %v7197_v62, 0.0  ;;  %v7915_v28 = vld [vmem:[%s17218_s5 + $0x180] sm:$0xff]  ;;  %v8094_v62 = vld [vmem:[%s17219_s7 + $0x78] sm:$0xff] }
 0x76d   :  { %9015 = vmatpush3.msra.mxu0 %v7869_v55  ;;  %v7899_v55 = vld [vmem:[%s17218_s5 + $0x100] sm:$0xff] }
 0x76e   :  { %7845 = vmatpush2.bf16.msra.mxu1 %v16314_v4  ;;  %9016 = vmatprep.subr.mxu0 %v7884_v27  ;;  %v9727_v27 = vmov 0.0  }
 0x76f   :  { %7846 = vmatprep.subr.bf16.mxu1 %v16317_v19  ;;  %9017 = vmatpush3.msra.mxu0 %v7868_v15  ;;  %v8093_v15 = vld [vmem:[%s17219_s7 + $0x70] sm:$0xff] }
 0x770   :  { %9018 = vmatprep.subr.mxu0 %v7883_v5  ;;  %v8092_v5 = vld [vmem:[%s17219_s7 + $0x68] sm:$0xff] }
 0x771   :  { %9019 = vmatpush3.msra.mxu0 %v7867_v45  ;;  %v8091_v45 = vld [vmem:[%s17219_s7 + $0x60] sm:$0xff] }
 0x772   :  { %7847 = vmatpush2.bf16.msra.mxu1 %v16322_v29  ;;  %8003 = vmatmul.mubr.f32.vlgmr.msra.gmra.mxu0 %v7199_v36  ;;  %v7930_v29 = vld [vmem:[%s17218_s5 + $0x1f8] sm:$0xff] }
 0x773   :  { %9023 = vmatprep.subr.mxu1 %v7930_v29  ;;  %9075 = vmatprep.subr.mxu0 %v9727_v27  ;;  %v8090_v36 = vld [vmem:[%s17219_s7 + $0x58] sm:$0xff] }
 0x774   :  { %9076 = vmatpush3.msra.mxu0 %v8094_v62  ;;  %9107 = vmatprep.mubr.msk.f32.mxu0 %vm9728_vm2, %v9727_v27 }
 0x775   :  { %v7604_v4 = vpop.f32.mrf.mxu1  ;;  %7849 = vmatmul.mubr.bf16.vlgmr.msra.gmra.mxu1 %v16488_v60  ;;  %v7914_v60 = vld [vmem:[%s17218_s5 + $0x178] sm:$0xff]  ;;  %9077 = vmatprep.subr.mxu0 %v9727_v27 }
 0x776   :  { %v7605_v24 = vadd.f32 %v7604_v4, %v16904_v21  ;;  %9024 = vmatpush3.msra.mxu1 %v7914_v60  ;;  %v7910_v21 = vld [vmem:[%s17218_s5 + $0x158] sm:$0xff]  ;;  %9078 = vmatpush3.msra.mxu0 %v8093_v15  ;;  %v8089_v4 = vld [vmem:[%s17219_s7 + $0x50] sm:$0xff] }
 0x777   :  { %v7606_v40 = vpop.f32.mrf.mxu1  ;;  %9025 = vmatprep.subr.mxu1 %v7929_v51  ;;  %9079 = vmatprep.subr.mxu0 %v9727_v27 }
 0x778   :  { %v7607_v19 = vadd.f32 %v7606_v40, %v16914_v17  ;;  %9026 = vmatpush3.msra.mxu1 %v7913_v30  ;;  %v7908_v17 = vld [vmem:[%s17218_s5 + $0x148] sm:$0xff]  ;;  %9080 = vmatpush3.msra.mxu0 %v8092_v5  ;;  %v8087_v40 = vld [vmem:[%s17219_s7 + $0x40] sm:$0xff] }
 0x779   :  { %v7608_v7 = vpop.f32.mrf.mxu1  ;;  %9027 = vmatprep.subr.mxu1 %v7928_v50  ;;  %9081 = vmatprep.subr.mxu0 %v9727_v27 }
 0x77a   :  { %9028 = vmatpush3.msra.mxu1 %v7912_v0  ;;  %9082 = vmatpush3.msra.mxu0 %v8091_v45 }
 0x77b   :  { %v7609_v16 = vpop.f32.mrf.mxu1  ;;  %9029 = vmatprep.subr.mxu1 %v7927_v26  ;;  %9083 = vmatprep.subr.mxu0 %v9727_v27 }
 0x77c   :  { %9030 = vmatpush3.msra.mxu1 %v7911_v52  ;;  %9084 = vmatpush3.msra.mxu0 %v8090_v36  ;;  %v8085_v16 = vld [vmem:[%s17219_s7 + $0x30] sm:$0xff] }
 0x77d   :  { %9031 = vmatprep.subr.mxu1 %v7926_v41  ;;  %9085 = vmatprep.subr.mxu0 %v9727_v27 }
 0x77e   :  { %9032 = vmatpush3.msra.mxu1 %v7910_v21  ;;  %9086 = vmatpush3.msra.mxu0 %v8089_v4 }
 0x77f   :  { %9033 = vmatprep.subr.mxu1 %v7925_v59  ;;  %9087 = vmatprep.subr.mxu0 %v9727_v27 }
 0x780   :  { %9034 = vmatpush3.msra.mxu1 %v7909_v35 }
 0x781   :  { %9035 = vmatprep.subr.mxu1 %v7924_v61 }
 0x782   :  { %9036 = vmatpush3.msra.mxu1 %v7908_v17 }
 0x783   :  { %9037 = vmatprep.subr.mxu1 %v7923_v32 }
 0x784   :  { %9038 = vmatpush3.msra.mxu1 %v7907_v63 }
 0x785   :  { %9039 = vmatprep.subr.mxu1 %v7922_v43 }
 0x786   :  { %9040 = vmatpush3.msra.mxu1 %v7906_v39 }
 0x787   :  { %9041 = vmatprep.subr.mxu1 %v7921_v8 }
 0x788   :  { %9042 = vmatpush3.msra.mxu1 %v7905_v10 }
 0x789   :  { %9043 = vmatprep.subr.mxu1 %v7920_v53 }
 0x78a   :  { %9044 = vmatpush3.msra.mxu1 %v7904_v14 }
 0x78b   :  { %9045 = vmatprep.subr.mxu1 %v7919_v12 }
 0x78c   :  { %9046 = vmatpush3.msra.mxu1 %v7903_v42 }
 0x78d   :  { %9047 = vmatprep.subr.mxu1 %v7918_v11 }
 0x78e   :  { %9048 = vmatpush3.msra.mxu1 %v7902_v6  ;;  %v19378_v6 = vlaneseq }
 0x78f   :  { %9049 = vmatprep.subr.mxu1 %v7917_v48 }
 0x790   :  { %9050 = vmatpush3.msra.mxu1 %v7901_v34  ;;  %v8173_v48 = vand.u32 127, %v19378_v6  ;;  %v8987_v34 = vld [vmem:[%s17221_s8] ss:$0 sm:$0xff] }
 0x791   :  { %9051 = vmatprep.subr.mxu1 %v7916_v23 }
 0x792   :  { %v7645_v44 = vpop.f32.mrf.mxu0  ;;  %9052 = vmatpush3.msra.mxu1 %v7900_v31  ;;  %vm8174_vm3 = vcmp.lt.s32.totalorder %v8173_v48, 10 }
 0x793   :  { %v7646_v1 = vadd.f32 %v7645_v44, %v7605_v24  ;;  %9053 = vmatprep.subr.mxu1 %v7915_v28  ;;  %v8088_v24 = vld [vmem:[%s17219_s7 + $0x48] sm:$0xff] }
 0x794   :  { %v7647_v49 = vpop.f32.mrf.mxu0  ;;  %9054 = vmatpush3.msra.mxu1 %v7899_v55  ;;  %9088 = vmatpush3.msra.mxu0 %v8088_v24 }
 0x795   :  { %v7648_v22 = vadd.f32 %v7647_v49, %v7607_v19  ;;  %9089 = vmatprep.subr.mxu0 %v9727_v27  ;;  %v8086_v19 = vld [vmem:[%s17219_s7 + $0x38] sm:$0xff] }
 0x796   :  { %v7649_v33 = vpop.f32.mrf.mxu0  ;;  %9090 = vmatpush3.msra.mxu0 %v8087_v40 }
 0x797   :  { %9091 = vmatprep.subr.mxu0 %v9727_v27 }
 0x798   :  { %v7650_v58 = vpop.f32.mrf.mxu0  ;;  %9092 = vmatpush3.msra.mxu0 %v8086_v19 }
 0x799   :  { %9093 = vmatprep.subr.mxu0 %v9727_v27 }
 0x79a   :  { %9094 = vmatpush3.msra.mxu0 %v8085_v16 }
 0x79b   :  { %9095 = vmatprep.subr.mxu0 %v9727_v27 }
 0x7b5   :  { %v7686_v2 = vpop.f32.mrf.mxu1 }
 0x7b6   :  { %v17082_v18 = vadd.f32 %v7686_v2, %v7646_v1  ;;  %v8084_v1 = vld [vmem:[%s17219_s7 + $0x28] sm:$0xff] }
 0x7b7   :  { %v7688_v37 = vpop.f32.mrf.mxu1  ;;  %9096 = vmatpush3.msra.mxu0 %v8084_v1 }
 0x7b8   :  { %v7857_v20 = vmax.f32 %v16710_v54, %v17082_v18  ;;  %v17092_v38 = vadd.f32 %v7688_v37, %v7648_v22  ;;  %9097 = vmatprep.subr.mxu0 %v9727_v27  ;;  %v8083_v54 = vld [vmem:[%s17219_s7 + $0x20] sm:$0xff] }
 0x7b9   :  { %v7690_v13 = vpop.f32.mrf.mxu1  ;;  %9098 = vmatpush3.msra.mxu0 %v8083_v54 }
 0x7ba   :  { %v7858_v46 = vmax.f32 %v16715_v47, %v17092_v38  ;;  %9099 = vmatprep.subr.mxu0 %v9727_v27  ;;  %v8082_v47 = vld [vmem:[%s17219_s7 + $0x18] sm:$0xff]  ;;  %v8986_v38 = vld [vmem:[%s17220_s6] ss:$0 sm:$0xff] }
 0x7bb   :  { %v7691_v9 = vpop.f32.mrf.mxu1  ;;  %9100 = vmatpush3.msra.mxu0 %v8082_v47 }
 0x7bc   :  { %9101 = vmatprep.subr.mxu0 %v9727_v27 }
 0x7d2   :  { %v7727_v7 = vpop.f32.mrf.mxu0 }
 0x7d4   :  { %v7729_v44 = vpop.f32.mrf.mxu0 }
 0x7d6   :  { %v7731_v49 = vpop.f32.mrf.mxu0 }
 0x7d8   :  { %v7732_v22 = vpop.f32.mrf.mxu0 }
 0x7f5   :  { %v7768_v33 = vpop.f32.mrf.mxu1 }
 0x7f6   :  { %v7769_v26 = vadd.f32 %v7768_v33, %v7727_v7 }
 0x7f7   :  { %v7770_v58 = vpop.f32.mrf.mxu1 }
 0x7f8   :  { %v7771_v52 = vadd.f32 %v7770_v58, %v7729_v44 }
 0x7f9   :  { %v7772_v29 = vpop.f32.mrf.mxu1 }
 0x7fb   :  { %v7773_v60 = vpop.f32.mrf.mxu1 }
 0x812   :  { %v7809_v51 = vpop.f32.mrf.mxu0 }
 0x813   :  { %v7810_v41 = vadd.f32 %v7809_v51, %v7769_v26 }
 0x814   :  { %v7811_v30 = vpop.f32.mrf.mxu0 }
 0x815   :  { %v7812_v59 = vadd.f32 %v7811_v30, %v7771_v52 }
 0x816   :  { %v7813_v50 = vpop.f32.mrf.mxu0 }
 0x818   :  { %v7814_v0 = vpop.f32.mrf.mxu0 }
 0x835   :  { %v7850_v21 = vpop.f32.mrf.mxu1 }
 0x836   :  { %v7851_v35 = vadd.f32 %v7850_v21, %v7810_v41 }
 0x837   :  { %v7852_v61 = vpop.f32.mrf.mxu1 }
 0x838   :  { %v7859_v17 = vmax.f32 %v16850_v57, %v7851_v35  ;;  %v7853_v32 = vadd.f32 %v7852_v61, %v7812_v59  ;;  %v8081_v57 = vld [vmem:[%s17219_s7 + $0x10] sm:$0xff] }
 0x839   :  { %v7854_v63 = vpop.f32.mrf.mxu1  ;;  %9102 = vmatpush3.msra.mxu0 %v8081_v57 }
 0x83a   :  { %v7861_v43 = vmax.f32 %v7857_v20, %v7859_v17  ;;  %v7860_v39 = vmax.f32 %v16855_v25, %v7853_v32  ;;  %9103 = vmatprep.subr.mxu0 %v9727_v27  ;;  %v8080_v25 = vld [vmem:[%s17219_s7 + $0x8] sm:$0xff] }
 0x83b   :  { %v7855_v8 = vpop.f32.mrf.mxu1  ;;  %9104 = vmatpush3.msra.mxu0 %v8080_v25 }
 0x83c   :  { %v7862_v2 = vmax.f32 %v7858_v46, %v7860_v39  ;;  %v7863_v10 = vadd.f32 %v7861_v43, %v16989_v3  ;;  %9105 = vmatprep.subr.mxu0 %v9727_v27  ;;  %v9020_v3 = vpop.f32.mrf.mxu0 }
 0x83e   :  { %v7864_v53 = vadd.f32 %v7862_v2, %v16884_v56  ;;  %v7865_v14 = vmax.f32 %v7863_v10, 0.0  ;;  %v8079_v56 = vld [vmem:[%s17219_s7] sm:$0xff]  ;;  %v9021_v18 = vpop.f32.mrf.mxu0 }
 0x83f   :  { %9106 = vmatpush3.msra.mxu0 %v8079_v56  ;;  %v9022_v20 = vadd.f32 %v9021_v18, %v9020_v3 }
 0x840   :  { %v7866_v37 = vmax.f32 %v7864_v53, 0.0 }
 0x841   :  { %v8005_v42 = vadd.f32 %v9022_v20, %v8986_v38 }
 0x842   :  { %8072 = vmatprep.mubr.f32.mxu1 %v7866_v37 }
 0x843   :  { %8073 = vmatmul.mubr.f32.vlgmr.msra.gmra.mxu1 %v7865_v14 }
 0x903   :  { %v9055_v12 = vpop.f32.mrf.mxu1 }
 0x905   :  { %v9056_v13 = vpop.f32.mrf.mxu1 }
 0x906   :  { %v9057_v46 = vadd.f32 %v9056_v13, %v9055_v12 }
 0x908   :  { %v8075_v11 = vadd.f32 %v9057_v46, %v8005_v42 }
 0x90a   :  { %v8078_v9 = vmax.f32 %v8075_v11, 0.0 }
 0x90c   :  { %9108 = vmatmul.mubr.f32.vlgmr.msra.gmra.mxu0 %v8078_v9 }
 0x9cc   :  { %v8168_v23 = vpop.f32.mrf.mxu0 }
 0x9cd   :  { %v8169_v31 = vadd.f32 %v8987_v34, %v8168_v23 }
 0x9ce   :  { %v9109_v28 = vpop.f32.mrf.mxu0 }
 0x9cf   :  { %v8175_v55 = vsel %vm8174_vm3, %v8169_v31, -inf }
 0x9d0   :  { %8176 = vmax.xlane.f32.xlu0 %v8175_v55 }
 0xa59   :  { %v8177_v27 = vpop.xlane.xlu0 %8176 }
 0xa5a   :  { %v8178_v62 = vsub.f32 %v8175_v55, %v8177_v27 }
 0xa5c   :  { %v8179_v15 = vmul.f32 1.442695, %v8178_v62 }
 0xa5e   :  { %9443 = vpow2.f32 %v8179_v15 }
 0xa6b   :  { %v9444_v5 = vpop.eup %9443 }
 0xa6c   :  { %8181 = vadd.xlane.f32.xlu0 %v9444_v5 }
 0xaf5   :  { %v8182_v45 = vpop.xlane.xlu0 %8181 }
 0xaf6   :  { %9445 = vlog2.f32 %v8182_v45 }
 0xb03   :  { %v9446_v36 = vpop.eup %9445 }
 0xb04   :  { %v8184_v4 = vmul.f32 0.6931472, %v9446_v36 }
 0xb06   :  { %v8185_v24 = vsub.f32 %v8178_v62, %v8184_v4 }
 0xb08   :  { %v8186_v40 = vsel %vm8174_vm3, %v8185_v24, 0.0 }
 0xb09   :  { %8187 = vst [vmem:[%s17222_s9] sm:$0xff] %v8186_v40 }

</bundles_post_ra>
